<compile_context>
chip_gen: v6e
topology: v6e:2x2x1
jax: 0.10.0
libtpu: 0.0.40
codegen_flags: <defaults>
</compile_context>

<pallas_src>
import functools

import numpy as np
import jax
import jax.numpy as jnp
from jax.experimental import pallas as pl
from jax.experimental.pallas import tpu as pltpu

N_FEATURES = 8
NUM_CLASSES = 5
CONV_CH = 100
HIDDEN = 26
GATE_PITCH = 128          # lane-aligned per-gate column stride
BN_EPS = 1e-5


# ----------------------------- the fused kernel -----------------------------

def _net_kernel(x_ref, bn0_ref, cvec_ref, sel1_ref, w1_ref, selp1_ref,
                sel2_ref, w2_ref, selp2_ref,
                wih0_ref, wih12_ref, whh_ref, biasg_ref,
                fcw_ref, fcb_ref, out_ref, *, batch, seq_len):
    B, T, GP = batch, seq_len, GATE_PITCH
    f32, bf16 = jnp.float32, jnp.bfloat16

    bn0 = bn0_ref[...]                                   # (2, C0)  [scale; shift]
    cvec = cvec_ref[...]                                 # (6, CH)  conv biases + BN affines

    # ---- conv block 1: BN0 -> Conv1d(k3,s2,p1) -> ReLU -> MaxPool(2,2) -> BN1 ----
    x = x_ref[...] * bn0[0:1, :] + bn0[1:2, :]           # (B*L, C0) f32
    xb = x.astype(bf16)
    y = cvec[0:1, :]                                     # conv1 bias
    for k in range(3):                                   # tap k selects input pos 2j + k - 1
        tap = jnp.dot(sel1_ref[k], xb, preferred_element_type=f32)
        y = y + jnp.dot(tap.astype(bf16), w1_ref[k], preferred_element_type=f32)
    y = jnp.maximum(y, 0.0).astype(bf16)                 # (B*L/2, CH)
    pe = jnp.dot(selp1_ref[0], y, preferred_element_type=f32)
    po = jnp.dot(selp1_ref[1], y, preferred_element_type=f32)
    h1 = (jnp.maximum(pe, po) * cvec[1:2, :] + cvec[2:3, :]).astype(bf16)   # (B*L/4, CH)

    # ---- conv block 2 (pool selectors also fold the (b,t)->(t,b) permutation) ----
    y = cvec[3:4, :]
    for k in range(3):
        tap = jnp.dot(sel2_ref[k], h1, preferred_element_type=f32)
        y = y + jnp.dot(tap.astype(bf16), w2_ref[k], preferred_element_type=f32)
    y = jnp.maximum(y, 0.0).astype(bf16)                 # (B*L/8, CH)
    pe = jnp.dot(selp2_ref[0], y, preferred_element_type=f32)
    po = jnp.dot(selp2_ref[1], y, preferred_element_type=f32)
    seq = jnp.maximum(pe, po) * cvec[4:5, :] + cvec[5:6, :]   # (T*B, CH) time-major f32

    biasg = biasg_ref[...]                               # (3, 8*GP) f32

    # ---- 3-layer bidirectional LSTM, fwd+bwd fused per layer ----
    xin = seq
    h_slab = jnp.zeros((B, 2 * GP), f32)
    for layer in range(3):
        wih = wih0_ref[...] if layer == 0 else wih12_ref[layer - 1]
        whh = whh_ref[layer]                             # (2*GP, 8*GP) bf16 block-diag
        # hoisted input projection for all time steps of both directions
        xg = jnp.dot(xin.astype(bf16), wih,
                     preferred_element_type=f32) + biasg[layer:layer + 1, :]   # (T*B, 8*GP)

        h_f = jnp.zeros((B, GP), f32); c_f = jnp.zeros((B, GP), f32)
        h_b = jnp.zeros((B, GP), f32); c_b = jnp.zeros((B, GP), f32)
        h_slab = jnp.zeros((B, 2 * GP), f32)             # [h_fwd | pad | h_bwd | pad]
        hs_f = [None] * T
        hs_b = [None] * T
        for s in range(T):                               # fully unrolled; fwd step s, bwd step T-1-s
            tf, tb = s, T - 1 - s
            rec = jnp.dot(h_slab.astype(bf16), whh, preferred_element_type=f32)   # (B, 8*GP)
            pre_f = xg[tf * B:(tf + 1) * B, 0:4 * GP] + rec[:, 0:4 * GP]
            pre_b = xg[tb * B:(tb + 1) * B, 4 * GP:8 * GP] + rec[:, 4 * GP:8 * GP]
            # gate column order [i | f | o | g]: one wide sigmoid + one tanh per direction
            sf = jax.nn.sigmoid(pre_f[:, 0:3 * GP]); gf = jnp.tanh(pre_f[:, 3 * GP:])
            sb = jax.nn.sigmoid(pre_b[:, 0:3 * GP]); gb = jnp.tanh(pre_b[:, 3 * GP:])
            c_f = sf[:, GP:2 * GP] * c_f + sf[:, 0:GP] * gf
            c_b = sb[:, GP:2 * GP] * c_b + sb[:, 0:GP] * gb
            h_f = sf[:, 2 * GP:3 * GP] * jnp.tanh(c_f)   # padded lanes stay exactly 0
            h_b = sb[:, 2 * GP:3 * GP] * jnp.tanh(c_b)
            h_slab = jnp.concatenate([h_f, h_b], axis=1)   # lane-aligned at 128
            hs_f[tf] = h_f
            hs_b[tb] = h_b
        if layer < 2:
            xin = jnp.concatenate(
                [jnp.concatenate([hs_f[t], hs_b[t]], axis=1) for t in range(T)],
                axis=0)                                   # (T*B, 2*GP) padded slab
        # inter-layer LSTM dropout(0.1): identity in eval mode

    # h_slab now holds [h_fwd_final | pad | h_bwd_final | pad]; fcw rows padded to match.
    out = jnp.dot(h_slab, fcw_ref[...], preferred_element_type=f32) + fcb_ref[...]
    out_ref[...] = out.astype(out_ref.dtype)


# ----------------------------- host-side constant builders -----------------------------

def _sel_matrix(b, l_in, delta):
    """(b*l_out, b*l_in) 0/1 matrix, l_out = l_in//2: row (bi, j) selects input row
    (bi, 2*j + delta); out-of-range -> all-zero row (conv zero padding)."""
    l_out = l_in // 2
    m = np.zeros((b * l_out, b * l_in), np.float32)
    for bi in range(b):
        for j in range(l_out):
            p = 2 * j + delta
            if 0 <= p < l_in:
                m[bi * l_out + j, bi * l_in + p] = 1.0
    return m


def _pool_tm_matrix(b, l_in, delta):
    """Pool selector with the batch-major -> time-major permutation folded in:
    row (t*b + bi) selects input row (bi*l_in + 2*t + delta)."""
    t_len = l_in // 2
    m = np.zeros((t_len * b, b * l_in), np.float32)
    for t in range(t_len):
        for bi in range(b):
            m[t * b + bi, bi * l_in + 2 * t + delta] = 1.0
    return m


def _fold_bn(gamma, beta, mean, var):
    scale = gamma / jnp.sqrt(var + BN_EPS)
    shift = beta - mean * scale
    return scale, shift


def _gate_cols(w):
    """PyTorch (4H, Din) gate-major (i,f,g,o) -> (Din, 4*GATE_PITCH) with column
    order [i | f | o | g], each gate zero-padded to GATE_PITCH lanes."""
    wt = w.T
    blocks = []
    for g in (0, 1, 3, 2):      # i, f, o, g
        blk = wt[:, g * HIDDEN:(g + 1) * HIDDEN]
        blocks.append(jnp.pad(blk, ((0, 0), (0, GATE_PITCH - HIDDEN))))
    return jnp.concatenate(blocks, axis=1)


def _gate_bias(b_ih, b_hh):
    b = (b_ih + b_hh).reshape(4, HIDDEN)
    blocks = [jnp.pad(b[g], (0, GATE_PITCH - HIDDEN)) for g in (0, 1, 3, 2)]
    return jnp.concatenate(blocks, axis=0)               # (4*GATE_PITCH,)


def _expand_rows_2h(w_cols):
    """(2H, 4*GP) rows [fwd_h; bwd_h] -> (2*GP, 4*GP): fwd rows at [0,H),
    bwd rows at [GP, GP+H), rest zero (matches the padded activation slab)."""
    out = jnp.zeros((2 * GATE_PITCH, w_cols.shape[1]), w_cols.dtype)
    out = out.at[0:HIDDEN].set(w_cols[0:HIDDEN])
    out = out.at[GATE_PITCH:GATE_PITCH + HIDDEN].set(w_cols[HIDDEN:2 * HIDDEN])
    return out


def _whh_comb(w_hh_f, w_hh_b):
    """Block-diagonal recurrent weight: (2*GP, 8*GP), fwd block rows [0,H) x cols
    [0,4GP), bwd block rows [GP,GP+H) x cols [4GP,8GP)."""
    out = jnp.zeros((2 * GATE_PITCH, 8 * GATE_PITCH), jnp.float32)
    out = out.at[0:HIDDEN, 0:4 * GATE_PITCH].set(_gate_cols(w_hh_f))
    out = out.at[GATE_PITCH:GATE_PITCH + HIDDEN, 4 * GATE_PITCH:].set(_gate_cols(w_hh_b))
    return out


# ----------------------------- wrapper (weight prep + 1 pallas_call) ---------

def net_thesis_forward(params, x):
    """x: (B, n_features, L) float32 (PyTorch NCL). Returns (B, num_classes)."""
    B, C0, L = x.shape
    # TODO(synk): generic L (odd conv/pool length chains) would need masked tails;
    # L % 16 == 0 covers the shapes exercised here.
    if L % 16 != 0:
        raise ValueError("fused kernel assumes L % 16 == 0")
    T = L // 16
    GP, H = GATE_PITCH, HIDDEN
    num_classes = params['fc1_w'].shape[0]

    # channel-last 2-D slab, rows ordered (batch, position)
    x2d = jnp.transpose(x, (0, 2, 1)).reshape(B * L, C0)

    s0, t0 = _fold_bn(params['bn0_gamma'], params['bn0_beta'],
                      params['bn0_mean'], params['bn0_var'])
    s1, t1 = _fold_bn(params['bn1_gamma'], params['bn1_beta'],
                      params['bn1_mean'], params['bn1_var'])
    s2, t2 = _fold_bn(params['bn2_gamma'], params['bn2_beta'],
                      params['bn2_mean'], params['bn2_var'])
    bn0 = jnp.stack([s0, t0])                                         # (2, C0)
    cvec = jnp.stack([params['conv1_b'], s1, t1,
                      params['conv2_b'], s2, t2])                     # (6, CH)

    # exact 0/1 selection constants (bf16), built host-side
    sel1 = jnp.asarray(np.stack([_sel_matrix(B, L, d) for d in (-1, 0, 1)]), jnp.bfloat16)
    selp1 = jnp.asarray(np.stack([_sel_matrix(B, L // 2, d) for d in (0, 1)]), jnp.bfloat16)
    sel2 = jnp.asarray(np.stack([_sel_matrix(B, L // 4, d) for d in (-1, 0, 1)]), jnp.bfloat16)
    selp2 = jnp.asarray(np.stack([_pool_tm_matrix(B, L // 8, d) for d in (0, 1)]), jnp.bfloat16)

    # conv weights -> (k, C_in, C_out) stacks, bf16 MXU operands
    w1 = jnp.transpose(params['conv1_w'], (2, 1, 0)).astype(jnp.bfloat16)   # (3, C0, CH)
    w2 = jnp.transpose(params['conv2_w'], (2, 1, 0)).astype(jnp.bfloat16)   # (3, CH, CH)

    # LSTM weights in the lane-aligned fused (fwd|bwd) gate-pitch layout
    wih_layers, whh_layers, bias_layers = [], [], []
    for layer in range(3):
        w_ih_f, w_hh_f, b_ih_f, b_hh_f = params[f'lstm_l{layer}_fwd']
        w_ih_b, w_hh_b, b_ih_b, b_hh_b = params[f'lstm_l{layer}_bwd']
        gf, gb = _gate_cols(w_ih_f), _gate_cols(w_ih_b)               # (Din, 4*GP)
        if layer > 0:
            gf, gb = _expand_rows_2h(gf), _expand_rows_2h(gb)         # (2*GP, 4*GP)
        wih_layers.append(jnp.concatenate([gf, gb], axis=1))          # (Din | 2*GP, 8*GP)
        whh_layers.append(_whh_comb(w_hh_f, w_hh_b))                  # (2*GP, 8*GP)
        bias_layers.append(jnp.concatenate([_gate_bias(b_ih_f, b_hh_f),
                                            _gate_bias(b_ih_b, b_hh_b)]))   # (8*GP,)
    wih0 = wih_layers[0].astype(jnp.bfloat16)                         # (CH, 8*GP)
    wih12 = jnp.stack(wih_layers[1:]).astype(jnp.bfloat16)            # (2, 2*GP, 8*GP)
    whh = jnp.stack(whh_layers).astype(jnp.bfloat16)                  # (3, 2*GP, 8*GP)
    biasg = jnp.stack(bias_layers)                                    # (3, 8*GP) f32

    # final linear padded to the hidden-state slab layout (no concat in-kernel)
    fw = params['fc1_w'].T                                            # (2H, NC)
    fcw = jnp.zeros((2 * GP, num_classes), jnp.float32)
    fcw = fcw.at[0:H].set(fw[0:H])
    fcw = fcw.at[GP:GP + H].set(fw[H:2 * H])
    fcb = params['fc1_b'].reshape(1, num_classes)

    args = [x2d, bn0, cvec, sel1, w1, selp1, sel2, w2, selp2,
            wih0, wih12, whh, biasg, fcw, fcb]

    return pl.pallas_call(
        functools.partial(_net_kernel, batch=B, seq_len=T),
        out_shape=jax.ShapeDtypeStruct((B, num_classes), jnp.float32),
        in_specs=[pl.BlockSpec(memory_space=pltpu.MemorySpace.VMEM) for _ in args],
        out_specs=pl.BlockSpec(memory_space=pltpu.MemorySpace.VMEM),
    )(*args)


# ----------------------------- parameter init -----------------------------

def _uniform(key, shape, bound):
    return jax.random.uniform(key, shape, jnp.float32, -bound, bound)


def init_params(key, num_classes=NUM_CLASSES, n_features=N_FEATURES):
    keys = iter(jax.random.split(key, 64))
    p = {}

    def bn(prefix, c):
        p[f'{prefix}_gamma'] = jax.random.uniform(next(keys), (c,), jnp.float32, 0.5, 1.5)
        p[f'{prefix}_beta'] = _uniform(next(keys), (c,), 0.1)
        p[f'{prefix}_mean'] = _uniform(next(keys), (c,), 0.1)
        p[f'{prefix}_var'] = jax.random.uniform(next(keys), (c,), jnp.float32, 0.5, 1.5)

    bn('bn0', n_features)
    bn('bn1', CONV_CH)
    bn('bn2', CONV_CH)

    fan1 = n_features * 3
    p['conv1_w'] = _uniform(next(keys), (CONV_CH, n_features, 3), (6.0 / fan1) ** 0.5)
    p['conv1_b'] = _uniform(next(keys), (CONV_CH,), 1.0 / fan1 ** 0.5)
    fan2 = CONV_CH * 3
    p['conv2_w'] = _uniform(next(keys), (CONV_CH, CONV_CH, 3), (6.0 / fan2) ** 0.5)
    p['conv2_b'] = _uniform(next(keys), (CONV_CH,), 1.0 / fan2 ** 0.5)

    k_lstm = 1.0 / HIDDEN ** 0.5
    for layer in range(3):
        d_in = CONV_CH if layer == 0 else 2 * HIDDEN
        for direction in ('fwd', 'bwd'):
            w_ih = _uniform(next(keys), (4 * HIDDEN, d_in), k_lstm)
            w_hh = _uniform(next(keys), (4 * HIDDEN, HIDDEN), k_lstm)
            b_ih = _uniform(next(keys), (4 * HIDDEN,), k_lstm)
            b_hh = _uniform(next(keys), (4 * HIDDEN,), k_lstm)
            p[f'lstm_l{layer}_{direction}'] = (w_ih, w_hh, b_ih, b_hh)

    fan_in, fan_out = 2 * HIDDEN, num_classes
    bound = (6.0 / (fan_in + fan_out)) ** 0.5
    p['fc1_w'] = _uniform(next(keys), (num_classes, 2 * HIDDEN), bound)
    p['fc1_b'] = _uniform(next(keys), (num_classes,), 1.0 / fan_in ** 0.5)
    return p


# ----------------------------- main -----------------------------

if __name__ == "__main__":
    key = jax.random.PRNGKey(0)
    pkey, xkey = jax.random.split(key)
    params = init_params(pkey)

    B, L = 2, 64
    x = jax.random.normal(xkey, (B, N_FEATURES, L), jnp.float32)

    fwd = jax.jit(net_thesis_forward)
    out = jax.block_until_ready(fwd(params, x))
    assert out.shape == (B, NUM_CLASSES), out.shape
    assert bool(jnp.all(jnp.isfinite(out)))
    print("KERNEL_OK")
</pallas_src>

<mosaic_0001>
module attributes {stable_mosaic.version = 11 : i64} {
  func.func @_net_kernel(%arg0: memref<128x8xf32, #tpu.memory_space<vmem>>, %arg1: memref<2x8xf32, #tpu.memory_space<vmem>>, %arg2: memref<6x100xf32, #tpu.memory_space<vmem>>, %arg3: memref<3x64x128xbf16, #tpu.memory_space<vmem>>, %arg4: memref<3x8x100xbf16, #tpu.memory_space<vmem>>, %arg5: memref<2x32x64xbf16, #tpu.memory_space<vmem>>, %arg6: memref<3x16x32xbf16, #tpu.memory_space<vmem>>, %arg7: memref<3x100x100xbf16, #tpu.memory_space<vmem>>, %arg8: memref<2x8x16xbf16, #tpu.memory_space<vmem>>, %arg9: memref<100x1024xbf16, #tpu.memory_space<vmem>>, %arg10: memref<2x256x1024xbf16, #tpu.memory_space<vmem>>, %arg11: memref<3x256x1024xbf16, #tpu.memory_space<vmem>>, %arg12: memref<3x1024xf32, #tpu.memory_space<vmem>>, %arg13: memref<256x5xf32, #tpu.memory_space<vmem>>, %arg14: memref<1x5xf32, #tpu.memory_space<vmem>>, %arg15: memref<2x5xf32, #tpu.memory_space<vmem>>) attributes {dimension_semantics = [], scalar_prefetch = 0 : i64, scratch_operands = 0 : i64, tpu.core_type = #tpu.core_type<tc>} {
    %c0 = arith.constant 0 : index
    %c0_0 = arith.constant 0 : index
    %0 = vector.load %arg1[%c0, %c0_0] : memref<2x8xf32, #tpu.memory_space<vmem>>, vector<2x8xf32>
    %c0_1 = arith.constant 0 : index
    %c0_2 = arith.constant 0 : index
    %1 = vector.load %arg2[%c0_1, %c0_2] : memref<6x100xf32, #tpu.memory_space<vmem>>, vector<6x100xf32>
    %c0_3 = arith.constant 0 : index
    %c0_4 = arith.constant 0 : index
    %2 = vector.load %arg0[%c0_3, %c0_4] : memref<128x8xf32, #tpu.memory_space<vmem>>, vector<128x8xf32>
    %3 = vector.extract_strided_slice %0 {offsets = [0, 0], sizes = [1, 8], strides = [1, 1]} : vector<2x8xf32> to vector<1x8xf32>
    %4 = vector.broadcast %3 : vector<1x8xf32> to vector<128x8xf32>
    %5 = arith.mulf %2, %4 : vector<128x8xf32>
    %6 = vector.extract_strided_slice %0 {offsets = [1, 0], sizes = [1, 8], strides = [1, 1]} : vector<2x8xf32> to vector<1x8xf32>
    %7 = vector.broadcast %6 : vector<1x8xf32> to vector<128x8xf32>
    %8 = arith.addf %5, %7 : vector<128x8xf32>
    %9 = arith.truncf %8 : vector<128x8xf32> to vector<128x8xbf16>
    %10 = vector.extract_strided_slice %1 {offsets = [0, 0], sizes = [1, 100], strides = [1, 1]} : vector<6x100xf32> to vector<1x100xf32>
    %c0_5 = arith.constant 0 : index
    %c0_6 = arith.constant 0 : index
    %c0_7 = arith.constant 0 : index
    %11 = vector.load %arg3[%c0_5, %c0_6, %c0_7] : memref<3x64x128xbf16, #tpu.memory_space<vmem>>, vector<1x64x128xbf16>
    %12 = vector.shape_cast %11 : vector<1x64x128xbf16> to vector<64x128xbf16>
    %cst = arith.constant dense<0.000000e+00> : vector<64x8xf32>
    %13 = tpu.matmul %12, %9, %cst {dimension_numbers = #tpu.dot_dimension_numbers<[1], [0], [0], [1], [0, 0, 1, 1], [], []>} : vector<64x128xbf16>, vector<128x8xbf16>, vector<64x8xf32> -> vector<64x8xf32>
    %14 = arith.truncf %13 : vector<64x8xf32> to vector<64x8xbf16>
    %c0_8 = arith.constant 0 : index
    %c0_9 = arith.constant 0 : index
    %c0_10 = arith.constant 0 : index
    %15 = vector.load %arg4[%c0_8, %c0_9, %c0_10] : memref<3x8x100xbf16, #tpu.memory_space<vmem>>, vector<1x8x100xbf16>
    %16 = vector.shape_cast %15 : vector<1x8x100xbf16> to vector<8x100xbf16>
    %cst_11 = arith.constant dense<0.000000e+00> : vector<64x100xf32>
    %17 = tpu.matmul %14, %16, %cst_11 {dimension_numbers = #tpu.dot_dimension_numbers<[1], [0], [0], [1], [0, 0, 1, 1], [], []>} : vector<64x8xbf16>, vector<8x100xbf16>, vector<64x100xf32> -> vector<64x100xf32>
    %18 = vector.broadcast %10 : vector<1x100xf32> to vector<64x100xf32>
    %19 = arith.addf %18, %17 : vector<64x100xf32>
    %c1 = arith.constant 1 : index
    %c0_12 = arith.constant 0 : index
    %c0_13 = arith.constant 0 : index
    %20 = vector.load %arg3[%c1, %c0_12, %c0_13] : memref<3x64x128xbf16, #tpu.memory_space<vmem>>, vector<1x64x128xbf16>
    %21 = vector.shape_cast %20 : vector<1x64x128xbf16> to vector<64x128xbf16>
    %cst_14 = arith.constant dense<0.000000e+00> : vector<64x8xf32>
    %22 = tpu.matmul %21, %9, %cst_14 {dimension_numbers = #tpu.dot_dimension_numbers<[1], [0], [0], [1], [0, 0, 1, 1], [], []>} : vector<64x128xbf16>, vector<128x8xbf16>, vector<64x8xf32> -> vector<64x8xf32>
    %23 = arith.truncf %22 : vector<64x8xf32> to vector<64x8xbf16>
    %c1_15 = arith.constant 1 : index
    %c0_16 = arith.constant 0 : index
    %c0_17 = arith.constant 0 : index
    %24 = vector.load %arg4[%c1_15, %c0_16, %c0_17] : memref<3x8x100xbf16, #tpu.memory_space<vmem>>, vector<1x8x100xbf16>
    %25 = vector.shape_cast %24 : vector<1x8x100xbf16> to vector<8x100xbf16>
    %cst_18 = arith.constant dense<0.000000e+00> : vector<64x100xf32>
    %26 = tpu.matmul %23, %25, %cst_18 {dimension_numbers = #tpu.dot_dimension_numbers<[1], [0], [0], [1], [0, 0, 1, 1], [], []>} : vector<64x8xbf16>, vector<8x100xbf16>, vector<64x100xf32> -> vector<64x100xf32>
    %27 = arith.addf %19, %26 : vector<64x100xf32>
    %c2 = arith.constant 2 : index
    %c0_19 = arith.constant 0 : index
    %c0_20 = arith.constant 0 : index
    %28 = vector.load %arg3[%c2, %c0_19, %c0_20] : memref<3x64x128xbf16, #tpu.memory_space<vmem>>, vector<1x64x128xbf16>
    %29 = vector.shape_cast %28 : vector<1x64x128xbf16> to vector<64x128xbf16>
    %cst_21 = arith.constant dense<0.000000e+00> : vector<64x8xf32>
    %30 = tpu.matmul %29, %9, %cst_21 {dimension_numbers = #tpu.dot_dimension_numbers<[1], [0], [0], [1], [0, 0, 1, 1], [], []>} : vector<64x128xbf16>, vector<128x8xbf16>, vector<64x8xf32> -> vector<64x8xf32>
    %31 = arith.truncf %30 : vector<64x8xf32> to vector<64x8xbf16>
    %c2_22 = arith.constant 2 : index
    %c0_23 = arith.constant 0 : index
    %c0_24 = arith.constant 0 : index
    %32 = vector.load %arg4[%c2_22, %c0_23, %c0_24] : memref<3x8x100xbf16, #tpu.memory_space<vmem>>, vector<1x8x100xbf16>
    %33 = vector.shape_cast %32 : vector<1x8x100xbf16> to vector<8x100xbf16>
    %cst_25 = arith.constant dense<0.000000e+00> : vector<64x100xf32>
    %34 = tpu.matmul %31, %33, %cst_25 {dimension_numbers = #tpu.dot_dimension_numbers<[1], [0], [0], [1], [0, 0, 1, 1], [], []>} : vector<64x8xbf16>, vector<8x100xbf16>, vector<64x100xf32> -> vector<64x100xf32>
    %35 = arith.addf %27, %34 : vector<64x100xf32>
    %cst_26 = arith.constant 0.000000e+00 : f32
    %36 = vector.broadcast %cst_26 : f32 to vector<64x100xf32>
    %37 = arith.maximumf %35, %36 : vector<64x100xf32>
    %38 = arith.truncf %37 : vector<64x100xf32> to vector<64x100xbf16>
    %c0_27 = arith.constant 0 : index
    %c0_28 = arith.constant 0 : index
    %c0_29 = arith.constant 0 : index
    %39 = vector.load %arg5[%c0_27, %c0_28, %c0_29] : memref<2x32x64xbf16, #tpu.memory_space<vmem>>, vector<1x32x64xbf16>
    %40 = vector.shape_cast %39 : vector<1x32x64xbf16> to vector<32x64xbf16>
    %cst_30 = arith.constant dense<0.000000e+00> : vector<32x100xf32>
    %41 = tpu.matmul %40, %38, %cst_30 {dimension_numbers = #tpu.dot_dimension_numbers<[1], [0], [0], [1], [0, 0, 1, 1], [], []>} : vector<32x64xbf16>, vector<64x100xbf16>, vector<32x100xf32> -> vector<32x100xf32>
    %c1_31 = arith.constant 1 : index
    %c0_32 = arith.constant 0 : index
    %c0_33 = arith.constant 0 : index
    %42 = vector.load %arg5[%c1_31, %c0_32, %c0_33] : memref<2x32x64xbf16, #tpu.memory_space<vmem>>, vector<1x32x64xbf16>
    %43 = vector.shape_cast %42 : vector<1x32x64xbf16> to vector<32x64xbf16>
    %cst_34 = arith.constant dense<0.000000e+00> : vector<32x100xf32>
    %44 = tpu.matmul %43, %38, %cst_34 {dimension_numbers = #tpu.dot_dimension_numbers<[1], [0], [0], [1], [0, 0, 1, 1], [], []>} : vector<32x64xbf16>, vector<64x100xbf16>, vector<32x100xf32> -> vector<32x100xf32>
    %45 = arith.maximumf %41, %44 : vector<32x100xf32>
    %46 = vector.extract_strided_slice %1 {offsets = [1, 0], sizes = [1, 100], strides = [1, 1]} : vector<6x100xf32> to vector<1x100xf32>
    %47 = vector.broadcast %46 : vector<1x100xf32> to vector<32x100xf32>
    %48 = arith.mulf %45, %47 : vector<32x100xf32>
    %49 = vector.extract_strided_slice %1 {offsets = [2, 0], sizes = [1, 100], strides = [1, 1]} : vector<6x100xf32> to vector<1x100xf32>
    %50 = vector.broadcast %49 : vector<1x100xf32> to vector<32x100xf32>
    %51 = arith.addf %48, %50 : vector<32x100xf32>
    %52 = arith.truncf %51 : vector<32x100xf32> to vector<32x100xbf16>
    %53 = vector.extract_strided_slice %1 {offsets = [3, 0], sizes = [1, 100], strides = [1, 1]} : vector<6x100xf32> to vector<1x100xf32>
    %c0_35 = arith.constant 0 : index
    %c0_36 = arith.constant 0 : index
    %c0_37 = arith.constant 0 : index
    %54 = vector.load %arg6[%c0_35, %c0_36, %c0_37] : memref<3x16x32xbf16, #tpu.memory_space<vmem>>, vector<1x16x32xbf16>
    %55 = vector.shape_cast %54 : vector<1x16x32xbf16> to vector<16x32xbf16>
    %cst_38 = arith.constant dense<0.000000e+00> : vector<16x100xf32>
    %56 = tpu.matmul %55, %52, %cst_38 {dimension_numbers = #tpu.dot_dimension_numbers<[1], [0], [0], [1], [0, 0, 1, 1], [], []>} : vector<16x32xbf16>, vector<32x100xbf16>, vector<16x100xf32> -> vector<16x100xf32>
    %57 = arith.truncf %56 : vector<16x100xf32> to vector<16x100xbf16>
    %c0_39 = arith.constant 0 : index
    %c0_40 = arith.constant 0 : index
    %c0_41 = arith.constant 0 : index
    %58 = vector.load %arg7[%c0_39, %c0_40, %c0_41] : memref<3x100x100xbf16, #tpu.memory_space<vmem>>, vector<1x100x100xbf16>
    %59 = vector.shape_cast %58 : vector<1x100x100xbf16> to vector<100x100xbf16>
    %cst_42 = arith.constant dense<0.000000e+00> : vector<16x100xf32>
    %60 = tpu.matmul %57, %59, %cst_42 {dimension_numbers = #tpu.dot_dimension_numbers<[1], [0], [0], [1], [0, 0, 1, 1], [], []>} : vector<16x100xbf16>, vector<100x100xbf16>, vector<16x100xf32> -> vector<16x100xf32>
    %61 = vector.broadcast %53 : vector<1x100xf32> to vector<16x100xf32>
    %62 = arith.addf %61, %60 : vector<16x100xf32>
    %c1_43 = arith.constant 1 : index
    %c0_44 = arith.constant 0 : index
    %c0_45 = arith.constant 0 : index
    %63 = vector.load %arg6[%c1_43, %c0_44, %c0_45] : memref<3x16x32xbf16, #tpu.memory_space<vmem>>, vector<1x16x32xbf16>
    %64 = vector.shape_cast %63 : vector<1x16x32xbf16> to vector<16x32xbf16>
    %cst_46 = arith.constant dense<0.000000e+00> : vector<16x100xf32>
    %65 = tpu.matmul %64, %52, %cst_46 {dimension_numbers = #tpu.dot_dimension_numbers<[1], [0], [0], [1], [0, 0, 1, 1], [], []>} : vector<16x32xbf16>, vector<32x100xbf16>, vector<16x100xf32> -> vector<16x100xf32>
    %66 = arith.truncf %65 : vector<16x100xf32> to vector<16x100xbf16>
    %c1_47 = arith.constant 1 : index
    %c0_48 = arith.constant 0 : index
    %c0_49 = arith.constant 0 : index
    %67 = vector.load %arg7[%c1_47, %c0_48, %c0_49] : memref<3x100x100xbf16, #tpu.memory_space<vmem>>, vector<1x100x100xbf16>
    %68 = vector.shape_cast %67 : vector<1x100x100xbf16> to vector<100x100xbf16>
    %cst_50 = arith.constant dense<0.000000e+00> : vector<16x100xf32>
    %69 = tpu.matmul %66, %68, %cst_50 {dimension_numbers = #tpu.dot_dimension_numbers<[1], [0], [0], [1], [0, 0, 1, 1], [], []>} : vector<16x100xbf16>, vector<100x100xbf16>, vector<16x100xf32> -> vector<16x100xf32>
    %70 = arith.addf %62, %69 : vector<16x100xf32>
    %c2_51 = arith.constant 2 : index
    %c0_52 = arith.constant 0 : index
    %c0_53 = arith.constant 0 : index
    %71 = vector.load %arg6[%c2_51, %c0_52, %c0_53] : memref<3x16x32xbf16, #tpu.memory_space<vmem>>, vector<1x16x32xbf16>
    %72 = vector.shape_cast %71 : vector<1x16x32xbf16> to vector<16x32xbf16>
    %cst_54 = arith.constant dense<0.000000e+00> : vector<16x100xf32>
    %73 = tpu.matmul %72, %52, %cst_54 {dimension_numbers = #tpu.dot_dimension_numbers<[1], [0], [0], [1], [0, 0, 1, 1], [], []>} : vector<16x32xbf16>, vector<32x100xbf16>, vector<16x100xf32> -> vector<16x100xf32>
    %74 = arith.truncf %73 : vector<16x100xf32> to vector<16x100xbf16>
    %c2_55 = arith.constant 2 : index
    %c0_56 = arith.constant 0 : index
    %c0_57 = arith.constant 0 : index
    %75 = vector.load %arg7[%c2_55, %c0_56, %c0_57] : memref<3x100x100xbf16, #tpu.memory_space<vmem>>, vector<1x100x100xbf16>
    %76 = vector.shape_cast %75 : vector<1x100x100xbf16> to vector<100x100xbf16>
    %cst_58 = arith.constant dense<0.000000e+00> : vector<16x100xf32>
    %77 = tpu.matmul %74, %76, %cst_58 {dimension_numbers = #tpu.dot_dimension_numbers<[1], [0], [0], [1], [0, 0, 1, 1], [], []>} : vector<16x100xbf16>, vector<100x100xbf16>, vector<16x100xf32> -> vector<16x100xf32>
    %78 = arith.addf %70, %77 : vector<16x100xf32>
    %cst_59 = arith.constant 0.000000e+00 : f32
    %79 = vector.broadcast %cst_59 : f32 to vector<16x100xf32>
    %80 = arith.maximumf %78, %79 : vector<16x100xf32>
    %81 = arith.truncf %80 : vector<16x100xf32> to vector<16x100xbf16>
    %c0_60 = arith.constant 0 : index
    %c0_61 = arith.constant 0 : index
    %c0_62 = arith.constant 0 : index
    %82 = vector.load %arg8[%c0_60, %c0_61, %c0_62] : memref<2x8x16xbf16, #tpu.memory_space<vmem>>, vector<1x8x16xbf16>
    %83 = vector.shape_cast %82 : vector<1x8x16xbf16> to vector<8x16xbf16>
    %cst_63 = arith.constant dense<0.000000e+00> : vector<8x100xf32>
    %84 = tpu.matmul %83, %81, %cst_63 {dimension_numbers = #tpu.dot_dimension_numbers<[1], [0], [0], [1], [0, 0, 1, 1], [], []>} : vector<8x16xbf16>, vector<16x100xbf16>, vector<8x100xf32> -> vector<8x100xf32>
    %c1_64 = arith.constant 1 : index
    %c0_65 = arith.constant 0 : index
    %c0_66 = arith.constant 0 : index
    %85 = vector.load %arg8[%c1_64, %c0_65, %c0_66] : memref<2x8x16xbf16, #tpu.memory_space<vmem>>, vector<1x8x16xbf16>
    %86 = vector.shape_cast %85 : vector<1x8x16xbf16> to vector<8x16xbf16>
    %cst_67 = arith.constant dense<0.000000e+00> : vector<8x100xf32>
    %87 = tpu.matmul %86, %81, %cst_67 {dimension_numbers = #tpu.dot_dimension_numbers<[1], [0], [0], [1], [0, 0, 1, 1], [], []>} : vector<8x16xbf16>, vector<16x100xbf16>, vector<8x100xf32> -> vector<8x100xf32>
    %88 = arith.maximumf %84, %87 : vector<8x100xf32>
    %89 = vector.extract_strided_slice %1 {offsets = [4, 0], sizes = [1, 100], strides = [1, 1]} : vector<6x100xf32> to vector<1x100xf32>
    %90 = vector.broadcast %89 : vector<1x100xf32> to vector<8x100xf32>
    %91 = arith.mulf %88, %90 : vector<8x100xf32>
    %92 = vector.extract_strided_slice %1 {offsets = [5, 0], sizes = [1, 100], strides = [1, 1]} : vector<6x100xf32> to vector<1x100xf32>
    %93 = vector.broadcast %92 : vector<1x100xf32> to vector<8x100xf32>
    %94 = arith.addf %91, %93 : vector<8x100xf32>
    %c0_68 = arith.constant 0 : index
    %c0_69 = arith.constant 0 : index
    %95 = vector.load %arg12[%c0_68, %c0_69] : memref<3x1024xf32, #tpu.memory_space<vmem>>, vector<3x1024xf32>
    %c0_70 = arith.constant 0 : index
    %c0_71 = arith.constant 0 : index
    %96 = vector.load %arg9[%c0_70, %c0_71] : memref<100x1024xbf16, #tpu.memory_space<vmem>>, vector<100x1024xbf16>
    %c0_72 = arith.constant 0 : index
    %c0_73 = arith.constant 0 : index
    %c0_74 = arith.constant 0 : index
    %97 = vector.load %arg11[%c0_72, %c0_73, %c0_74] : memref<3x256x1024xbf16, #tpu.memory_space<vmem>>, vector<1x256x1024xbf16>
    %98 = vector.shape_cast %97 : vector<1x256x1024xbf16> to vector<256x1024xbf16>
    %99 = arith.truncf %94 : vector<8x100xf32> to vector<8x100xbf16>
    %cst_75 = arith.constant dense<0.000000e+00> : vector<8x1024xf32>
    %100 = tpu.matmul %99, %96, %cst_75 {dimension_numbers = #tpu.dot_dimension_numbers<[1], [0], [0], [1], [0, 0, 1, 1], [], []>} : vector<8x100xbf16>, vector<100x1024xbf16>, vector<8x1024xf32> -> vector<8x1024xf32>
    %101 = vector.extract_strided_slice %95 {offsets = [0, 0], sizes = [1, 1024], strides = [1, 1]} : vector<3x1024xf32> to vector<1x1024xf32>
    %102 = vector.broadcast %101 : vector<1x1024xf32> to vector<8x1024xf32>
    %103 = arith.addf %100, %102 : vector<8x1024xf32>
    %cst_76 = arith.constant 0.000000e+00 : f32
    %104 = vector.broadcast %cst_76 : f32 to vector<2x128xf32>
    %cst_77 = arith.constant 0.000000e+00 : f32
    %105 = vector.broadcast %cst_77 : f32 to vector<2x128xf32>
    %cst_78 = arith.constant 0.000000e+00 : f32
    %106 = vector.broadcast %cst_78 : f32 to vector<2x256xf32>
    %107 = arith.truncf %106 : vector<2x256xf32> to vector<2x256xbf16>
    %cst_79 = arith.constant dense<0.000000e+00> : vector<2x1024xf32>
    %108 = tpu.matmul %107, %98, %cst_79 {dimension_numbers = #tpu.dot_dimension_numbers<[1], [0], [0], [1], [0, 0, 1, 1], [], []>} : vector<2x256xbf16>, vector<256x1024xbf16>, vector<2x1024xf32> -> vector<2x1024xf32>
    %109 = vector.extract_strided_slice %103 {offsets = [0, 0], sizes = [2, 512], strides = [1, 1]} : vector<8x1024xf32> to vector<2x512xf32>
    %110 = vector.extract_strided_slice %108 {offsets = [0, 0], sizes = [2, 512], strides = [1, 1]} : vector<2x1024xf32> to vector<2x512xf32>
    %111 = arith.addf %109, %110 : vector<2x512xf32>
    %112 = vector.extract_strided_slice %103 {offsets = [6, 512], sizes = [2, 512], strides = [1, 1]} : vector<8x1024xf32> to vector<2x512xf32>
    %113 = vector.extract_strided_slice %108 {offsets = [0, 512], sizes = [2, 512], strides = [1, 1]} : vector<2x1024xf32> to vector<2x512xf32>
    %114 = arith.addf %112, %113 : vector<2x512xf32>
    %115 = vector.extract_strided_slice %111 {offsets = [0, 0], sizes = [2, 384], strides = [1, 1]} : vector<2x512xf32> to vector<2x384xf32>
    %116 = arith.negf %115 : vector<2x384xf32>
    %117 = math.exp %116 : vector<2x384xf32>
    %cst_80 = arith.constant 1.000000e+00 : f32
    %118 = vector.broadcast %cst_80 : f32 to vector<2x384xf32>
    %119 = arith.addf %118, %117 : vector<2x384xf32>
    %120 = arith.divf %118, %119 : vector<2x384xf32>
    %121 = vector.extract_strided_slice %111 {offsets = [0, 384], sizes = [2, 128], strides = [1, 1]} : vector<2x512xf32> to vector<2x128xf32>
    %122 = math.tanh %121 : vector<2x128xf32>
    %123 = vector.extract_strided_slice %114 {offsets = [0, 0], sizes = [2, 384], strides = [1, 1]} : vector<2x512xf32> to vector<2x384xf32>
    %124 = arith.negf %123 : vector<2x384xf32>
    %125 = math.exp %124 : vector<2x384xf32>
    %cst_81 = arith.constant 1.000000e+00 : f32
    %126 = vector.broadcast %cst_81 : f32 to vector<2x384xf32>
    %127 = arith.addf %126, %125 : vector<2x384xf32>
    %128 = arith.divf %126, %127 : vector<2x384xf32>
    %129 = vector.extract_strided_slice %114 {offsets = [0, 384], sizes = [2, 128], strides = [1, 1]} : vector<2x512xf32> to vector<2x128xf32>
    %130 = math.tanh %129 : vector<2x128xf32>
    %131 = vector.extract_strided_slice %120 {offsets = [0, 128], sizes = [2, 128], strides = [1, 1]} : vector<2x384xf32> to vector<2x128xf32>
    %132 = arith.mulf %131, %104 : vector<2x128xf32>
    %133 = vector.extract_strided_slice %120 {offsets = [0, 0], sizes = [2, 128], strides = [1, 1]} : vector<2x384xf32> to vector<2x128xf32>
    %134 = arith.mulf %133, %122 : vector<2x128xf32>
    %135 = arith.addf %132, %134 : vector<2x128xf32>
    %136 = vector.extract_strided_slice %128 {offsets = [0, 128], sizes = [2, 128], strides = [1, 1]} : vector<2x384xf32> to vector<2x128xf32>
    %137 = arith.mulf %136, %105 : vector<2x128xf32>
    %138 = vector.extract_strided_slice %128 {offsets = [0, 0], sizes = [2, 128], strides = [1, 1]} : vector<2x384xf32> to vector<2x128xf32>
    %139 = arith.mulf %138, %130 : vector<2x128xf32>
    %140 = arith.addf %137, %139 : vector<2x128xf32>
    %141 = vector.extract_strided_slice %120 {offsets = [0, 256], sizes = [2, 128], strides = [1, 1]} : vector<2x384xf32> to vector<2x128xf32>
    %142 = math.tanh %135 : vector<2x128xf32>
    %143 = arith.mulf %141, %142 : vector<2x128xf32>
    %144 = vector.extract_strided_slice %128 {offsets = [0, 256], sizes = [2, 128], strides = [1, 1]} : vector<2x384xf32> to vector<2x128xf32>
    %145 = math.tanh %140 : vector<2x128xf32>
    %146 = arith.mulf %144, %145 : vector<2x128xf32>
    %147 = tpu.concatenate %143, %146 in 1 : vector<2x128xf32>, vector<2x128xf32> -> vector<2x256xf32>
    %148 = arith.truncf %147 : vector<2x256xf32> to vector<2x256xbf16>
    %cst_82 = arith.constant dense<0.000000e+00> : vector<2x1024xf32>
    %149 = tpu.matmul %148, %98, %cst_82 {dimension_numbers = #tpu.dot_dimension_numbers<[1], [0], [0], [1], [0, 0, 1, 1], [], []>} : vector<2x256xbf16>, vector<256x1024xbf16>, vector<2x1024xf32> -> vector<2x1024xf32>
    %150 = vector.extract_strided_slice %103 {offsets = [2, 0], sizes = [2, 512], strides = [1, 1]} : vector<8x1024xf32> to vector<2x512xf32>
    %151 = vector.extract_strided_slice %149 {offsets = [0, 0], sizes = [2, 512], strides = [1, 1]} : vector<2x1024xf32> to vector<2x512xf32>
    %152 = arith.addf %150, %151 : vector<2x512xf32>
    %153 = vector.extract_strided_slice %103 {offsets = [4, 512], sizes = [2, 512], strides = [1, 1]} : vector<8x1024xf32> to vector<2x512xf32>
    %154 = vector.extract_strided_slice %149 {offsets = [0, 512], sizes = [2, 512], strides = [1, 1]} : vector<2x1024xf32> to vector<2x512xf32>
    %155 = arith.addf %153, %154 : vector<2x512xf32>
    %156 = vector.extract_strided_slice %152 {offsets = [0, 0], sizes = [2, 384], strides = [1, 1]} : vector<2x512xf32> to vector<2x384xf32>
    %157 = arith.negf %156 : vector<2x384xf32>
    %158 = math.exp %157 : vector<2x384xf32>
    %cst_83 = arith.constant 1.000000e+00 : f32
    %159 = vector.broadcast %cst_83 : f32 to vector<2x384xf32>
    %160 = arith.addf %159, %158 : vector<2x384xf32>
    %161 = arith.divf %159, %160 : vector<2x384xf32>
    %162 = vector.extract_strided_slice %152 {offsets = [0, 384], sizes = [2, 128], strides = [1, 1]} : vector<2x512xf32> to vector<2x128xf32>
    %163 = math.tanh %162 : vector<2x128xf32>
    %164 = vector.extract_strided_slice %155 {offsets = [0, 0], sizes = [2, 384], strides = [1, 1]} : vector<2x512xf32> to vector<2x384xf32>
    %165 = arith.negf %164 : vector<2x384xf32>
    %166 = math.exp %165 : vector<2x384xf32>
    %cst_84 = arith.constant 1.000000e+00 : f32
    %167 = vector.broadcast %cst_84 : f32 to vector<2x384xf32>
    %168 = arith.addf %167, %166 : vector<2x384xf32>
    %169 = arith.divf %167, %168 : vector<2x384xf32>
    %170 = vector.extract_strided_slice %155 {offsets = [0, 384], sizes = [2, 128], strides = [1, 1]} : vector<2x512xf32> to vector<2x128xf32>
    %171 = math.tanh %170 : vector<2x128xf32>
    %172 = vector.extract_strided_slice %161 {offsets = [0, 128], sizes = [2, 128], strides = [1, 1]} : vector<2x384xf32> to vector<2x128xf32>
    %173 = arith.mulf %172, %135 : vector<2x128xf32>
    %174 = vector.extract_strided_slice %161 {offsets = [0, 0], sizes = [2, 128], strides = [1, 1]} : vector<2x384xf32> to vector<2x128xf32>
    %175 = arith.mulf %174, %163 : vector<2x128xf32>
    %176 = arith.addf %173, %175 : vector<2x128xf32>
    %177 = vector.extract_strided_slice %169 {offsets = [0, 128], sizes = [2, 128], strides = [1, 1]} : vector<2x384xf32> to vector<2x128xf32>
    %178 = arith.mulf %177, %140 : vector<2x128xf32>
    %179 = vector.extract_strided_slice %169 {offsets = [0, 0], sizes = [2, 128], strides = [1, 1]} : vector<2x384xf32> to vector<2x128xf32>
    %180 = arith.mulf %179, %171 : vector<2x128xf32>
    %181 = arith.addf %178, %180 : vector<2x128xf32>
    %182 = vector.extract_strided_slice %161 {offsets = [0, 256], sizes = [2, 128], strides = [1, 1]} : vector<2x384xf32> to vector<2x128xf32>
    %183 = math.tanh %176 : vector<2x128xf32>
    %184 = arith.mulf %182, %183 : vector<2x128xf32>
    %185 = vector.extract_strided_slice %169 {offsets = [0, 256], sizes = [2, 128], strides = [1, 1]} : vector<2x384xf32> to vector<2x128xf32>
    %186 = math.tanh %181 : vector<2x128xf32>
    %187 = arith.mulf %185, %186 : vector<2x128xf32>
    %188 = tpu.concatenate %184, %187 in 1 : vector<2x128xf32>, vector<2x128xf32> -> vector<2x256xf32>
    %189 = arith.truncf %188 : vector<2x256xf32> to vector<2x256xbf16>
    %cst_85 = arith.constant dense<0.000000e+00> : vector<2x1024xf32>
    %190 = tpu.matmul %189, %98, %cst_85 {dimension_numbers = #tpu.dot_dimension_numbers<[1], [0], [0], [1], [0, 0, 1, 1], [], []>} : vector<2x256xbf16>, vector<256x1024xbf16>, vector<2x1024xf32> -> vector<2x1024xf32>
    %191 = vector.extract_strided_slice %103 {offsets = [4, 0], sizes = [2, 512], strides = [1, 1]} : vector<8x1024xf32> to vector<2x512xf32>
    %192 = vector.extract_strided_slice %190 {offsets = [0, 0], sizes = [2, 512], strides = [1, 1]} : vector<2x1024xf32> to vector<2x512xf32>
    %193 = arith.addf %191, %192 : vector<2x512xf32>
    %194 = vector.extract_strided_slice %103 {offsets = [2, 512], sizes = [2, 512], strides = [1, 1]} : vector<8x1024xf32> to vector<2x512xf32>
    %195 = vector.extract_strided_slice %190 {offsets = [0, 512], sizes = [2, 512], strides = [1, 1]} : vector<2x1024xf32> to vector<2x512xf32>
    %196 = arith.addf %194, %195 : vector<2x512xf32>
    %197 = vector.extract_strided_slice %193 {offsets = [0, 0], sizes = [2, 384], strides = [1, 1]} : vector<2x512xf32> to vector<2x384xf32>
    %198 = arith.negf %197 : vector<2x384xf32>
    %199 = math.exp %198 : vector<2x384xf32>
    %cst_86 = arith.constant 1.000000e+00 : f32
    %200 = vector.broadcast %cst_86 : f32 to vector<2x384xf32>
    %201 = arith.addf %200, %199 : vector<2x384xf32>
    %202 = arith.divf %200, %201 : vector<2x384xf32>
    %203 = vector.extract_strided_slice %193 {offsets = [0, 384], sizes = [2, 128], strides = [1, 1]} : vector<2x512xf32> to vector<2x128xf32>
    %204 = math.tanh %203 : vector<2x128xf32>
    %205 = vector.extract_strided_slice %196 {offsets = [0, 0], sizes = [2, 384], strides = [1, 1]} : vector<2x512xf32> to vector<2x384xf32>
    %206 = arith.negf %205 : vector<2x384xf32>
    %207 = math.exp %206 : vector<2x384xf32>
    %cst_87 = arith.constant 1.000000e+00 : f32
    %208 = vector.broadcast %cst_87 : f32 to vector<2x384xf32>
    %209 = arith.addf %208, %207 : vector<2x384xf32>
    %210 = arith.divf %208, %209 : vector<2x384xf32>
    %211 = vector.extract_strided_slice %196 {offsets = [0, 384], sizes = [2, 128], strides = [1, 1]} : vector<2x512xf32> to vector<2x128xf32>
    %212 = math.tanh %211 : vector<2x128xf32>
    %213 = vector.extract_strided_slice %202 {offsets = [0, 128], sizes = [2, 128], strides = [1, 1]} : vector<2x384xf32> to vector<2x128xf32>
    %214 = arith.mulf %213, %176 : vector<2x128xf32>
    %215 = vector.extract_strided_slice %202 {offsets = [0, 0], sizes = [2, 128], strides = [1, 1]} : vector<2x384xf32> to vector<2x128xf32>
    %216 = arith.mulf %215, %204 : vector<2x128xf32>
    %217 = arith.addf %214, %216 : vector<2x128xf32>
    %218 = vector.extract_strided_slice %210 {offsets = [0, 128], sizes = [2, 128], strides = [1, 1]} : vector<2x384xf32> to vector<2x128xf32>
    %219 = arith.mulf %218, %181 : vector<2x128xf32>
    %220 = vector.extract_strided_slice %210 {offsets = [0, 0], sizes = [2, 128], strides = [1, 1]} : vector<2x384xf32> to vector<2x128xf32>
    %221 = arith.mulf %220, %212 : vector<2x128xf32>
    %222 = arith.addf %219, %221 : vector<2x128xf32>
    %223 = vector.extract_strided_slice %202 {offsets = [0, 256], sizes = [2, 128], strides = [1, 1]} : vector<2x384xf32> to vector<2x128xf32>
    %224 = math.tanh %217 : vector<2x128xf32>
    %225 = arith.mulf %223, %224 : vector<2x128xf32>
    %226 = vector.extract_strided_slice %210 {offsets = [0, 256], sizes = [2, 128], strides = [1, 1]} : vector<2x384xf32> to vector<2x128xf32>
    %227 = math.tanh %222 : vector<2x128xf32>
    %228 = arith.mulf %226, %227 : vector<2x128xf32>
    %229 = tpu.concatenate %225, %228 in 1 : vector<2x128xf32>, vector<2x128xf32> -> vector<2x256xf32>
    %230 = arith.truncf %229 : vector<2x256xf32> to vector<2x256xbf16>
    %cst_88 = arith.constant dense<0.000000e+00> : vector<2x1024xf32>
    %231 = tpu.matmul %230, %98, %cst_88 {dimension_numbers = #tpu.dot_dimension_numbers<[1], [0], [0], [1], [0, 0, 1, 1], [], []>} : vector<2x256xbf16>, vector<256x1024xbf16>, vector<2x1024xf32> -> vector<2x1024xf32>
    %232 = vector.extract_strided_slice %103 {offsets = [6, 0], sizes = [2, 512], strides = [1, 1]} : vector<8x1024xf32> to vector<2x512xf32>
    %233 = vector.extract_strided_slice %231 {offsets = [0, 0], sizes = [2, 512], strides = [1, 1]} : vector<2x1024xf32> to vector<2x512xf32>
    %234 = arith.addf %232, %233 : vector<2x512xf32>
    %235 = vector.extract_strided_slice %103 {offsets = [0, 512], sizes = [2, 512], strides = [1, 1]} : vector<8x1024xf32> to vector<2x512xf32>
    %236 = vector.extract_strided_slice %231 {offsets = [0, 512], sizes = [2, 512], strides = [1, 1]} : vector<2x1024xf32> to vector<2x512xf32>
    %237 = arith.addf %235, %236 : vector<2x512xf32>
    %238 = vector.extract_strided_slice %234 {offsets = [0, 0], sizes = [2, 384], strides = [1, 1]} : vector<2x512xf32> to vector<2x384xf32>
    %239 = arith.negf %238 : vector<2x384xf32>
    %240 = math.exp %239 : vector<2x384xf32>
    %cst_89 = arith.constant 1.000000e+00 : f32
    %241 = vector.broadcast %cst_89 : f32 to vector<2x384xf32>
    %242 = arith.addf %241, %240 : vector<2x384xf32>
    %243 = arith.divf %241, %242 : vector<2x384xf32>
    %244 = vector.extract_strided_slice %234 {offsets = [0, 384], sizes = [2, 128], strides = [1, 1]} : vector<2x512xf32> to vector<2x128xf32>
    %245 = math.tanh %244 : vector<2x128xf32>
    %246 = vector.extract_strided_slice %237 {offsets = [0, 0], sizes = [2, 384], strides = [1, 1]} : vector<2x512xf32> to vector<2x384xf32>
    %247 = arith.negf %246 : vector<2x384xf32>
    %248 = math.exp %247 : vector<2x384xf32>
    %cst_90 = arith.constant 1.000000e+00 : f32
    %249 = vector.broadcast %cst_90 : f32 to vector<2x384xf32>
    %250 = arith.addf %249, %248 : vector<2x384xf32>
    %251 = arith.divf %249, %250 : vector<2x384xf32>
    %252 = vector.extract_strided_slice %237 {offsets = [0, 384], sizes = [2, 128], strides = [1, 1]} : vector<2x512xf32> to vector<2x128xf32>
    %253 = math.tanh %252 : vector<2x128xf32>
    %254 = vector.extract_strided_slice %243 {offsets = [0, 128], sizes = [2, 128], strides = [1, 1]} : vector<2x384xf32> to vector<2x128xf32>
    %255 = arith.mulf %254, %217 : vector<2x128xf32>
    %256 = vector.extract_strided_slice %243 {offsets = [0, 0], sizes = [2, 128], strides = [1, 1]} : vector<2x384xf32> to vector<2x128xf32>
    %257 = arith.mulf %256, %245 : vector<2x128xf32>
    %258 = arith.addf %255, %257 : vector<2x128xf32>
    %259 = vector.extract_strided_slice %251 {offsets = [0, 128], sizes = [2, 128], strides = [1, 1]} : vector<2x384xf32> to vector<2x128xf32>
    %260 = arith.mulf %259, %222 : vector<2x128xf32>
    %261 = vector.extract_strided_slice %251 {offsets = [0, 0], sizes = [2, 128], strides = [1, 1]} : vector<2x384xf32> to vector<2x128xf32>
    %262 = arith.mulf %261, %253 : vector<2x128xf32>
    %263 = arith.addf %260, %262 : vector<2x128xf32>
    %264 = vector.extract_strided_slice %243 {offsets = [0, 256], sizes = [2, 128], strides = [1, 1]} : vector<2x384xf32> to vector<2x128xf32>
    %265 = math.tanh %258 : vector<2x128xf32>
    %266 = arith.mulf %264, %265 : vector<2x128xf32>
    %267 = vector.extract_strided_slice %251 {offsets = [0, 256], sizes = [2, 128], strides = [1, 1]} : vector<2x384xf32> to vector<2x128xf32>
    %268 = math.tanh %263 : vector<2x128xf32>
    %269 = arith.mulf %267, %268 : vector<2x128xf32>
    %270 = tpu.concatenate %143, %269 in 1 : vector<2x128xf32>, vector<2x128xf32> -> vector<2x256xf32>
    %271 = tpu.concatenate %184, %228 in 1 : vector<2x128xf32>, vector<2x128xf32> -> vector<2x256xf32>
    %272 = tpu.concatenate %225, %187 in 1 : vector<2x128xf32>, vector<2x128xf32> -> vector<2x256xf32>
    %273 = tpu.concatenate %266, %146 in 1 : vector<2x128xf32>, vector<2x128xf32> -> vector<2x256xf32>
    %274 = tpu.concatenate %270, %271, %272, %273 in 0 : vector<2x256xf32>, vector<2x256xf32>, vector<2x256xf32>, vector<2x256xf32> -> vector<8x256xf32>
    %c0_91 = arith.constant 0 : index
    %c0_92 = arith.constant 0 : index
    %c0_93 = arith.constant 0 : index
    %275 = vector.load %arg10[%c0_91, %c0_92, %c0_93] : memref<2x256x1024xbf16, #tpu.memory_space<vmem>>, vector<1x256x1024xbf16>
    %276 = vector.shape_cast %275 : vector<1x256x1024xbf16> to vector<256x1024xbf16>
    %c1_94 = arith.constant 1 : index
    %c0_95 = arith.constant 0 : index
    %c0_96 = arith.constant 0 : index
    %277 = vector.load %arg11[%c1_94, %c0_95, %c0_96] : memref<3x256x1024xbf16, #tpu.memory_space<vmem>>, vector<1x256x1024xbf16>
    %278 = vector.shape_cast %277 : vector<1x256x1024xbf16> to vector<256x1024xbf16>
    %279 = arith.truncf %274 : vector<8x256xf32> to vector<8x256xbf16>
    %cst_97 = arith.constant dense<0.000000e+00> : vector<8x1024xf32>
    %280 = tpu.matmul %279, %276, %cst_97 {dimension_numbers = #tpu.dot_dimension_numbers<[1], [0], [0], [1], [0, 0, 1, 1], [], []>} : vector<8x256xbf16>, vector<256x1024xbf16>, vector<8x1024xf32> -> vector<8x1024xf32>
    %281 = vector.extract_strided_slice %95 {offsets = [1, 0], sizes = [1, 1024], strides = [1, 1]} : vector<3x1024xf32> to vector<1x1024xf32>
    %282 = vector.broadcast %281 : vector<1x1024xf32> to vector<8x1024xf32>
    %283 = arith.addf %280, %282 : vector<8x1024xf32>
    %cst_98 = arith.constant 0.000000e+00 : f32
    %284 = vector.broadcast %cst_98 : f32 to vector<2x128xf32>
    %cst_99 = arith.constant 0.000000e+00 : f32
    %285 = vector.broadcast %cst_99 : f32 to vector<2x128xf32>
    %cst_100 = arith.constant 0.000000e+00 : f32
    %286 = vector.broadcast %cst_100 : f32 to vector<2x256xf32>
    %287 = arith.truncf %286 : vector<2x256xf32> to vector<2x256xbf16>
    %cst_101 = arith.constant dense<0.000000e+00> : vector<2x1024xf32>
    %288 = tpu.matmul %287, %278, %cst_101 {dimension_numbers = #tpu.dot_dimension_numbers<[1], [0], [0], [1], [0, 0, 1, 1], [], []>} : vector<2x256xbf16>, vector<256x1024xbf16>, vector<2x1024xf32> -> vector<2x1024xf32>
    %289 = vector.extract_strided_slice %283 {offsets = [0, 0], sizes = [2, 512], strides = [1, 1]} : vector<8x1024xf32> to vector<2x512xf32>
    %290 = vector.extract_strided_slice %288 {offsets = [0, 0], sizes = [2, 512], strides = [1, 1]} : vector<2x1024xf32> to vector<2x512xf32>
    %291 = arith.addf %289, %290 : vector<2x512xf32>
    %292 = vector.extract_strided_slice %283 {offsets = [6, 512], sizes = [2, 512], strides = [1, 1]} : vector<8x1024xf32> to vector<2x512xf32>
    %293 = vector.extract_strided_slice %288 {offsets = [0, 512], sizes = [2, 512], strides = [1, 1]} : vector<2x1024xf32> to vector<2x512xf32>
    %294 = arith.addf %292, %293 : vector<2x512xf32>
    %295 = vector.extract_strided_slice %291 {offsets = [0, 0], sizes = [2, 384], strides = [1, 1]} : vector<2x512xf32> to vector<2x384xf32>
    %296 = arith.negf %295 : vector<2x384xf32>
    %297 = math.exp %296 : vector<2x384xf32>
    %cst_102 = arith.constant 1.000000e+00 : f32
    %298 = vector.broadcast %cst_102 : f32 to vector<2x384xf32>
    %299 = arith.addf %298, %297 : vector<2x384xf32>
    %300 = arith.divf %298, %299 : vector<2x384xf32>
    %301 = vector.extract_strided_slice %291 {offsets = [0, 384], sizes = [2, 128], strides = [1, 1]} : vector<2x512xf32> to vector<2x128xf32>
    %302 = math.tanh %301 : vector<2x128xf32>
    %303 = vector.extract_strided_slice %294 {offsets = [0, 0], sizes = [2, 384], strides = [1, 1]} : vector<2x512xf32> to vector<2x384xf32>
    %304 = arith.negf %303 : vector<2x384xf32>
    %305 = math.exp %304 : vector<2x384xf32>
    %cst_103 = arith.constant 1.000000e+00 : f32
    %306 = vector.broadcast %cst_103 : f32 to vector<2x384xf32>
    %307 = arith.addf %306, %305 : vector<2x384xf32>
    %308 = arith.divf %306, %307 : vector<2x384xf32>
    %309 = vector.extract_strided_slice %294 {offsets = [0, 384], sizes = [2, 128], strides = [1, 1]} : vector<2x512xf32> to vector<2x128xf32>
    %310 = math.tanh %309 : vector<2x128xf32>
    %311 = vector.extract_strided_slice %300 {offsets = [0, 128], sizes = [2, 128], strides = [1, 1]} : vector<2x384xf32> to vector<2x128xf32>
    %312 = arith.mulf %311, %284 : vector<2x128xf32>
    %313 = vector.extract_strided_slice %300 {offsets = [0, 0], sizes = [2, 128], strides = [1, 1]} : vector<2x384xf32> to vector<2x128xf32>
    %314 = arith.mulf %313, %302 : vector<2x128xf32>
    %315 = arith.addf %312, %314 : vector<2x128xf32>
    %316 = vector.extract_strided_slice %308 {offsets = [0, 128], sizes = [2, 128], strides = [1, 1]} : vector<2x384xf32> to vector<2x128xf32>
    %317 = arith.mulf %316, %285 : vector<2x128xf32>
    %318 = vector.extract_strided_slice %308 {offsets = [0, 0], sizes = [2, 128], strides = [1, 1]} : vector<2x384xf32> to vector<2x128xf32>
    %319 = arith.mulf %318, %310 : vector<2x128xf32>
    %320 = arith.addf %317, %319 : vector<2x128xf32>
    %321 = vector.extract_strided_slice %300 {offsets = [0, 256], sizes = [2, 128], strides = [1, 1]} : vector<2x384xf32> to vector<2x128xf32>
    %322 = math.tanh %315 : vector<2x128xf32>
    %323 = arith.mulf %321, %322 : vector<2x128xf32>
    %324 = vector.extract_strided_slice %308 {offsets = [0, 256], sizes = [2, 128], strides = [1, 1]} : vector<2x384xf32> to vector<2x128xf32>
    %325 = math.tanh %320 : vector<2x128xf32>
    %326 = arith.mulf %324, %325 : vector<2x128xf32>
    %327 = tpu.concatenate %323, %326 in 1 : vector<2x128xf32>, vector<2x128xf32> -> vector<2x256xf32>
    %328 = arith.truncf %327 : vector<2x256xf32> to vector<2x256xbf16>
    %cst_104 = arith.constant dense<0.000000e+00> : vector<2x1024xf32>
    %329 = tpu.matmul %328, %278, %cst_104 {dimension_numbers = #tpu.dot_dimension_numbers<[1], [0], [0], [1], [0, 0, 1, 1], [], []>} : vector<2x256xbf16>, vector<256x1024xbf16>, vector<2x1024xf32> -> vector<2x1024xf32>
    %330 = vector.extract_strided_slice %283 {offsets = [2, 0], sizes = [2, 512], strides = [1, 1]} : vector<8x1024xf32> to vector<2x512xf32>
    %331 = vector.extract_strided_slice %329 {offsets = [0, 0], sizes = [2, 512], strides = [1, 1]} : vector<2x1024xf32> to vector<2x512xf32>
    %332 = arith.addf %330, %331 : vector<2x512xf32>
    %333 = vector.extract_strided_slice %283 {offsets = [4, 512], sizes = [2, 512], strides = [1, 1]} : vector<8x1024xf32> to vector<2x512xf32>
    %334 = vector.extract_strided_slice %329 {offsets = [0, 512], sizes = [2, 512], strides = [1, 1]} : vector<2x1024xf32> to vector<2x512xf32>
    %335 = arith.addf %333, %334 : vector<2x512xf32>
    %336 = vector.extract_strided_slice %332 {offsets = [0, 0], sizes = [2, 384], strides = [1, 1]} : vector<2x512xf32> to vector<2x384xf32>
    %337 = arith.negf %336 : vector<2x384xf32>
    %338 = math.exp %337 : vector<2x384xf32>
    %cst_105 = arith.constant 1.000000e+00 : f32
    %339 = vector.broadcast %cst_105 : f32 to vector<2x384xf32>
    %340 = arith.addf %339, %338 : vector<2x384xf32>
    %341 = arith.divf %339, %340 : vector<2x384xf32>
    %342 = vector.extract_strided_slice %332 {offsets = [0, 384], sizes = [2, 128], strides = [1, 1]} : vector<2x512xf32> to vector<2x128xf32>
    %343 = math.tanh %342 : vector<2x128xf32>
    %344 = vector.extract_strided_slice %335 {offsets = [0, 0], sizes = [2, 384], strides = [1, 1]} : vector<2x512xf32> to vector<2x384xf32>
    %345 = arith.negf %344 : vector<2x384xf32>
    %346 = math.exp %345 : vector<2x384xf32>
    %cst_106 = arith.constant 1.000000e+00 : f32
    %347 = vector.broadcast %cst_106 : f32 to vector<2x384xf32>
    %348 = arith.addf %347, %346 : vector<2x384xf32>
    %349 = arith.divf %347, %348 : vector<2x384xf32>
    %350 = vector.extract_strided_slice %335 {offsets = [0, 384], sizes = [2, 128], strides = [1, 1]} : vector<2x512xf32> to vector<2x128xf32>
    %351 = math.tanh %350 : vector<2x128xf32>
    %352 = vector.extract_strided_slice %341 {offsets = [0, 128], sizes = [2, 128], strides = [1, 1]} : vector<2x384xf32> to vector<2x128xf32>
    %353 = arith.mulf %352, %315 : vector<2x128xf32>
    %354 = vector.extract_strided_slice %341 {offsets = [0, 0], sizes = [2, 128], strides = [1, 1]} : vector<2x384xf32> to vector<2x128xf32>
    %355 = arith.mulf %354, %343 : vector<2x128xf32>
    %356 = arith.addf %353, %355 : vector<2x128xf32>
    %357 = vector.extract_strided_slice %349 {offsets = [0, 128], sizes = [2, 128], strides = [1, 1]} : vector<2x384xf32> to vector<2x128xf32>
    %358 = arith.mulf %357, %320 : vector<2x128xf32>
    %359 = vector.extract_strided_slice %349 {offsets = [0, 0], sizes = [2, 128], strides = [1, 1]} : vector<2x384xf32> to vector<2x128xf32>
    %360 = arith.mulf %359, %351 : vector<2x128xf32>
    %361 = arith.addf %358, %360 : vector<2x128xf32>
    %362 = vector.extract_strided_slice %341 {offsets = [0, 256], sizes = [2, 128], strides = [1, 1]} : vector<2x384xf32> to vector<2x128xf32>
    %363 = math.tanh %356 : vector<2x128xf32>
    %364 = arith.mulf %362, %363 : vector<2x128xf32>
    %365 = vector.extract_strided_slice %349 {offsets = [0, 256], sizes = [2, 128], strides = [1, 1]} : vector<2x384xf32> to vector<2x128xf32>
    %366 = math.tanh %361 : vector<2x128xf32>
    %367 = arith.mulf %365, %366 : vector<2x128xf32>
    %368 = tpu.concatenate %364, %367 in 1 : vector<2x128xf32>, vector<2x128xf32> -> vector<2x256xf32>
    %369 = arith.truncf %368 : vector<2x256xf32> to vector<2x256xbf16>
    %cst_107 = arith.constant dense<0.000000e+00> : vector<2x1024xf32>
    %370 = tpu.matmul %369, %278, %cst_107 {dimension_numbers = #tpu.dot_dimension_numbers<[1], [0], [0], [1], [0, 0, 1, 1], [], []>} : vector<2x256xbf16>, vector<256x1024xbf16>, vector<2x1024xf32> -> vector<2x1024xf32>
    %371 = vector.extract_strided_slice %283 {offsets = [4, 0], sizes = [2, 512], strides = [1, 1]} : vector<8x1024xf32> to vector<2x512xf32>
    %372 = vector.extract_strided_slice %370 {offsets = [0, 0], sizes = [2, 512], strides = [1, 1]} : vector<2x1024xf32> to vector<2x512xf32>
    %373 = arith.addf %371, %372 : vector<2x512xf32>
    %374 = vector.extract_strided_slice %283 {offsets = [2, 512], sizes = [2, 512], strides = [1, 1]} : vector<8x1024xf32> to vector<2x512xf32>
    %375 = vector.extract_strided_slice %370 {offsets = [0, 512], sizes = [2, 512], strides = [1, 1]} : vector<2x1024xf32> to vector<2x512xf32>
    %376 = arith.addf %374, %375 : vector<2x512xf32>
    %377 = vector.extract_strided_slice %373 {offsets = [0, 0], sizes = [2, 384], strides = [1, 1]} : vector<2x512xf32> to vector<2x384xf32>
    %378 = arith.negf %377 : vector<2x384xf32>
    %379 = math.exp %378 : vector<2x384xf32>
    %cst_108 = arith.constant 1.000000e+00 : f32
    %380 = vector.broadcast %cst_108 : f32 to vector<2x384xf32>
    %381 = arith.addf %380, %379 : vector<2x384xf32>
    %382 = arith.divf %380, %381 : vector<2x384xf32>
    %383 = vector.extract_strided_slice %373 {offsets = [0, 384], sizes = [2, 128], strides = [1, 1]} : vector<2x512xf32> to vector<2x128xf32>
    %384 = math.tanh %383 : vector<2x128xf32>
    %385 = vector.extract_strided_slice %376 {offsets = [0, 0], sizes = [2, 384], strides = [1, 1]} : vector<2x512xf32> to vector<2x384xf32>
    %386 = arith.negf %385 : vector<2x384xf32>
    %387 = math.exp %386 : vector<2x384xf32>
    %cst_109 = arith.constant 1.000000e+00 : f32
    %388 = vector.broadcast %cst_109 : f32 to vector<2x384xf32>
    %389 = arith.addf %388, %387 : vector<2x384xf32>
    %390 = arith.divf %388, %389 : vector<2x384xf32>
    %391 = vector.extract_strided_slice %376 {offsets = [0, 384], sizes = [2, 128], strides = [1, 1]} : vector<2x512xf32> to vector<2x128xf32>
    %392 = math.tanh %391 : vector<2x128xf32>
    %393 = vector.extract_strided_slice %382 {offsets = [0, 128], sizes = [2, 128], strides = [1, 1]} : vector<2x384xf32> to vector<2x128xf32>
    %394 = arith.mulf %393, %356 : vector<2x128xf32>
    %395 = vector.extract_strided_slice %382 {offsets = [0, 0], sizes = [2, 128], strides = [1, 1]} : vector<2x384xf32> to vector<2x128xf32>
    %396 = arith.mulf %395, %384 : vector<2x128xf32>
    %397 = arith.addf %394, %396 : vector<2x128xf32>
    %398 = vector.extract_strided_slice %390 {offsets = [0, 128], sizes = [2, 128], strides = [1, 1]} : vector<2x384xf32> to vector<2x128xf32>
    %399 = arith.mulf %398, %361 : vector<2x128xf32>
    %400 = vector.extract_strided_slice %390 {offsets = [0, 0], sizes = [2, 128], strides = [1, 1]} : vector<2x384xf32> to vector<2x128xf32>
    %401 = arith.mulf %400, %392 : vector<2x128xf32>
    %402 = arith.addf %399, %401 : vector<2x128xf32>
    %403 = vector.extract_strided_slice %382 {offsets = [0, 256], sizes = [2, 128], strides = [1, 1]} : vector<2x384xf32> to vector<2x128xf32>
    %404 = math.tanh %397 : vector<2x128xf32>
    %405 = arith.mulf %403, %404 : vector<2x128xf32>
    %406 = vector.extract_strided_slice %390 {offsets = [0, 256], sizes = [2, 128], strides = [1, 1]} : vector<2x384xf32> to vector<2x128xf32>
    %407 = math.tanh %402 : vector<2x128xf32>
    %408 = arith.mulf %406, %407 : vector<2x128xf32>
    %409 = tpu.concatenate %405, %408 in 1 : vector<2x128xf32>, vector<2x128xf32> -> vector<2x256xf32>
    %410 = arith.truncf %409 : vector<2x256xf32> to vector<2x256xbf16>
    %cst_110 = arith.constant dense<0.000000e+00> : vector<2x1024xf32>
    %411 = tpu.matmul %410, %278, %cst_110 {dimension_numbers = #tpu.dot_dimension_numbers<[1], [0], [0], [1], [0, 0, 1, 1], [], []>} : vector<2x256xbf16>, vector<256x1024xbf16>, vector<2x1024xf32> -> vector<2x1024xf32>
    %412 = vector.extract_strided_slice %283 {offsets = [6, 0], sizes = [2, 512], strides = [1, 1]} : vector<8x1024xf32> to vector<2x512xf32>
    %413 = vector.extract_strided_slice %411 {offsets = [0, 0], sizes = [2, 512], strides = [1, 1]} : vector<2x1024xf32> to vector<2x512xf32>
    %414 = arith.addf %412, %413 : vector<2x512xf32>
    %415 = vector.extract_strided_slice %283 {offsets = [0, 512], sizes = [2, 512], strides = [1, 1]} : vector<8x1024xf32> to vector<2x512xf32>
    %416 = vector.extract_strided_slice %411 {offsets = [0, 512], sizes = [2, 512], strides = [1, 1]} : vector<2x1024xf32> to vector<2x512xf32>
    %417 = arith.addf %415, %416 : vector<2x512xf32>
    %418 = vector.extract_strided_slice %414 {offsets = [0, 0], sizes = [2, 384], strides = [1, 1]} : vector<2x512xf32> to vector<2x384xf32>
    %419 = arith.negf %418 : vector<2x384xf32>
    %420 = math.exp %419 : vector<2x384xf32>
    %cst_111 = arith.constant 1.000000e+00 : f32
    %421 = vector.broadcast %cst_111 : f32 to vector<2x384xf32>
    %422 = arith.addf %421, %420 : vector<2x384xf32>
    %423 = arith.divf %421, %422 : vector<2x384xf32>
    %424 = vector.extract_strided_slice %414 {offsets = [0, 384], sizes = [2, 128], strides = [1, 1]} : vector<2x512xf32> to vector<2x128xf32>
    %425 = math.tanh %424 : vector<2x128xf32>
    %426 = vector.extract_strided_slice %417 {offsets = [0, 0], sizes = [2, 384], strides = [1, 1]} : vector<2x512xf32> to vector<2x384xf32>
    %427 = arith.negf %426 : vector<2x384xf32>
    %428 = math.exp %427 : vector<2x384xf32>
    %cst_112 = arith.constant 1.000000e+00 : f32
    %429 = vector.broadcast %cst_112 : f32 to vector<2x384xf32>
    %430 = arith.addf %429, %428 : vector<2x384xf32>
    %431 = arith.divf %429, %430 : vector<2x384xf32>
    %432 = vector.extract_strided_slice %417 {offsets = [0, 384], sizes = [2, 128], strides = [1, 1]} : vector<2x512xf32> to vector<2x128xf32>
    %433 = math.tanh %432 : vector<2x128xf32>
    %434 = vector.extract_strided_slice %423 {offsets = [0, 128], sizes = [2, 128], strides = [1, 1]} : vector<2x384xf32> to vector<2x128xf32>
    %435 = arith.mulf %434, %397 : vector<2x128xf32>
    %436 = vector.extract_strided_slice %423 {offsets = [0, 0], sizes = [2, 128], strides = [1, 1]} : vector<2x384xf32> to vector<2x128xf32>
    %437 = arith.mulf %436, %425 : vector<2x128xf32>
    %438 = arith.addf %435, %437 : vector<2x128xf32>
    %439 = vector.extract_strided_slice %431 {offsets = [0, 128], sizes = [2, 128], strides = [1, 1]} : vector<2x384xf32> to vector<2x128xf32>
    %440 = arith.mulf %439, %402 : vector<2x128xf32>
    %441 = vector.extract_strided_slice %431 {offsets = [0, 0], sizes = [2, 128], strides = [1, 1]} : vector<2x384xf32> to vector<2x128xf32>
    %442 = arith.mulf %441, %433 : vector<2x128xf32>
    %443 = arith.addf %440, %442 : vector<2x128xf32>
    %444 = vector.extract_strided_slice %423 {offsets = [0, 256], sizes = [2, 128], strides = [1, 1]} : vector<2x384xf32> to vector<2x128xf32>
    %445 = math.tanh %438 : vector<2x128xf32>
    %446 = arith.mulf %444, %445 : vector<2x128xf32>
    %447 = vector.extract_strided_slice %431 {offsets = [0, 256], sizes = [2, 128], strides = [1, 1]} : vector<2x384xf32> to vector<2x128xf32>
    %448 = math.tanh %443 : vector<2x128xf32>
    %449 = arith.mulf %447, %448 : vector<2x128xf32>
    %450 = tpu.concatenate %323, %449 in 1 : vector<2x128xf32>, vector<2x128xf32> -> vector<2x256xf32>
    %451 = tpu.concatenate %364, %408 in 1 : vector<2x128xf32>, vector<2x128xf32> -> vector<2x256xf32>
    %452 = tpu.concatenate %405, %367 in 1 : vector<2x128xf32>, vector<2x128xf32> -> vector<2x256xf32>
    %453 = tpu.concatenate %446, %326 in 1 : vector<2x128xf32>, vector<2x128xf32> -> vector<2x256xf32>
    %454 = tpu.concatenate %450, %451, %452, %453 in 0 : vector<2x256xf32>, vector<2x256xf32>, vector<2x256xf32>, vector<2x256xf32> -> vector<8x256xf32>
    %c1_113 = arith.constant 1 : index
    %c0_114 = arith.constant 0 : index
    %c0_115 = arith.constant 0 : index
    %455 = vector.load %arg10[%c1_113, %c0_114, %c0_115] : memref<2x256x1024xbf16, #tpu.memory_space<vmem>>, vector<1x256x1024xbf16>
    %456 = vector.shape_cast %455 : vector<1x256x1024xbf16> to vector<256x1024xbf16>
    %c2_116 = arith.constant 2 : index
    %c0_117 = arith.constant 0 : index
    %c0_118 = arith.constant 0 : index
    %457 = vector.load %arg11[%c2_116, %c0_117, %c0_118] : memref<3x256x1024xbf16, #tpu.memory_space<vmem>>, vector<1x256x1024xbf16>
    %458 = vector.shape_cast %457 : vector<1x256x1024xbf16> to vector<256x1024xbf16>
    %459 = arith.truncf %454 : vector<8x256xf32> to vector<8x256xbf16>
    %cst_119 = arith.constant dense<0.000000e+00> : vector<8x1024xf32>
    %460 = tpu.matmul %459, %456, %cst_119 {dimension_numbers = #tpu.dot_dimension_numbers<[1], [0], [0], [1], [0, 0, 1, 1], [], []>} : vector<8x256xbf16>, vector<256x1024xbf16>, vector<8x1024xf32> -> vector<8x1024xf32>
    %461 = vector.extract_strided_slice %95 {offsets = [2, 0], sizes = [1, 1024], strides = [1, 1]} : vector<3x1024xf32> to vector<1x1024xf32>
    %462 = vector.broadcast %461 : vector<1x1024xf32> to vector<8x1024xf32>
    %463 = arith.addf %460, %462 : vector<8x1024xf32>
    %cst_120 = arith.constant 0.000000e+00 : f32
    %464 = vector.broadcast %cst_120 : f32 to vector<2x128xf32>
    %cst_121 = arith.constant 0.000000e+00 : f32
    %465 = vector.broadcast %cst_121 : f32 to vector<2x128xf32>
    %cst_122 = arith.constant 0.000000e+00 : f32
    %466 = vector.broadcast %cst_122 : f32 to vector<2x256xf32>
    %467 = arith.truncf %466 : vector<2x256xf32> to vector<2x256xbf16>
    %cst_123 = arith.constant dense<0.000000e+00> : vector<2x1024xf32>
    %468 = tpu.matmul %467, %458, %cst_123 {dimension_numbers = #tpu.dot_dimension_numbers<[1], [0], [0], [1], [0, 0, 1, 1], [], []>} : vector<2x256xbf16>, vector<256x1024xbf16>, vector<2x1024xf32> -> vector<2x1024xf32>
    %469 = vector.extract_strided_slice %463 {offsets = [0, 0], sizes = [2, 512], strides = [1, 1]} : vector<8x1024xf32> to vector<2x512xf32>
    %470 = vector.extract_strided_slice %468 {offsets = [0, 0], sizes = [2, 512], strides = [1, 1]} : vector<2x1024xf32> to vector<2x512xf32>
    %471 = arith.addf %469, %470 : vector<2x512xf32>
    %472 = vector.extract_strided_slice %463 {offsets = [6, 512], sizes = [2, 512], strides = [1, 1]} : vector<8x1024xf32> to vector<2x512xf32>
    %473 = vector.extract_strided_slice %468 {offsets = [0, 512], sizes = [2, 512], strides = [1, 1]} : vector<2x1024xf32> to vector<2x512xf32>
    %474 = arith.addf %472, %473 : vector<2x512xf32>
    %475 = vector.extract_strided_slice %471 {offsets = [0, 0], sizes = [2, 384], strides = [1, 1]} : vector<2x512xf32> to vector<2x384xf32>
    %476 = arith.negf %475 : vector<2x384xf32>
    %477 = math.exp %476 : vector<2x384xf32>
    %cst_124 = arith.constant 1.000000e+00 : f32
    %478 = vector.broadcast %cst_124 : f32 to vector<2x384xf32>
    %479 = arith.addf %478, %477 : vector<2x384xf32>
    %480 = arith.divf %478, %479 : vector<2x384xf32>
    %481 = vector.extract_strided_slice %471 {offsets = [0, 384], sizes = [2, 128], strides = [1, 1]} : vector<2x512xf32> to vector<2x128xf32>
    %482 = math.tanh %481 : vector<2x128xf32>
    %483 = vector.extract_strided_slice %474 {offsets = [0, 0], sizes = [2, 384], strides = [1, 1]} : vector<2x512xf32> to vector<2x384xf32>
    %484 = arith.negf %483 : vector<2x384xf32>
    %485 = math.exp %484 : vector<2x384xf32>
    %cst_125 = arith.constant 1.000000e+00 : f32
    %486 = vector.broadcast %cst_125 : f32 to vector<2x384xf32>
    %487 = arith.addf %486, %485 : vector<2x384xf32>
    %488 = arith.divf %486, %487 : vector<2x384xf32>
    %489 = vector.extract_strided_slice %474 {offsets = [0, 384], sizes = [2, 128], strides = [1, 1]} : vector<2x512xf32> to vector<2x128xf32>
    %490 = math.tanh %489 : vector<2x128xf32>
    %491 = vector.extract_strided_slice %480 {offsets = [0, 128], sizes = [2, 128], strides = [1, 1]} : vector<2x384xf32> to vector<2x128xf32>
    %492 = arith.mulf %491, %464 : vector<2x128xf32>
    %493 = vector.extract_strided_slice %480 {offsets = [0, 0], sizes = [2, 128], strides = [1, 1]} : vector<2x384xf32> to vector<2x128xf32>
    %494 = arith.mulf %493, %482 : vector<2x128xf32>
    %495 = arith.addf %492, %494 : vector<2x128xf32>
    %496 = vector.extract_strided_slice %488 {offsets = [0, 128], sizes = [2, 128], strides = [1, 1]} : vector<2x384xf32> to vector<2x128xf32>
    %497 = arith.mulf %496, %465 : vector<2x128xf32>
    %498 = vector.extract_strided_slice %488 {offsets = [0, 0], sizes = [2, 128], strides = [1, 1]} : vector<2x384xf32> to vector<2x128xf32>
    %499 = arith.mulf %498, %490 : vector<2x128xf32>
    %500 = arith.addf %497, %499 : vector<2x128xf32>
    %501 = vector.extract_strided_slice %480 {offsets = [0, 256], sizes = [2, 128], strides = [1, 1]} : vector<2x384xf32> to vector<2x128xf32>
    %502 = math.tanh %495 : vector<2x128xf32>
    %503 = arith.mulf %501, %502 : vector<2x128xf32>
    %504 = vector.extract_strided_slice %488 {offsets = [0, 256], sizes = [2, 128], strides = [1, 1]} : vector<2x384xf32> to vector<2x128xf32>
    %505 = math.tanh %500 : vector<2x128xf32>
    %506 = arith.mulf %504, %505 : vector<2x128xf32>
    %507 = tpu.concatenate %503, %506 in 1 : vector<2x128xf32>, vector<2x128xf32> -> vector<2x256xf32>
    %508 = arith.truncf %507 : vector<2x256xf32> to vector<2x256xbf16>
    %cst_126 = arith.constant dense<0.000000e+00> : vector<2x1024xf32>
    %509 = tpu.matmul %508, %458, %cst_126 {dimension_numbers = #tpu.dot_dimension_numbers<[1], [0], [0], [1], [0, 0, 1, 1], [], []>} : vector<2x256xbf16>, vector<256x1024xbf16>, vector<2x1024xf32> -> vector<2x1024xf32>
    %510 = vector.extract_strided_slice %463 {offsets = [2, 0], sizes = [2, 512], strides = [1, 1]} : vector<8x1024xf32> to vector<2x512xf32>
    %511 = vector.extract_strided_slice %509 {offsets = [0, 0], sizes = [2, 512], strides = [1, 1]} : vector<2x1024xf32> to vector<2x512xf32>
    %512 = arith.addf %510, %511 : vector<2x512xf32>
    %513 = vector.extract_strided_slice %463 {offsets = [4, 512], sizes = [2, 512], strides = [1, 1]} : vector<8x1024xf32> to vector<2x512xf32>
    %514 = vector.extract_strided_slice %509 {offsets = [0, 512], sizes = [2, 512], strides = [1, 1]} : vector<2x1024xf32> to vector<2x512xf32>
    %515 = arith.addf %513, %514 : vector<2x512xf32>
    %516 = vector.extract_strided_slice %512 {offsets = [0, 0], sizes = [2, 384], strides = [1, 1]} : vector<2x512xf32> to vector<2x384xf32>
    %517 = arith.negf %516 : vector<2x384xf32>
    %518 = math.exp %517 : vector<2x384xf32>
    %cst_127 = arith.constant 1.000000e+00 : f32
    %519 = vector.broadcast %cst_127 : f32 to vector<2x384xf32>
    %520 = arith.addf %519, %518 : vector<2x384xf32>
    %521 = arith.divf %519, %520 : vector<2x384xf32>
    %522 = vector.extract_strided_slice %512 {offsets = [0, 384], sizes = [2, 128], strides = [1, 1]} : vector<2x512xf32> to vector<2x128xf32>
    %523 = math.tanh %522 : vector<2x128xf32>
    %524 = vector.extract_strided_slice %515 {offsets = [0, 0], sizes = [2, 384], strides = [1, 1]} : vector<2x512xf32> to vector<2x384xf32>
    %525 = arith.negf %524 : vector<2x384xf32>
    %526 = math.exp %525 : vector<2x384xf32>
    %cst_128 = arith.constant 1.000000e+00 : f32
    %527 = vector.broadcast %cst_128 : f32 to vector<2x384xf32>
    %528 = arith.addf %527, %526 : vector<2x384xf32>
    %529 = arith.divf %527, %528 : vector<2x384xf32>
    %530 = vector.extract_strided_slice %515 {offsets = [0, 384], sizes = [2, 128], strides = [1, 1]} : vector<2x512xf32> to vector<2x128xf32>
    %531 = math.tanh %530 : vector<2x128xf32>
    %532 = vector.extract_strided_slice %521 {offsets = [0, 128], sizes = [2, 128], strides = [1, 1]} : vector<2x384xf32> to vector<2x128xf32>
    %533 = arith.mulf %532, %495 : vector<2x128xf32>
    %534 = vector.extract_strided_slice %521 {offsets = [0, 0], sizes = [2, 128], strides = [1, 1]} : vector<2x384xf32> to vector<2x128xf32>
    %535 = arith.mulf %534, %523 : vector<2x128xf32>
    %536 = arith.addf %533, %535 : vector<2x128xf32>
    %537 = vector.extract_strided_slice %529 {offsets = [0, 128], sizes = [2, 128], strides = [1, 1]} : vector<2x384xf32> to vector<2x128xf32>
    %538 = arith.mulf %537, %500 : vector<2x128xf32>
    %539 = vector.extract_strided_slice %529 {offsets = [0, 0], sizes = [2, 128], strides = [1, 1]} : vector<2x384xf32> to vector<2x128xf32>
    %540 = arith.mulf %539, %531 : vector<2x128xf32>
    %541 = arith.addf %538, %540 : vector<2x128xf32>
    %542 = vector.extract_strided_slice %521 {offsets = [0, 256], sizes = [2, 128], strides = [1, 1]} : vector<2x384xf32> to vector<2x128xf32>
    %543 = math.tanh %536 : vector<2x128xf32>
    %544 = arith.mulf %542, %543 : vector<2x128xf32>
    %545 = vector.extract_strided_slice %529 {offsets = [0, 256], sizes = [2, 128], strides = [1, 1]} : vector<2x384xf32> to vector<2x128xf32>
    %546 = math.tanh %541 : vector<2x128xf32>
    %547 = arith.mulf %545, %546 : vector<2x128xf32>
    %548 = tpu.concatenate %544, %547 in 1 : vector<2x128xf32>, vector<2x128xf32> -> vector<2x256xf32>
    %549 = arith.truncf %548 : vector<2x256xf32> to vector<2x256xbf16>
    %cst_129 = arith.constant dense<0.000000e+00> : vector<2x1024xf32>
    %550 = tpu.matmul %549, %458, %cst_129 {dimension_numbers = #tpu.dot_dimension_numbers<[1], [0], [0], [1], [0, 0, 1, 1], [], []>} : vector<2x256xbf16>, vector<256x1024xbf16>, vector<2x1024xf32> -> vector<2x1024xf32>
    %551 = vector.extract_strided_slice %463 {offsets = [4, 0], sizes = [2, 512], strides = [1, 1]} : vector<8x1024xf32> to vector<2x512xf32>
    %552 = vector.extract_strided_slice %550 {offsets = [0, 0], sizes = [2, 512], strides = [1, 1]} : vector<2x1024xf32> to vector<2x512xf32>
    %553 = arith.addf %551, %552 : vector<2x512xf32>
    %554 = vector.extract_strided_slice %463 {offsets = [2, 512], sizes = [2, 512], strides = [1, 1]} : vector<8x1024xf32> to vector<2x512xf32>
    %555 = vector.extract_strided_slice %550 {offsets = [0, 512], sizes = [2, 512], strides = [1, 1]} : vector<2x1024xf32> to vector<2x512xf32>
    %556 = arith.addf %554, %555 : vector<2x512xf32>
    %557 = vector.extract_strided_slice %553 {offsets = [0, 0], sizes = [2, 384], strides = [1, 1]} : vector<2x512xf32> to vector<2x384xf32>
    %558 = arith.negf %557 : vector<2x384xf32>
    %559 = math.exp %558 : vector<2x384xf32>
    %cst_130 = arith.constant 1.000000e+00 : f32
    %560 = vector.broadcast %cst_130 : f32 to vector<2x384xf32>
    %561 = arith.addf %560, %559 : vector<2x384xf32>
    %562 = arith.divf %560, %561 : vector<2x384xf32>
    %563 = vector.extract_strided_slice %553 {offsets = [0, 384], sizes = [2, 128], strides = [1, 1]} : vector<2x512xf32> to vector<2x128xf32>
    %564 = math.tanh %563 : vector<2x128xf32>
    %565 = vector.extract_strided_slice %556 {offsets = [0, 0], sizes = [2, 384], strides = [1, 1]} : vector<2x512xf32> to vector<2x384xf32>
    %566 = arith.negf %565 : vector<2x384xf32>
    %567 = math.exp %566 : vector<2x384xf32>
    %cst_131 = arith.constant 1.000000e+00 : f32
    %568 = vector.broadcast %cst_131 : f32 to vector<2x384xf32>
    %569 = arith.addf %568, %567 : vector<2x384xf32>
    %570 = arith.divf %568, %569 : vector<2x384xf32>
    %571 = vector.extract_strided_slice %556 {offsets = [0, 384], sizes = [2, 128], strides = [1, 1]} : vector<2x512xf32> to vector<2x128xf32>
    %572 = math.tanh %571 : vector<2x128xf32>
    %573 = vector.extract_strided_slice %562 {offsets = [0, 128], sizes = [2, 128], strides = [1, 1]} : vector<2x384xf32> to vector<2x128xf32>
    %574 = arith.mulf %573, %536 : vector<2x128xf32>
    %575 = vector.extract_strided_slice %562 {offsets = [0, 0], sizes = [2, 128], strides = [1, 1]} : vector<2x384xf32> to vector<2x128xf32>
    %576 = arith.mulf %575, %564 : vector<2x128xf32>
    %577 = arith.addf %574, %576 : vector<2x128xf32>
    %578 = vector.extract_strided_slice %570 {offsets = [0, 128], sizes = [2, 128], strides = [1, 1]} : vector<2x384xf32> to vector<2x128xf32>
    %579 = arith.mulf %578, %541 : vector<2x128xf32>
    %580 = vector.extract_strided_slice %570 {offsets = [0, 0], sizes = [2, 128], strides = [1, 1]} : vector<2x384xf32> to vector<2x128xf32>
    %581 = arith.mulf %580, %572 : vector<2x128xf32>
    %582 = arith.addf %579, %581 : vector<2x128xf32>
    %583 = vector.extract_strided_slice %562 {offsets = [0, 256], sizes = [2, 128], strides = [1, 1]} : vector<2x384xf32> to vector<2x128xf32>
    %584 = math.tanh %577 : vector<2x128xf32>
    %585 = arith.mulf %583, %584 : vector<2x128xf32>
    %586 = vector.extract_strided_slice %570 {offsets = [0, 256], sizes = [2, 128], strides = [1, 1]} : vector<2x384xf32> to vector<2x128xf32>
    %587 = math.tanh %582 : vector<2x128xf32>
    %588 = arith.mulf %586, %587 : vector<2x128xf32>
    %589 = tpu.concatenate %585, %588 in 1 : vector<2x128xf32>, vector<2x128xf32> -> vector<2x256xf32>
    %590 = arith.truncf %589 : vector<2x256xf32> to vector<2x256xbf16>
    %cst_132 = arith.constant dense<0.000000e+00> : vector<2x1024xf32>
    %591 = tpu.matmul %590, %458, %cst_132 {dimension_numbers = #tpu.dot_dimension_numbers<[1], [0], [0], [1], [0, 0, 1, 1], [], []>} : vector<2x256xbf16>, vector<256x1024xbf16>, vector<2x1024xf32> -> vector<2x1024xf32>
    %592 = vector.extract_strided_slice %463 {offsets = [6, 0], sizes = [2, 512], strides = [1, 1]} : vector<8x1024xf32> to vector<2x512xf32>
    %593 = vector.extract_strided_slice %591 {offsets = [0, 0], sizes = [2, 512], strides = [1, 1]} : vector<2x1024xf32> to vector<2x512xf32>
    %594 = arith.addf %592, %593 : vector<2x512xf32>
    %595 = vector.extract_strided_slice %463 {offsets = [0, 512], sizes = [2, 512], strides = [1, 1]} : vector<8x1024xf32> to vector<2x512xf32>
    %596 = vector.extract_strided_slice %591 {offsets = [0, 512], sizes = [2, 512], strides = [1, 1]} : vector<2x1024xf32> to vector<2x512xf32>
    %597 = arith.addf %595, %596 : vector<2x512xf32>
    %598 = vector.extract_strided_slice %594 {offsets = [0, 0], sizes = [2, 384], strides = [1, 1]} : vector<2x512xf32> to vector<2x384xf32>
    %599 = arith.negf %598 : vector<2x384xf32>
    %600 = math.exp %599 : vector<2x384xf32>
    %cst_133 = arith.constant 1.000000e+00 : f32
    %601 = vector.broadcast %cst_133 : f32 to vector<2x384xf32>
    %602 = arith.addf %601, %600 : vector<2x384xf32>
    %603 = arith.divf %601, %602 : vector<2x384xf32>
    %604 = vector.extract_strided_slice %594 {offsets = [0, 384], sizes = [2, 128], strides = [1, 1]} : vector<2x512xf32> to vector<2x128xf32>
    %605 = math.tanh %604 : vector<2x128xf32>
    %606 = vector.extract_strided_slice %597 {offsets = [0, 0], sizes = [2, 384], strides = [1, 1]} : vector<2x512xf32> to vector<2x384xf32>
    %607 = arith.negf %606 : vector<2x384xf32>
    %608 = math.exp %607 : vector<2x384xf32>
    %cst_134 = arith.constant 1.000000e+00 : f32
    %609 = vector.broadcast %cst_134 : f32 to vector<2x384xf32>
    %610 = arith.addf %609, %608 : vector<2x384xf32>
    %611 = arith.divf %609, %610 : vector<2x384xf32>
    %612 = vector.extract_strided_slice %597 {offsets = [0, 384], sizes = [2, 128], strides = [1, 1]} : vector<2x512xf32> to vector<2x128xf32>
    %613 = math.tanh %612 : vector<2x128xf32>
    %614 = vector.extract_strided_slice %603 {offsets = [0, 128], sizes = [2, 128], strides = [1, 1]} : vector<2x384xf32> to vector<2x128xf32>
    %615 = arith.mulf %614, %577 : vector<2x128xf32>
    %616 = vector.extract_strided_slice %603 {offsets = [0, 0], sizes = [2, 128], strides = [1, 1]} : vector<2x384xf32> to vector<2x128xf32>
    %617 = arith.mulf %616, %605 : vector<2x128xf32>
    %618 = arith.addf %615, %617 : vector<2x128xf32>
    %619 = vector.extract_strided_slice %611 {offsets = [0, 128], sizes = [2, 128], strides = [1, 1]} : vector<2x384xf32> to vector<2x128xf32>
    %620 = arith.mulf %619, %582 : vector<2x128xf32>
    %621 = vector.extract_strided_slice %611 {offsets = [0, 0], sizes = [2, 128], strides = [1, 1]} : vector<2x384xf32> to vector<2x128xf32>
    %622 = arith.mulf %621, %613 : vector<2x128xf32>
    %623 = arith.addf %620, %622 : vector<2x128xf32>
    %624 = vector.extract_strided_slice %603 {offsets = [0, 256], sizes = [2, 128], strides = [1, 1]} : vector<2x384xf32> to vector<2x128xf32>
    %625 = math.tanh %618 : vector<2x128xf32>
    %626 = arith.mulf %624, %625 : vector<2x128xf32>
    %627 = vector.extract_strided_slice %611 {offsets = [0, 256], sizes = [2, 128], strides = [1, 1]} : vector<2x384xf32> to vector<2x128xf32>
    %628 = math.tanh %623 : vector<2x128xf32>
    %629 = arith.mulf %627, %628 : vector<2x128xf32>
    %630 = tpu.concatenate %626, %629 in 1 : vector<2x128xf32>, vector<2x128xf32> -> vector<2x256xf32>
    %c0_135 = arith.constant 0 : index
    %c0_136 = arith.constant 0 : index
    %631 = vector.load %arg13[%c0_135, %c0_136] : memref<256x5xf32, #tpu.memory_space<vmem>>, vector<256x5xf32>
    %cst_137 = arith.constant dense<0.000000e+00> : vector<2x5xf32>
    %632 = tpu.matmul %630, %631, %cst_137 {dimension_numbers = #tpu.dot_dimension_numbers<[1], [0], [0], [1], [0, 0, 1, 1], [], []>} : vector<2x256xf32>, vector<256x5xf32>, vector<2x5xf32> -> vector<2x5xf32>
    %c0_138 = arith.constant 0 : index
    %c0_139 = arith.constant 0 : index
    %633 = vector.load %arg14[%c0_138, %c0_139] : memref<1x5xf32, #tpu.memory_space<vmem>>, vector<1x5xf32>
    %634 = vector.broadcast %633 : vector<1x5xf32> to vector<2x5xf32>
    %635 = arith.addf %632, %634 : vector<2x5xf32>
    %c0_140 = arith.constant 0 : index
    %c0_141 = arith.constant 0 : index
    %636 = vector.load %arg15[%c0_140, %c0_141] : memref<2x5xf32, #tpu.memory_space<vmem>>, vector<2x5xf32>
    tpu.vector_store %arg15[%c0_140, %c0_141], %635 {strides = array<i32>} : memref<2x5xf32, #tpu.memory_space<vmem>>, vector<2x5xf32>,
    return
  }
}

</mosaic_0001>

<bundles_post_ra>
// kernel: custom-call.2
= control target key start
LH: loop header
LB: loop body
LE: loop exit
PB: predicated region body
PF: predicated region fallthrough
CT: control target
= control target key end

     0   :  { %s6_s0 = inlined_call_operand.vmem [shape: f32[1024], index: 0, kind: output, shape index: {}]  }

// kernel: net_thesis_forward.1
= control target key start
LH: loop header
LB: loop body
LE: loop exit
PB: predicated region body
PF: predicated region fallthrough
CT: control target
= control target key end

     0   :  { %v70_v0 = vlaneseq  ;;  %s17127_s0 = inlined_call_operand.vmem [shape: f32[128,8], index: 0, kind: input, shape index: {}]   ;;  %s17128_s1 = inlined_call_operand.vmem [shape: f32[2,8], index: 1, kind: input, shape index: {}]   ;;  %s17129_s2 = inlined_call_operand.vmem [shape: f32[6,100], index: 2, kind: input, shape index: {}]   ;;  %s17130_s3 = inlined_call_operand.vmem [shape: bf16[3,64,128], index: 3, kind: input, shape index: {}]   ;;  %s17131_s4 = inlined_call_operand.vmem [shape: bf16[3,8,100], index: 4, kind: input, shape index: {}]   ;;  %s17132_s5 = inlined_call_operand.vmem [shape: bf16[2,32,64], index: 5, kind: input, shape index: {}]   ;;  %s17133_s6 = inlined_call_operand.vmem [shape: bf16[3,16,32], index: 6, kind: input, shape index: {}]   ;;  %s17134_s7 = inlined_call_operand.vmem [shape: bf16[3,100,100], index: 7, kind: input, shape index: {}]   ;;  %s17135_s8 = inlined_call_operand.vmem [shape: bf16[2,8,16], index: 8, kind: input, shape index: {}]   ;;  %s17136_s9 = inlined_call_operand.vmem [shape: bf16[100,1024], index: 9, kind: input, shape index: {}]   ;;  %s17137_s10 = inlined_call_operand.vmem [shape: bf16[2,256,1024], index: 10, kind: input, shape index: {}]   ;;  %s17138_s11 = inlined_call_operand.vmem [shape: bf16[3,256,1024], index: 11, kind: input, shape index: {}]   ;;  %s17139_s12 = inlined_call_operand.vmem [shape: f32[3,1024], index: 12, kind: input, shape index: {}]   ;;  %s17140_s13 = inlined_call_operand.vmem [shape: f32[256,5], index: 13, kind: input, shape index: {}]   ;;  %s17141_s14 = inlined_call_operand.vmem [shape: f32[1,5], index: 14, kind: input, shape index: {}]   ;;  %s17142_s15 = inlined_call_operand.hbm [shape: f32[2,5], index: 15, kind: output, shape index: {}]  }
   0x1   :  { %v52_v2 = vld [vmem:[%s17128_s1] sm:$0x3]  ;;  %v68_v3 = vld [vmem:[%s17127_s0 + $0x70] sm:$0xff]  ;;  %v69_v4 = vld [vmem:[%s17127_s0 + $0x78] sm:$0xff] }
   0x2   :  { %v11668_v1 = vshrl.u32 %v70_v0, 7  ;;  %v66_v7 = vld [vmem:[%s17127_s0 + $0x60] sm:$0xff]  ;;  %v67_v8 = vld [vmem:[%s17127_s0 + $0x68] sm:$0xff]  ;;  %v64_v9 = vld [vmem:[%s17127_s0 + $0x50] sm:$0xff] }
   0x3   :  { %v65_v10 = vld [vmem:[%s17127_s0 + $0x58] sm:$0xff]  ;;  %v11122_v13 = vld [vmem:[%s17130_s3] sm:$0xff]   ;;  %v63_v19 = vld [vmem:[%s17127_s0 + $0x48] sm:$0xff] }
   0x4   :  { %17827 = vst [vmem:[#allocation5_spill] sm:$0xff] %v11668_v1  ;;  %v11680_v5 = vsub.s32 0, %v11668_v1  ;;  %v11683_v6 = vsub.s32 1, %v11668_v1  ;;  %v62_v14 = vld [vmem:[%s17127_s0 + $0x40] sm:$0xff]  ;;  %10915 = vmatprep.mubr.bf16.mxu0 %v11122_v13  ;;  %v60_v28 = vld [vmem:[%s17127_s0 + $0x30] sm:$0xff]  ;;  %v61_v29 = vld [vmem:[%s17127_s0 + $0x38] sm:$0xff] }
   0x5   :  { %v58_v36 = vld [vmem:[%s17127_s0 + $0x20] sm:$0xff]  ;;  %v59_v37 = vld [vmem:[%s17127_s0 + $0x28] sm:$0xff]  ;;  %v56_v41 = vld [vmem:[%s17127_s0 + $0x10] sm:$0xff] }
   0x6   :  { %17828 = vst [vmem:[#allocation6_spill] sm:$0xff] %v11680_v5  ;;  %17829 = vst [vmem:[#allocation7_spill] sm:$0xff] %v11683_v6  ;;  %v73_v11 = vrot.slane %v52_v2, %v11680_v5  ;;  %v93_v12 = vrot.slane %v52_v2, %v11683_v6  ;;  %v57_v43 = vld [vmem:[%s17127_s0 + $0x18] sm:$0xff]  ;;  %v54_v48 = vld [vmem:[%s17127_s0] sm:$0xff] }
   0x7   :  { %v55_v50 = vld [vmem:[%s17127_s0 + $0x8] sm:$0xff] }
   0x8   :  { %v88_v15 = vmul.f32 %v73_v11, %v68_v3  ;;  %v89_v16 = vmul.f32 %v73_v11, %v69_v4  ;;  %v86_v17 = vmul.f32 %v73_v11, %v66_v7  ;;  %v87_v18 = vmul.f32 %v73_v11, %v67_v8 }
   0x9   :  { %v84_v20 = vmul.f32 %v73_v11, %v64_v9  ;;  %v85_v21 = vmul.f32 %v73_v11, %v65_v10  ;;  %v82_v26 = vmul.f32 %v73_v11, %v62_v14  ;;  %v83_v27 = vmul.f32 %v73_v11, %v63_v19 }
   0xa   :  { %v108_v22 = vadd.f32 %v93_v12, %v88_v15  ;;  %v109_v23 = vadd.f32 %v93_v12, %v89_v16  ;;  %v106_v24 = vadd.f32 %v93_v12, %v86_v17  ;;  %v107_v25 = vadd.f32 %v93_v12, %v87_v18 }
   0xb   :  { %v104_v32 = vadd.f32 %v93_v12, %v84_v20  ;;  %v105_v33 = vadd.f32 %v93_v12, %v85_v21  ;;  %v102_v34 = vadd.f32 %v93_v12, %v82_v26  ;;  %v103_v35 = vadd.f32 %v93_v12, %v83_v27 }
   0xc   :  { %v11714_v30 = vpack.c.bf16 %v109_v23, %v108_v22  ;;  %v11716_v31 = vpack.c.bf16 %v107_v25, %v106_v24  ;;  %v80_v39 = vmul.f32 %v73_v11, %v60_v28  ;;  %v81_v40 = vmul.f32 %v73_v11, %v61_v29 }
   0xd   :  { %v11727_v38 = vpack.c.bf16 %v105_v33, %v104_v32  ;;  %v11733_v42 = vpack.c.bf16 %v103_v35, %v102_v34  ;;  %v78_v46 = vmul.f32 %v73_v11, %v58_v36  ;;  %v79_v47 = vmul.f32 %v73_v11, %v59_v37 }
   0xe   :  { %10899 = vmatprep.subr.bf16.mxu0 %v11714_v30  ;;  %v100_v44 = vadd.f32 %v93_v12, %v80_v39  ;;  %v101_v45 = vadd.f32 %v93_v12, %v81_v40  ;;  %v76_v49 = vmul.f32 %v73_v11, %v56_v41  ;;  %v77_v54 = vmul.f32 %v73_v11, %v57_v43 }
   0xf   :  { %10900 = vmatpush3.bf16.msra.mxu0 %v11714_v30  ;;  %v98_v52 = vadd.f32 %v93_v12, %v78_v46  ;;  %v99_v53 = vadd.f32 %v93_v12, %v79_v47  ;;  %v74_v55 = vmul.f32 %v73_v11, %v54_v48  ;;  %v75_v59 = vmul.f32 %v73_v11, %v55_v50 }
  0x10   :  { %10901 = vmatprep.subr.bf16.mxu0 %v11716_v31  ;;  %v11747_v51 = vpack.c.bf16 %v101_v45, %v100_v44  ;;  %v96_v57 = vadd.f32 %v93_v12, %v76_v49  ;;  %v97_v58 = vadd.f32 %v93_v12, %v77_v54 }
  0x11   :  { %v11751_v56 = vpack.c.bf16 %v99_v53, %v98_v52  ;;  %v94_v61 = vadd.f32 %v93_v12, %v74_v55  ;;  %v95_v62 = vadd.f32 %v93_v12, %v75_v59 }
  0x12   :  { %v11755_v60 = vpack.c.bf16 %v97_v58, %v96_v57 }
  0x13   :  { %10902 = vmatpush3.bf16.msra.mxu0 %v11716_v31 }
  0x14   :  { %10903 = vmatprep.subr.bf16.mxu0 %v11727_v38 }
  0x17   :  { %10904 = vmatpush3.bf16.msra.mxu0 %v11727_v38 }
  0x18   :  { %10905 = vmatprep.subr.bf16.mxu0 %v11733_v42 }
  0x1b   :  { %10906 = vmatpush3.bf16.msra.mxu0 %v11733_v42 }
  0x1c   :  { %10907 = vmatprep.subr.bf16.mxu0 %v11747_v51 }
  0x1f   :  { %10908 = vmatpush3.bf16.msra.mxu0 %v11747_v51 }
  0x20   :  { %10909 = vmatprep.subr.bf16.mxu0 %v11751_v56 }
  0x21   :  { %20 = vsyncpa [#allocation3], 0  ;;  %v11759_v63 = vpack.c.bf16 %v95_v62, %v94_v61  ;;  %v11123_v0 = vld [vmem:[%s17130_s3 + $0x8] sm:$0xff]   ;;  %v11124_v2 = vld [vmem:[%s17130_s3 + $0x10] sm:$0xff]   ;;  %vm233_vm0 = vcmask 1043456   ;;  %vm220_vm1 = vcmask 64512  }
  0x22   :  { %v11125_v3 = vld [vmem:[%s17130_s3 + $0x18] sm:$0xff]   ;;  %v219_v4 = vld [vmem:[%s17131_s4] sm:$0xf]  ;;  %v11127_v21 = vld [vmem:[%s17130_s3 + $0x28] sm:$0xff]   ;;  %vm724_vm2 = vcmask 523264   ;;  %vm11585_vm3 = vmmov 0  }
  0x23   :  { %10910 = vmatpush3.bf16.msra.mxu0 %v11751_v56  ;;  %11115 = vmatprep.subr.msk.bf16.mxu1 %vm233_vm0, %v219_v4  ;;  %v235_v7 = vsel %vm233_vm0, %v219_v4, 0  ;;  %v11126_v20 = vld [vmem:[%s17130_s3 + $0x20] sm:$0xff]   ;;  %v11128_v22 = vld [vmem:[%s17130_s3 + $0x30] sm:$0xff]   ;;  %v11129_v23 = vld [vmem:[%s17130_s3 + $0x38] sm:$0xff]   ;;  %vm981_vm4 = vcmask 1041408   ;;  %vm879_vm5 = vcmask 261120  }
  0x24   :  { %10911 = vmatprep.subr.bf16.mxu0 %v11755_v60  ;;  %10924 = vmatpush3.bf16.msra.mxu1 %v235_v7  ;;  %v11130_v24 = vld [vmem:[%s17130_s3 + $0x40] sm:$0xff]   ;;  %v11131_v25 = vld [vmem:[%s17130_s3 + $0x48] sm:$0xff]   ;;  %v11132_v26 = vld [vmem:[%s17130_s3 + $0x50] sm:$0xff]   ;;  %vm977_vm6 = vcmask 818176   ;;  %vm1346_vm7 = vcmask 130048   ;;  %vm3799_vm8 = vcmask 1045504  }
  0x25   :  { %10933 = vmatprep.subr.bf16.mxu1 %v11714_v30  ;;  %v11133_v27 = vld [vmem:[%s17130_s3 + $0x58] sm:$0xff]   ;;  %v9505_v28 = vld [vmem:[%s17131_s4 + $0x4] sm:$0xf]  ;;  %s11587_s19 = smov [#allocation2]   ;;  %vm9469_vm9 = vcmask 33792  }
  0x26   :  { %v431_v29 = vsel %vm233_vm0, %v9505_v28, 0 }
  0x27   :  { %10912 = vmatpush3.bf16.msra.mxu0 %v11755_v60 }
  0x28   :  { %10913 = vmatprep.subr.bf16.mxu0 %v11759_v63 }
  0x2b   :  { %10914 = vmatpush3.bf16.msra.mxu0 %v11759_v63 }
  0x2c   :  { %11116 = vmatprep.subr.msk.bf16.mxu0 %vm233_vm0, %v9505_v28 }
  0x2e   :  { %10916 = vmatmul.mubr.bf16.vlgmr.msra.gmra.mxu0 %v11123_v0  ;;  %v11134_v0 = vld [vmem:[%s17132_s5] sm:$0xff]  }
  0x2f   :  { %10919 = vmatprep.mubr.bf16.mxu0 %v11124_v2  ;;  %10958 = vmatpush3.bf16.msra.mxu0 %v431_v29  ;;  %v11135_v2 = vld [vmem:[%s17132_s5 + $0x10] sm:$0xff]  }
  0x36   :  { %10920 = vmatmul.mubr.bf16.gmra.mxu0 %v11125_v3 }
  0xee   :  { %v10917_v8 = vpop.f32.mrf.mxu0 }
  0xf0   :  { %v184_v9 = vpop.f32.mrf.mxu0 }
  0xf2   :  { %v10918_v10 = vpop.f32.mrf.mxu0 }
  0xf3   :  { %v216_v13 = vpack.c.bf16 %v10918_v10, %v10917_v8 }
  0xf4   :  { %v187_v11 = vpop.f32.mrf.mxu0 }
  0xf5   :  { %v215_v12 = vpack.c.bf16 %v187_v11, %v184_v9  ;;  %v11879_v11 = vld [vmem:[%s17129_s2] sm:$0x3f] }
  0xf6   :  { %v10921_v14 = vpop.f32.mrf.mxu0 }
  0xf7   :  { %10925 = vmatprep.mubr.msk.bf16.mxu1 %vm220_vm1, %v215_v12 }
  0xf8   :  { %10926 = vmatmul.mubr.msk.bf16.vlgmr.msra.gmra.mxu1 %vm220_vm1, %v216_v13  ;;  %v200_v15 = vpop.f32.mrf.mxu0  ;;  %v305_v13 = vrot.slane %v11879_v11, %v11680_v5  ;;  %v1578_v5 = vld [vmem:[%s17138_s11 + $0x260] sm:$0xff] }
  0xf9   :  { %10934 = vmatpush3.bf16.msra.mxu1 %v11714_v30 }
  0xfa   :  { %10935 = vmatprep.subr.bf16.mxu1 %v11716_v31  ;;  %v10922_v16 = vpop.f32.mrf.mxu0 }
  0xfb   :  { %v218_v17 = vpack.c.bf16 %v10922_v16, %v10921_v14 }
  0xfc   :  { %v203_v18 = vpop.f32.mrf.mxu0 }
  0xfd   :  { %10936 = vmatpush3.bf16.msra.mxu1 %v11716_v31  ;;  %v217_v19 = vpack.c.bf16 %v203_v18, %v200_v15 }
  0xfe   :  { %10937 = vmatprep.subr.bf16.mxu1 %v11727_v38 }
  0xff   :  { %10929 = vmatprep.mubr.msk.bf16.mxu1 %vm220_vm1, %v217_v19 }
 0x100   :  { %10930 = vmatmul.mubr.msk.bf16.gmra.mxu1 %vm220_vm1, %v218_v17 }
 0x101   :  { %10938 = vmatpush3.bf16.msra.mxu1 %v11727_v38  ;;  %10949 = vmatprep.mubr.bf16.mxu1 %v11126_v20 }
 0x102   :  { %10939 = vmatprep.subr.bf16.mxu1 %v11733_v42 }
 0x105   :  { %10940 = vmatpush3.bf16.msra.mxu1 %v11733_v42 }
 0x106   :  { %10941 = vmatprep.subr.bf16.mxu1 %v11747_v51 }
 0x109   :  { %10942 = vmatpush3.bf16.msra.mxu1 %v11747_v51 }
 0x10a   :  { %10943 = vmatprep.subr.bf16.mxu1 %v11751_v56 }
 0x10d   :  { %10944 = vmatpush3.bf16.msra.mxu1 %v11751_v56 }
 0x10e   :  { %10945 = vmatprep.subr.bf16.mxu1 %v11755_v60 }
 0x111   :  { %10946 = vmatpush3.bf16.msra.mxu1 %v11755_v60 }
 0x112   :  { %10947 = vmatprep.subr.bf16.mxu1 %v11759_v63 }
 0x115   :  { %10948 = vmatpush3.bf16.msra.mxu1 %v11759_v63 }
 0x116   :  { %10967 = vmatprep.subr.bf16.mxu1 %v11714_v30 }
 0x118   :  { %10950 = vmatmul.mubr.bf16.vlgmr.msra.gmra.mxu1 %v11127_v21 }
 0x119   :  { %10968 = vmatpush3.bf16.msra.mxu1 %v11714_v30  ;;  %10953 = vmatprep.mubr.bf16.mxu1 %v11128_v22  ;;  %v9522_v30 = vld [vmem:[%s17131_s4 + $0x8] sm:$0xf] }
 0x11a   :  { %10969 = vmatprep.subr.bf16.mxu1 %v11716_v31  ;;  %11117 = vmatprep.subr.msk.bf16.mxu0 %vm233_vm0, %v9522_v30  ;;  %v623_v46 = vsel %vm233_vm0, %v9522_v30, 0 }
 0x11d   :  { %10970 = vmatpush3.bf16.msra.mxu1 %v11716_v31 }
 0x11e   :  { %10971 = vmatprep.subr.bf16.mxu1 %v11727_v38 }
 0x120   :  { %10954 = vmatmul.mubr.bf16.gmra.mxu1 %v11129_v23 }
 0x121   :  { %10972 = vmatpush3.bf16.msra.mxu1 %v11727_v38  ;;  %10983 = vmatprep.mubr.bf16.mxu1 %v11130_v24 }
 0x122   :  { %10973 = vmatprep.subr.bf16.mxu1 %v11733_v42 }
 0x125   :  { %10974 = vmatpush3.bf16.msra.mxu1 %v11733_v42 }
 0x126   :  { %10975 = vmatprep.subr.bf16.mxu1 %v11747_v51 }
 0x129   :  { %10976 = vmatpush3.bf16.msra.mxu1 %v11747_v51 }
 0x12a   :  { %10977 = vmatprep.subr.bf16.mxu1 %v11751_v56 }
 0x12d   :  { %10978 = vmatpush3.bf16.msra.mxu1 %v11751_v56 }
 0x12e   :  { %10979 = vmatprep.subr.bf16.mxu1 %v11755_v60 }
 0x131   :  { %10980 = vmatpush3.bf16.msra.mxu1 %v11755_v60 }
 0x132   :  { %10981 = vmatprep.subr.bf16.mxu1 %v11759_v63 }
 0x135   :  { %10982 = vmatpush3.bf16.msra.mxu1 %v11759_v63 }
 0x138   :  { %10984 = vmatmul.mubr.bf16.vlgmr.msra.gmra.mxu1 %v11131_v25 }
 0x139   :  { %10987 = vmatprep.mubr.bf16.mxu1 %v11132_v26 }
 0x140   :  { %10988 = vmatmul.mubr.bf16.gmra.mxu1 %v11133_v27 }
 0x141   :  { %11021 = vmatprep.mubr.msk.bf16.mxu1 %vm724_vm2, %v11135_v2  ;;  %v857_v2 = vrot.slane %v11879_v11, %v11683_v6 }
 0x1b8   :  { %v10927_v31 = vpop.f32.mrf.mxu1 }
 0x1b9   :  { %v308_v15 = vadd.f32 %v10927_v31, %v305_v13 }
 0x1ba   :  { %v11847_v32 = vpop.f32.mrf.mxu1 }
 0x1bc   :  { %v10928_v33 = vpop.f32.mrf.mxu1 }
 0x1bd   :  { %v309_v17 = vadd.f32 %v10928_v33, %v305_v13 }
 0x1be   :  { %v11849_v34 = vpop.f32.mrf.mxu1 }
 0x1c0   :  { %v11851_v35 = vpop.f32.mrf.mxu1 }
 0x1c1   :  { %v312_v25 = vadd.f32 %v11851_v35, %v305_v13 }
 0x1c2   :  { %v11853_v36 = vpop.f32.mrf.mxu1 }
 0x1c3   :  { %v310_v29 = vadd.f32 %v305_v13, %v11853_v36 }
 0x1c4   :  { %v11855_v37 = vpop.f32.mrf.mxu1 }
 0x1c5   :  { %v313_v30 = vadd.f32 %v11855_v37, %v305_v13  ;;  %v306_v37 = vadd.f32 %v305_v13, %v11847_v32 }
 0x1c6   :  { %v11857_v38 = vpop.f32.mrf.mxu1 }
 0x1c7   :  { %v311_v33 = vadd.f32 %v305_v13, %v11857_v38 }
 0x1d8   :  { %v10951_v39 = vpop.f32.mrf.mxu1 }
 0x1da   :  { %v381_v40 = vpop.f32.mrf.mxu1 }
 0x1dc   :  { %v10952_v41 = vpop.f32.mrf.mxu1 }
 0x1dd   :  { %v413_v44 = vpack.c.bf16 %v10952_v41, %v10951_v39 }
 0x1de   :  { %v384_v42 = vpop.f32.mrf.mxu1 }
 0x1df   :  { %v412_v43 = vpack.c.bf16 %v384_v42, %v381_v40 }
 0x1e0   :  { %v10955_v45 = vpop.f32.mrf.mxu1 }
 0x1e1   :  { %10959 = vmatprep.mubr.msk.bf16.mxu0 %vm220_vm1, %v412_v43 }
 0x1e2   :  { %v397_v47 = vpop.f32.mrf.mxu1  ;;  %10960 = vmatmul.mubr.msk.bf16.vlgmr.msra.gmra.mxu0 %vm220_vm1, %v413_v44 }
 0x1e3   :  { %10992 = vmatpush3.bf16.msra.mxu0 %v623_v46 }
 0x1e4   :  { %v10956_v48 = vpop.f32.mrf.mxu1 }
 0x1e5   :  { %v415_v49 = vpack.c.bf16 %v10956_v48, %v10955_v45  ;;  %v307_v48 = vadd.f32 %v305_v13, %v11849_v34 }
 0x1e6   :  { %v400_v50 = vpop.f32.mrf.mxu1 }
 0x1e7   :  { %v414_v51 = vpack.c.bf16 %v400_v50, %v397_v47 }
 0x1e9   :  { %10963 = vmatprep.mubr.msk.bf16.mxu0 %vm220_vm1, %v414_v51 }
 0x1ea   :  { %10964 = vmatmul.mubr.msk.bf16.gmra.mxu0 %vm220_vm1, %v415_v49 }
 0x1f8   :  { %v10985_v52 = vpop.f32.mrf.mxu1 }
 0x1fa   :  { %v573_v53 = vpop.f32.mrf.mxu1 }
 0x1fc   :  { %v10986_v54 = vpop.f32.mrf.mxu1 }
 0x1fd   :  { %v605_v57 = vpack.c.bf16 %v10986_v54, %v10985_v52 }
 0x1fe   :  { %v576_v55 = vpop.f32.mrf.mxu1 }
 0x1ff   :  { %v604_v56 = vpack.c.bf16 %v576_v55, %v573_v53 }
 0x200   :  { %v10989_v58 = vpop.f32.mrf.mxu1 }
 0x201   :  { %10993 = vmatprep.mubr.msk.bf16.mxu0 %vm220_vm1, %v604_v56 }
 0x202   :  { %v589_v59 = vpop.f32.mrf.mxu1  ;;  %10994 = vmatmul.mubr.msk.bf16.vlgmr.msra.gmra.mxu0 %vm220_vm1, %v605_v57 }
 0x204   :  { %v10990_v60 = vpop.f32.mrf.mxu1 }
 0x205   :  { %v607_v63 = vpack.c.bf16 %v10990_v60, %v10989_v58  ;;  %v11137_v60 = vld [vmem:[%s17132_s5 + $0x18] sm:$0xff]  }
 0x206   :  { %v592_v61 = vpop.f32.mrf.mxu1 }
 0x207   :  { %v606_v62 = vpack.c.bf16 %v592_v61, %v589_v59  ;;  %v11136_v59 = vld [vmem:[%s17132_s5 + $0x8] sm:$0xff]   ;;  %v11584_v61 = vmov 0.0  }
 0x209   :  { %10997 = vmatprep.mubr.msk.bf16.mxu0 %vm220_vm1, %v606_v62 }
 0x20a   :  { %10998 = vmatmul.mubr.msk.bf16.gmra.mxu0 %vm220_vm1, %v607_v63 }
 0x20b   :  { %11009 = vmatprep.mubr.msk.bf16.mxu0 %vm724_vm2, %v11134_v0 }
 0x2a2   :  { %v10961_v3 = vpop.f32.mrf.mxu0 }
 0x2a3   :  { %v500_v18 = vadd.f32 %v10961_v3, %v308_v15  ;;  %v11906_v3 = vsub.s32 2, %v11668_v1 }
 0x2a4   :  { %v467_v4 = vpop.f32.mrf.mxu0 }
 0x2a5   :  { %v498_v38 = vadd.f32 %v467_v4, %v306_v37  ;;  %17830 = vst [vmem:[#allocation8_spill] sm:$0xff] %v11906_v3 }
 0x2a6   :  { %v10962_v7 = vpop.f32.mrf.mxu0 }
 0x2a7   :  { %v501_v20 = vadd.f32 %v10962_v7, %v309_v17 }
 0x2a8   :  { %v470_v8 = vpop.f32.mrf.mxu0 }
 0x2a9   :  { %v499_v51 = vadd.f32 %v470_v8, %v307_v48  ;;  %v11152_v48 = vld [vmem:[%s17134_s7] sm:$0xff]  }
 0x2aa   :  { %v10965_v9 = vpop.f32.mrf.mxu0 }
 0x2ab   :  { %v504_v39 = vadd.f32 %v10965_v9, %v312_v25 }
 0x2ac   :  { %v483_v10 = vpop.f32.mrf.mxu0 }
 0x2ad   :  { %v502_v41 = vadd.f32 %v483_v10, %v310_v29  ;;  %v11138_v29 = vld [vmem:[%s17133_s6] sm:$0xff]  }
 0x2ae   :  { %v10966_v12 = vpop.f32.mrf.mxu0 }
 0x2af   :  { %v505_v42 = vadd.f32 %v10966_v12, %v313_v30  ;;  %v865_v12 = vrot.slane %v11879_v11, %v11906_v3  ;;  %v11139_v30 = vld [vmem:[%s17133_s6 + $0x8] sm:$0xff]   ;;  %v1582_v3 = vld [vmem:[%s17138_s11 + $0x280] sm:$0xff] }
 0x2b0   :  { %v486_v14 = vpop.f32.mrf.mxu0 }
 0x2b1   :  { %v503_v45 = vadd.f32 %v486_v14, %v311_v33  ;;  %v11143_v33 = vld [vmem:[%s17134_s7 + $0x5c] sm:$0xff]  }
 0x2c2   :  { %v10995_v16 = vpop.f32.mrf.mxu0 }
 0x2c3   :  { %v692_v21 = vadd.f32 %v10995_v16, %v500_v18 }
 0x2c4   :  { %v659_v19 = vpop.f32.mrf.mxu0 }
 0x2c5   :  { %v700_v26 = vmax.f32 %v692_v21, 0.0  ;;  %v690_v57 = vadd.f32 %v659_v19, %v498_v38 }
 0x2c6   :  { %v10996_v22 = vpop.f32.mrf.mxu0 }
 0x2c7   :  { %v693_v23 = vadd.f32 %v10996_v22, %v501_v20  ;;  %v698_v58 = vmax.f32 %v690_v57, 0.0  ;;  %v11155_v57 = vld [vmem:[%s17134_s7 + $0x98] ss:$0 sps:$4 sm:$0x33]  }
 0x2c8   :  { %v662_v24 = vpop.f32.mrf.mxu0 }
 0x2c9   :  { %v701_v27 = vmax.f32 %v693_v23, 0.0  ;;  %v691_v55 = vadd.f32 %v662_v24, %v499_v51 }
 0x2ca   :  { %v10999_v28 = vpop.f32.mrf.mxu0 }
 0x2cb   :  { %v707_v31 = vpack.c.bf16 %v701_v27, %v700_v26  ;;  %v696_v43 = vadd.f32 %v10999_v28, %v504_v39  ;;  %v699_v34 = vmax.f32 %v691_v55, 0.0  ;;  %v11140_v26 = vld [vmem:[%s17134_s7 + $0x30] ss:$0 sps:$4 sm:$0x33]  }
 0x2cc   :  { %v675_v40 = vpop.f32.mrf.mxu0  ;;  %v11141_v27 = vld [vmem:[%s17134_s7 + $0x64] ss:$0 sps:$4 sm:$0x33]   ;;  %v983_v39 = vsel %vm981_vm4, %v11140_v26, 0 }
 0x2cd   :  { %v694_v46 = vadd.f32 %v675_v40, %v502_v41  ;;  %v704_v49 = vmax.f32 %v696_v43, 0.0  ;;  %v706_v32 = vpack.c.bf16 %v699_v34, %v698_v58  ;;  %v11142_v40 = vld [vmem:[%s17134_s7 + $0x28] sm:$0xff]   ;;  %v11144_v41 = vld [vmem:[%s17134_s7 + $0x20] sm:$0xff]   ;;  %v11146_v43 = vld [vmem:[%s17134_s7 + $0x18] sm:$0xff]   ;;  %v1297_v58 = vsel %vm981_vm4, %v11155_v57, 0 }
 0x2ce   :  { %v11000_v44 = vpop.f32.mrf.mxu0  ;;  %v11154_v34 = vld [vmem:[%s17133_s6 + $0x10] sm:$0xff]   ;;  %v1486_v57 = vld [vmem:[%s17136_s9 + $0x120] sm:$0xff]  ;;  %s9477_s6 = sshll.u32 %s11587_s19, 4  ;;  %s9478_s6 = int_to_ptr.vmem [resolvable:$true] %s9477_s6 }
 0x2cf   :  { %v697_v47 = vadd.f32 %v11000_v44, %v505_v42  ;;  %v702_v52 = vmax.f32 %v694_v46, 0.0  ;;  %v11145_v42 = vld [vmem:[%s17134_s7 + $0x54] sm:$0xff]   ;;  %v11147_v44 = vld [vmem:[%s17134_s7 + $0x4c] sm:$0xff]   ;;  %v11149_v46 = vld [vmem:[%s17134_s7 + $0x44] sm:$0xff]   ;;  %s11562_s2 = scalar_lea.vmem %s9478_s6, 32  ;;  %p11567_p1 = scmp.lt.s32.totalorder %s9478_s6, %s9478_s6 }
 0x2d0   :  { %v678_v35 = vpop.f32.mrf.mxu0  ;;  %p11563_p0 = scmp.ne.s32.totalorder %s9478_s6, %s11562_s2  ;;  %p11568_p2 = scmp.lt.s32.totalorder %s11562_s2, %s11562_s2 }
 0x2d1   :  { %v705_v50 = vmax.f32 %v697_v47, 0.0  ;;  %v695_v36 = vadd.f32 %v678_v35, %v503_v45  ;;  %v11148_v45 = vld [vmem:[%s17134_s7 + $0x10] sm:$0xff]   ;;  %v11150_v47 = vld [vmem:[%s17134_s7 + $0x8] sm:$0xff]   ;;  %v11151_v35 = vld [vmem:[%s17134_s7 + $0x3c] sm:$0xff]  }
 0x2d2   :  { %p11569_p3 = por %p11568_p2, %p11567_p1 }
 0x2d3   :  { %v709_v53 = vpack.c.bf16 %v705_v50, %v704_v49  ;;  %v703_v54 = vmax.f32 %v695_v36, 0.0  ;;  %v11153_v49 = vld [vmem:[%s17134_s7 + $0x34] sm:$0xff]  }
 0x2d4   :  { %p11570_p4 = pnand %p11569_p3, %p11563_p0 }
 0x2d5   :  { %v708_v56 = vpack.c.bf16 %v703_v54, %v702_v52  ;;  %11001 = vmatprep.subr.bf16.mxu0 %v709_v53  ;;  %11013 = vmatprep.subr.bf16.mxu1 %v709_v53 }
 0x2d6   :  { %11002 = vmatpush3.bf16.msra.mxu0 %v709_v53  ;;  %11014 = vmatpush3.bf16.msra.mxu1 %v709_v53 }
 0x2d7   :  { %11003 = vmatprep.subr.bf16.mxu0 %v708_v56  ;;  %11015 = vmatprep.subr.bf16.mxu1 %v708_v56 }
 0x2da   :  { %11004 = vmatpush3.bf16.msra.mxu0 %v708_v56  ;;  %11016 = vmatpush3.bf16.msra.mxu1 %v708_v56 }
 0x2db   :  { %11005 = vmatprep.subr.bf16.mxu0 %v707_v31  ;;  %11017 = vmatprep.subr.bf16.mxu1 %v707_v31 }
 0x2de   :  { %11006 = vmatpush3.bf16.msra.mxu0 %v707_v31  ;;  %11018 = vmatpush3.bf16.msra.mxu1 %v707_v31  ;;  %v1142_v31 = vsel %vm981_vm4, %v11141_v27, 0 }
 0x2df   :  { %11007 = vmatprep.subr.bf16.mxu0 %v706_v32  ;;  %11019 = vmatprep.subr.bf16.mxu1 %v706_v32 }
 0x2e2   :  { %11008 = vmatpush3.bf16.msra.mxu0 %v706_v32  ;;  %11020 = vmatpush3.bf16.msra.mxu1 %v706_v32  ;;  %v11156_v32 = vld [vmem:[%s17134_s7 + $0x90] sm:$0xff]  }
 0x2e3   :  { %11025 = vmatprep.subr.bf16.mxu1 %v11584_v61  ;;  %11051 = vmatprep.subr.bf16.mxu0 %v11584_v61 }
 0x2e5   :  { %11010 = vmatmul.mubr.msk.bf16.vlgmr.msra.gmra.mxu0 %vm724_vm2, %v11136_v59  ;;  %11022 = vmatmul.mubr.msk.bf16.vlgmr.msra.gmra.mxu1 %vm724_vm2, %v11137_v60  ;;  %v11157_v59 = vld [vmem:[%s17134_s7 + $0x88] sm:$0xff]   ;;  %v11158_v60 = vld [vmem:[%s17134_s7 + $0x80] sm:$0xff]  }
 0x2e6   :  { %11029 = vmatprep.mubr.msk.bf16.mxu1 %vm11585_vm3, %v11584_v61  ;;  %11055 = vmatprep.mubr.msk.bf16.mxu0 %vm11585_vm3, %v11584_v61 }
 0x3a5   :  { %v11011_v62 = vpop.f32.mrf.mxu0  ;;  %v11023_v63 = vpop.f32.mrf.mxu1 }
 0x3a6   :  { %v852_v0 = vmax.f32 %v11011_v62, %v11023_v63  ;;  %v11159_v62 = vld [vmem:[%s17134_s7 + $0x78] sm:$0xff]   ;;  %v11160_v63 = vld [vmem:[%s17134_s7 + $0x70] sm:$0xff]  }
 0x3a7   :  { %v765_v4 = vpop.f32.mrf.mxu0  ;;  %v835_v7 = vpop.f32.mrf.mxu1 }
 0x3a8   :  { %v860_v10 = vmul.f32 %v857_v2, %v852_v0  ;;  %v850_v13 = vmax.f32 %v765_v4, %v835_v7  ;;  %v11161_v0 = vld [vmem:[%s17134_s7 + $0x68] sm:$0xff]  }
 0x3a9   :  { %v11012_v8 = vpop.f32.mrf.mxu0  ;;  %v11024_v9 = vpop.f32.mrf.mxu1 }
 0x3aa   :  { %v853_v14 = vmax.f32 %v11012_v8, %v11024_v9  ;;  %v868_v19 = vadd.f32 %v865_v12, %v860_v10  ;;  %v858_v20 = vmul.f32 %v857_v2, %v850_v13 }
 0x3ab   :  { %v768_v15 = vpop.f32.mrf.mxu0  ;;  %v838_v16 = vpop.f32.mrf.mxu1 }
 0x3ac   :  { %v861_v17 = vmul.f32 %v857_v2, %v853_v14  ;;  %v851_v18 = vmax.f32 %v768_v15, %v838_v16  ;;  %v866_v25 = vadd.f32 %v865_v12, %v858_v20 }
 0x3ae   :  { %v869_v21 = vadd.f32 %v865_v12, %v861_v17  ;;  %v859_v22 = vmul.f32 %v857_v2, %v851_v18  ;;  %v1028_v2 = vsub.s32 3, %v11668_v1 }
 0x3b0   :  { %v11910_v23 = vpack.c.bf16 %v869_v21, %v868_v19  ;;  %v867_v24 = vadd.f32 %v865_v12, %v859_v22  ;;  %v1029_v4 = vrot.slane %v11879_v11, %v1028_v2 }
 0x3b2   :  { %11026 = vmatpush3.bf16.msra.mxu1 %v11910_v23  ;;  %11052 = vmatpush3.bf16.msra.mxu0 %v11910_v23  ;;  %v11922_v28 = vpack.c.bf16 %v867_v24, %v866_v25  ;;  %v1499_v25 = vld [vmem:[%s17136_s9 + $0x188] sm:$0x33] }
 0x3b3   :  { %11027 = vmatprep.subr.bf16.mxu1 %v11584_v61  ;;  %11053 = vmatprep.subr.bf16.mxu0 %v11584_v61  ;;  %v9653_v26 = vcombine.high %v1499_v25, %v1499_v25  ;;  %v9652_v27 = vcombine.low %v1499_v25, %v1499_v25  ;;  %v1450_v25 = vld [vmem:[%s17136_s9] sm:$0xff] }
 0x3b6   :  { %11028 = vmatpush3.bf16.msra.mxu1 %v11922_v28  ;;  %11054 = vmatpush3.bf16.msra.mxu0 %v11922_v28 }
 0x3b7   :  { %11033 = vmatprep.subr.bf16.mxu1 %v11584_v61  ;;  %11059 = vmatprep.subr.bf16.mxu0 %v11584_v61 }
 0x3b9   :  { %11030 = vmatmul.mubr.msk.bf16.vlgmr.msra.gmra.mxu1 %vm879_vm5, %v11138_v29  ;;  %11056 = vmatmul.mubr.msk.bf16.vlgmr.msra.gmra.mxu0 %vm879_vm5, %v11139_v30  ;;  %v1495_v29 = vld [vmem:[%s17136_s9 + $0x168] sm:$0xff]  ;;  %v1977_v30 = vsel %vm981_vm4, %v9652_v27, 0 }
 0x3ba   :  { %11034 = vmatpush3.bf16.msra.mxu1 %v983_v39  ;;  %11060 = vmatpush3.bf16.msra.mxu0 %v1142_v31  ;;  %v1451_v27 = vld [vmem:[%s17136_s9 + $0x8] sm:$0xff] }
 0x3bb   :  { %11035 = vmatprep.subr.bf16.mxu1 %v11584_v61  ;;  %11061 = vmatprep.subr.bf16.mxu0 %v11584_v61 }
 0x3bc   :  { %11047 = vmatprep.mubr.msk.bf16.mxu1 %vm11585_vm3, %v11584_v61  ;;  %11073 = vmatprep.mubr.msk.bf16.mxu0 %vm11585_vm3, %v11584_v61 }
 0x3be   :  { %11036 = vmatpush3.bf16.msra.mxu1 %v11142_v40  ;;  %11062 = vmatpush3.bf16.msra.mxu0 %v11143_v33  ;;  %v1483_v40 = vld [vmem:[%s17136_s9 + $0x108] sm:$0xff] }
 0x3bf   :  { %11037 = vmatprep.subr.bf16.mxu1 %v11584_v61  ;;  %11063 = vmatprep.subr.bf16.mxu0 %v11584_v61  ;;  %v1487_v33 = vld [vmem:[%s17136_s9 + $0x128] sm:$0xff] }
 0x3c2   :  { %11038 = vmatpush3.bf16.msra.mxu1 %v11144_v41  ;;  %11064 = vmatpush3.bf16.msra.mxu0 %v11145_v42  ;;  %v9637_v41 = vcombine.high %v1483_v40, %v1487_v33  ;;  %v9636_v42 = vcombine.low %v1483_v40, %v1487_v33  ;;  %v1500_v40 = vld [vmem:[%s17136_s9 + $0x190] sm:$0x33]  ;;  %v1501_v33 = vld [vmem:[%s17136_s9 + $0x198] sm:$0x33] }
 0x3c3   :  { %11039 = vmatprep.subr.bf16.mxu1 %v11584_v61  ;;  %11065 = vmatprep.subr.bf16.mxu0 %v11584_v61 }
 0x3c6   :  { %11040 = vmatpush3.bf16.msra.mxu1 %v11146_v43  ;;  %11066 = vmatpush3.bf16.msra.mxu0 %v11147_v44 }
 0x3c7   :  { %11041 = vmatprep.subr.bf16.mxu1 %v11584_v61  ;;  %11067 = vmatprep.subr.bf16.mxu0 %v11584_v61 }
 0x3ca   :  { %11042 = vmatpush3.bf16.msra.mxu1 %v11148_v45  ;;  %11068 = vmatpush3.bf16.msra.mxu0 %v11149_v46 }
 0x3cb   :  { %11043 = vmatprep.subr.bf16.mxu1 %v11584_v61  ;;  %11069 = vmatprep.subr.bf16.mxu0 %v11584_v61 }
 0x3ce   :  { %11044 = vmatpush3.bf16.msra.mxu1 %v11150_v47  ;;  %11070 = vmatpush3.bf16.msra.mxu0 %v11151_v35 }
 0x3cf   :  { %11045 = vmatprep.subr.bf16.mxu1 %v11584_v61  ;;  %11071 = vmatprep.subr.bf16.mxu0 %v11584_v61 }
 0x3d2   :  { %11046 = vmatpush3.bf16.msra.mxu1 %v11152_v48  ;;  %11072 = vmatpush3.bf16.msra.mxu0 %v11153_v49 }
 0x3d3   :  { %11077 = vmatprep.subr.bf16.mxu1 %v11584_v61  ;;  %11103 = vmatprep.subr.bf16.mxu0 %v11584_v61 }
 0x479   :  { %v917_v50 = vpop.f32.mrf.mxu1  ;;  %v1077_v36 = vpop.f32.mrf.mxu0 }
 0x47b   :  { %v11031_v37 = vpop.f32.mrf.mxu1  ;;  %v11057_v51 = vpop.f32.mrf.mxu0 }
 0x47c   :  { %v1345_v37 = vld [vmem:[%s17135_s8] sm:$0xf] }
 0x47d   :  { %v920_v52 = vpop.f32.mrf.mxu1  ;;  %v1080_v53 = vpop.f32.mrf.mxu0 }
 0x47e   :  { %v924_v54 = vpack.c.bf16 %v920_v52, %v917_v50  ;;  %v1084_v38 = vpack.c.bf16 %v1080_v53, %v1077_v36  ;;  %v1498_v36 = vld [vmem:[%s17136_s9 + $0x180] sm:$0x33] }
 0x47f   :  { %v11032_v55 = vpop.f32.mrf.mxu1  ;;  %v11058_v56 = vpop.f32.mrf.mxu0  ;;  %v9651_v51 = vcombine.high %v1498_v36, %v1498_v36  ;;  %v9650_v52 = vcombine.low %v1498_v36, %v1498_v36  ;;  %v1490_v53 = vld [vmem:[%s17136_s9 + $0x140] sm:$0xff] }
 0x480   :  { %11048 = vmatmul.mubr.msk.bf16.vlgmr.msra.gmra.mxu1 %vm977_vm6, %v924_v54  ;;  %11074 = vmatmul.mubr.msk.bf16.vlgmr.msra.gmra.mxu0 %vm977_vm6, %v1084_v38  ;;  %v1494_v54 = vld [vmem:[%s17136_s9 + $0x160] sm:$0xff] }
 0x481   :  { %11078 = vmatpush3.bf16.msra.mxu1 %v11910_v23  ;;  %11081 = vmatprep.mubr.msk.bf16.mxu1 %vm11585_vm3, %v11584_v61  ;;  %v9600_v38 = vld [vmem:[%s17135_s8 + $0x4] sm:$0xf]  ;;  %v1971_v55 = vsel %vm981_vm4, %v9650_v52, 0  ;;  %v9643_v56 = vcombine.high %v1490_v53, %v1494_v54  ;;  %v9654_v52 = vcombine.low %v1500_v40, %v1500_v40 }
 0x482   :  { %11079 = vmatprep.subr.bf16.mxu1 %v11584_v61  ;;  %11105 = vmatprep.mubr.msk.bf16.mxu0 %vm11585_vm3, %v11584_v61 }
 0x485   :  { %11080 = vmatpush3.bf16.msra.mxu1 %v11922_v28  ;;  %v1491_v28 = vld [vmem:[%s17136_s9 + $0x148] sm:$0xff] }
 0x486   :  { %11085 = vmatprep.subr.bf16.mxu1 %v11584_v61  ;;  %v9645_v39 = vcombine.high %v1491_v28, %v1495_v29  ;;  %v9644_v31 = vcombine.low %v1491_v28, %v1495_v29  ;;  %v1455_v29 = vld [vmem:[%s17136_s9 + $0x28] sm:$0xff] }
 0x488   :  { %11082 = vmatmul.mubr.msk.bf16.vlgmr.msra.gmra.mxu1 %vm879_vm5, %v11154_v34  ;;  %v9642_v34 = vcombine.low %v1490_v53, %v1494_v54  ;;  %v9656_v54 = vcombine.low %v1501_v33, %v1501_v33 }
 0x489   :  { %11086 = vmatpush3.bf16.msra.mxu1 %v1297_v58  ;;  %11099 = vmatprep.mubr.msk.bf16.mxu1 %vm11585_vm3, %v11584_v61 }
 0x48a   :  { %11087 = vmatprep.subr.bf16.mxu1 %v11584_v61 }
 0x48d   :  { %11088 = vmatpush3.bf16.msra.mxu1 %v11156_v32 }
 0x48e   :  { %11089 = vmatprep.subr.bf16.mxu1 %v11584_v61 }
 0x491   :  { %11090 = vmatpush3.bf16.msra.mxu1 %v11157_v59  ;;  %v1474_v59 = vld [vmem:[%s17136_s9 + $0xc0] sm:$0xff] }
 0x492   :  { %11091 = vmatprep.subr.bf16.mxu1 %v11584_v61 }
 0x495   :  { %11092 = vmatpush3.bf16.msra.mxu1 %v11158_v60  ;;  %v1478_v60 = vld [vmem:[%s17136_s9 + $0xe0] sm:$0xff] }
 0x496   :  { %11093 = vmatprep.subr.bf16.mxu1 %v11584_v61  ;;  %v9626_v2 = vcombine.low %v1474_v59, %v1478_v60 }
 0x499   :  { %11094 = vmatpush3.bf16.msra.mxu1 %v11159_v62  ;;  %v1475_v62 = vld [vmem:[%s17136_s9 + $0xc8] sm:$0xff] }
 0x49a   :  { %11095 = vmatprep.subr.bf16.mxu1 %v11584_v61 }
 0x49d   :  { %11096 = vmatpush3.bf16.msra.mxu1 %v11160_v63  ;;  %v9627_v63 = vcombine.high %v1474_v59, %v1478_v60  ;;  %v1989_v59 = vsel %vm981_vm4, %v9656_v54, 0 }
 0x49e   :  { %11097 = vmatprep.subr.bf16.mxu1 %v11584_v61 }
 0x4a1   :  { %11098 = vmatpush3.bf16.msra.mxu1 %v11161_v0  ;;  %v1479_v0 = vld [vmem:[%s17136_s9 + $0xe8] sm:$0xff] }
 0x4a2   :  { %9660 = vmatprep.subr.msk.bf16.mxu1 %vm981_vm4, %v9653_v26  ;;  %v1454_v26 = vld [vmem:[%s17136_s9 + $0x20] sm:$0xff] }
 0x4a3   :  { %v9603_v28 = vcombine.high %v1450_v25, %v1454_v26 }
 0x540   :  { %v1019_v7 = vpop.f32.mrf.mxu1  ;;  %v1178_v8 = vpop.f32.mrf.mxu0 }
 0x541   :  { %v1030_v9 = vadd.f32 %v1029_v4, %v1019_v7  ;;  %v9629_v7 = vcombine.high %v1475_v62, %v1479_v0 }
 0x542   :  { %v11049_v10 = vpop.f32.mrf.mxu1  ;;  %v11075_v12 = vpop.f32.mrf.mxu0 }
 0x543   :  { %v1185_v13 = vadd.f32 %v1178_v8, %v1030_v9  ;;  %v1466_v8 = vld [vmem:[%s17136_s9 + $0x80] sm:$0xff]  ;;  %v1467_v10 = vld [vmem:[%s17136_s9 + $0x88] sm:$0xff] }
 0x544   :  { %v1022_v14 = vpop.f32.mrf.mxu1  ;;  %v1181_v15 = vpop.f32.mrf.mxu0  ;;  %v1470_v9 = vld [vmem:[%s17136_s9 + $0xa0] sm:$0xff] }
 0x545   :  { %v1031_v16 = vadd.f32 %v1029_v4, %v1022_v14  ;;  %v9628_v4 = vcombine.low %v1475_v62, %v1479_v0  ;;  %v9619_v12 = vcombine.high %v1466_v8, %v1470_v9  ;;  %v9618_v14 = vcombine.low %v1466_v8, %v1470_v9  ;;  %v1488_v0 = vld [vmem:[%s17136_s9 + $0x130] sm:$0xff] }
 0x546   :  { %v11050_v17 = vpop.f32.mrf.mxu1  ;;  %v11076_v18 = vpop.f32.mrf.mxu0 }
 0x547   :  { %v1186_v19 = vadd.f32 %v1181_v15, %v1031_v16  ;;  %v1458_v17 = vld [vmem:[%s17136_s9 + $0x40] sm:$0xff] }
 0x548   :  { %v1232_v20 = vpop.f32.mrf.mxu1  ;;  %v1462_v18 = vld [vmem:[%s17136_s9 + $0x60] sm:$0xff] }
 0x54a   :  { %v11083_v21 = vpop.f32.mrf.mxu1 }
 0x54b   :  { %v1463_v21 = vld [vmem:[%s17136_s9 + $0x68] sm:$0xff] }
 0x54c   :  { %v1235_v22 = vpop.f32.mrf.mxu1 }
 0x54d   :  { %v1239_v23 = vpack.c.bf16 %v1235_v22, %v1232_v20  ;;  %v9611_v20 = vcombine.high %v1458_v17, %v1462_v18  ;;  %v9610_v22 = vcombine.low %v1458_v17, %v1462_v18 }
 0x54e   :  { %v11084_v24 = vpop.f32.mrf.mxu1 }
 0x54f   :  { %11100 = vmatmul.mubr.msk.bf16.vlgmr.msra.gmra.mxu1 %vm977_vm6, %v1239_v23 }
 0x550   :  { %2038 = vmatpush1.bf16.msra.mxu1 %v1977_v30  ;;  %v9602_v30 = vcombine.low %v1450_v25, %v1454_v26 }
 0x551   :  { %2039 = vmatprep.subr.bf16.mxu1 %v9645_v39  ;;  %v9604_v39 = vcombine.low %v1451_v27, %v1455_v29 }
 0x554   :  { %2040 = vmatpush1.bf16.msra.mxu1 %v9644_v31  ;;  %v9605_v31 = vcombine.high %v1451_v27, %v1455_v29  ;;  %v1464_v29 = vld [vmem:[%s17136_s9 + $0x70] sm:$0xff] }
 0x555   :  { %2041 = vmatprep.subr.bf16.mxu1 %v9637_v41  ;;  %v9655_v41 = vcombine.high %v1500_v40, %v1500_v40 }
 0x558   :  { %2042 = vmatpush1.bf16.msra.mxu1 %v9636_v42  ;;  %v9657_v42 = vcombine.high %v1501_v33, %v1501_v33 }
 0x559   :  { %2043 = vmatprep.subr.bf16.mxu1 %v9629_v7 }
 0x55c   :  { %2044 = vmatpush1.bf16.msra.mxu1 %v9628_v4  ;;  %v1489_v4 = vld [vmem:[%s17136_s9 + $0x138] sm:$0xff] }
 0x60f   :  { %v1333_v43 = vpop.f32.mrf.mxu1 }
 0x610   :  { %v1340_v45 = vadd.f32 %v1333_v43, %v1185_v13  ;;  %v1471_v13 = vld [vmem:[%s17136_s9 + $0xa8] sm:$0xff]  ;;  %v17143_v43 = vmov 0  }
 0x611   :  { %v11101_v44 = vpop.f32.mrf.mxu1  ;;  %v9620_v15 = vcombine.low %v1467_v10, %v1471_v13  ;;  %v9621_v16 = vcombine.high %v1467_v10, %v1471_v13  ;;  %2067 = vmatprep.mubr.bf16.mxu1 %v17143_v43  ;;  %v1480_v13 = vld [vmem:[%s17136_s9 + $0xf0] sm:$0xff] }
 0x612   :  { %v1342_v48 = vmax.f32 %v1340_v45, 0.0 }
 0x613   :  { %v1336_v46 = vpop.f32.mrf.mxu1  ;;  %2045 = vmatprep.subr.bf16.mxu1 %v9621_v16 }
 0x614   :  { %v1341_v47 = vadd.f32 %v1336_v46, %v1186_v19  ;;  %v1459_v19 = vld [vmem:[%s17136_s9 + $0x48] sm:$0xff]  ;;  %2046 = vmatpush1.bf16.msra.mxu1 %v9620_v15  ;;  %v12141_v46 = vsub.s32 4, %v11668_v1  ;;  %v1481_v15 = vld [vmem:[%s17136_s9 + $0xf8] sm:$0xff] }
 0x615   :  { %v11102_v35 = vpop.f32.mrf.mxu1  ;;  %v9612_v23 = vcombine.low %v1459_v19, %v1463_v21  ;;  %v9613_v24 = vcombine.high %v1459_v19, %v1463_v21  ;;  %v1472_v21 = vld [vmem:[%s17136_s9 + $0xb0] sm:$0xff] }
 0x616   :  { %v1343_v49 = vmax.f32 %v1341_v47, 0.0  ;;  %17831 = vst [vmem:[#allocation9_spill] sm:$0xff] %v12141_v46  ;;  %v12144_v35 = vsub.s32 5, %v11668_v1  ;;  %v1586_v1 = vld [vmem:[%s17138_s11 + $0x2a0] sm:$0xff] }
 0x617   :  { %2047 = vmatprep.subr.bf16.mxu1 %v9613_v24 }
 0x618   :  { %v1344_v50 = vpack.c.bf16 %v1343_v49, %v1342_v48  ;;  %2048 = vmatpush1.bf16.msra.mxu1 %v9612_v23  ;;  %17832 = vst [vmem:[#allocation10_spill] sm:$0xff] %v12144_v35  ;;  %v1439_v49 = vrot.slane %v11879_v11, %v12141_v46  ;;  %v1473_v23 = vld [vmem:[%s17136_s9 + $0xb8] sm:$0xff]  ;;  %v1574_v46 = vld [vmem:[%s17138_s11 + $0x240] sm:$0xff] }
 0x619   :  { %2049 = vmatprep.subr.bf16.mxu1 %v9605_v31 }
 0x61a   :  { %11104 = vmatpush3.bf16.msra.mxu0 %v1344_v50 }
 0x61b   :  { %11109 = vmatprep.subr.bf16.mxu0 %v11584_v61 }
 0x61c   :  { %2050 = vmatpush1.bf16.msra.mxu1 %v9604_v39  ;;  %v1465_v39 = vld [vmem:[%s17136_s9 + $0x78] sm:$0xff] }
 0x61d   :  { %11106 = vmatmul.mubr.msk.bf16.vlgmr.msra.gmra.mxu0 %vm1346_vm7, %v1345_v37  ;;  %9664 = vmatprep.subr.msk.bf16.mxu1 %vm981_vm4, %v9657_v42  ;;  %v1444_v37 = vrot.slane %v11879_v11, %v12144_v35  ;;  %v1497_v11 = vld [vmem:[%s17136_s9 + $0x178] sm:$0xff]  ;;  %v1452_v42 = vld [vmem:[%s17136_s9 + $0x10] sm:$0xff]  ;;  %v12560_v35 = vcombine.high %v1582_v3, %v1586_v1 }
 0x61e   :  { %11110 = vmatpush3.bf16.msra.mxu0 %v1344_v50  ;;  %11111 = vmatprep.mubr.msk.bf16.mxu0 %vm11585_vm3, %v11584_v61  ;;  %v1482_v61 = vld [vmem:[%s17136_s9 + $0x100] sm:$0xff] }
 0x61f   :  { %9658 = vmatprep.subr.msk.bf16.mxu0 %vm981_vm4, %v9651_v51  ;;  %v9635_v58 = vcombine.high %v1482_v61, %v1486_v57  ;;  %v9634_v32 = vcombine.low %v1482_v61, %v1486_v57  ;;  %v1493_v61 = vld [vmem:[%s17136_s9 + $0x158] sm:$0xff]  ;;  %17877 = vst [vmem:[#allocation55_spill] sm:$0xff] %v12560_v35 }
 0x620   :  { %v9649_v62 = vcombine.high %v1493_v61, %v1497_v11  ;;  %v9648_v8 = vcombine.low %v1493_v61, %v1497_v11  ;;  %v1550_v61 = vld [vmem:[%s17138_s11 + $0x180] sm:$0xff] }
 0x621   :  { %v1554_v11 = vld [vmem:[%s17138_s11 + $0x1a0] sm:$0xff] }
 0x625   :  { %11112 = vmatmul.mubr.msk.bf16.vlgmr.msra.gmra.mxu0 %vm1346_vm7, %v9600_v38  ;;  %v1492_v38 = vld [vmem:[%s17136_s9 + $0x150] sm:$0xff] }
 0x626   :  { %1997 = vmatpush1.bf16.msra.mxu0 %v1971_v55  ;;  %2026 = vmatprep.mubr.bf16.mxu0 %v17143_v43 }
 0x627   :  { %1998 = vmatprep.subr.bf16.mxu0 %v9643_v56  ;;  %v1496_v56 = vld [vmem:[%s17136_s9 + $0x170] sm:$0xff] }
 0x628   :  { %v9647_v60 = vcombine.high %v1492_v38, %v1496_v56  ;;  %v9646_v7 = vcombine.low %v1492_v38, %v1496_v56 }
 0x62a   :  { %1999 = vmatpush1.bf16.msra.mxu0 %v9642_v34 }
 0x62b   :  { %2000 = vmatprep.subr.bf16.mxu0 %v9635_v58  ;;  %v1983_v58 = vsel %vm981_vm4, %v9654_v52, 0  ;;  %v1559_v52 = vld [vmem:[%s17138_s11 + $0x1c8] sm:$0xff] }
 0x62e   :  { %2001 = vmatpush1.bf16.msra.mxu0 %v9634_v32 }
 0x62f   :  { %2002 = vmatprep.subr.bf16.mxu0 %v9627_v63  ;;  %v1484_v63 = vld [vmem:[%s17136_s9 + $0x110] sm:$0xff] }
 0x630   :  { %v9639_v9 = vcombine.high %v1484_v63, %v1488_v0  ;;  %v9638_v16 = vcombine.low %v1484_v63, %v1488_v0  ;;  %v1542_v63 = vld [vmem:[%s17138_s11 + $0x140] sm:$0xff] }
 0x631   :  { %v1546_v0 = vld [vmem:[%s17138_s11 + $0x160] sm:$0xff] }
 0x632   :  { %2003 = vmatpush1.bf16.msra.mxu0 %v9626_v2  ;;  %v1485_v2 = vld [vmem:[%s17136_s9 + $0x118] sm:$0xff] }
 0x633   :  { %2004 = vmatprep.subr.bf16.mxu0 %v9619_v12  ;;  %v9641_v10 = vcombine.high %v1485_v2, %v1489_v4  ;;  %v1476_v12 = vld [vmem:[%s17136_s9 + $0xd0] sm:$0xff]  ;;  %v9640_v17 = vcombine.low %v1485_v2, %v1489_v4  ;;  %v1543_v2 = vld [vmem:[%s17138_s11 + $0x148] sm:$0xff] }
 0x634   :  { %v9631_v18 = vcombine.high %v1476_v12, %v1480_v13  ;;  %v9630_v24 = vcombine.low %v1476_v12, %v1480_v13  ;;  %v1547_v4 = vld [vmem:[%s17138_s11 + $0x168] sm:$0xff]  ;;  %v1538_v12 = vld [vmem:[%s17138_s11 + $0x120] sm:$0xff] }
 0x635   :  { %v1535_v13 = vld [vmem:[%s17138_s11 + $0x108] sm:$0xff] }
 0x636   :  { %2005 = vmatpush1.bf16.msra.mxu0 %v9618_v14  ;;  %v1477_v14 = vld [vmem:[%s17136_s9 + $0xd8] sm:$0xff] }
 0x637   :  { %2006 = vmatprep.subr.bf16.mxu0 %v9611_v20  ;;  %v9633_v19 = vcombine.high %v1477_v14, %v1481_v15  ;;  %v1468_v20 = vld [vmem:[%s17136_s9 + $0x90] sm:$0xff]  ;;  %v9632_v25 = vcombine.low %v1477_v14, %v1481_v15  ;;  %v1539_v14 = vld [vmem:[%s17138_s11 + $0x128] sm:$0xff]  ;;  %v12314_v15 = vcombine.low %v1542_v63, %v1546_v0 }
 0x638   :  { %v9623_v26 = vcombine.high %v1468_v20, %v1472_v21  ;;  %v9622_v31 = vcombine.low %v1468_v20, %v1472_v21  ;;  %v1530_v20 = vld [vmem:[%s17138_s11 + $0xe0] sm:$0xff]  ;;  %v1527_v21 = vld [vmem:[%s17138_s11 + $0xc8] sm:$0xff] }
 0x639   :  { %17835 = vst [vmem:[#allocation13_spill] sm:$0xff] %v12314_v15 }
 0x63a   :  { %2007 = vmatpush1.bf16.msra.mxu0 %v9610_v22  ;;  %v1469_v22 = vld [vmem:[%s17136_s9 + $0x98] sm:$0xff] }
 0x63b   :  { %2008 = vmatprep.subr.bf16.mxu0 %v9603_v28  ;;  %v9625_v27 = vcombine.high %v1469_v22, %v1473_v23  ;;  %v1460_v28 = vld [vmem:[%s17136_s9 + $0x50] sm:$0xff]  ;;  %v9624_v40 = vcombine.low %v1469_v22, %v1473_v23  ;;  %v1531_v22 = vld [vmem:[%s17138_s11 + $0xe8] sm:$0xff] }
 0x63c   :  { %v9615_v33 = vcombine.high %v1460_v28, %v1464_v29 }
 0x63e   :  { %2009 = vmatpush1.bf16.msra.mxu0 %v9602_v30  ;;  %v1461_v30 = vld [vmem:[%s17136_s9 + $0x58] sm:$0xff] }
 0x63f   :  { %9662 = vmatprep.subr.msk.bf16.mxu0 %vm981_vm4, %v9655_v41  ;;  %v9617_v41 = vcombine.high %v1461_v30, %v1465_v39 }
 0x6dd   :  { %v1384_v44 = vpop.f32.mrf.mxu0 }
 0x6df   :  { %v11107_v45 = vpop.f32.mrf.mxu0 }
 0x6e0   :  { %v1453_v45 = vld [vmem:[%s17136_s9 + $0x18] sm:$0xff] }
 0x6e1   :  { %v1387_v47 = vpop.f32.mrf.mxu0 }
 0x6e2   :  { %v1457_v47 = vld [vmem:[%s17136_s9 + $0x38] sm:$0xff] }
 0x6e3   :  { %v11108_v48 = vpop.f32.mrf.mxu0  ;;  %v9608_v38 = vcombine.low %v1453_v45, %v1457_v47 }
 0x6e4   :  { %v9614_v48 = vcombine.low %v1460_v28, %v1464_v29  ;;  %v1522_v28 = vld [vmem:[%s17138_s11 + $0xa0] sm:$0xff]  ;;  %v1519_v29 = vld [vmem:[%s17138_s11 + $0x88] sm:$0xff] }
 0x6e5   :  { %v1429_v50 = vpop.f32.mrf.mxu0 }
 0x6e6   :  { %v1435_v36 = vmax.f32 %v1384_v44, %v1429_v50  ;;  %v1456_v44 = vld [vmem:[%s17136_s9 + $0x30] sm:$0xff] }
 0x6e7   :  { %v11113_v51 = vpop.f32.mrf.mxu0  ;;  %v9607_v50 = vcombine.high %v1452_v42, %v1456_v44  ;;  %v9606_v54 = vcombine.low %v1452_v42, %v1456_v44  ;;  %v1514_v42 = vld [vmem:[%s17138_s11 + $0x60] sm:$0xff]  ;;  %v1511_v44 = vld [vmem:[%s17138_s11 + $0x48] sm:$0xff] }
 0x6e8   :  { %v1440_v53 = vmul.f32 %v1439_v49, %v1435_v36  ;;  %v9616_v49 = vcombine.low %v1461_v30, %v1465_v39  ;;  %v9609_v36 = vcombine.high %v1453_v45, %v1457_v47  ;;  %v1562_v51 = vld [vmem:[%s17138_s11 + $0x1e0] sm:$0xff]  ;;  %v1523_v30 = vld [vmem:[%s17138_s11 + $0xa8] sm:$0xff] }
 0x6e9   :  { %v1432_v55 = vpop.f32.mrf.mxu0  ;;  %v1515_v45 = vld [vmem:[%s17138_s11 + $0x68] sm:$0xff] }
 0x6ea   :  { %v1445_v57 = vadd.f32 %v1444_v37, %v1440_v53  ;;  %v1558_v37 = vld [vmem:[%s17138_s11 + $0x1c0] sm:$0xff]  ;;  %v1563_v53 = vld [vmem:[%s17138_s11 + $0x1e8] sm:$0xff] }
 0x6eb   :  { %v11114_v34 = vpop.f32.mrf.mxu0  ;;  %v12244_v55 = vcombine.high %v1558_v37, %v1562_v51  ;;  %v12246_v56 = vcombine.high %v1559_v52, %v1563_v53 }
 0x6ec   :  { %v12163_v32 = vpack.c.bf16 %v1445_v57, %v1445_v57  ;;  %v1551_v57 = vld [vmem:[%s17138_s11 + $0x188] sm:$0xff] }
 0x6ed   :  { %v1555_v34 = vld [vmem:[%s17138_s11 + $0x1a8] sm:$0xff] }
 0x6ee   :  { %9659 = vmatmul.mubr.msk.bf16.vlgmr.msra.gmra.mxu0 %vm977_vm6, %v12163_v32  ;;  %9661 = vmatmul.mubr.msk.bf16.vlgmr.msra.gmra.mxu1 %vm977_vm6, %v12163_v32 }
 0x6ef   :  { %2079 = vmatpush1.bf16.msra.mxu0 %v1983_v58  ;;  %2120 = vmatpush1.bf16.msra.mxu1 %v1989_v59  ;;  %v12260_v58 = vcombine.low %v1558_v37, %v1562_v51  ;;  %v12262_v59 = vcombine.low %v1559_v52, %v1563_v53  ;;  %v1506_v37 = vld [vmem:[%s17138_s11 + $0x20] sm:$0xff]  ;;  %v1503_v51 = vld [vmem:[%s17138_s11 + $0x8] sm:$0xff] }
 0x6f0   :  { %2080 = vmatprep.subr.bf16.mxu0 %v9647_v60  ;;  %2121 = vmatprep.subr.bf16.mxu1 %v9649_v62  ;;  %v12266_v60 = vcombine.high %v1550_v61, %v1554_v11  ;;  %v12268_v62 = vcombine.high %v1551_v57, %v1555_v34  ;;  %v1507_v52 = vld [vmem:[%s17138_s11 + $0x28] sm:$0xff] }
 0x6f1   :  { %2108 = vmatprep.mubr.bf16.mxu0 %v17143_v43  ;;  %2149 = vmatprep.mubr.bf16.mxu1 %v17143_v43 }
 0x6f3   :  { %2081 = vmatpush1.bf16.msra.mxu0 %v9646_v7  ;;  %2122 = vmatpush1.bf16.msra.mxu1 %v9648_v8  ;;  %v12288_v7 = vcombine.low %v1550_v61, %v1554_v11  ;;  %v12290_v8 = vcombine.low %v1551_v57, %v1555_v34  ;;  %v12418_v61 = vcombine.high %v1503_v51, %v1507_v52  ;;  %v1622_v11 = vld [vmem:[%s17138_s11 + $0x3c0] sm:$0xff]  ;;  %v1623_v34 = vld [vmem:[%s17138_s11 + $0x3c8] sm:$0xff] }
 0x6f4   :  { %2082 = vmatprep.subr.bf16.mxu0 %v9639_v9  ;;  %2123 = vmatprep.subr.bf16.mxu1 %v9641_v10  ;;  %v12294_v9 = vcombine.high %v1542_v63, %v1546_v0  ;;  %v12296_v10 = vcombine.high %v1543_v2, %v1547_v4  ;;  %v1626_v57 = vld [vmem:[%s17138_s11 + $0x3e0] sm:$0xff]  ;;  %v1627_v63 = vld [vmem:[%s17138_s11 + $0x3e8] sm:$0xff] }
 0x6f5   :  { %17854 = vst [vmem:[#allocation32_spill] sm:$0xff] %v12418_v61 }
 0x6f6   :  { %17833 = vst [vmem:[#allocation11_spill] sm:$0xff] %v12294_v9  ;;  %17834 = vst [vmem:[#allocation12_spill] sm:$0xff] %v12296_v10 }
 0x6f7   :  { %2083 = vmatpush1.bf16.msra.mxu0 %v9638_v16  ;;  %2124 = vmatpush1.bf16.msra.mxu1 %v9640_v17  ;;  %v12316_v16 = vcombine.low %v1543_v2, %v1547_v4  ;;  %v12436_v2 = vcombine.low %v1503_v51, %v1507_v52  ;;  %v12440_v4 = vcombine.high %v1622_v11, %v1626_v57  ;;  %v1602_v51 = vld [vmem:[%s17138_s11 + $0x320] sm:$0xff]  ;;  %v1599_v52 = vld [vmem:[%s17138_s11 + $0x308] sm:$0xff] }
 0x6f8   :  { %2084 = vmatprep.subr.bf16.mxu0 %v9631_v18  ;;  %2125 = vmatprep.subr.bf16.mxu1 %v9633_v19  ;;  %v12322_v18 = vcombine.high %v1535_v13, %v1539_v14  ;;  %v1526_v19 = vld [vmem:[%s17138_s11 + $0xc0] sm:$0xff] }
 0x6f9   :  { %17836 = vst [vmem:[#allocation14_spill] sm:$0xff] %v12316_v16  ;;  %v12362_v39 = vcombine.low %v1526_v19, %v1530_v20  ;;  %17856 = vst [vmem:[#allocation34_spill] sm:$0xff] %v12436_v2 }
 0x6fa   :  { %17838 = vst [vmem:[#allocation16_spill] sm:$0xff] %v12322_v18  ;;  %17857 = vst [vmem:[#allocation35_spill] sm:$0xff] %v12440_v4 }
 0x6fb   :  { %2085 = vmatpush1.bf16.msra.mxu0 %v9630_v24  ;;  %2126 = vmatpush1.bf16.msra.mxu1 %v9632_v25  ;;  %v12340_v24 = vcombine.low %v1535_v13, %v1539_v14  ;;  %v12344_v25 = vcombine.high %v1526_v19, %v1530_v20  ;;  %17843 = vst [vmem:[#allocation21_spill] sm:$0xff] %v12362_v39  ;;  %v1618_v13 = vld [vmem:[%s17138_s11 + $0x3a0] sm:$0xff]  ;;  %v1615_v14 = vld [vmem:[%s17138_s11 + $0x388] sm:$0xff] }
 0x6fc   :  { %2086 = vmatprep.subr.bf16.mxu0 %v9623_v26  ;;  %2127 = vmatprep.subr.bf16.mxu1 %v9625_v27  ;;  %v12346_v26 = vcombine.high %v1527_v21, %v1531_v22  ;;  %v1518_v27 = vld [vmem:[%s17138_s11 + $0x80] sm:$0xff]  ;;  %v1619_v19 = vld [vmem:[%s17138_s11 + $0x3a8] sm:$0xff]  ;;  %v12458_v20 = vcombine.low %v1622_v11, %v1626_v57 }
 0x6fd   :  { %17840 = vst [vmem:[#allocation18_spill] sm:$0xff] %v12340_v24  ;;  %17841 = vst [vmem:[#allocation19_spill] sm:$0xff] %v12344_v25  ;;  %v12386_v47 = vcombine.low %v1518_v27, %v1522_v28  ;;  %v1603_v11 = vld [vmem:[%s17138_s11 + $0x328] sm:$0xff] }
 0x6fe   :  { %17842 = vst [vmem:[#allocation20_spill] sm:$0xff] %v12346_v26  ;;  %17859 = vst [vmem:[#allocation37_spill] sm:$0xff] %v12458_v20 }
 0x6ff   :  { %2087 = vmatpush1.bf16.msra.mxu0 %v9622_v31  ;;  %2128 = vmatpush1.bf16.msra.mxu1 %v9624_v40  ;;  %v12364_v31 = vcombine.low %v1527_v21, %v1531_v22  ;;  %v12368_v40 = vcombine.high %v1518_v27, %v1522_v28  ;;  %17847 = vst [vmem:[#allocation25_spill] sm:$0xff] %v12386_v47  ;;  %v1606_v28 = vld [vmem:[%s17138_s11 + $0x340] sm:$0xff] }
 0x700   :  { %2088 = vmatprep.subr.bf16.mxu0 %v9615_v33  ;;  %2129 = vmatprep.subr.bf16.mxu1 %v9617_v41  ;;  %v12370_v33 = vcombine.high %v1519_v29, %v1523_v30  ;;  %v1510_v41 = vld [vmem:[%s17138_s11 + $0x40] sm:$0xff]  ;;  %v12460_v21 = vcombine.low %v1623_v34, %v1627_v63  ;;  %v12466_v27 = vcombine.high %v1615_v14, %v1619_v19 }
 0x701   :  { %17844 = vst [vmem:[#allocation22_spill] sm:$0xff] %v12364_v31  ;;  %17845 = vst [vmem:[#allocation23_spill] sm:$0xff] %v12368_v40  ;;  %v12410_v53 = vcombine.low %v1510_v41, %v1514_v42 }
 0x702   :  { %17846 = vst [vmem:[#allocation24_spill] sm:$0xff] %v12370_v33  ;;  %17860 = vst [vmem:[#allocation38_spill] sm:$0xff] %v12460_v21 }
 0x703   :  { %2089 = vmatpush1.bf16.msra.mxu0 %v9614_v48  ;;  %2130 = vmatpush1.bf16.msra.mxu1 %v9616_v49  ;;  %v12388_v48 = vcombine.low %v1519_v29, %v1523_v30  ;;  %v12392_v49 = vcombine.high %v1510_v41, %v1514_v42  ;;  %17851 = vst [vmem:[#allocation29_spill] sm:$0xff] %v12410_v53  ;;  %17862 = vst [vmem:[#allocation40_spill] sm:$0xff] %v12466_v27  ;;  %v1610_v29 = vld [vmem:[%s17138_s11 + $0x360] sm:$0xff]  ;;  %v1607_v30 = vld [vmem:[%s17138_s11 + $0x348] sm:$0xff] }
 0x704   :  { %2090 = vmatprep.subr.bf16.mxu0 %v9607_v50  ;;  %2131 = vmatprep.subr.bf16.mxu1 %v9609_v36  ;;  %v12394_v50 = vcombine.high %v1511_v44, %v1515_v45  ;;  %v1502_v36 = vld [vmem:[%s17138_s11] sm:$0xff]  ;;  %v1611_v41 = vld [vmem:[%s17138_s11 + $0x368] sm:$0xff]  ;;  %v12506_v57 = vcombine.low %v1606_v28, %v1610_v29 }
 0x705   :  { %17848 = vst [vmem:[#allocation26_spill] sm:$0xff] %v12388_v48  ;;  %17849 = vst [vmem:[#allocation27_spill] sm:$0xff] %v12392_v49  ;;  %v12434_v0 = vcombine.low %v1502_v36, %v1506_v37 }
 0x706   :  { %17850 = vst [vmem:[#allocation28_spill] sm:$0xff] %v12394_v50  ;;  %17867 = vst [vmem:[#allocation45_spill] sm:$0xff] %v12506_v57 }
 0x707   :  { %2091 = vmatpush1.bf16.msra.mxu0 %v9606_v54  ;;  %2132 = vmatpush1.bf16.msra.mxu1 %v9608_v38  ;;  %v12412_v54 = vcombine.low %v1511_v44, %v1515_v45  ;;  %v12416_v38 = vcombine.high %v1502_v36, %v1506_v37  ;;  %17855 = vst [vmem:[#allocation33_spill] sm:$0xff] %v12434_v0  ;;  %v1598_v37 = vld [vmem:[%s17138_s11 + $0x300] sm:$0xff] }
 0x708   :  { %2798 = vmatprep.subr.bf16.mxu0 %v12244_v55  ;;  %2839 = vmatprep.subr.bf16.mxu1 %v12246_v56  ;;  %v12484_v44 = vcombine.low %v1615_v14, %v1619_v19  ;;  %v12488_v45 = vcombine.high %v1606_v28, %v1610_v29  ;;  %v12490_v36 = vcombine.high %v1607_v30, %v1611_v41  ;;  %v1594_v14 = vld [vmem:[%s17138_s11 + $0x2e0] sm:$0xff]  ;;  %v1591_v19 = vld [vmem:[%s17138_s11 + $0x2c8] sm:$0xff] }
 0x709   :  { %17852 = vst [vmem:[#allocation30_spill] sm:$0xff] %v12412_v54  ;;  %17853 = vst [vmem:[#allocation31_spill] sm:$0xff] %v12416_v38  ;;  %v1595_v28 = vld [vmem:[%s17138_s11 + $0x2e8] sm:$0xff]  ;;  %v12530_v29 = vcombine.low %v1598_v37, %v1602_v51 }
 0x70a   :  { %9663 = vmatmul.mubr.msk.bf16.vlgmr.msra.gmra.mxu0 %vm977_vm6, %v12163_v32  ;;  %9665 = vmatmul.mubr.msk.bf16.vlgmr.msra.gmra.mxu1 %vm977_vm6, %v12163_v32  ;;  %v1534_v32 = vld [vmem:[%s17138_s11 + $0x100] sm:$0xff]  ;;  %17864 = vst [vmem:[#allocation42_spill] sm:$0xff] %v12484_v44  ;;  %17865 = vst [vmem:[#allocation43_spill] sm:$0xff] %v12488_v45 }
 0x70b   :  { %2799 = vmatpush1.bf16.msra.mxu0 %v12260_v58  ;;  %2840 = vmatpush1.bf16.msra.mxu1 %v12262_v59  ;;  %v12320_v17 = vcombine.high %v1534_v32, %v1538_v12  ;;  %v12338_v23 = vcombine.low %v1534_v32, %v1538_v12  ;;  %v12442_v32 = vcombine.high %v1623_v34, %v1627_v63  ;;  %v1614_v12 = vld [vmem:[%s17138_s11 + $0x380] sm:$0xff] }
 0x70c   :  { %2800 = vmatprep.subr.bf16.mxu0 %v12266_v60  ;;  %2841 = vmatprep.subr.bf16.mxu1 %v12268_v62  ;;  %v12464_v22 = vcombine.high %v1614_v12, %v1618_v13  ;;  %v12482_v42 = vcombine.low %v1614_v12, %v1618_v13  ;;  %17866 = vst [vmem:[#allocation44_spill] sm:$0xff] %v12490_v36  ;;  %v1590_v13 = vld [vmem:[%s17138_s11 + $0x2c0] sm:$0xff]  ;;  %17871 = vst [vmem:[#allocation49_spill] sm:$0xff] %v12530_v29 }
 0x70d   :  { %2830 = vmatprep.mubr.bf16.mxu0 %v17143_v43  ;;  %2871 = vmatprep.mubr.bf16.mxu1 %v17143_v43  ;;  %17837 = vst [vmem:[#allocation15_spill] sm:$0xff] %v12320_v17  ;;  %17839 = vst [vmem:[#allocation17_spill] sm:$0xff] %v12338_v23  ;;  %v12508_v34 = vcombine.low %v1607_v30, %v1611_v41  ;;  %v12512_v63 = vcombine.high %v1598_v37, %v1602_v51  ;;  %v1583_v37 = vld [vmem:[%s17138_s11 + $0x288] sm:$0xff] }
 0x70e   :  { %17858 = vst [vmem:[#allocation36_spill] sm:$0xff] %v12442_v32  ;;  %17861 = vst [vmem:[#allocation39_spill] sm:$0xff] %v12464_v22  ;;  %v12514_v12 = vcombine.high %v1599_v52, %v1603_v11  ;;  %v12532_v30 = vcombine.low %v1599_v52, %v1603_v11  ;;  %v12536_v41 = vcombine.high %v1590_v13, %v1594_v14  ;;  %v1587_v51 = vld [vmem:[%s17138_s11 + $0x2a8] sm:$0xff] }
 0x70f   :  { %2801 = vmatpush1.bf16.msra.mxu0 %v12288_v7  ;;  %2842 = vmatpush1.bf16.msra.mxu1 %v12290_v8  ;;  %17863 = vst [vmem:[#allocation41_spill] sm:$0xff] %v12482_v42  ;;  %17868 = vst [vmem:[#allocation46_spill] sm:$0xff] %v12508_v34  ;;  %v12538_v43 = vcombine.high %v1591_v19, %v1595_v28  ;;  %v12554_v52 = vcombine.low %v1590_v13, %v1594_v14  ;;  %v1575_v13 = vld [vmem:[%s17138_s11 + $0x248] sm:$0xff] }
 0x710   :  { %2802 = vmatprep.subr.bf16.mxu0 %v12294_v9  ;;  %2843 = vmatprep.subr.bf16.mxu1 %v12296_v10  ;;  %17869 = vst [vmem:[#allocation47_spill] sm:$0xff] %v12512_v63  ;;  %17870 = vst [vmem:[#allocation48_spill] sm:$0xff] %v12514_v12  ;;  %v12556_v11 = vcombine.low %v1591_v19, %v1595_v28  ;;  %v12562_v6 = vcombine.high %v1583_v37, %v1587_v51  ;;  %v1579_v14 = vld [vmem:[%s17138_s11 + $0x268] sm:$0xff] }
 0x711   :  { %17872 = vst [vmem:[#allocation50_spill] sm:$0xff] %v12532_v30  ;;  %17873 = vst [vmem:[#allocation51_spill] sm:$0xff] %v12536_v41  ;;  %v12578_v19 = vcombine.low %v1582_v3, %v1586_v1  ;;  %v12580_v28 = vcombine.low %v1583_v37, %v1587_v51  ;;  %v1567_v1 = vld [vmem:[%s17138_s11 + $0x208] sm:$0xff]  ;;  %v12602_v37 = vcombine.low %v1574_v46, %v1578_v5 }
 0x712   :  { %17874 = vst [vmem:[#allocation52_spill] sm:$0xff] %v12538_v43  ;;  %17875 = vst [vmem:[#allocation53_spill] sm:$0xff] %v12554_v52  ;;  %v1571_v3 = vld [vmem:[%s17138_s11 + $0x228] sm:$0xff]  ;;  %v12604_v51 = vcombine.low %v1575_v13, %v1579_v14 }
 0x713   :  { %2803 = vmatpush1.bf16.msra.mxu0 %v12314_v15  ;;  %2844 = vmatpush1.bf16.msra.mxu1 %v12316_v16  ;;  %17876 = vst [vmem:[#allocation54_spill] sm:$0xff] %v12556_v11  ;;  %17878 = vst [vmem:[#allocation56_spill] sm:$0xff] %v12562_v6 }
 0x714   :  { %2804 = vmatprep.subr.bf16.mxu0 %v12320_v17  ;;  %2845 = vmatprep.subr.bf16.mxu1 %v12322_v18  ;;  %17879 = vst [vmem:[#allocation57_spill] sm:$0xff] %v12578_v19  ;;  %17880 = vst [vmem:[#allocation58_spill] sm:$0xff] %v12580_v28 }
 0x715   :  { %17883 = vst [vmem:[#allocation61_spill] sm:$0xff] %v12602_v37  ;;  %17884 = vst [vmem:[#allocation62_spill] sm:$0xff] %v12604_v51 }
 0x717   :  { %2805 = vmatpush1.bf16.msra.mxu0 %v12338_v23  ;;  %2846 = vmatpush1.bf16.msra.mxu1 %v12340_v24 }
 0x718   :  { %2806 = vmatprep.subr.bf16.mxu0 %v12344_v25  ;;  %2847 = vmatprep.subr.bf16.mxu1 %v12346_v26 }
 0x71b   :  { %2807 = vmatpush1.bf16.msra.mxu0 %v12362_v39  ;;  %2848 = vmatpush1.bf16.msra.mxu1 %v12364_v31 }
 0x71c   :  { %2808 = vmatprep.subr.bf16.mxu0 %v12368_v40  ;;  %2849 = vmatprep.subr.bf16.mxu1 %v12370_v33 }
 0x71f   :  { %2809 = vmatpush1.bf16.msra.mxu0 %v12386_v47  ;;  %2850 = vmatpush1.bf16.msra.mxu1 %v12388_v48 }
 0x720   :  { %2810 = vmatprep.subr.bf16.mxu0 %v12392_v49  ;;  %2851 = vmatprep.subr.bf16.mxu1 %v12394_v50 }
 0x723   :  { %2811 = vmatpush1.bf16.msra.mxu0 %v12410_v53  ;;  %2852 = vmatpush1.bf16.msra.mxu1 %v12412_v54 }
 0x724   :  { %2812 = vmatprep.subr.bf16.mxu0 %v12416_v38  ;;  %2853 = vmatprep.subr.bf16.mxu1 %v12418_v61 }
 0x727   :  { %2813 = vmatpush1.bf16.msra.mxu0 %v12434_v0  ;;  %2854 = vmatpush1.bf16.msra.mxu1 %v12436_v2 }
 0x728   :  { %2814 = vmatprep.subr.bf16.mxu0 %v12440_v4  ;;  %2855 = vmatprep.subr.bf16.mxu1 %v12442_v32 }
 0x72b   :  { %2815 = vmatpush2.bf16.msra.mxu0 %v12458_v20  ;;  %2856 = vmatpush2.bf16.msra.mxu1 %v12460_v21 }
 0x72c   :  { %2816 = vmatprep.subr.bf16.mxu0 %v12464_v22  ;;  %2857 = vmatprep.subr.bf16.mxu1 %v12466_v27 }
 0x72f   :  { %2817 = vmatpush2.bf16.msra.mxu0 %v12482_v42  ;;  %2858 = vmatpush2.bf16.msra.mxu1 %v12484_v44 }
 0x730   :  { %2818 = vmatprep.subr.bf16.mxu0 %v12488_v45  ;;  %2859 = vmatprep.subr.bf16.mxu1 %v12490_v36 }
 0x733   :  { %2819 = vmatpush2.bf16.msra.mxu0 %v12506_v57  ;;  %2860 = vmatpush2.bf16.msra.mxu1 %v12508_v34 }
 0x734   :  { %2820 = vmatprep.subr.bf16.mxu0 %v12512_v63  ;;  %2861 = vmatprep.subr.bf16.mxu1 %v12514_v12 }
 0x737   :  { %2821 = vmatpush2.bf16.msra.mxu0 %v12530_v29  ;;  %2862 = vmatpush2.bf16.msra.mxu1 %v12532_v30  ;;  %v1566_v30 = vld [vmem:[%s17138_s11 + $0x200] sm:$0xff]  ;;  %v1536_v29 = vld [vmem:[%s17138_s11 + $0x110] sm:$0xff] }
 0x738   :  { %2822 = vmatprep.subr.bf16.mxu0 %v12536_v41  ;;  %2863 = vmatprep.subr.bf16.mxu1 %v12538_v43  ;;  %v12584_v43 = vcombine.high %v1574_v46, %v1578_v5  ;;  %v12586_v41 = vcombine.high %v1575_v13, %v1579_v14  ;;  %v1561_v5 = vld [vmem:[%s17138_s11 + $0x1d8] sm:$0xff]  ;;  %v12628_v14 = vcombine.low %v1567_v1, %v1571_v3 }
 0x739   :  { %v1565_v46 = vld [vmem:[%s17138_s11 + $0x1f8] sm:$0xff] }
 0x73a   :  { %17881 = vst [vmem:[#allocation59_spill] sm:$0xff] %v12584_v43  ;;  %17882 = vst [vmem:[#allocation60_spill] sm:$0xff] %v12586_v41 }
 0x73b   :  { %2823 = vmatpush2.bf16.msra.mxu0 %v12554_v52  ;;  %2864 = vmatpush2.bf16.msra.mxu1 %v12556_v11  ;;  %v1570_v11 = vld [vmem:[%s17138_s11 + $0x220] sm:$0xff]  ;;  %v1560_v52 = vld [vmem:[%s17138_s11 + $0x1d0] sm:$0xff]  ;;  %17888 = vst [vmem:[#allocation66_spill] sm:$0xff] %v12628_v14 }
 0x73c   :  { %2824 = vmatprep.subr.bf16.mxu0 %v12560_v35  ;;  %2865 = vmatprep.subr.bf16.mxu1 %v12562_v6  ;;  %v12608_v6 = vcombine.high %v1566_v30, %v1570_v11  ;;  %v12610_v35 = vcombine.high %v1567_v1, %v1571_v3  ;;  %v12626_v13 = vcombine.low %v1566_v30, %v1570_v11  ;;  %v1553_v30 = vld [vmem:[%s17138_s11 + $0x198] sm:$0xff] }
 0x73d   :  { %v1557_v11 = vld [vmem:[%s17138_s11 + $0x1b8] sm:$0xff]  ;;  %v12652_v3 = vcombine.low %v1561_v5, %v1565_v46 }
 0x73e   :  { %17885 = vst [vmem:[#allocation63_spill] sm:$0xff] %v12608_v6  ;;  %17886 = vst [vmem:[#allocation64_spill] sm:$0xff] %v12610_v35 }
 0x73f   :  { %2825 = vmatpush2.bf16.msra.mxu0 %v12578_v19  ;;  %2866 = vmatpush2.bf16.msra.mxu1 %v12580_v28  ;;  %v1564_v28 = vld [vmem:[%s17138_s11 + $0x1f0] sm:$0xff]  ;;  %17887 = vst [vmem:[#allocation65_spill] sm:$0xff] %v12626_v13  ;;  %17892 = vst [vmem:[#allocation70_spill] sm:$0xff] %v12652_v3 }
 0x740   :  { %2826 = vmatprep.subr.bf16.mxu0 %v12584_v43  ;;  %2867 = vmatprep.subr.bf16.mxu1 %v12586_v41  ;;  %v12632_v41 = vcombine.high %v1560_v52, %v1564_v28  ;;  %v12634_v43 = vcombine.high %v1561_v5, %v1565_v46  ;;  %v1552_v19 = vld [vmem:[%s17138_s11 + $0x190] sm:$0xff]  ;;  %v12650_v1 = vcombine.low %v1560_v52, %v1564_v28  ;;  %v1545_v52 = vld [vmem:[%s17138_s11 + $0x158] sm:$0xff]  ;;  %v17895_v5 = vmov 0  }
 0x741   :  { %v1549_v28 = vld [vmem:[%s17138_s11 + $0x178] sm:$0xff] }
 0x742   :  { %17889 = vst [vmem:[#allocation67_spill] sm:$0xff] %v12632_v41  ;;  %17890 = vst [vmem:[#allocation68_spill] sm:$0xff] %v12634_v43 }
 0x743   :  { %2827 = vmatpush2.bf16.msra.mxu0 %v12602_v37  ;;  %2868 = vmatpush2.bf16.msra.mxu1 %v12604_v51  ;;  %v1556_v51 = vld [vmem:[%s17138_s11 + $0x1b0] sm:$0xff]  ;;  %17891 = vst [vmem:[#allocation69_spill] sm:$0xff] %v12650_v1 }
 0x744   :  { %2828 = vmatprep.subr.bf16.mxu0 %v12608_v6  ;;  %2869 = vmatprep.subr.bf16.mxu1 %v12610_v35  ;;  %v12656_v35 = vcombine.high %v1552_v19, %v1556_v51  ;;  %v12658_v6 = vcombine.high %v1553_v30, %v1557_v11  ;;  %v1544_v37 = vld [vmem:[%s17138_s11 + $0x150] sm:$0xff]  ;;  %v12676_v46 = vcombine.low %v1552_v19, %v1556_v51  ;;  %v1537_v19 = vld [vmem:[%s17138_s11 + $0x118] sm:$0xff] }
 0x745   :  { %v1541_v51 = vld [vmem:[%s17138_s11 + $0x138] sm:$0xff] }
 0x746   :  { %17893 = vst [vmem:[#allocation71_spill] sm:$0xff] %v12656_v35  ;;  %17894 = vst [vmem:[#allocation72_spill] sm:$0xff] %v12658_v6 }
 0x747   :  { %2829 = vmatpush2.bf16.msra.mxu0 %v12626_v13  ;;  %2870 = vmatpush2.bf16.msra.mxu1 %v12628_v14  ;;  %v1548_v14 = vld [vmem:[%s17138_s11 + $0x170] sm:$0xff]  ;;  %17896 = vst [vmem:[#allocation73_spill] sm:$0xff] %v12676_v46  ;;  %v12684_v13 = vcombine.high %v1545_v52, %v1549_v28 }
 0x748   :  { %2880 = vmatprep.subr.bf16.mxu0 %v12632_v41  ;;  %2921 = vmatprep.subr.bf16.mxu1 %v12634_v43  ;;  %v12678_v43 = vcombine.low %v1553_v30, %v1557_v11  ;;  %v12682_v41 = vcombine.high %v1544_v37, %v1548_v14  ;;  %v12702_v30 = vcombine.low %v1544_v37, %v1548_v14  ;;  %v1529_v37 = vld [vmem:[%s17138_s11 + $0xd8] sm:$0xff] }
 0x749   :  { %17899 = vst [vmem:[#allocation76_spill] sm:$0xff] %v12684_v13  ;;  %v12704_v11 = vcombine.low %v1545_v52, %v1549_v28  ;;  %v1533_v14 = vld [vmem:[%s17138_s11 + $0xf8] sm:$0xff]  ;;  %v12728_v28 = vcombine.low %v1537_v19, %v1541_v51 }
 0x74a   :  { %2831 = vmatmul.mubr.bf16.vlgmr.msra.gmra.mxu0 %v17895_v5  ;;  %2872 = vmatmul.mubr.bf16.vlgmr.msra.gmra.mxu1 %v17895_v5  ;;  %17897 = vst [vmem:[#allocation74_spill] sm:$0xff] %v12678_v43  ;;  %17898 = vst [vmem:[#allocation75_spill] sm:$0xff] %v12682_v41 }
 0x74b   :  { %2881 = vmatpush1.bf16.msra.mxu0 %v12650_v1  ;;  %2922 = vmatpush1.bf16.msra.mxu1 %v12652_v3  ;;  %v1540_v3 = vld [vmem:[%s17138_s11 + $0x130] sm:$0xff]  ;;  %17900 = vst [vmem:[#allocation77_spill] sm:$0xff] %v12702_v30  ;;  %17901 = vst [vmem:[#allocation78_spill] sm:$0xff] %v12704_v11 }
 0x74c   :  { %2882 = vmatprep.subr.bf16.mxu0 %v12656_v35  ;;  %2923 = vmatprep.subr.bf16.mxu1 %v12658_v6  ;;  %v12708_v6 = vcombine.high %v1536_v29, %v1540_v3  ;;  %v12710_v35 = vcombine.high %v1537_v19, %v1541_v51  ;;  %v1528_v1 = vld [vmem:[%s17138_s11 + $0xd0] sm:$0xff]  ;;  %v12726_v52 = vcombine.low %v1536_v29, %v1540_v3  ;;  %v1521_v29 = vld [vmem:[%s17138_s11 + $0x98] sm:$0xff] }
 0x74d   :  { %2912 = vmatprep.mubr.bf16.mxu0 %v17895_v5  ;;  %2953 = vmatprep.mubr.bf16.mxu1 %v17895_v5  ;;  %17905 = vst [vmem:[#allocation82_spill] sm:$0xff] %v12728_v28  ;;  %v1525_v3 = vld [vmem:[%s17138_s11 + $0xb8] sm:$0xff]  ;;  %v12752_v51 = vcombine.low %v1529_v37, %v1533_v14 }
 0x74e   :  { %17902 = vst [vmem:[#allocation79_spill] sm:$0xff] %v12708_v6  ;;  %17903 = vst [vmem:[#allocation80_spill] sm:$0xff] %v12710_v35 }
 0x74f   :  { %2883 = vmatpush1.bf16.msra.mxu0 %v12676_v46  ;;  %2924 = vmatpush1.bf16.msra.mxu1 %v12678_v43  ;;  %v1532_v43 = vld [vmem:[%s17138_s11 + $0xf0] sm:$0xff]  ;;  %17904 = vst [vmem:[#allocation81_spill] sm:$0xff] %v12726_v52  ;;  %17909 = vst [vmem:[#allocation86_spill] sm:$0xff] %v12752_v51 }
 0x750   :  { %2884 = vmatprep.subr.bf16.mxu0 %v12682_v41  ;;  %2925 = vmatprep.subr.bf16.mxu1 %v12684_v13  ;;  %v12732_v13 = vcombine.high %v1528_v1, %v1532_v43  ;;  %v12734_v41 = vcombine.high %v1529_v37, %v1533_v14  ;;  %v1520_v46 = vld [vmem:[%s17138_s11 + $0x90] sm:$0xff]  ;;  %v12750_v19 = vcombine.low %v1528_v1, %v1532_v43  ;;  %v1513_v43 = vld [vmem:[%s17138_s11 + $0x58] sm:$0xff] }
 0x751   :  { %v1517_v1 = vld [vmem:[%s17138_s11 + $0x78] sm:$0xff]  ;;  %v12776_v14 = vcombine.low %v1521_v29, %v1525_v3 }
 0x752   :  { %17906 = vst [vmem:[#allocation83_spill] sm:$0xff] %v12732_v13  ;;  %17907 = vst [vmem:[#allocation84_spill] sm:$0xff] %v12734_v41 }
 0x753   :  { %2885 = vmatpush1.bf16.msra.mxu0 %v12702_v30  ;;  %2926 = vmatpush1.bf16.msra.mxu1 %v12704_v11  ;;  %v1524_v11 = vld [vmem:[%s17138_s11 + $0xb0] sm:$0xff]  ;;  %17908 = vst [vmem:[#allocation85_spill] sm:$0xff] %v12750_v19  ;;  %17913 = vst [vmem:[#allocation90_spill] sm:$0xff] %v12776_v14 }
 0x754   :  { %2886 = vmatprep.subr.bf16.mxu0 %v12708_v6  ;;  %2927 = vmatprep.subr.bf16.mxu1 %v12710_v35  ;;  %v12756_v35 = vcombine.high %v1520_v46, %v1524_v11  ;;  %v12758_v6 = vcombine.high %v1521_v29, %v1525_v3  ;;  %v1512_v30 = vld [vmem:[%s17138_s11 + $0x50] sm:$0xff]  ;;  %v12774_v37 = vcombine.low %v1520_v46, %v1524_v11  ;;  %v1505_v46 = vld [vmem:[%s17138_s11 + $0x18] sm:$0xff] }
 0x755   :  { %v1509_v11 = vld [vmem:[%s17138_s11 + $0x38] sm:$0xff]  ;;  %v12800_v3 = vcombine.low %v1513_v43, %v1517_v1 }
 0x756   :  { %17910 = vst [vmem:[#allocation87_spill] sm:$0xff] %v12756_v35  ;;  %17911 = vst [vmem:[#allocation88_spill] sm:$0xff] %v12758_v6 }
 0x757   :  { %2887 = vmatpush1.bf16.msra.mxu0 %v12726_v52  ;;  %2928 = vmatpush1.bf16.msra.mxu1 %v12728_v28  ;;  %v1516_v28 = vld [vmem:[%s17138_s11 + $0x70] sm:$0xff]  ;;  %17912 = vst [vmem:[#allocation89_spill] sm:$0xff] %v12774_v37  ;;  %17917 = vst [vmem:[#allocation94_spill] sm:$0xff] %v12800_v3 }
 0x758   :  { %2888 = vmatprep.subr.bf16.mxu0 %v12732_v13  ;;  %2929 = vmatprep.subr.bf16.mxu1 %v12734_v41  ;;  %v12780_v41 = vcombine.high %v1512_v30, %v1516_v28  ;;  %v12782_v13 = vcombine.high %v1513_v43, %v1517_v1  ;;  %v1504_v52 = vld [vmem:[%s17138_s11 + $0x10] sm:$0xff]  ;;  %v12798_v29 = vcombine.low %v1512_v30, %v1516_v28  ;;  %v1625_v30 = vld [vmem:[%s17138_s11 + $0x3d8] sm:$0xff] }
 0x759   :  { %v1629_v28 = vld [vmem:[%s17138_s11 + $0x3f8] sm:$0xff]  ;;  %v12824_v1 = vcombine.low %v1505_v46, %v1509_v11 }
 0x75a   :  { %17914 = vst [vmem:[#allocation91_spill] sm:$0xff] %v12780_v41  ;;  %17915 = vst [vmem:[#allocation92_spill] sm:$0xff] %v12782_v13 }
 0x75b   :  { %2889 = vmatpush1.bf16.msra.mxu0 %v12750_v19  ;;  %2930 = vmatpush1.bf16.msra.mxu1 %v12752_v51  ;;  %v1508_v51 = vld [vmem:[%s17138_s11 + $0x30] sm:$0xff]  ;;  %17916 = vst [vmem:[#allocation93_spill] sm:$0xff] %v12798_v29  ;;  %17921 = vst [vmem:[#allocation98_spill] sm:$0xff] %v12824_v1 }
 0x75c   :  { %2890 = vmatprep.subr.bf16.mxu0 %v12756_v35  ;;  %2931 = vmatprep.subr.bf16.mxu1 %v12758_v6  ;;  %v12804_v6 = vcombine.high %v1504_v52, %v1508_v51  ;;  %v12806_v35 = vcombine.high %v1505_v46, %v1509_v11  ;;  %v1624_v19 = vld [vmem:[%s17138_s11 + $0x3d0] sm:$0xff]  ;;  %v12822_v43 = vcombine.low %v1504_v52, %v1508_v51  ;;  %v1617_v52 = vld [vmem:[%s17138_s11 + $0x398] sm:$0xff] }
 0x75d   :  { %v1621_v51 = vld [vmem:[%s17138_s11 + $0x3b8] sm:$0xff]  ;;  %v12848_v11 = vcombine.low %v1625_v30, %v1629_v28 }
 0x75e   :  { %17918 = vst [vmem:[#allocation95_spill] sm:$0xff] %v12804_v6  ;;  %17919 = vst [vmem:[#allocation96_spill] sm:$0xff] %v12806_v35 }
 0x75f   :  { %2891 = vmatpush1.bf16.msra.mxu0 %v12774_v37  ;;  %2932 = vmatpush1.bf16.msra.mxu1 %v12776_v14  ;;  %v1628_v14 = vld [vmem:[%s17138_s11 + $0x3f0] sm:$0xff]  ;;  %17920 = vst [vmem:[#allocation97_spill] sm:$0xff] %v12822_v43  ;;  %17925 = vst [vmem:[#allocation102_spill] sm:$0xff] %v12848_v11 }
 0x760   :  { %2892 = vmatprep.subr.bf16.mxu0 %v12780_v41  ;;  %2933 = vmatprep.subr.bf16.mxu1 %v12782_v13  ;;  %v12828_v13 = vcombine.high %v1624_v19, %v1628_v14  ;;  %v12830_v41 = vcombine.high %v1625_v30, %v1629_v28  ;;  %v1616_v37 = vld [vmem:[%s17138_s11 + $0x390] sm:$0xff]  ;;  %v12846_v46 = vcombine.low %v1624_v19, %v1628_v14  ;;  %v1609_v19 = vld [vmem:[%s17138_s11 + $0x358] sm:$0xff] }
 0x761   :  { %v1613_v14 = vld [vmem:[%s17138_s11 + $0x378] sm:$0xff]  ;;  %v12872_v28 = vcombine.low %v1617_v52, %v1621_v51 }
 0x762   :  { %17922 = vst [vmem:[#allocation99_spill] sm:$0xff] %v12828_v13  ;;  %17923 = vst [vmem:[#allocation100_spill] sm:$0xff] %v12830_v41 }
 0x763   :  { %2893 = vmatpush1.bf16.msra.mxu0 %v12798_v29  ;;  %2934 = vmatpush1.bf16.msra.mxu1 %v12800_v3  ;;  %v1620_v3 = vld [vmem:[%s17138_s11 + $0x3b0] sm:$0xff]  ;;  %17924 = vst [vmem:[#allocation101_spill] sm:$0xff] %v12846_v46  ;;  %17929 = vst [vmem:[#allocation106_spill] sm:$0xff] %v12872_v28 }
 0x764   :  { %2894 = vmatprep.subr.bf16.mxu0 %v12804_v6  ;;  %2935 = vmatprep.subr.bf16.mxu1 %v12806_v35  ;;  %v12852_v35 = vcombine.high %v1616_v37, %v1620_v3  ;;  %v12854_v6 = vcombine.high %v1617_v52, %v1621_v51  ;;  %v1608_v29 = vld [vmem:[%s17138_s11 + $0x350] sm:$0xff]  ;;  %v12870_v30 = vcombine.low %v1616_v37, %v1620_v3  ;;  %v1601_v37 = vld [vmem:[%s17138_s11 + $0x318] sm:$0xff] }
 0x765   :  { %v1605_v3 = vld [vmem:[%s17138_s11 + $0x338] sm:$0xff]  ;;  %v12896_v51 = vcombine.low %v1609_v19, %v1613_v14 }
 0x766   :  { %17926 = vst [vmem:[#allocation103_spill] sm:$0xff] %v12852_v35  ;;  %17927 = vst [vmem:[#allocation104_spill] sm:$0xff] %v12854_v6 }
 0x767   :  { %2895 = vmatpush1.bf16.msra.mxu0 %v12822_v43  ;;  %2936 = vmatpush1.bf16.msra.mxu1 %v12824_v1  ;;  %v1612_v1 = vld [vmem:[%s17138_s11 + $0x370] sm:$0xff]  ;;  %17928 = vst [vmem:[#allocation105_spill] sm:$0xff] %v12870_v30  ;;  %17933 = vst [vmem:[#allocation110_spill] sm:$0xff] %v12896_v51 }
 0x768   :  { %2896 = vmatprep.subr.bf16.mxu0 %v12828_v13  ;;  %2937 = vmatprep.subr.bf16.mxu1 %v12830_v41  ;;  %v12876_v41 = vcombine.high %v1608_v29, %v1612_v1  ;;  %v12878_v13 = vcombine.high %v1609_v19, %v1613_v14  ;;  %v1600_v43 = vld [vmem:[%s17138_s11 + $0x310] sm:$0xff]  ;;  %v12894_v52 = vcombine.low %v1608_v29, %v1612_v1  ;;  %v1593_v29 = vld [vmem:[%s17138_s11 + $0x2d8] sm:$0xff] }
 0x769   :  { %v1597_v1 = vld [vmem:[%s17138_s11 + $0x2f8] sm:$0xff]  ;;  %v12920_v14 = vcombine.low %v1601_v37, %v1605_v3 }
 0x76a   :  { %17930 = vst [vmem:[#allocation107_spill] sm:$0xff] %v12876_v41  ;;  %17931 = vst [vmem:[#allocation108_spill] sm:$0xff] %v12878_v13 }
 0x76b   :  { %2897 = vmatpush2.bf16.msra.mxu0 %v12846_v46  ;;  %2938 = vmatpush2.bf16.msra.mxu1 %v12848_v11  ;;  %v1604_v11 = vld [vmem:[%s17138_s11 + $0x330] sm:$0xff]  ;;  %17932 = vst [vmem:[#allocation109_spill] sm:$0xff] %v12894_v52  ;;  %17937 = vst [vmem:[#allocation114_spill] sm:$0xff] %v12920_v14 }
 0x76c   :  { %2898 = vmatprep.subr.bf16.mxu0 %v12852_v35  ;;  %2939 = vmatprep.subr.bf16.mxu1 %v12854_v6  ;;  %v12900_v6 = vcombine.high %v1600_v43, %v1604_v11  ;;  %v12902_v35 = vcombine.high %v1601_v37, %v1605_v3  ;;  %v1592_v46 = vld [vmem:[%s17138_s11 + $0x2d0] sm:$0xff]  ;;  %v12918_v19 = vcombine.low %v1600_v43, %v1604_v11  ;;  %v1585_v43 = vld [vmem:[%s17138_s11 + $0x298] sm:$0xff] }
 0x76d   :  { %v1589_v11 = vld [vmem:[%s17138_s11 + $0x2b8] sm:$0xff]  ;;  %v12944_v3 = vcombine.low %v1593_v29, %v1597_v1 }
 0x76e   :  { %17934 = vst [vmem:[#allocation111_spill] sm:$0xff] %v12900_v6  ;;  %17935 = vst [vmem:[#allocation112_spill] sm:$0xff] %v12902_v35 }
 0x76f   :  { %2899 = vmatpush2.bf16.msra.mxu0 %v12870_v30  ;;  %2940 = vmatpush2.bf16.msra.mxu1 %v12872_v28  ;;  %v1596_v28 = vld [vmem:[%s17138_s11 + $0x2f0] sm:$0xff]  ;;  %17936 = vst [vmem:[#allocation113_spill] sm:$0xff] %v12918_v19  ;;  %17941 = vst [vmem:[#allocation118_spill] sm:$0xff] %v12944_v3 }
 0x770   :  { %2900 = vmatprep.subr.bf16.mxu0 %v12876_v41  ;;  %2941 = vmatprep.subr.bf16.mxu1 %v12878_v13  ;;  %v12924_v13 = vcombine.high %v1592_v46, %v1596_v28  ;;  %v12926_v41 = vcombine.high %v1593_v29, %v1597_v1  ;;  %v1584_v30 = vld [vmem:[%s17138_s11 + $0x290] sm:$0xff]  ;;  %v12942_v37 = vcombine.low %v1592_v46, %v1596_v28  ;;  %v1577_v46 = vld [vmem:[%s17138_s11 + $0x258] sm:$0xff] }
 0x771   :  { %v1581_v28 = vld [vmem:[%s17138_s11 + $0x278] sm:$0xff]  ;;  %v12968_v1 = vcombine.low %v1585_v43, %v1589_v11 }
 0x772   :  { %17938 = vst [vmem:[#allocation115_spill] sm:$0xff] %v12924_v13  ;;  %17939 = vst [vmem:[#allocation116_spill] sm:$0xff] %v12926_v41 }
 0x773   :  { %2901 = vmatpush2.bf16.msra.mxu0 %v12894_v52  ;;  %2942 = vmatpush2.bf16.msra.mxu1 %v12896_v51  ;;  %v1588_v51 = vld [vmem:[%s17138_s11 + $0x2b0] sm:$0xff]  ;;  %17940 = vst [vmem:[#allocation117_spill] sm:$0xff] %v12942_v37  ;;  %17945 = vst [vmem:[#allocation122_spill] sm:$0xff] %v12968_v1 }
 0x774   :  { %2902 = vmatprep.subr.bf16.mxu0 %v12900_v6  ;;  %2943 = vmatprep.subr.bf16.mxu1 %v12902_v35  ;;  %v12948_v35 = vcombine.high %v1584_v30, %v1588_v51  ;;  %v12950_v6 = vcombine.high %v1585_v43, %v1589_v11  ;;  %v1576_v52 = vld [vmem:[%s17138_s11 + $0x250] sm:$0xff]  ;;  %v12966_v29 = vcombine.low %v1584_v30, %v1588_v51  ;;  %v1569_v30 = vld [vmem:[%s17138_s11 + $0x218] sm:$0xff] }
 0x775   :  { %v1573_v51 = vld [vmem:[%s17138_s11 + $0x238] sm:$0xff]  ;;  %v12992_v11 = vcombine.low %v1577_v46, %v1581_v28 }
 0x776   :  { %17942 = vst [vmem:[#allocation119_spill] sm:$0xff] %v12948_v35  ;;  %17943 = vst [vmem:[#allocation120_spill] sm:$0xff] %v12950_v6 }
 0x777   :  { %2903 = vmatpush2.bf16.msra.mxu0 %v12918_v19  ;;  %2944 = vmatpush2.bf16.msra.mxu1 %v12920_v14  ;;  %v1580_v14 = vld [vmem:[%s17138_s11 + $0x270] sm:$0xff]  ;;  %17944 = vst [vmem:[#allocation121_spill] sm:$0xff] %v12966_v29  ;;  %17949 = vst [vmem:[#allocation126_spill] sm:$0xff] %v12992_v11 }
 0x778   :  { %2904 = vmatprep.subr.bf16.mxu0 %v12924_v13  ;;  %2945 = vmatprep.subr.bf16.mxu1 %v12926_v41  ;;  %v12972_v41 = vcombine.high %v1576_v52, %v1580_v14  ;;  %v12974_v13 = vcombine.high %v1577_v46, %v1581_v28  ;;  %v1568_v19 = vld [vmem:[%s17138_s11 + $0x210] sm:$0xff]  ;;  %v12990_v43 = vcombine.low %v1576_v52, %v1580_v14 }
 0x77a   :  { %17946 = vst [vmem:[#allocation123_spill] sm:$0xff] %v12972_v41  ;;  %17947 = vst [vmem:[#allocation124_spill] sm:$0xff] %v12974_v13 }
 0x77b   :  { %2905 = vmatpush2.bf16.msra.mxu0 %v12942_v37  ;;  %2946 = vmatpush2.bf16.msra.mxu1 %v12944_v3  ;;  %v1572_v3 = vld [vmem:[%s17138_s11 + $0x230] sm:$0xff]  ;;  %17948 = vst [vmem:[#allocation125_spill] sm:$0xff] %v12990_v43 }
 0x77c   :  { %2906 = vmatprep.subr.bf16.mxu0 %v12948_v35  ;;  %2947 = vmatprep.subr.bf16.mxu1 %v12950_v6  ;;  %v12996_v6 = vcombine.high %v1568_v19, %v1572_v3  ;;  %v12998_v35 = vcombine.high %v1569_v30, %v1573_v51  ;;  %v13002_v37 = vcombine.low %v1568_v19, %v1572_v3 }
 0x77e   :  { %17950 = vst [vmem:[#allocation127_spill] sm:$0xff] %v12996_v6  ;;  %17951 = vst [vmem:[#allocation128_spill] sm:$0xff] %v12998_v35 }
 0x77f   :  { %2907 = vmatpush2.bf16.msra.mxu0 %v12966_v29  ;;  %2948 = vmatpush2.bf16.msra.mxu1 %v12968_v1  ;;  %17952 = vst [vmem:[#allocation129_spill] sm:$0xff] %v13002_v37  ;;  %v13004_v29 = vcombine.low %v1569_v30, %v1573_v51 }
 0x780   :  { %2908 = vmatprep.subr.bf16.mxu0 %v12972_v41  ;;  %2949 = vmatprep.subr.bf16.mxu1 %v12974_v13 }
 0x781   :  { %17953 = vst [vmem:[#allocation130_spill] sm:$0xff] %v13004_v29 }
 0x783   :  { %2909 = vmatpush2.bf16.msra.mxu0 %v12990_v43  ;;  %2950 = vmatpush2.bf16.msra.mxu1 %v12992_v11 }
 0x784   :  { %2910 = vmatprep.subr.bf16.mxu0 %v12996_v6  ;;  %2951 = vmatprep.subr.bf16.mxu1 %v12998_v35 }
 0x787   :  { %2911 = vmatpush2.bf16.msra.mxu0 %v13002_v37  ;;  %2952 = vmatpush2.bf16.msra.mxu1 %v13004_v29 }
 0x788   :  { %3035 = vmatprep.subr.bf16.mxu0 %v12244_v55  ;;  %3076 = vmatprep.subr.bf16.mxu1 %v12246_v56 }
 0x78a   :  { %2913 = vmatmul.mubr.bf16.vlgmr.msra.gmra.mxu0 %v17895_v5  ;;  %2954 = vmatmul.mubr.bf16.vlgmr.msra.gmra.mxu1 %v17895_v5  ;;  %v17954_v5 = vld [vmem:[#allocation49_spill] sm:$0xff] }
 0x78b   :  { %3036 = vmatpush1.bf16.msra.mxu0 %v12260_v58  ;;  %3077 = vmatpush1.bf16.msra.mxu1 %v12262_v59 }
 0x78c   :  { %3037 = vmatprep.subr.bf16.mxu0 %v12266_v60  ;;  %3078 = vmatprep.subr.bf16.mxu1 %v12268_v62 }
 0x78f   :  { %3038 = vmatpush1.bf16.msra.mxu0 %v12288_v7  ;;  %3079 = vmatpush1.bf16.msra.mxu1 %v12290_v8 }
 0x790   :  { %3039 = vmatprep.subr.bf16.mxu0 %v12294_v9  ;;  %3080 = vmatprep.subr.bf16.mxu1 %v12296_v10 }
 0x793   :  { %3040 = vmatpush1.bf16.msra.mxu0 %v12314_v15  ;;  %3081 = vmatpush1.bf16.msra.mxu1 %v12316_v16 }
 0x794   :  { %3041 = vmatprep.subr.bf16.mxu0 %v12320_v17  ;;  %3082 = vmatprep.subr.bf16.mxu1 %v12322_v18 }
 0x797   :  { %3042 = vmatpush1.bf16.msra.mxu0 %v12338_v23  ;;  %3083 = vmatpush1.bf16.msra.mxu1 %v12340_v24 }
 0x798   :  { %3043 = vmatprep.subr.bf16.mxu0 %v12344_v25  ;;  %3084 = vmatprep.subr.bf16.mxu1 %v12346_v26 }
 0x79b   :  { %3044 = vmatpush1.bf16.msra.mxu0 %v12362_v39  ;;  %3085 = vmatpush1.bf16.msra.mxu1 %v12364_v31 }
 0x79c   :  { %3045 = vmatprep.subr.bf16.mxu0 %v12368_v40  ;;  %3086 = vmatprep.subr.bf16.mxu1 %v12370_v33 }
 0x79f   :  { %3046 = vmatpush1.bf16.msra.mxu0 %v12386_v47  ;;  %3087 = vmatpush1.bf16.msra.mxu1 %v12388_v48 }
 0x7a0   :  { %3047 = vmatprep.subr.bf16.mxu0 %v12392_v49  ;;  %3088 = vmatprep.subr.bf16.mxu1 %v12394_v50 }
 0x7a3   :  { %3048 = vmatpush1.bf16.msra.mxu0 %v12410_v53  ;;  %3089 = vmatpush1.bf16.msra.mxu1 %v12412_v54 }
 0x7a4   :  { %3049 = vmatprep.subr.bf16.mxu0 %v12416_v38  ;;  %3090 = vmatprep.subr.bf16.mxu1 %v12418_v61 }
 0x7a7   :  { %3050 = vmatpush1.bf16.msra.mxu0 %v12434_v0  ;;  %3091 = vmatpush1.bf16.msra.mxu1 %v12436_v2 }
 0x7a8   :  { %3051 = vmatprep.subr.bf16.mxu0 %v12440_v4  ;;  %3092 = vmatprep.subr.bf16.mxu1 %v12442_v32 }
 0x7ab   :  { %3052 = vmatpush2.bf16.msra.mxu0 %v12458_v20  ;;  %3093 = vmatpush2.bf16.msra.mxu1 %v12460_v21  ;;  %v1447_v21 = vld [vmem:[%s17139_s12 + $0x8] sm:$0x77] }
 0x7ac   :  { %3053 = vmatprep.subr.bf16.mxu0 %v12464_v22  ;;  %3094 = vmatprep.subr.bf16.mxu1 %v12466_v27 }
 0x7ae   :  { %v2028_v52 = vpop.f32.mrf.mxu0  ;;  %v13050_v19 = vpop.f32.mrf.mxu1 }
 0x7af   :  { %3054 = vmatpush2.bf16.msra.mxu0 %v12482_v42  ;;  %3095 = vmatpush2.bf16.msra.mxu1 %v12484_v44  ;;  %v17955_v44 = vld [vmem:[#allocation50_spill] sm:$0xff]  ;;  %v17956_v42 = vld [vmem:[#allocation51_spill] sm:$0xff] }
 0x7b0   :  { %v2030_v14 = vpop.f32.mrf.mxu0  ;;  %v13054_v3 = vpop.f32.mrf.mxu1  ;;  %3055 = vmatprep.subr.bf16.mxu0 %v12488_v45  ;;  %3096 = vmatprep.subr.bf16.mxu1 %v12490_v36  ;;  %v17957_v45 = vld [vmem:[#allocation52_spill] sm:$0xff]  ;;  %v17975_v36 = vld [vmem:[#allocation9_spill] sm:$0xff] }
 0x7b2   :  { %v2032_v46 = vpop.f32.mrf.mxu0  ;;  %v2073_v28 = vpop.f32.mrf.mxu1 }
 0x7b3   :  { %3056 = vmatpush2.bf16.msra.mxu0 %v12506_v57  ;;  %3097 = vmatpush2.bf16.msra.mxu1 %v12508_v34  ;;  %v17958_v46 = vld [vmem:[#allocation53_spill] sm:$0xff]  ;;  %v17959_v28 = vld [vmem:[#allocation54_spill] sm:$0xff]  ;;  %v17960_v57 = vld [vmem:[#allocation55_spill] sm:$0xff] }
 0x7b4   :  { %v2033_v30 = vpop.f32.mrf.mxu0  ;;  %v2074_v51 = vpop.f32.mrf.mxu1  ;;  %3057 = vmatprep.subr.bf16.mxu0 %v12512_v63  ;;  %3098 = vmatprep.subr.bf16.mxu1 %v12514_v12  ;;  %v17963_v63 = vld [vmem:[#allocation58_spill] sm:$0xff]  ;;  %v17964_v12 = vld [vmem:[#allocation59_spill] sm:$0xff] }
 0x7b5   :  { %v17961_v30 = vld [vmem:[#allocation56_spill] sm:$0xff]  ;;  %v17962_v51 = vld [vmem:[#allocation57_spill] sm:$0xff] }
 0x7b7   :  { %3058 = vmatpush2.bf16.msra.mxu0 %v17954_v5  ;;  %3099 = vmatpush2.bf16.msra.mxu1 %v17955_v44  ;;  %v17965_v5 = vld [vmem:[#allocation60_spill] sm:$0xff]  ;;  %v17966_v44 = vld [vmem:[#allocation61_spill] sm:$0xff] }
 0x7b8   :  { %3059 = vmatprep.subr.bf16.mxu0 %v17956_v42  ;;  %3100 = vmatprep.subr.bf16.mxu1 %v17957_v45  ;;  %v17967_v42 = vld [vmem:[#allocation62_spill] sm:$0xff]  ;;  %v17968_v45 = vld [vmem:[#allocation63_spill] sm:$0xff] }
 0x7bb   :  { %3060 = vmatpush2.bf16.msra.mxu0 %v17958_v46  ;;  %3101 = vmatpush2.bf16.msra.mxu1 %v17959_v28  ;;  %v17969_v46 = vld [vmem:[#allocation64_spill] sm:$0xff]  ;;  %v17970_v28 = vld [vmem:[#allocation65_spill] sm:$0xff] }
 0x7bc   :  { %3061 = vmatprep.subr.bf16.mxu0 %v17960_v57  ;;  %3102 = vmatprep.subr.bf16.mxu1 %v17961_v30  ;;  %v17971_v57 = vld [vmem:[#allocation66_spill] sm:$0xff]  ;;  %v17972_v30 = vld [vmem:[#allocation67_spill] sm:$0xff] }
 0x7bf   :  { %3062 = vmatpush2.bf16.msra.mxu0 %v17962_v51  ;;  %3103 = vmatpush2.bf16.msra.mxu1 %v17963_v63  ;;  %v17973_v51 = vld [vmem:[#allocation68_spill] sm:$0xff] }
 0x7c0   :  { %3063 = vmatprep.subr.bf16.mxu0 %v17964_v12  ;;  %3104 = vmatprep.subr.bf16.mxu1 %v17965_v5 }
 0x7c3   :  { %3064 = vmatpush2.bf16.msra.mxu0 %v17966_v44  ;;  %3105 = vmatpush2.bf16.msra.mxu1 %v17967_v42 }
 0x7c4   :  { %3065 = vmatprep.subr.bf16.mxu0 %v17968_v45  ;;  %3106 = vmatprep.subr.bf16.mxu1 %v17969_v46 }
 0x7c7   :  { %3066 = vmatpush2.bf16.msra.mxu0 %v17970_v28  ;;  %3107 = vmatpush2.bf16.msra.mxu1 %v17971_v57  ;;  %v1446_v57 = vld [vmem:[%s17139_s12] sm:$0x77]  ;;  %v17974_v28 = vld [vmem:[#allocation6_spill] sm:$0xff] }
 0x7c8   :  { %3117 = vmatprep.subr.bf16.mxu0 %v17972_v30  ;;  %3158 = vmatprep.subr.bf16.mxu1 %v17973_v51  ;;  %v1638_v30 = vrot.slane %v1446_v57, %v17974_v28  ;;  %v1642_v51 = vrot.slane %v1446_v57, %v17975_v36 }
 0x7ca   :  { %v13082_v63 = vpop.f32.mrf.mxu0  ;;  %v13084_v12 = vpop.f32.mrf.mxu1  ;;  %v1678_v27 = vrot.slane %v1638_v30, %v17974_v28  ;;  %v1682_v22 = vrot.slane %v1642_v51, %v17974_v28 }
 0x7cc   :  { %v13086_v5 = vpop.f32.mrf.mxu0  ;;  %v13088_v44 = vpop.f32.mrf.mxu1  ;;  %v13103_v20 = vadd.f32 %v2030_v14, %v1682_v22 }
 0x7ce   :  { %v2114_v42 = vpop.f32.mrf.mxu0  ;;  %v2155_v45 = vpop.f32.mrf.mxu1 }
 0x7cf   :  { %v13100_v42 = vadd.f32 %v2028_v52, %v1678_v27  ;;  %v1650_v52 = vrot.slane %v1447_v21, %v17975_v36 }
 0x7d0   :  { %v2115_v34 = vpop.f32.mrf.mxu0  ;;  %v2156_v46 = vpop.f32.mrf.mxu1 }
 0x7d1   :  { %v1646_v46 = vrot.slane %v1447_v21, %v17974_v28  ;;  %v1690_v14 = vrot.slane %v1650_v52, %v17974_v28 }
 0x7d3   :  { %v1686_v61 = vrot.slane %v1646_v46, %v17974_v28 }
 0x7d5   :  { %v13110_v22 = vadd.f32 %v13050_v19, %v1686_v61 }
 0x80a   :  { %v2832_v45 = vpop.f32.mrf.mxu0  ;;  %v2873_v34 = vpop.f32.mrf.mxu1 }
 0x80b   :  { %v2962_v32 = vadd.f32 %v2832_v45, %v13100_v42 }
 0x80c   :  { %v2834_v4 = vpop.f32.mrf.mxu0  ;;  %v2875_v57 = vpop.f32.mrf.mxu1 }
 0x80d   :  { %v9794_v2 = vmul.f32 -1.442695, %v2962_v32  ;;  %v2963_v30 = vadd.f32 %v2834_v4, %v13103_v20  ;;  %v2964_v32 = vadd.f32 %v2873_v34, %v13110_v22  ;;  %v13115_v4 = vadd.f32 %v13054_v3, %v1690_v14  ;;  %v1448_v14 = vld [vmem:[%s17139_s12 + $0x10] sm:$0x77] }
 0x80e   :  { %v2836_v51 = vpop.f32.mrf.mxu0  ;;  %v2877_v0 = vpop.f32.mrf.mxu1 }
 0x80f   :  { %11170 = vpow2.f32 %v9794_v2  ;;  %v9795_v27 = vmul.f32 -1.442695, %v2963_v30  ;;  %17976 = vst [vmem:[#allocation6_spill] sm:$0xff] %v13115_v4  ;;  %v9796_v0 = vmul.f32 -1.442695, %v2964_v32  ;;  %v2965_v45 = vadd.f32 %v2875_v57, %v13115_v4 }
 0x810   :  { %v2837_v38 = vpop.f32.mrf.mxu0  ;;  %v2878_v54 = vpop.f32.mrf.mxu1 }
 0x811   :  { %11172 = vpow2.f32 %v9795_v27 }
 0x812   :  { %11174 = vpow2.f32 %v9796_v0  ;;  %v1654_v0 = vrot.slane %v1448_v14, %v17974_v28 }
 0x813   :  { %11176 = vtanh.f32 %v2965_v45  ;;  %v1658_v45 = vrot.slane %v1448_v14, %v17975_v36 }
 0x81c   :  { %v11171_v2 = vpop.eup %11170 }
 0x81d   :  { %v2991_v46 = vadd.f32 1.0, %v11171_v2  ;;  %v1694_v2 = vrot.slane %v1654_v0, %v17974_v28 }
 0x81e   :  { %v11173_v21 = vpop.eup %11172 }
 0x81f   :  { %11178 = vrcp.f32 %v2991_v46  ;;  %v2992_v54 = vadd.f32 1.0, %v11173_v21  ;;  %v11175_v38 = vpop.eup %11174  ;;  %v1698_v46 = vrot.slane %v1658_v45, %v17974_v28 }
 0x820   :  { %v11177_v61 = vpop.eup %11176  ;;  %v2993_v34 = vadd.f32 1.0, %v11175_v38  ;;  %v13131_v38 = vadd.f32 %v13082_v63, %v1694_v2 }
 0x821   :  { %11180 = vrcp.f32 %v2992_v54 }
 0x822   :  { %11182 = vrcp.f32 %v2993_v34  ;;  %v13137_v34 = vadd.f32 %v13086_v5, %v1698_v46 }
 0x82c   :  { %v11179_v19 = vpop.eup %11178 }
 0x82d   :  { %v3021_v30 = vmul.f32 %v11179_v19, %v11177_v61  ;;  %v1449_v61 = vld [vmem:[%s17139_s12 + $0x18] sm:$0x77] }
 0x82e   :  { %v11181_v51 = vpop.eup %11180  ;;  %v1666_v5 = vrot.slane %v1449_v61, %v17975_v36 }
 0x82f   :  { %v3020_v27 = vmul.f32 0.0, %v11181_v51  ;;  %v11183_v57 = vpop.eup %11182 }
 0x831   :  { %v13118_v3 = vadd.f32 %v3021_v30, %v3020_v27 }
 0x833   :  { %17977 = vst [vmem:[#allocation9_spill] sm:$0xff] %v13118_v3  ;;  %11184 = vtanh.f32 %v13118_v3 }
 0x840   :  { %v11185_v52 = vpop.eup %11184 }
 0x841   :  { %v13124_v32 = vmul.f32 %v11185_v52, %v11183_v57  ;;  %v1662_v52 = vrot.slane %v1449_v61, %v17974_v28 }
 0x843   :  { %17978 = vst [vmem:[#allocation131_spill] sm:$0xff] %v13124_v32 }
 0x84a   :  { %v2914_v21 = vpop.f32.mrf.mxu0  ;;  %v2955_v54 = vpop.f32.mrf.mxu1 }
 0x84b   :  { %v2970_v19 = vrot.slane %v2914_v21, 2  ;;  %v1702_v21 = vrot.slane %v1662_v52, %v17974_v28  ;;  %v2972_v46 = vrot.slane %v2955_v54, 2 }
 0x84c   :  { %v2916_v30 = vpop.f32.mrf.mxu0  ;;  %v2957_v51 = vpop.f32.mrf.mxu1 }
 0x84d   :  { %v2978_v27 = vadd.f32 %v2970_v19, %v13131_v38  ;;  %v2971_v57 = vrot.slane %v2916_v30, 2  ;;  %v13145_v19 = vadd.f32 %v13084_v12, %v1702_v21  ;;  %v1706_v30 = vrot.slane %v1666_v5, %v17974_v28 }
 0x84e   :  { %v2918_v14 = vpop.f32.mrf.mxu0  ;;  %v2959_v0 = vpop.f32.mrf.mxu1 }
 0x84f   :  { %v9797_v45 = vmul.f32 -1.442695, %v2978_v27  ;;  %v2979_v63 = vadd.f32 %v2971_v57, %v13137_v34  ;;  %v2980_v14 = vadd.f32 %v2972_v46, %v13145_v19  ;;  %v2973_v27 = vrot.slane %v2957_v51, 2 }
 0x850   :  { %v2919_v2 = vpop.f32.mrf.mxu0  ;;  %v2960_v3 = vpop.f32.mrf.mxu1  ;;  %v13150_v57 = vadd.f32 %v13088_v44, %v1706_v30 }
 0x851   :  { %11186 = vpow2.f32 %v9797_v45  ;;  %v9798_v4 = vmul.f32 -1.442695, %v2979_v63  ;;  %v9799_v3 = vmul.f32 -1.442695, %v2980_v14 }
 0x852   :  { %v2981_v45 = vadd.f32 %v2973_v27, %v13150_v57  ;;  %v13161_v27 = vpack.c.bf16 %v13124_v32, %v13124_v32  ;;  %v17998_v32 = vld [vmem:[#allocation87_spill] sm:$0xff] }
 0x853   :  { %11188 = vpow2.f32 %v9798_v4 }
 0x854   :  { %11190 = vpow2.f32 %v9799_v3  ;;  %v17980_v3 = vld [vmem:[#allocation69_spill] sm:$0xff] }
 0x85e   :  { %v11187_v0 = vpop.eup %11186 }
 0x85f   :  { %v3010_v52 = vadd.f32 1.0, %v11187_v0  ;;  %v17981_v0 = vld [vmem:[#allocation70_spill] sm:$0xff] }
 0x860   :  { %v11189_v4 = vpop.eup %11188 }
 0x861   :  { %11192 = vrcp.f32 %v3010_v52  ;;  %v3011_v36 = vadd.f32 1.0, %v11189_v4  ;;  %v11191_v12 = vpop.eup %11190  ;;  %v17983_v52 = vld [vmem:[#allocation72_spill] sm:$0xff]  ;;  %v17984_v4 = vld [vmem:[#allocation73_spill] sm:$0xff] }
 0x862   :  { %11194 = vtanh.f32 %v2981_v45  ;;  %v3012_v63 = vadd.f32 1.0, %v11191_v12  ;;  %v17982_v45 = vld [vmem:[#allocation71_spill] sm:$0xff] }
 0x863   :  { %11196 = vrcp.f32 %v3011_v36  ;;  %v17985_v36 = vld [vmem:[#allocation74_spill] sm:$0xff]  ;;  %v17986_v12 = vld [vmem:[#allocation75_spill] sm:$0xff] }
 0x864   :  { %11198 = vrcp.f32 %v3012_v63  ;;  %v17990_v63 = vld [vmem:[#allocation79_spill] sm:$0xff] }
 0x86e   :  { %v11193_v54 = vpop.eup %11192 }
 0x86f   :  { %v11195_v28 = vpop.eup %11194 }
 0x870   :  { %v11197_v61 = vpop.eup %11196  ;;  %v3024_v2 = vmul.f32 %v11195_v28, %v11193_v54  ;;  %v17987_v54 = vld [vmem:[#allocation76_spill] sm:$0xff]  ;;  %v17988_v28 = vld [vmem:[#allocation77_spill] sm:$0xff] }
 0x871   :  { %v3023_v51 = vmul.f32 0.0, %v11197_v61  ;;  %v11199_v21 = vpop.eup %11198  ;;  %v17989_v61 = vld [vmem:[#allocation78_spill] sm:$0xff] }
 0x873   :  { %v13153_v44 = vadd.f32 %v3024_v2, %v3023_v51  ;;  %v17991_v51 = vld [vmem:[#allocation80_spill] sm:$0xff]  ;;  %v17992_v2 = vld [vmem:[#allocation81_spill] sm:$0xff] }
 0x875   :  { %11200 = vtanh.f32 %v13153_v44 }
 0x882   :  { %v11201_v5 = vpop.eup %11200 }
 0x883   :  { %v13156_v46 = vmul.f32 %v11201_v5, %v11199_v21  ;;  %v17993_v21 = vld [vmem:[#allocation82_spill] sm:$0xff]  ;;  %v17994_v5 = vld [vmem:[#allocation83_spill] sm:$0xff] }
 0x885   :  { %17979 = vst [vmem:[#allocation132_spill] sm:$0xff] %v13156_v46  ;;  %v3031_v30 = vrot.slane %v13156_v46, 6  ;;  %v17997_v46 = vld [vmem:[#allocation86_spill] sm:$0xff] }
 0x887   :  { %v3034_v14 = vpack.c.bf16 %v3031_v30, %v3031_v30  ;;  %v17995_v30 = vld [vmem:[#allocation84_spill] sm:$0xff] }
 0x889   :  { %3067 = vmatprep.mubr.bf16.mxu0 %v3034_v14  ;;  %3108 = vmatprep.mubr.bf16.mxu1 %v3034_v14 }
 0x88a   :  { %3068 = vmatmul.mubr.bf16.vlgmr.msra.gmra.mxu0 %v13161_v27  ;;  %3109 = vmatmul.mubr.bf16.vlgmr.msra.gmra.mxu1 %v13161_v27 }
 0x88b   :  { %3118 = vmatpush1.bf16.msra.mxu0 %v17980_v3  ;;  %3159 = vmatpush1.bf16.msra.mxu1 %v17981_v0 }
 0x88c   :  { %3149 = vmatprep.mubr.bf16.mxu0 %v3034_v14  ;;  %3190 = vmatprep.mubr.bf16.mxu1 %v3034_v14  ;;  %v17996_v14 = vld [vmem:[#allocation85_spill] sm:$0xff] }
 0x88d   :  { %3119 = vmatprep.subr.bf16.mxu0 %v17982_v45  ;;  %3160 = vmatprep.subr.bf16.mxu1 %v17983_v52 }
 0x88f   :  { %3120 = vmatpush1.bf16.msra.mxu0 %v17984_v4  ;;  %3161 = vmatpush1.bf16.msra.mxu1 %v17985_v36 }
 0x890   :  { %3121 = vmatprep.subr.bf16.mxu0 %v17986_v12  ;;  %3162 = vmatprep.subr.bf16.mxu1 %v17987_v54 }
 0x893   :  { %3122 = vmatpush1.bf16.msra.mxu0 %v17988_v28  ;;  %3163 = vmatpush1.bf16.msra.mxu1 %v17989_v61  ;;  %v17999_v28 = vld [vmem:[#allocation88_spill] sm:$0xff]  ;;  %v18000_v61 = vld [vmem:[#allocation89_spill] sm:$0xff] }
 0x894   :  { %3123 = vmatprep.subr.bf16.mxu0 %v17990_v63  ;;  %3164 = vmatprep.subr.bf16.mxu1 %v17991_v51  ;;  %v18001_v63 = vld [vmem:[#allocation90_spill] sm:$0xff]  ;;  %v18002_v51 = vld [vmem:[#allocation91_spill] sm:$0xff] }
 0x897   :  { %3124 = vmatpush1.bf16.msra.mxu0 %v17992_v2  ;;  %3165 = vmatpush1.bf16.msra.mxu1 %v17993_v21  ;;  %v18003_v2 = vld [vmem:[#allocation92_spill] sm:$0xff]  ;;  %v18004_v21 = vld [vmem:[#allocation93_spill] sm:$0xff] }
 0x898   :  { %3125 = vmatprep.subr.bf16.mxu0 %v17994_v5  ;;  %3166 = vmatprep.subr.bf16.mxu1 %v17995_v30  ;;  %v18005_v5 = vld [vmem:[#allocation94_spill] sm:$0xff]  ;;  %v18006_v30 = vld [vmem:[#allocation95_spill] sm:$0xff] }
 0x89b   :  { %3126 = vmatpush1.bf16.msra.mxu0 %v17996_v14  ;;  %3167 = vmatpush1.bf16.msra.mxu1 %v17997_v46  ;;  %v18007_v14 = vld [vmem:[#allocation96_spill] sm:$0xff]  ;;  %v18008_v46 = vld [vmem:[#allocation97_spill] sm:$0xff] }
 0x89c   :  { %3127 = vmatprep.subr.bf16.mxu0 %v17998_v32  ;;  %3168 = vmatprep.subr.bf16.mxu1 %v17999_v28  ;;  %v18009_v32 = vld [vmem:[#allocation98_spill] sm:$0xff]  ;;  %v18010_v28 = vld [vmem:[#allocation99_spill] sm:$0xff] }
 0x89f   :  { %3128 = vmatpush1.bf16.msra.mxu0 %v18000_v61  ;;  %3169 = vmatpush1.bf16.msra.mxu1 %v18001_v63  ;;  %v18011_v61 = vld [vmem:[#allocation100_spill] sm:$0xff]  ;;  %v18012_v63 = vld [vmem:[#allocation101_spill] sm:$0xff] }
 0x8a0   :  { %3129 = vmatprep.subr.bf16.mxu0 %v18002_v51  ;;  %3170 = vmatprep.subr.bf16.mxu1 %v18003_v2  ;;  %v18013_v51 = vld [vmem:[#allocation102_spill] sm:$0xff]  ;;  %v18014_v2 = vld [vmem:[#allocation103_spill] sm:$0xff] }
 0x8a3   :  { %3130 = vmatpush1.bf16.msra.mxu0 %v18004_v21  ;;  %3171 = vmatpush1.bf16.msra.mxu1 %v18005_v5  ;;  %v18015_v21 = vld [vmem:[#allocation104_spill] sm:$0xff]  ;;  %v18016_v5 = vld [vmem:[#allocation105_spill] sm:$0xff] }
 0x8a4   :  { %3131 = vmatprep.subr.bf16.mxu0 %v18006_v30  ;;  %3172 = vmatprep.subr.bf16.mxu1 %v18007_v14  ;;  %v18017_v30 = vld [vmem:[#allocation106_spill] sm:$0xff]  ;;  %v18018_v14 = vld [vmem:[#allocation107_spill] sm:$0xff] }
 0x8a7   :  { %3132 = vmatpush1.bf16.msra.mxu0 %v18008_v46  ;;  %3173 = vmatpush1.bf16.msra.mxu1 %v18009_v32  ;;  %v18019_v46 = vld [vmem:[#allocation108_spill] sm:$0xff]  ;;  %v18020_v32 = vld [vmem:[#allocation109_spill] sm:$0xff] }
 0x8a8   :  { %3133 = vmatprep.subr.bf16.mxu0 %v18010_v28  ;;  %3174 = vmatprep.subr.bf16.mxu1 %v18011_v61  ;;  %v18021_v28 = vld [vmem:[#allocation110_spill] sm:$0xff]  ;;  %v18022_v61 = vld [vmem:[#allocation111_spill] sm:$0xff] }
 0x8ab   :  { %3134 = vmatpush2.bf16.msra.mxu0 %v18012_v63  ;;  %3175 = vmatpush2.bf16.msra.mxu1 %v18013_v51  ;;  %v18023_v63 = vld [vmem:[#allocation112_spill] sm:$0xff]  ;;  %v18024_v51 = vld [vmem:[#allocation113_spill] sm:$0xff] }
 0x8ac   :  { %3135 = vmatprep.subr.bf16.mxu0 %v18014_v2  ;;  %3176 = vmatprep.subr.bf16.mxu1 %v18015_v21  ;;  %v18025_v2 = vld [vmem:[#allocation114_spill] sm:$0xff]  ;;  %v18026_v21 = vld [vmem:[#allocation115_spill] sm:$0xff] }
 0x8af   :  { %3136 = vmatpush2.bf16.msra.mxu0 %v18016_v5  ;;  %3177 = vmatpush2.bf16.msra.mxu1 %v18017_v30  ;;  %v18027_v5 = vld [vmem:[#allocation116_spill] sm:$0xff]  ;;  %v18028_v30 = vld [vmem:[#allocation117_spill] sm:$0xff] }
 0x8b0   :  { %3137 = vmatprep.subr.bf16.mxu0 %v18018_v14  ;;  %3178 = vmatprep.subr.bf16.mxu1 %v18019_v46  ;;  %v18029_v14 = vld [vmem:[#allocation118_spill] sm:$0xff]  ;;  %v18030_v46 = vld [vmem:[#allocation119_spill] sm:$0xff] }
 0x8b3   :  { %3138 = vmatpush2.bf16.msra.mxu0 %v18020_v32  ;;  %3179 = vmatpush2.bf16.msra.mxu1 %v18021_v28  ;;  %v18031_v32 = vld [vmem:[#allocation120_spill] sm:$0xff]  ;;  %v18032_v28 = vld [vmem:[#allocation121_spill] sm:$0xff] }
 0x8b4   :  { %3139 = vmatprep.subr.bf16.mxu0 %v18022_v61  ;;  %3180 = vmatprep.subr.bf16.mxu1 %v18023_v63 }
 0x8b7   :  { %3140 = vmatpush2.bf16.msra.mxu0 %v18024_v51  ;;  %3181 = vmatpush2.bf16.msra.mxu1 %v18025_v2 }
 0x8b8   :  { %3141 = vmatprep.subr.bf16.mxu0 %v18026_v21  ;;  %3182 = vmatprep.subr.bf16.mxu1 %v18027_v5 }
 0x8bb   :  { %3142 = vmatpush2.bf16.msra.mxu0 %v18028_v30  ;;  %3183 = vmatpush2.bf16.msra.mxu1 %v18029_v14 }
 0x8bc   :  { %3143 = vmatprep.subr.bf16.mxu0 %v18030_v46  ;;  %3184 = vmatprep.subr.bf16.mxu1 %v18031_v32 }
 0x8bf   :  { %3144 = vmatpush2.bf16.msra.mxu0 %v18032_v28  ;;  %3185 = vmatpush2.bf16.msra.mxu1 %v12968_v1 }
 0x8c0   :  { %3145 = vmatprep.subr.bf16.mxu0 %v12972_v41  ;;  %3186 = vmatprep.subr.bf16.mxu1 %v12974_v13 }
 0x8c3   :  { %3146 = vmatpush2.bf16.msra.mxu0 %v12990_v43  ;;  %3187 = vmatpush2.bf16.msra.mxu1 %v12992_v11 }
 0x8c4   :  { %3147 = vmatprep.subr.bf16.mxu0 %v12996_v6  ;;  %3188 = vmatprep.subr.bf16.mxu1 %v12998_v35 }
 0x8c7   :  { %3148 = vmatpush2.bf16.msra.mxu0 %v13002_v37  ;;  %3189 = vmatpush2.bf16.msra.mxu1 %v13004_v29 }
 0x8c8   :  { %3296 = vmatprep.subr.bf16.mxu0 %v12244_v55  ;;  %3337 = vmatprep.subr.bf16.mxu1 %v12246_v56 }
 0x8ca   :  { %3150 = vmatmul.mubr.bf16.vlgmr.msra.gmra.mxu0 %v13161_v27  ;;  %3191 = vmatmul.mubr.bf16.vlgmr.msra.gmra.mxu1 %v13161_v27  ;;  %v18033_v27 = vld [vmem:[#allocation30_spill] sm:$0xff] }
 0x8cb   :  { %3297 = vmatpush1.bf16.msra.mxu0 %v12260_v58  ;;  %3338 = vmatpush1.bf16.msra.mxu1 %v12262_v59 }
 0x8cc   :  { %3298 = vmatprep.subr.bf16.mxu0 %v12266_v60  ;;  %3339 = vmatprep.subr.bf16.mxu1 %v12268_v62 }
 0x8cf   :  { %3299 = vmatpush1.bf16.msra.mxu0 %v12288_v7  ;;  %3340 = vmatpush1.bf16.msra.mxu1 %v12290_v8 }
 0x8d0   :  { %3300 = vmatprep.subr.bf16.mxu0 %v12294_v9  ;;  %3341 = vmatprep.subr.bf16.mxu1 %v12296_v10 }
 0x8d3   :  { %3301 = vmatpush1.bf16.msra.mxu0 %v12314_v15  ;;  %3342 = vmatpush1.bf16.msra.mxu1 %v12316_v16  ;;  %v18072_v15 = vld [vmem:[#allocation6_spill] sm:$0xff] }
 0x8d4   :  { %3302 = vmatprep.subr.bf16.mxu0 %v12320_v17  ;;  %3343 = vmatprep.subr.bf16.mxu1 %v12322_v18 }
 0x8d7   :  { %3303 = vmatpush1.bf16.msra.mxu0 %v12338_v23  ;;  %3344 = vmatpush1.bf16.msra.mxu1 %v12340_v24 }
 0x8d8   :  { %3304 = vmatprep.subr.bf16.mxu0 %v12344_v25  ;;  %3345 = vmatprep.subr.bf16.mxu1 %v12346_v26  ;;  %v18034_v26 = vld [vmem:[#allocation31_spill] sm:$0xff] }
 0x8db   :  { %3305 = vmatpush1.bf16.msra.mxu0 %v12362_v39  ;;  %3346 = vmatpush1.bf16.msra.mxu1 %v12364_v31  ;;  %v18035_v39 = vld [vmem:[#allocation32_spill] sm:$0xff]  ;;  %v18036_v31 = vld [vmem:[#allocation33_spill] sm:$0xff] }
 0x8dc   :  { %3306 = vmatprep.subr.bf16.mxu0 %v12368_v40  ;;  %3347 = vmatprep.subr.bf16.mxu1 %v12370_v33  ;;  %v18037_v40 = vld [vmem:[#allocation34_spill] sm:$0xff]  ;;  %v18038_v33 = vld [vmem:[#allocation35_spill] sm:$0xff] }
 0x8df   :  { %3307 = vmatpush1.bf16.msra.mxu0 %v12386_v47  ;;  %3348 = vmatpush1.bf16.msra.mxu1 %v12388_v48  ;;  %v18039_v47 = vld [vmem:[#allocation36_spill] sm:$0xff]  ;;  %v18040_v48 = vld [vmem:[#allocation37_spill] sm:$0xff] }
 0x8e0   :  { %3308 = vmatprep.subr.bf16.mxu0 %v12392_v49  ;;  %3349 = vmatprep.subr.bf16.mxu1 %v12394_v50  ;;  %v18041_v49 = vld [vmem:[#allocation38_spill] sm:$0xff]  ;;  %v18042_v50 = vld [vmem:[#allocation39_spill] sm:$0xff] }
 0x8e3   :  { %3309 = vmatpush1.bf16.msra.mxu0 %v12410_v53  ;;  %3350 = vmatpush1.bf16.msra.mxu1 %v18033_v27  ;;  %v18043_v53 = vld [vmem:[#allocation40_spill] sm:$0xff]  ;;  %v18044_v27 = vld [vmem:[#allocation41_spill] sm:$0xff] }
 0x8e4   :  { %3310 = vmatprep.subr.bf16.mxu0 %v18034_v26  ;;  %3351 = vmatprep.subr.bf16.mxu1 %v18035_v39  ;;  %v18045_v26 = vld [vmem:[#allocation42_spill] sm:$0xff]  ;;  %v18046_v39 = vld [vmem:[#allocation43_spill] sm:$0xff] }
 0x8e7   :  { %3311 = vmatpush1.bf16.msra.mxu0 %v18036_v31  ;;  %3352 = vmatpush1.bf16.msra.mxu1 %v18037_v40  ;;  %v18047_v31 = vld [vmem:[#allocation44_spill] sm:$0xff]  ;;  %v18048_v40 = vld [vmem:[#allocation45_spill] sm:$0xff] }
 0x8e8   :  { %3312 = vmatprep.subr.bf16.mxu0 %v18038_v33  ;;  %3353 = vmatprep.subr.bf16.mxu1 %v18039_v47  ;;  %v18049_v33 = vld [vmem:[#allocation46_spill] sm:$0xff]  ;;  %v18050_v47 = vld [vmem:[#allocation47_spill] sm:$0xff] }
 0x8eb   :  { %3313 = vmatpush2.bf16.msra.mxu0 %v18040_v48  ;;  %3354 = vmatpush2.bf16.msra.mxu1 %v18041_v49  ;;  %v18051_v48 = vld [vmem:[#allocation48_spill] sm:$0xff]  ;;  %v18052_v49 = vld [vmem:[#allocation49_spill] sm:$0xff] }
 0x8ec   :  { %3314 = vmatprep.subr.bf16.mxu0 %v18042_v50  ;;  %3355 = vmatprep.subr.bf16.mxu1 %v18043_v53  ;;  %v18053_v50 = vld [vmem:[#allocation50_spill] sm:$0xff]  ;;  %v18054_v53 = vld [vmem:[#allocation51_spill] sm:$0xff] }
 0x8ef   :  { %3315 = vmatpush2.bf16.msra.mxu0 %v18044_v27  ;;  %3356 = vmatpush2.bf16.msra.mxu1 %v18045_v26  ;;  %v18055_v27 = vld [vmem:[#allocation52_spill] sm:$0xff]  ;;  %v18056_v26 = vld [vmem:[#allocation53_spill] sm:$0xff] }
 0x8f0   :  { %3316 = vmatprep.subr.bf16.mxu0 %v18046_v39  ;;  %3357 = vmatprep.subr.bf16.mxu1 %v18047_v31  ;;  %v18057_v39 = vld [vmem:[#allocation54_spill] sm:$0xff]  ;;  %v18058_v31 = vld [vmem:[#allocation55_spill] sm:$0xff] }
 0x8f3   :  { %3317 = vmatpush2.bf16.msra.mxu0 %v18048_v40  ;;  %3358 = vmatpush2.bf16.msra.mxu1 %v18049_v33  ;;  %v18059_v40 = vld [vmem:[#allocation56_spill] sm:$0xff]  ;;  %v18060_v33 = vld [vmem:[#allocation57_spill] sm:$0xff] }
 0x8f4   :  { %3318 = vmatprep.subr.bf16.mxu0 %v18050_v47  ;;  %3359 = vmatprep.subr.bf16.mxu1 %v18051_v48  ;;  %v18061_v47 = vld [vmem:[#allocation58_spill] sm:$0xff]  ;;  %v18062_v48 = vld [vmem:[#allocation59_spill] sm:$0xff] }
 0x8f7   :  { %3319 = vmatpush2.bf16.msra.mxu0 %v18052_v49  ;;  %3360 = vmatpush2.bf16.msra.mxu1 %v18053_v50  ;;  %v18063_v49 = vld [vmem:[#allocation60_spill] sm:$0xff]  ;;  %v18064_v50 = vld [vmem:[#allocation61_spill] sm:$0xff] }
 0x8f8   :  { %3320 = vmatprep.subr.bf16.mxu0 %v18054_v53  ;;  %3361 = vmatprep.subr.bf16.mxu1 %v18055_v27  ;;  %v18065_v53 = vld [vmem:[#allocation62_spill] sm:$0xff]  ;;  %v18066_v27 = vld [vmem:[#allocation63_spill] sm:$0xff] }
 0x8fb   :  { %3321 = vmatpush2.bf16.msra.mxu0 %v18056_v26  ;;  %3362 = vmatpush2.bf16.msra.mxu1 %v18057_v39  ;;  %v18067_v26 = vld [vmem:[#allocation64_spill] sm:$0xff]  ;;  %v18068_v39 = vld [vmem:[#allocation65_spill] sm:$0xff] }
 0x8fc   :  { %3322 = vmatprep.subr.bf16.mxu0 %v18058_v31  ;;  %3363 = vmatprep.subr.bf16.mxu1 %v18059_v40  ;;  %v18069_v31 = vld [vmem:[#allocation66_spill] sm:$0xff]  ;;  %v18070_v40 = vld [vmem:[#allocation67_spill] sm:$0xff] }
 0x8ff   :  { %3323 = vmatpush2.bf16.msra.mxu0 %v18060_v33  ;;  %3364 = vmatpush2.bf16.msra.mxu1 %v18061_v47  ;;  %v18071_v33 = vld [vmem:[#allocation68_spill] sm:$0xff] }
 0x900   :  { %3324 = vmatprep.subr.bf16.mxu0 %v18062_v48  ;;  %3365 = vmatprep.subr.bf16.mxu1 %v18063_v49 }
 0x903   :  { %3325 = vmatpush2.bf16.msra.mxu0 %v18064_v50  ;;  %3366 = vmatpush2.bf16.msra.mxu1 %v18065_v53 }
 0x904   :  { %3326 = vmatprep.subr.bf16.mxu0 %v18066_v27  ;;  %3367 = vmatprep.subr.bf16.mxu1 %v18067_v26 }
 0x907   :  { %3327 = vmatpush2.bf16.msra.mxu0 %v18068_v39  ;;  %3368 = vmatpush2.bf16.msra.mxu1 %v18069_v31 }
 0x908   :  { %3378 = vmatprep.subr.bf16.mxu0 %v18070_v40  ;;  %3419 = vmatprep.subr.bf16.mxu1 %v18071_v33 }
 0x94a   :  { %v3069_v47 = vpop.f32.mrf.mxu0  ;;  %v3110_v48 = vpop.f32.mrf.mxu1 }
 0x94b   :  { %v3203_v25 = vrot.slane %v3069_v47, 6  ;;  %v3205_v40 = vrot.slane %v3110_v48, 6 }
 0x94c   :  { %v3071_v49 = vpop.f32.mrf.mxu0  ;;  %v3112_v24 = vpop.f32.mrf.mxu1 }
 0x94d   :  { %v3211_v50 = vadd.f32 %v3203_v25, %v13100_v42  ;;  %v3204_v53 = vrot.slane %v3071_v49, 6  ;;  %v3213_v33 = vadd.f32 %v3205_v40, %v13110_v22  ;;  %v3206_v16 = vrot.slane %v3112_v24, 6 }
 0x94e   :  { %v3073_v23 = vpop.f32.mrf.mxu0  ;;  %v3114_v27 = vpop.f32.mrf.mxu1 }
 0x94f   :  { %v9800_v18 = vmul.f32 -1.442695, %v3211_v50  ;;  %v3212_v26 = vadd.f32 %v3204_v53, %v13103_v20  ;;  %v9802_v47 = vmul.f32 -1.442695, %v3213_v33  ;;  %v3214_v10 = vadd.f32 %v3206_v16, %v18072_v15 }
 0x950   :  { %v3074_v39 = vpop.f32.mrf.mxu0  ;;  %v3115_v17 = vpop.f32.mrf.mxu1 }
 0x951   :  { %11202 = vpow2.f32 %v9800_v18  ;;  %v9801_v31 = vmul.f32 -1.442695, %v3212_v26  ;;  %v18073_v26 = vld [vmem:[#allocation9_spill] sm:$0xff] }
 0x952   :  { %v3270_v48 = vrot.slane %v18073_v26, 6 }
 0x953   :  { %11204 = vpow2.f32 %v9801_v31 }
 0x954   :  { %11206 = vpow2.f32 %v9802_v47 }
 0x955   :  { %11208 = vtanh.f32 %v3214_v10 }
 0x95e   :  { %v11203_v9 = vpop.eup %11202 }
 0x95f   :  { %v3240_v25 = vadd.f32 1.0, %v11203_v9 }
 0x960   :  { %v11205_v23 = vpop.eup %11204 }
 0x961   :  { %11210 = vrcp.f32 %v3240_v25  ;;  %v3241_v49 = vadd.f32 1.0, %v11205_v23  ;;  %v11207_v39 = vpop.eup %11206 }
 0x962   :  { %v11209_v17 = vpop.eup %11208  ;;  %v3242_v40 = vadd.f32 1.0, %v11207_v39 }
 0x963   :  { %11212 = vrcp.f32 %v3241_v49 }
 0x964   :  { %11214 = vrcp.f32 %v3242_v40 }
 0x96e   :  { %v11211_v18 = vpop.eup %11210 }
 0x96f   :  { %v3273_v31 = vmul.f32 %v11211_v18, %v11209_v17 }
 0x970   :  { %v11213_v50 = vpop.eup %11212 }
 0x971   :  { %v3272_v24 = vmul.f32 %v11213_v50, %v3270_v48  ;;  %v11215_v9 = vpop.eup %11214 }
 0x973   :  { %v13300_v33 = vadd.f32 %v3273_v31, %v3272_v24 }
 0x975   :  { %18074 = vst [vmem:[#allocation69_spill] sm:$0xff] %v13300_v33  ;;  %11216 = vtanh.f32 %v13300_v33 }
 0x982   :  { %v11217_v16 = vpop.eup %11216 }
 0x983   :  { %v13303_v10 = vmul.f32 %v11217_v16, %v11215_v9 }
 0x98a   :  { %v3151_v53 = vpop.f32.mrf.mxu0  ;;  %v3192_v27 = vpop.f32.mrf.mxu1 }
 0x98b   :  { %v3219_v47 = vrot.slane %v3151_v53, 4  ;;  %v3221_v24 = vrot.slane %v3192_v27, 4 }
 0x98c   :  { %v3153_v25 = vpop.f32.mrf.mxu0  ;;  %v3194_v23 = vpop.f32.mrf.mxu1 }
 0x98d   :  { %v3227_v49 = vadd.f32 %v3219_v47, %v13131_v38  ;;  %v3220_v17 = vrot.slane %v3153_v25, 4  ;;  %v3229_v9 = vadd.f32 %v3221_v24, %v13145_v19  ;;  %v3222_v16 = vrot.slane %v3194_v23, 4 }
 0x98e   :  { %v3155_v18 = vpop.f32.mrf.mxu0  ;;  %v3196_v39 = vpop.f32.mrf.mxu1 }
 0x98f   :  { %v9803_v26 = vmul.f32 -1.442695, %v3227_v49  ;;  %v3228_v48 = vadd.f32 %v3220_v17, %v13137_v34  ;;  %v9805_v53 = vmul.f32 -1.442695, %v3229_v9  ;;  %v3230_v15 = vadd.f32 %v3222_v16, %v13150_v57 }
 0x990   :  { %v3156_v31 = vpop.f32.mrf.mxu0  ;;  %v3197_v50 = vpop.f32.mrf.mxu1  ;;  %v3288_v9 = vpack.c.bf16 %v13303_v10, %v13303_v10 }
 0x991   :  { %11218 = vpow2.f32 %v9803_v26  ;;  %v9804_v40 = vmul.f32 -1.442695, %v3228_v48  ;;  %v3276_v26 = vrot.slane %v13153_v44, 2 }
 0x993   :  { %11220 = vpow2.f32 %v9804_v40 }
 0x994   :  { %11222 = vpow2.f32 %v9805_v53  ;;  %v13318_v53 = vrot.slane %v3288_v9, 1  ;;  %v18090_v9 = vld [vmem:[#allocation91_spill] sm:$0xff] }
 0x99e   :  { %v11219_v33 = vpop.eup %11218 }
 0x99f   :  { %v3259_v47 = vadd.f32 1.0, %v11219_v33 }
 0x9a0   :  { %v11221_v25 = vpop.eup %11220 }
 0x9a1   :  { %11224 = vrcp.f32 %v3259_v47  ;;  %v3260_v49 = vadd.f32 1.0, %v11221_v25  ;;  %v11223_v17 = vpop.eup %11222  ;;  %v18076_v47 = vld [vmem:[#allocation77_spill] sm:$0xff]  ;;  %v18077_v25 = vld [vmem:[#allocation78_spill] sm:$0xff] }
 0x9a2   :  { %11226 = vtanh.f32 %v3230_v15  ;;  %v3261_v48 = vadd.f32 1.0, %v11223_v17  ;;  %v18079_v17 = vld [vmem:[#allocation80_spill] sm:$0xff] }
 0x9a3   :  { %11228 = vrcp.f32 %v3260_v49  ;;  %v18078_v49 = vld [vmem:[#allocation79_spill] sm:$0xff] }
 0x9a4   :  { %11230 = vrcp.f32 %v3261_v48  ;;  %v18084_v48 = vld [vmem:[#allocation85_spill] sm:$0xff] }
 0x9ae   :  { %v11225_v18 = vpop.eup %11224 }
 0x9af   :  { %v11227_v39 = vpop.eup %11226 }
 0x9b0   :  { %v11229_v27 = vpop.eup %11228  ;;  %v3279_v23 = vmul.f32 %v11227_v39, %v11225_v18  ;;  %v18080_v18 = vld [vmem:[#allocation81_spill] sm:$0xff]  ;;  %v18081_v39 = vld [vmem:[#allocation82_spill] sm:$0xff] }
 0x9b1   :  { %v3278_v31 = vmul.f32 %v11229_v27, %v3276_v26  ;;  %v11231_v33 = vpop.eup %11230  ;;  %v18082_v26 = vld [vmem:[#allocation83_spill] sm:$0xff]  ;;  %v18083_v27 = vld [vmem:[#allocation84_spill] sm:$0xff] }
 0x9b3   :  { %v13310_v50 = vadd.f32 %v3279_v23, %v3278_v31  ;;  %v18085_v31 = vld [vmem:[#allocation86_spill] sm:$0xff]  ;;  %v18086_v23 = vld [vmem:[#allocation87_spill] sm:$0xff] }
 0x9b5   :  { %11232 = vtanh.f32 %v13310_v50 }
 0x9c2   :  { %v11233_v40 = vpop.eup %11232 }
 0x9c3   :  { %v13313_v24 = vmul.f32 %v11233_v40, %v11231_v33  ;;  %v18087_v33 = vld [vmem:[#allocation88_spill] sm:$0xff]  ;;  %v18088_v40 = vld [vmem:[#allocation89_spill] sm:$0xff] }
 0x9c5   :  { %18075 = vst [vmem:[#allocation70_spill] sm:$0xff] %v13313_v24  ;;  %v3286_v15 = vrot.slane %v13313_v24, 2  ;;  %v18093_v24 = vld [vmem:[#allocation94_spill] sm:$0xff] }
 0x9c7   :  { %v3289_v16 = vpack.c.bf16 %v3286_v15, %v3286_v15  ;;  %v18089_v15 = vld [vmem:[#allocation90_spill] sm:$0xff] }
 0x9c9   :  { %v3293_v44 = vrot.slane %v3289_v16, 1  ;;  %v18091_v16 = vld [vmem:[#allocation92_spill] sm:$0xff] }
 0x9cb   :  { %3328 = vmatprep.mubr.bf16.mxu0 %v3293_v44  ;;  %3369 = vmatprep.mubr.bf16.mxu1 %v3293_v44 }
 0x9cc   :  { %3329 = vmatmul.mubr.bf16.vlgmr.msra.gmra.mxu0 %v13318_v53  ;;  %3370 = vmatmul.mubr.bf16.vlgmr.msra.gmra.mxu1 %v13318_v53 }
 0x9cd   :  { %3379 = vmatpush1.bf16.msra.mxu0 %v17980_v3  ;;  %3420 = vmatpush1.bf16.msra.mxu1 %v17981_v0 }
 0x9ce   :  { %3410 = vmatprep.mubr.bf16.mxu0 %v3293_v44  ;;  %3451 = vmatprep.mubr.bf16.mxu1 %v3293_v44  ;;  %v18092_v44 = vld [vmem:[#allocation93_spill] sm:$0xff] }
 0x9cf   :  { %3380 = vmatprep.subr.bf16.mxu0 %v17982_v45  ;;  %3421 = vmatprep.subr.bf16.mxu1 %v17983_v52 }
 0x9d1   :  { %3381 = vmatpush1.bf16.msra.mxu0 %v17984_v4  ;;  %3422 = vmatpush1.bf16.msra.mxu1 %v17985_v36 }
 0x9d2   :  { %3382 = vmatprep.subr.bf16.mxu0 %v17986_v12  ;;  %3423 = vmatprep.subr.bf16.mxu1 %v17987_v54 }
 0x9d5   :  { %3383 = vmatpush1.bf16.msra.mxu0 %v18076_v47  ;;  %3424 = vmatpush1.bf16.msra.mxu1 %v18077_v25 }
 0x9d6   :  { %3384 = vmatprep.subr.bf16.mxu0 %v18078_v49  ;;  %3425 = vmatprep.subr.bf16.mxu1 %v18079_v17 }
 0x9d9   :  { %3385 = vmatpush1.bf16.msra.mxu0 %v18080_v18  ;;  %3426 = vmatpush1.bf16.msra.mxu1 %v18081_v39 }
 0x9da   :  { %3386 = vmatprep.subr.bf16.mxu0 %v18082_v26  ;;  %3427 = vmatprep.subr.bf16.mxu1 %v18083_v27  ;;  %v18094_v27 = vld [vmem:[#allocation95_spill] sm:$0xff] }
 0x9dd   :  { %3387 = vmatpush1.bf16.msra.mxu0 %v18084_v48  ;;  %3428 = vmatpush1.bf16.msra.mxu1 %v18085_v31  ;;  %v18095_v48 = vld [vmem:[#allocation96_spill] sm:$0xff]  ;;  %v18096_v31 = vld [vmem:[#allocation97_spill] sm:$0xff] }
 0x9de   :  { %3388 = vmatprep.subr.bf16.mxu0 %v18086_v23  ;;  %3429 = vmatprep.subr.bf16.mxu1 %v18087_v33  ;;  %v18097_v23 = vld [vmem:[#allocation98_spill] sm:$0xff]  ;;  %v18098_v33 = vld [vmem:[#allocation99_spill] sm:$0xff] }
 0x9e1   :  { %3389 = vmatpush1.bf16.msra.mxu0 %v18088_v40  ;;  %3430 = vmatpush1.bf16.msra.mxu1 %v18089_v15  ;;  %v18099_v40 = vld [vmem:[#allocation100_spill] sm:$0xff]  ;;  %v18100_v15 = vld [vmem:[#allocation101_spill] sm:$0xff] }
 0x9e2   :  { %3390 = vmatprep.subr.bf16.mxu0 %v18090_v9  ;;  %3431 = vmatprep.subr.bf16.mxu1 %v18091_v16  ;;  %v18101_v9 = vld [vmem:[#allocation102_spill] sm:$0xff]  ;;  %v18102_v16 = vld [vmem:[#allocation103_spill] sm:$0xff] }
 0x9e5   :  { %3391 = vmatpush1.bf16.msra.mxu0 %v18092_v44  ;;  %3432 = vmatpush1.bf16.msra.mxu1 %v18093_v24  ;;  %v18103_v44 = vld [vmem:[#allocation104_spill] sm:$0xff]  ;;  %v18104_v24 = vld [vmem:[#allocation105_spill] sm:$0xff] }
 0x9e6   :  { %3392 = vmatprep.subr.bf16.mxu0 %v18094_v27  ;;  %3433 = vmatprep.subr.bf16.mxu1 %v18095_v48  ;;  %v18105_v27 = vld [vmem:[#allocation106_spill] sm:$0xff]  ;;  %v18106_v48 = vld [vmem:[#allocation107_spill] sm:$0xff] }
 0x9e9   :  { %3393 = vmatpush1.bf16.msra.mxu0 %v18096_v31  ;;  %3434 = vmatpush1.bf16.msra.mxu1 %v18097_v23  ;;  %v18107_v31 = vld [vmem:[#allocation108_spill] sm:$0xff]  ;;  %v18108_v23 = vld [vmem:[#allocation109_spill] sm:$0xff] }
 0x9ea   :  { %3394 = vmatprep.subr.bf16.mxu0 %v18098_v33  ;;  %3435 = vmatprep.subr.bf16.mxu1 %v18099_v40  ;;  %v18109_v33 = vld [vmem:[#allocation110_spill] sm:$0xff] }
 0x9ed   :  { %3395 = vmatpush2.bf16.msra.mxu0 %v18100_v15  ;;  %3436 = vmatpush2.bf16.msra.mxu1 %v18101_v9 }
 0x9ee   :  { %3396 = vmatprep.subr.bf16.mxu0 %v18102_v16  ;;  %3437 = vmatprep.subr.bf16.mxu1 %v18103_v44 }
 0x9f1   :  { %3397 = vmatpush2.bf16.msra.mxu0 %v18104_v24  ;;  %3438 = vmatpush2.bf16.msra.mxu1 %v18105_v27 }
 0x9f2   :  { %3398 = vmatprep.subr.bf16.mxu0 %v18106_v48  ;;  %3439 = vmatprep.subr.bf16.mxu1 %v18107_v31 }
 0x9f5   :  { %3399 = vmatpush2.bf16.msra.mxu0 %v18108_v23  ;;  %3440 = vmatpush2.bf16.msra.mxu1 %v18109_v33 }
 0x9f6   :  { %3400 = vmatprep.subr.bf16.mxu0 %v18022_v61  ;;  %3441 = vmatprep.subr.bf16.mxu1 %v18023_v63 }
 0x9f9   :  { %3401 = vmatpush2.bf16.msra.mxu0 %v18024_v51  ;;  %3442 = vmatpush2.bf16.msra.mxu1 %v18025_v2 }
 0x9fa   :  { %3402 = vmatprep.subr.bf16.mxu0 %v18026_v21  ;;  %3443 = vmatprep.subr.bf16.mxu1 %v18027_v5 }
 0x9fd   :  { %3403 = vmatpush2.bf16.msra.mxu0 %v18028_v30  ;;  %3444 = vmatpush2.bf16.msra.mxu1 %v18029_v14 }
 0x9fe   :  { %3404 = vmatprep.subr.bf16.mxu0 %v18030_v46  ;;  %3445 = vmatprep.subr.bf16.mxu1 %v18031_v32 }
 0xa01   :  { %3405 = vmatpush2.bf16.msra.mxu0 %v18032_v28  ;;  %3446 = vmatpush2.bf16.msra.mxu1 %v12968_v1  ;;  %v18168_v1 = vld [vmem:[#allocation6_spill] sm:$0xff] }
 0xa02   :  { %3406 = vmatprep.subr.bf16.mxu0 %v12972_v41  ;;  %3447 = vmatprep.subr.bf16.mxu1 %v12974_v13 }
 0xa05   :  { %3407 = vmatpush2.bf16.msra.mxu0 %v12990_v43  ;;  %3448 = vmatpush2.bf16.msra.mxu1 %v12992_v11 }
 0xa06   :  { %3408 = vmatprep.subr.bf16.mxu0 %v12996_v6  ;;  %3449 = vmatprep.subr.bf16.mxu1 %v12998_v35 }
 0xa09   :  { %3409 = vmatpush2.bf16.msra.mxu0 %v13002_v37  ;;  %3450 = vmatpush2.bf16.msra.mxu1 %v13004_v29  ;;  %v18110_v29 = vld [vmem:[#allocation11_spill] sm:$0xff]  ;;  %v18113_v37 = vld [vmem:[#allocation14_spill] sm:$0xff] }
 0xa0a   :  { %3557 = vmatprep.subr.bf16.mxu0 %v12244_v55  ;;  %3598 = vmatprep.subr.bf16.mxu1 %v12246_v56  ;;  %v18111_v55 = vld [vmem:[#allocation12_spill] sm:$0xff]  ;;  %v18112_v56 = vld [vmem:[#allocation13_spill] sm:$0xff] }
 0xa0c   :  { %3411 = vmatmul.mubr.bf16.vlgmr.msra.gmra.mxu0 %v13318_v53  ;;  %3452 = vmatmul.mubr.bf16.vlgmr.msra.gmra.mxu1 %v13318_v53  ;;  %v18114_v53 = vld [vmem:[#allocation15_spill] sm:$0xff] }
 0xa0d   :  { %3558 = vmatpush1.bf16.msra.mxu0 %v12260_v58  ;;  %3599 = vmatpush1.bf16.msra.mxu1 %v12262_v59  ;;  %v18115_v58 = vld [vmem:[#allocation16_spill] sm:$0xff]  ;;  %v18116_v59 = vld [vmem:[#allocation17_spill] sm:$0xff] }
 0xa0e   :  { %3559 = vmatprep.subr.bf16.mxu0 %v12266_v60  ;;  %3600 = vmatprep.subr.bf16.mxu1 %v12268_v62  ;;  %v18117_v60 = vld [vmem:[#allocation18_spill] sm:$0xff]  ;;  %v18118_v62 = vld [vmem:[#allocation19_spill] sm:$0xff] }
 0xa11   :  { %3560 = vmatpush1.bf16.msra.mxu0 %v12288_v7  ;;  %3601 = vmatpush1.bf16.msra.mxu1 %v12290_v8  ;;  %v18119_v7 = vld [vmem:[#allocation20_spill] sm:$0xff]  ;;  %v18120_v8 = vld [vmem:[#allocation21_spill] sm:$0xff] }
 0xa12   :  { %3561 = vmatprep.subr.bf16.mxu0 %v18110_v29  ;;  %3602 = vmatprep.subr.bf16.mxu1 %v18111_v55  ;;  %v18121_v29 = vld [vmem:[#allocation22_spill] sm:$0xff]  ;;  %v18122_v55 = vld [vmem:[#allocation23_spill] sm:$0xff] }
 0xa15   :  { %3562 = vmatpush1.bf16.msra.mxu0 %v18112_v56  ;;  %3603 = vmatpush1.bf16.msra.mxu1 %v18113_v37  ;;  %v18123_v56 = vld [vmem:[#allocation24_spill] sm:$0xff]  ;;  %v18124_v37 = vld [vmem:[#allocation25_spill] sm:$0xff] }
 0xa16   :  { %3563 = vmatprep.subr.bf16.mxu0 %v18114_v53  ;;  %3604 = vmatprep.subr.bf16.mxu1 %v18115_v58  ;;  %v18125_v53 = vld [vmem:[#allocation26_spill] sm:$0xff]  ;;  %v18126_v58 = vld [vmem:[#allocation27_spill] sm:$0xff] }
 0xa19   :  { %3564 = vmatpush1.bf16.msra.mxu0 %v18116_v59  ;;  %3605 = vmatpush1.bf16.msra.mxu1 %v18117_v60  ;;  %v18127_v59 = vld [vmem:[#allocation28_spill] sm:$0xff]  ;;  %v18128_v60 = vld [vmem:[#allocation29_spill] sm:$0xff] }
 0xa1a   :  { %3565 = vmatprep.subr.bf16.mxu0 %v18118_v62  ;;  %3606 = vmatprep.subr.bf16.mxu1 %v18119_v7  ;;  %v18129_v62 = vld [vmem:[#allocation30_spill] sm:$0xff]  ;;  %v18130_v7 = vld [vmem:[#allocation31_spill] sm:$0xff] }
 0xa1d   :  { %3566 = vmatpush1.bf16.msra.mxu0 %v18120_v8  ;;  %3607 = vmatpush1.bf16.msra.mxu1 %v18121_v29  ;;  %v18131_v8 = vld [vmem:[#allocation32_spill] sm:$0xff]  ;;  %v18132_v29 = vld [vmem:[#allocation33_spill] sm:$0xff] }
 0xa1e   :  { %3567 = vmatprep.subr.bf16.mxu0 %v18122_v55  ;;  %3608 = vmatprep.subr.bf16.mxu1 %v18123_v56  ;;  %v18133_v55 = vld [vmem:[#allocation34_spill] sm:$0xff]  ;;  %v18134_v56 = vld [vmem:[#allocation35_spill] sm:$0xff] }
 0xa21   :  { %3568 = vmatpush1.bf16.msra.mxu0 %v18124_v37  ;;  %3609 = vmatpush1.bf16.msra.mxu1 %v18125_v53  ;;  %v18135_v37 = vld [vmem:[#allocation36_spill] sm:$0xff]  ;;  %v18136_v53 = vld [vmem:[#allocation37_spill] sm:$0xff] }
 0xa22   :  { %3569 = vmatprep.subr.bf16.mxu0 %v18126_v58  ;;  %3610 = vmatprep.subr.bf16.mxu1 %v18127_v59  ;;  %v18137_v58 = vld [vmem:[#allocation38_spill] sm:$0xff]  ;;  %v18138_v59 = vld [vmem:[#allocation39_spill] sm:$0xff] }
 0xa25   :  { %3570 = vmatpush1.bf16.msra.mxu0 %v18128_v60  ;;  %3611 = vmatpush1.bf16.msra.mxu1 %v18129_v62  ;;  %v18139_v60 = vld [vmem:[#allocation40_spill] sm:$0xff]  ;;  %v18140_v62 = vld [vmem:[#allocation41_spill] sm:$0xff] }
 0xa26   :  { %3571 = vmatprep.subr.bf16.mxu0 %v18130_v7  ;;  %3612 = vmatprep.subr.bf16.mxu1 %v18131_v8  ;;  %v18141_v7 = vld [vmem:[#allocation42_spill] sm:$0xff]  ;;  %v18142_v8 = vld [vmem:[#allocation43_spill] sm:$0xff] }
 0xa29   :  { %3572 = vmatpush1.bf16.msra.mxu0 %v18132_v29  ;;  %3613 = vmatpush1.bf16.msra.mxu1 %v18133_v55  ;;  %v18143_v29 = vld [vmem:[#allocation44_spill] sm:$0xff]  ;;  %v18144_v55 = vld [vmem:[#allocation45_spill] sm:$0xff] }
 0xa2a   :  { %3573 = vmatprep.subr.bf16.mxu0 %v18134_v56  ;;  %3614 = vmatprep.subr.bf16.mxu1 %v18135_v37  ;;  %v18145_v56 = vld [vmem:[#allocation46_spill] sm:$0xff]  ;;  %v18146_v37 = vld [vmem:[#allocation47_spill] sm:$0xff] }
 0xa2d   :  { %3574 = vmatpush2.bf16.msra.mxu0 %v18136_v53  ;;  %3615 = vmatpush2.bf16.msra.mxu1 %v18137_v58  ;;  %v18147_v53 = vld [vmem:[#allocation48_spill] sm:$0xff]  ;;  %v18148_v58 = vld [vmem:[#allocation49_spill] sm:$0xff] }
 0xa2e   :  { %3575 = vmatprep.subr.bf16.mxu0 %v18138_v59  ;;  %3616 = vmatprep.subr.bf16.mxu1 %v18139_v60  ;;  %v18149_v59 = vld [vmem:[#allocation50_spill] sm:$0xff]  ;;  %v18150_v60 = vld [vmem:[#allocation51_spill] sm:$0xff] }
 0xa31   :  { %3576 = vmatpush2.bf16.msra.mxu0 %v18140_v62  ;;  %3617 = vmatpush2.bf16.msra.mxu1 %v18141_v7  ;;  %v18151_v62 = vld [vmem:[#allocation52_spill] sm:$0xff]  ;;  %v18152_v7 = vld [vmem:[#allocation53_spill] sm:$0xff] }
 0xa32   :  { %3577 = vmatprep.subr.bf16.mxu0 %v18142_v8  ;;  %3618 = vmatprep.subr.bf16.mxu1 %v18143_v29  ;;  %v18153_v8 = vld [vmem:[#allocation54_spill] sm:$0xff]  ;;  %v18154_v29 = vld [vmem:[#allocation55_spill] sm:$0xff] }
 0xa35   :  { %3578 = vmatpush2.bf16.msra.mxu0 %v18144_v55  ;;  %3619 = vmatpush2.bf16.msra.mxu1 %v18145_v56  ;;  %v18155_v55 = vld [vmem:[#allocation56_spill] sm:$0xff]  ;;  %v18156_v56 = vld [vmem:[#allocation57_spill] sm:$0xff] }
 0xa36   :  { %3579 = vmatprep.subr.bf16.mxu0 %v18146_v37  ;;  %3620 = vmatprep.subr.bf16.mxu1 %v18147_v53  ;;  %v18157_v37 = vld [vmem:[#allocation58_spill] sm:$0xff]  ;;  %v18158_v53 = vld [vmem:[#allocation59_spill] sm:$0xff] }
 0xa39   :  { %3580 = vmatpush2.bf16.msra.mxu0 %v18148_v58  ;;  %3621 = vmatpush2.bf16.msra.mxu1 %v18149_v59  ;;  %v18159_v58 = vld [vmem:[#allocation60_spill] sm:$0xff]  ;;  %v18160_v59 = vld [vmem:[#allocation61_spill] sm:$0xff] }
 0xa3a   :  { %3581 = vmatprep.subr.bf16.mxu0 %v18150_v60  ;;  %3622 = vmatprep.subr.bf16.mxu1 %v18151_v62  ;;  %v18161_v60 = vld [vmem:[#allocation62_spill] sm:$0xff]  ;;  %v18162_v62 = vld [vmem:[#allocation63_spill] sm:$0xff] }
 0xa3d   :  { %3582 = vmatpush2.bf16.msra.mxu0 %v18152_v7  ;;  %3623 = vmatpush2.bf16.msra.mxu1 %v18153_v8  ;;  %v18163_v7 = vld [vmem:[#allocation64_spill] sm:$0xff]  ;;  %v18164_v8 = vld [vmem:[#allocation65_spill] sm:$0xff] }
 0xa3e   :  { %3583 = vmatprep.subr.bf16.mxu0 %v18154_v29  ;;  %3624 = vmatprep.subr.bf16.mxu1 %v18155_v55  ;;  %v18165_v29 = vld [vmem:[#allocation66_spill] sm:$0xff]  ;;  %v18166_v55 = vld [vmem:[#allocation67_spill] sm:$0xff] }
 0xa41   :  { %3584 = vmatpush2.bf16.msra.mxu0 %v18156_v56  ;;  %3625 = vmatpush2.bf16.msra.mxu1 %v18157_v37  ;;  %v18167_v56 = vld [vmem:[#allocation68_spill] sm:$0xff] }
 0xa42   :  { %3585 = vmatprep.subr.bf16.mxu0 %v18158_v53  ;;  %3626 = vmatprep.subr.bf16.mxu1 %v18159_v58 }
 0xa45   :  { %3586 = vmatpush2.bf16.msra.mxu0 %v18160_v59  ;;  %3627 = vmatpush2.bf16.msra.mxu1 %v18161_v60 }
 0xa46   :  { %3587 = vmatprep.subr.bf16.mxu0 %v18162_v62  ;;  %3628 = vmatprep.subr.bf16.mxu1 %v18163_v7 }
 0xa49   :  { %3588 = vmatpush2.bf16.msra.mxu0 %v18164_v8  ;;  %3629 = vmatpush2.bf16.msra.mxu1 %v18165_v29 }
 0xa4a   :  { %3639 = vmatprep.subr.bf16.mxu0 %v18166_v55  ;;  %3680 = vmatprep.subr.bf16.mxu1 %v18167_v56 }
 0xa8c   :  { %v3330_v37 = vpop.f32.mrf.mxu0  ;;  %v3371_v53 = vpop.f32.mrf.mxu1 }
 0xa8d   :  { %v3464_v35 = vrot.slane %v3330_v37, 4  ;;  %v3466_v55 = vrot.slane %v3371_v53, 4 }
 0xa8e   :  { %v3332_v58 = vpop.f32.mrf.mxu0  ;;  %v3373_v6 = vpop.f32.mrf.mxu1 }
 0xa8f   :  { %v3472_v59 = vadd.f32 %v3464_v35, %v13100_v42  ;;  %v3465_v60 = vrot.slane %v3332_v58, 4  ;;  %v3474_v56 = vadd.f32 %v3466_v55, %v13110_v22  ;;  %v3467_v41 = vrot.slane %v3373_v6, 4  ;;  %v18171_v55 = vld [vmem:[#allocation131_spill] sm:$0xff] }
 0xa90   :  { %v3334_v11 = vpop.f32.mrf.mxu0  ;;  %v3375_v62 = vpop.f32.mrf.mxu1 }
 0xa91   :  { %v9806_v43 = vmul.f32 -1.442695, %v3472_v59  ;;  %v3473_v7 = vadd.f32 %v3465_v60, %v13103_v20  ;;  %v9808_v37 = vmul.f32 -1.442695, %v3474_v56  ;;  %v3475_v28 = vadd.f32 %v3467_v41, %v18168_v1  ;;  %v18169_v60 = vld [vmem:[#allocation69_spill] sm:$0xff] }
 0xa92   :  { %v3335_v8 = vpop.f32.mrf.mxu0  ;;  %v3376_v13 = vpop.f32.mrf.mxu1  ;;  %v3531_v53 = vrot.slane %v18169_v60, 6  ;;  %v3795_v56 = vsel %vm981_vm4, %v18171_v55, %v13303_v10 }
 0xa93   :  { %11234 = vpow2.f32 %v9806_v43  ;;  %v9807_v29 = vmul.f32 -1.442695, %v3473_v7 }
 0xa95   :  { %11236 = vpow2.f32 %v9807_v29 }
 0xa96   :  { %11238 = vpow2.f32 %v9808_v37 }
 0xa97   :  { %11240 = vtanh.f32 %v3475_v28 }
 0xaa0   :  { %v11235_v32 = vpop.eup %11234 }
 0xaa1   :  { %v3501_v35 = vadd.f32 1.0, %v11235_v32 }
 0xaa2   :  { %v11237_v11 = vpop.eup %11236 }
 0xaa3   :  { %11242 = vrcp.f32 %v3501_v35  ;;  %v3502_v58 = vadd.f32 1.0, %v11237_v11  ;;  %v11239_v59 = vpop.eup %11238 }
 0xaa4   :  { %v11241_v13 = vpop.eup %11240  ;;  %v3503_v8 = vadd.f32 1.0, %v11239_v59 }
 0xaa5   :  { %11244 = vrcp.f32 %v3502_v58 }
 0xaa6   :  { %11246 = vrcp.f32 %v3503_v8 }
 0xab0   :  { %v11243_v43 = vpop.eup %11242 }
 0xab1   :  { %v3534_v62 = vmul.f32 %v11243_v43, %v11241_v13 }
 0xab2   :  { %v11245_v7 = vpop.eup %11244 }
 0xab3   :  { %v3533_v6 = vmul.f32 %v11245_v7, %v3531_v53  ;;  %v11247_v41 = vpop.eup %11246 }
 0xab5   :  { %v13457_v29 = vadd.f32 %v3534_v62, %v3533_v6 }
 0xab7   :  { %18170 = vst [vmem:[#allocation71_spill] sm:$0xff] %v13457_v29  ;;  %11248 = vtanh.f32 %v13457_v29 }
 0xac4   :  { %v11249_v32 = vpop.eup %11248 }
 0xac5   :  { %v3543_v28 = vmul.f32 %v11249_v32, %v11247_v41 }
 0xac7   :  { %v13464_v37 = vsel %vm233_vm0, %v3795_v56, %v3543_v28 }
 0xac8   :  { %18172 = vst [vmem:[#allocation72_spill] sm:$0xff] %v13464_v37 }
 0xacc   :  { %v3412_v35 = vpop.f32.mrf.mxu0  ;;  %v3453_v11 = vpop.f32.mrf.mxu1 }
 0xacd   :  { %v3480_v58 = vrot.slane %v3412_v35, 6  ;;  %v3482_v32 = vrot.slane %v3453_v11, 6 }
 0xace   :  { %v3414_v59 = vpop.f32.mrf.mxu0  ;;  %v3455_v13 = vpop.f32.mrf.mxu1 }
 0xacf   :  { %v3488_v43 = vadd.f32 %v3480_v58, %v13131_v38  ;;  %v3481_v60 = vrot.slane %v3414_v59, 6  ;;  %v3490_v55 = vadd.f32 %v3482_v32, %v13145_v19  ;;  %v3483_v56 = vrot.slane %v3455_v13, 6 }
 0xad0   :  { %v3416_v53 = vpop.f32.mrf.mxu0  ;;  %v3457_v62 = vpop.f32.mrf.mxu1 }
 0xad1   :  { %v9809_v7 = vmul.f32 -1.442695, %v3488_v43  ;;  %v3489_v8 = vadd.f32 %v3481_v60, %v13137_v34  ;;  %v9811_v35 = vmul.f32 -1.442695, %v3490_v55  ;;  %v3491_v29 = vadd.f32 %v3483_v56, %v13150_v57 }
 0xad2   :  { %v3417_v6 = vpop.f32.mrf.mxu0  ;;  %v3458_v41 = vpop.f32.mrf.mxu1  ;;  %v3549_v55 = vpack.c.bf16 %v3543_v28, %v3543_v28  ;;  %v3854_v28 = vld [vmem:[%s17137_s10 + $0x1a0] sm:$0xff] }
 0xad3   :  { %11250 = vpow2.f32 %v9809_v7  ;;  %v9810_v10 = vmul.f32 -1.442695, %v3489_v8  ;;  %v3537_v7 = vrot.slane %v13310_v50, 2  ;;  %v18181_v50 = vld [vmem:[#allocation92_spill] sm:$0xff] }
 0xad5   :  { %11252 = vpow2.f32 %v9810_v10 }
 0xad6   :  { %11254 = vpow2.f32 %v9811_v35 }
 0xae0   :  { %v11251_v37 = vpop.eup %11250 }
 0xae1   :  { %v3520_v58 = vadd.f32 1.0, %v11251_v37 }
 0xae2   :  { %v11253_v59 = vpop.eup %11252 }
 0xae3   :  { %11256 = vrcp.f32 %v3520_v58  ;;  %v3521_v43 = vadd.f32 1.0, %v11253_v59  ;;  %v11255_v60 = vpop.eup %11254  ;;  %v13477_v58 = vrot.slane %v3549_v55, 2  ;;  %v3851_v59 = vld [vmem:[%s17137_s10 + $0x188] sm:$0xff] }
 0xae4   :  { %11258 = vtanh.f32 %v3491_v29  ;;  %v3522_v8 = vadd.f32 1.0, %v11255_v60  ;;  %v3855_v60 = vld [vmem:[%s17137_s10 + $0x1a8] sm:$0xff] }
 0xae5   :  { %11260 = vrcp.f32 %v3521_v43 }
 0xae6   :  { %11262 = vrcp.f32 %v3522_v8  ;;  %v3846_v8 = vld [vmem:[%s17137_s10 + $0x160] sm:$0xff] }
 0xaf0   :  { %v11257_v53 = vpop.eup %11256 }
 0xaf1   :  { %v11259_v62 = vpop.eup %11258 }
 0xaf2   :  { %v11261_v11 = vpop.eup %11260  ;;  %v3540_v13 = vmul.f32 %v11259_v62, %v11257_v53  ;;  %v9996_v62 = vcombine.low %v3851_v59, %v3855_v60 }
 0xaf3   :  { %v3539_v6 = vmul.f32 %v11261_v11, %v3537_v7  ;;  %v11263_v37 = vpop.eup %11262  ;;  %v9997_v7 = vcombine.high %v3851_v59, %v3855_v60  ;;  %v3842_v11 = vld [vmem:[%s17137_s10 + $0x140] sm:$0xff]  ;;  %v3923_v60 = vld [vmem:[%s17137_s10 + $0x3c8] sm:$0xff] }
 0xaf4   :  { %v3922_v59 = vld [vmem:[%s17137_s10 + $0x3c0] sm:$0xff] }
 0xaf5   :  { %v13471_v41 = vadd.f32 %v3540_v13, %v3539_v6  ;;  %v3843_v6 = vld [vmem:[%s17137_s10 + $0x148] sm:$0xff]  ;;  %v9987_v13 = vcombine.high %v3842_v11, %v3846_v8 }
 0xaf7   :  { %11264 = vtanh.f32 %v13471_v41 }
 0xb04   :  { %v11265_v10 = vpop.eup %11264 }
 0xb05   :  { %v13474_v32 = vmul.f32 %v11265_v10, %v11263_v37  ;;  %v3847_v37 = vld [vmem:[%s17137_s10 + $0x168] sm:$0xff]  ;;  %v9986_v10 = vcombine.low %v3842_v11, %v3846_v8 }
 0xb06   :  { %v9989_v55 = vcombine.high %v3843_v6, %v3847_v37 }
 0xb07   :  { %v3547_v29 = vrot.slane %v13474_v32, 6 }
 0xb09   :  { %v3550_v56 = vpack.c.bf16 %v3547_v29, %v3547_v29  ;;  %v9988_v29 = vcombine.low %v3843_v6, %v3847_v37  ;;  %v3914_v6 = vld [vmem:[%s17137_s10 + $0x380] sm:$0xff]  ;;  %v3915_v37 = vld [vmem:[%s17137_s10 + $0x388] sm:$0xff] }
 0xb0b   :  { %v3554_v35 = vrot.slane %v3550_v56, 2  ;;  %v3834_v56 = vld [vmem:[%s17137_s10 + $0x100] sm:$0xff] }
 0xb0d   :  { %3589 = vmatprep.mubr.bf16.mxu0 %v3554_v35  ;;  %3630 = vmatprep.mubr.bf16.mxu1 %v3554_v35 }
 0xb0e   :  { %3590 = vmatmul.mubr.bf16.vlgmr.msra.gmra.mxu0 %v13477_v58  ;;  %3631 = vmatmul.mubr.bf16.vlgmr.msra.gmra.mxu1 %v13477_v58 }
 0xb0f   :  { %3640 = vmatpush1.bf16.msra.mxu0 %v17980_v3  ;;  %3681 = vmatpush1.bf16.msra.mxu1 %v17981_v0  ;;  %v18173_v3 = vld [vmem:[#allocation84_spill] sm:$0xff]  ;;  %v18174_v0 = vld [vmem:[#allocation85_spill] sm:$0xff] }
 0xb10   :  { %3671 = vmatprep.mubr.bf16.mxu0 %v3554_v35  ;;  %3712 = vmatprep.mubr.bf16.mxu1 %v3554_v35  ;;  %v3838_v35 = vld [vmem:[%s17137_s10 + $0x120] sm:$0xff] }
 0xb11   :  { %3641 = vmatprep.subr.bf16.mxu0 %v17982_v45  ;;  %3682 = vmatprep.subr.bf16.mxu1 %v17983_v52  ;;  %v18175_v45 = vld [vmem:[#allocation86_spill] sm:$0xff]  ;;  %v18176_v52 = vld [vmem:[#allocation87_spill] sm:$0xff] }
 0xb13   :  { %3642 = vmatpush1.bf16.msra.mxu0 %v17984_v4  ;;  %3683 = vmatpush1.bf16.msra.mxu1 %v17985_v36  ;;  %v18177_v4 = vld [vmem:[#allocation88_spill] sm:$0xff]  ;;  %v18178_v36 = vld [vmem:[#allocation89_spill] sm:$0xff] }
 0xb14   :  { %3643 = vmatprep.subr.bf16.mxu0 %v17986_v12  ;;  %3684 = vmatprep.subr.bf16.mxu1 %v17987_v54  ;;  %v18179_v12 = vld [vmem:[#allocation90_spill] sm:$0xff]  ;;  %v18180_v54 = vld [vmem:[#allocation91_spill] sm:$0xff] }
 0xb17   :  { %3644 = vmatpush1.bf16.msra.mxu0 %v18076_v47  ;;  %3685 = vmatpush1.bf16.msra.mxu1 %v18077_v25  ;;  %v18182_v47 = vld [vmem:[#allocation93_spill] sm:$0xff]  ;;  %v18183_v25 = vld [vmem:[#allocation94_spill] sm:$0xff] }
 0xb18   :  { %3645 = vmatprep.subr.bf16.mxu0 %v18078_v49  ;;  %3686 = vmatprep.subr.bf16.mxu1 %v18079_v17  ;;  %v18184_v49 = vld [vmem:[#allocation95_spill] sm:$0xff]  ;;  %v18185_v17 = vld [vmem:[#allocation96_spill] sm:$0xff] }
 0xb1b   :  { %3646 = vmatpush1.bf16.msra.mxu0 %v18080_v18  ;;  %3687 = vmatpush1.bf16.msra.mxu1 %v18081_v39  ;;  %v18186_v18 = vld [vmem:[#allocation97_spill] sm:$0xff]  ;;  %v18187_v39 = vld [vmem:[#allocation98_spill] sm:$0xff] }
 0xb1c   :  { %3647 = vmatprep.subr.bf16.mxu0 %v18082_v26  ;;  %3688 = vmatprep.subr.bf16.mxu1 %v18173_v3  ;;  %v18188_v26 = vld [vmem:[#allocation99_spill] sm:$0xff]  ;;  %v9979_v3 = vcombine.high %v3834_v56, %v3838_v35 }
 0xb1f   :  { %3648 = vmatpush1.bf16.msra.mxu0 %v18174_v0  ;;  %3689 = vmatpush1.bf16.msra.mxu1 %v18175_v45  ;;  %v3839_v0 = vld [vmem:[%s17137_s10 + $0x128] sm:$0xff]  ;;  %v9978_v45 = vcombine.low %v3834_v56, %v3838_v35 }
 0xb20   :  { %3649 = vmatprep.subr.bf16.mxu0 %v18176_v52  ;;  %3690 = vmatprep.subr.bf16.mxu1 %v18177_v4 }
 0xb23   :  { %3650 = vmatpush1.bf16.msra.mxu0 %v18178_v36  ;;  %3691 = vmatpush1.bf16.msra.mxu1 %v18179_v12  ;;  %v3826_v36 = vld [vmem:[%s17137_s10 + $0xc0] sm:$0xff] }
 0xb24   :  { %3651 = vmatprep.subr.bf16.mxu0 %v18180_v54  ;;  %3692 = vmatprep.subr.bf16.mxu1 %v18181_v50  ;;  %v3830_v12 = vld [vmem:[%s17137_s10 + $0xe0] sm:$0xff]  ;;  %v3827_v54 = vld [vmem:[%s17137_s10 + $0xc8] sm:$0xff] }
 0xb25   :  { %v9971_v50 = vcombine.high %v3826_v36, %v3830_v12 }
 0xb27   :  { %3652 = vmatpush1.bf16.msra.mxu0 %v18182_v47  ;;  %3693 = vmatpush1.bf16.msra.mxu1 %v18183_v25  ;;  %v3831_v47 = vld [vmem:[%s17137_s10 + $0xe8] sm:$0xff]  ;;  %v9970_v25 = vcombine.low %v3826_v36, %v3830_v12 }
 0xb28   :  { %3653 = vmatprep.subr.bf16.mxu0 %v18184_v49  ;;  %3694 = vmatprep.subr.bf16.mxu1 %v18185_v17  ;;  %v9972_v49 = vcombine.low %v3827_v54, %v3831_v47  ;;  %v9973_v17 = vcombine.high %v3827_v54, %v3831_v47  ;;  %v3898_v54 = vld [vmem:[%s17137_s10 + $0x300] sm:$0xff]  ;;  %v3899_v47 = vld [vmem:[%s17137_s10 + $0x308] sm:$0xff] }
 0xb2b   :  { %3654 = vmatpush1.bf16.msra.mxu0 %v18186_v18  ;;  %3695 = vmatpush1.bf16.msra.mxu1 %v18187_v39  ;;  %v3818_v18 = vld [vmem:[%s17137_s10 + $0x80] sm:$0xff] }
 0xb2c   :  { %3655 = vmatprep.subr.bf16.mxu0 %v18188_v26  ;;  %3696 = vmatprep.subr.bf16.mxu1 %v18099_v40  ;;  %v3822_v39 = vld [vmem:[%s17137_s10 + $0xa0] sm:$0xff]  ;;  %v3819_v26 = vld [vmem:[%s17137_s10 + $0x88] sm:$0xff] }
 0xb2f   :  { %3656 = vmatpush2.bf16.msra.mxu0 %v18100_v15  ;;  %3697 = vmatpush2.bf16.msra.mxu1 %v18101_v9  ;;  %v3863_v15 = vld [vmem:[%s17137_s10 + $0x1e8] sm:$0xff] }
 0xb30   :  { %3657 = vmatprep.subr.bf16.mxu0 %v18102_v16  ;;  %3698 = vmatprep.subr.bf16.mxu1 %v18103_v44  ;;  %v3850_v44 = vld [vmem:[%s17137_s10 + $0x180] sm:$0xff] }
 0xb31   :  { %v9995_v43 = vcombine.high %v3850_v44, %v3854_v28  ;;  %v9994_v53 = vcombine.low %v3850_v44, %v3854_v28 }
 0xb33   :  { %3658 = vmatpush2.bf16.msra.mxu0 %v18104_v24  ;;  %3699 = vmatpush2.bf16.msra.mxu1 %v18105_v27  ;;  %v18189_v24 = vld [vmem:[#allocation120_spill] sm:$0xff]  ;;  %v18190_v27 = vld [vmem:[#allocation121_spill] sm:$0xff] }
 0xb34   :  { %3659 = vmatprep.subr.bf16.mxu0 %v18106_v48  ;;  %3700 = vmatprep.subr.bf16.mxu1 %v18107_v31  ;;  %v3858_v48 = vld [vmem:[%s17137_s10 + $0x1c0] sm:$0xff] }
 0xb35   :  { %v3862_v31 = vld [vmem:[%s17137_s10 + $0x1e0] sm:$0xff] }
 0xb36   :  { %v10003_v40 = vcombine.high %v3858_v48, %v3862_v31 }
 0xb37   :  { %3660 = vmatpush2.bf16.msra.mxu0 %v18108_v23  ;;  %3701 = vmatpush2.bf16.msra.mxu1 %v18109_v33  ;;  %v3859_v23 = vld [vmem:[%s17137_s10 + $0x1c8] sm:$0xff]  ;;  %v10002_v33 = vcombine.low %v3858_v48, %v3862_v31 }
 0xb38   :  { %3661 = vmatprep.subr.bf16.mxu0 %v18022_v61  ;;  %3702 = vmatprep.subr.bf16.mxu1 %v18023_v63  ;;  %v18191_v61 = vld [vmem:[#allocation122_spill] sm:$0xff]  ;;  %v18192_v63 = vld [vmem:[#allocation123_spill] sm:$0xff]  ;;  %v10004_v9 = vcombine.low %v3859_v23, %v3863_v15  ;;  %v10005_v16 = vcombine.high %v3859_v23, %v3863_v15  ;;  %v3802_v23 = vld [vmem:[%s17137_s10] sm:$0xff] }
 0xb3b   :  { %3662 = vmatpush2.bf16.msra.mxu0 %v18024_v51  ;;  %3703 = vmatpush2.bf16.msra.mxu1 %v18025_v2  ;;  %v18193_v51 = vld [vmem:[#allocation124_spill] sm:$0xff]  ;;  %v18194_v2 = vld [vmem:[#allocation125_spill] sm:$0xff] }
 0xb3c   :  { %3663 = vmatprep.subr.bf16.mxu0 %v18026_v21  ;;  %3704 = vmatprep.subr.bf16.mxu1 %v18027_v5  ;;  %v18195_v21 = vld [vmem:[#allocation126_spill] sm:$0xff]  ;;  %v18196_v5 = vld [vmem:[#allocation127_spill] sm:$0xff] }
 0xb3f   :  { %3664 = vmatpush2.bf16.msra.mxu0 %v18028_v30  ;;  %3705 = vmatpush2.bf16.msra.mxu1 %v18029_v14  ;;  %v18197_v30 = vld [vmem:[#allocation128_spill] sm:$0xff]  ;;  %v18198_v14 = vld [vmem:[#allocation129_spill] sm:$0xff] }
 0xb40   :  { %3665 = vmatprep.subr.bf16.mxu0 %v18030_v46  ;;  %3706 = vmatprep.subr.bf16.mxu1 %v18189_v24  ;;  %v18199_v46 = vld [vmem:[#allocation130_spill] sm:$0xff]  ;;  %v9963_v24 = vcombine.high %v3818_v18, %v3822_v39 }
 0xb43   :  { %3666 = vmatpush2.bf16.msra.mxu0 %v18190_v27  ;;  %3707 = vmatpush2.bf16.msra.mxu1 %v18191_v61  ;;  %v3823_v27 = vld [vmem:[%s17137_s10 + $0xa8] sm:$0xff]  ;;  %v9962_v61 = vcombine.low %v3818_v18, %v3822_v39  ;;  %v3890_v18 = vld [vmem:[%s17137_s10 + $0x2c0] sm:$0xff] }
 0xb44   :  { %3667 = vmatprep.subr.bf16.mxu0 %v18192_v63  ;;  %3708 = vmatprep.subr.bf16.mxu1 %v18193_v51  ;;  %v9964_v63 = vcombine.low %v3819_v26, %v3823_v27  ;;  %v9965_v51 = vcombine.high %v3819_v26, %v3823_v27  ;;  %v3894_v39 = vld [vmem:[%s17137_s10 + $0x2e0] sm:$0xff] }
 0xb45   :  { %v10035_v27 = vcombine.high %v3890_v18, %v3894_v39 }
 0xb47   :  { %3668 = vmatpush2.bf16.msra.mxu0 %v18194_v2  ;;  %3709 = vmatpush2.bf16.msra.mxu1 %v18195_v21  ;;  %v3810_v2 = vld [vmem:[%s17137_s10 + $0x40] sm:$0xff] }
 0xb48   :  { %3669 = vmatprep.subr.bf16.mxu0 %v18196_v5  ;;  %3710 = vmatprep.subr.bf16.mxu1 %v18197_v30  ;;  %v3814_v21 = vld [vmem:[%s17137_s10 + $0x60] sm:$0xff]  ;;  %v3811_v5 = vld [vmem:[%s17137_s10 + $0x48] sm:$0xff] }
 0xb49   :  { %v9955_v30 = vcombine.high %v3810_v2, %v3814_v21 }
 0xb4b   :  { %3670 = vmatpush2.bf16.msra.mxu0 %v18198_v14  ;;  %3711 = vmatpush2.bf16.msra.mxu1 %v18199_v46  ;;  %v3815_v14 = vld [vmem:[%s17137_s10 + $0x68] sm:$0xff]  ;;  %v9954_v46 = vcombine.low %v3810_v2, %v3814_v21  ;;  %v3882_v2 = vld [vmem:[%s17137_s10 + $0x280] sm:$0xff] }
 0xb4c   :  { %4773 = vmatprep.subr.bf16.mxu0 %v10003_v40  ;;  %4814 = vmatprep.subr.bf16.mxu1 %v10005_v16  ;;  %v9956_v48 = vcombine.low %v3811_v5, %v3815_v14  ;;  %v9957_v31 = vcombine.high %v3811_v5, %v3815_v14  ;;  %v3803_v40 = vld [vmem:[%s17137_s10 + $0x8] sm:$0xff]  ;;  %v3886_v21 = vld [vmem:[%s17137_s10 + $0x2a0] sm:$0xff]  ;;  %v10034_v14 = vcombine.low %v3890_v18, %v3894_v39 }
 0xb4d   :  { %v3883_v5 = vld [vmem:[%s17137_s10 + $0x288] sm:$0xff] }
 0xb4e   :  { %3672 = vmatmul.mubr.bf16.vlgmr.msra.gmra.mxu0 %v13477_v58  ;;  %3713 = vmatmul.mubr.bf16.vlgmr.msra.gmra.mxu1 %v13477_v58  ;;  %v3835_v58 = vld [vmem:[%s17137_s10 + $0x108] sm:$0xff] }
 0xb4f   :  { %4774 = vmatpush1.bf16.msra.mxu0 %v10002_v33  ;;  %4815 = vmatpush1.bf16.msra.mxu1 %v10004_v9  ;;  %v9980_v52 = vcombine.low %v3835_v58, %v3839_v0  ;;  %v9981_v4 = vcombine.high %v3835_v58, %v3839_v0  ;;  %v3806_v33 = vld [vmem:[%s17137_s10 + $0x20] sm:$0xff]  ;;  %v3807_v9 = vld [vmem:[%s17137_s10 + $0x28] sm:$0xff] }
 0xb50   :  { %4775 = vmatprep.subr.bf16.mxu0 %v9995_v43  ;;  %4816 = vmatprep.subr.bf16.mxu1 %v9997_v7  ;;  %v9947_v15 = vcombine.high %v3802_v23, %v3806_v33  ;;  %v9946_v16 = vcombine.low %v3802_v23, %v3806_v33  ;;  %v9948_v44 = vcombine.low %v3803_v40, %v3807_v9  ;;  %v3926_v43 = vld [vmem:[%s17137_s10 + $0x3e0] sm:$0xff]  ;;  %v3907_v0 = vld [vmem:[%s17137_s10 + $0x348] sm:$0xff] }
 0xb51   :  { %v9949_v28 = vcombine.high %v3803_v40, %v3807_v9  ;;  %v10066_v7 = vcombine.low %v3922_v59, %v3926_v43  ;;  %v3906_v58 = vld [vmem:[%s17137_s10 + $0x340] sm:$0xff]  ;;  %v3875_v40 = vld [vmem:[%s17137_s10 + $0x248] sm:$0xff]  ;;  %v10026_v9 = vcombine.low %v3882_v2, %v3886_v21 }
 0xb52   :  { %v3874_v23 = vld [vmem:[%s17137_s10 + $0x240] sm:$0xff] }
 0xb53   :  { %4776 = vmatpush1.bf16.msra.mxu0 %v9994_v53  ;;  %4817 = vmatpush1.bf16.msra.mxu1 %v9996_v62  ;;  %v10067_v53 = vcombine.high %v3922_v59, %v3926_v43  ;;  %v3927_v62 = vld [vmem:[%s17137_s10 + $0x3e8] sm:$0xff]  ;;  %v3878_v33 = vld [vmem:[%s17137_s10 + $0x260] sm:$0xff] }
 0xb54   :  { %4777 = vmatprep.subr.bf16.mxu0 %v9987_v13  ;;  %4818 = vmatprep.subr.bf16.mxu1 %v9989_v55  ;;  %v10068_v11 = vcombine.low %v3923_v60, %v3927_v62  ;;  %v10069_v8 = vcombine.high %v3923_v60, %v3927_v62  ;;  %v3918_v13 = vld [vmem:[%s17137_s10 + $0x3a0] sm:$0xff]  ;;  %v3867_v60 = vld [vmem:[%s17137_s10 + $0x208] sm:$0xff]  ;;  %v10018_v62 = vcombine.low %v3874_v23, %v3878_v33 }
 0xb55   :  { %v10058_v55 = vcombine.low %v3914_v6, %v3918_v13  ;;  %v3866_v59 = vld [vmem:[%s17137_s10 + $0x200] sm:$0xff] }
 0xb56   :  { %v3870_v43 = vld [vmem:[%s17137_s10 + $0x220] sm:$0xff] }
 0xb57   :  { %4778 = vmatpush1.bf16.msra.mxu0 %v9986_v10  ;;  %4819 = vmatpush1.bf16.msra.mxu1 %v9988_v29  ;;  %v10059_v10 = vcombine.high %v3914_v6, %v3918_v13  ;;  %v3919_v29 = vld [vmem:[%s17137_s10 + $0x3a8] sm:$0xff]  ;;  %v10010_v6 = vcombine.low %v3866_v59, %v3870_v43 }
 0xb58   :  { %4779 = vmatprep.subr.bf16.mxu0 %v9979_v3  ;;  %4820 = vmatprep.subr.bf16.mxu1 %v9981_v4  ;;  %v10060_v56 = vcombine.low %v3915_v37, %v3919_v29  ;;  %v10061_v35 = vcombine.high %v3915_v37, %v3919_v29  ;;  %v3910_v3 = vld [vmem:[%s17137_s10 + $0x360] sm:$0xff]  ;;  %v13740_v37 = vld [vmem:[%s17137_s10 + $0x1d0] sm:$0xff]  ;;  %v13750_v29 = vld [vmem:[%s17137_s10 + $0x1d8] sm:$0xff] }
 0xb59   :  { %v10050_v4 = vcombine.low %v3906_v58, %v3910_v3 }
 0xb5b   :  { %4780 = vmatpush1.bf16.msra.mxu0 %v9978_v45  ;;  %4821 = vmatpush1.bf16.msra.mxu1 %v9980_v52  ;;  %v10051_v45 = vcombine.high %v3906_v58, %v3910_v3  ;;  %v3911_v52 = vld [vmem:[%s17137_s10 + $0x368] sm:$0xff] }
 0xb5c   :  { %4781 = vmatprep.subr.bf16.mxu0 %v9971_v50  ;;  %4822 = vmatprep.subr.bf16.mxu1 %v9973_v17  ;;  %v10052_v36 = vcombine.low %v3907_v0, %v3911_v52  ;;  %v10053_v12 = vcombine.high %v3907_v0, %v3911_v52  ;;  %v3902_v50 = vld [vmem:[%s17137_s10 + $0x320] sm:$0xff]  ;;  %v3903_v17 = vld [vmem:[%s17137_s10 + $0x328] sm:$0xff] }
 0xb5d   :  { %v10044_v26 = vcombine.low %v3899_v47, %v3903_v17 }
 0xb5f   :  { %4782 = vmatpush1.bf16.msra.mxu0 %v9970_v25  ;;  %4823 = vmatpush1.bf16.msra.mxu1 %v9972_v49  ;;  %v10042_v25 = vcombine.low %v3898_v54, %v3902_v50  ;;  %v10043_v49 = vcombine.high %v3898_v54, %v3902_v50 }
 0xb60   :  { %4783 = vmatprep.subr.bf16.mxu0 %v9963_v24  ;;  %4824 = vmatprep.subr.bf16.mxu1 %v9965_v51  ;;  %v10045_v24 = vcombine.high %v3899_v47, %v3903_v17 }
 0xb63   :  { %4784 = vmatpush1.bf16.msra.mxu0 %v9962_v61  ;;  %4825 = vmatpush1.bf16.msra.mxu1 %v9964_v63  ;;  %v3891_v61 = vld [vmem:[%s17137_s10 + $0x2c8] sm:$0xff] }
 0xb64   :  { %4785 = vmatprep.subr.bf16.mxu0 %v9955_v30  ;;  %4826 = vmatprep.subr.bf16.mxu1 %v9957_v31  ;;  %v3895_v63 = vld [vmem:[%s17137_s10 + $0x2e8] sm:$0xff] }
 0xb65   :  { %v10037_v51 = vcombine.high %v3891_v61, %v3895_v63  ;;  %v3887_v30 = vld [vmem:[%s17137_s10 + $0x2a8] sm:$0xff] }
 0xb66   :  { %v10029_v31 = vcombine.high %v3883_v5, %v3887_v30 }
 0xb67   :  { %4786 = vmatpush1.bf16.msra.mxu0 %v9954_v46  ;;  %4827 = vmatpush1.bf16.msra.mxu1 %v9956_v48  ;;  %v10036_v46 = vcombine.low %v3891_v61, %v3895_v63  ;;  %v10027_v48 = vcombine.high %v3882_v2, %v3886_v21 }
 0xb68   :  { %4787 = vmatprep.subr.bf16.mxu0 %v9947_v15  ;;  %4828 = vmatprep.subr.bf16.mxu1 %v9949_v28  ;;  %v3879_v15 = vld [vmem:[%s17137_s10 + $0x268] sm:$0xff] }
 0xb69   :  { %v10021_v28 = vcombine.high %v3875_v40, %v3879_v15 }
 0xb6b   :  { %4788 = vmatpush1.bf16.msra.mxu0 %v9946_v16  ;;  %4829 = vmatpush1.bf16.msra.mxu1 %v9948_v44  ;;  %v10028_v16 = vcombine.low %v3883_v5, %v3887_v30  ;;  %v10019_v44 = vcombine.high %v3874_v23, %v3878_v33 }
 0xb6c   :  { %4789 = vmatprep.subr.bf16.mxu0 %v10067_v53  ;;  %4830 = vmatprep.subr.bf16.mxu1 %v10069_v8  ;;  %v3871_v53 = vld [vmem:[%s17137_s10 + $0x228] sm:$0xff] }
 0xb6d   :  { %v10013_v8 = vcombine.high %v3867_v60, %v3871_v53  ;;  %v10012_v13 = vcombine.low %v3867_v60, %v3871_v53 }
 0xb6f   :  { %4790 = vmatpush2.bf16.msra.mxu0 %v10066_v7  ;;  %4831 = vmatpush2.bf16.msra.mxu1 %v10068_v11  ;;  %v10020_v7 = vcombine.low %v3875_v40, %v3879_v15  ;;  %v10011_v11 = vcombine.high %v3866_v59, %v3870_v43 }
 0xb70   :  { %4791 = vmatprep.subr.bf16.mxu0 %v10059_v10  ;;  %4832 = vmatprep.subr.bf16.mxu1 %v10061_v35  ;;  %v13745_v10 = vld [vmem:[%s17137_s10 + $0x1f0] sm:$0xff]  ;;  %v13759_v35 = vld [vmem:[%s17137_s10 + $0x1f8] sm:$0xff] }
 0xb71   :  { %v10008_v0 = vcombine.low %v13750_v29, %v13759_v35 }
 0xb73   :  { %4792 = vmatpush2.bf16.msra.mxu0 %v10058_v55  ;;  %4833 = vmatpush2.bf16.msra.mxu1 %v10060_v56  ;;  %v10006_v55 = vcombine.low %v13740_v37, %v13745_v10  ;;  %v10007_v56 = vcombine.high %v13740_v37, %v13745_v10  ;;  %v3840_v37 = vld [vmem:[%s17137_s10 + $0x130] sm:$0xff]  ;;  %v3837_v10 = vld [vmem:[%s17137_s10 + $0x118] sm:$0xff] }
 0xb74   :  { %4793 = vmatprep.subr.bf16.mxu0 %v10051_v45  ;;  %4834 = vmatprep.subr.bf16.mxu1 %v10053_v12  ;;  %v10009_v45 = vcombine.high %v13750_v29, %v13759_v35  ;;  %v3841_v29 = vld [vmem:[%s17137_s10 + $0x138] sm:$0xff] }
 0xb77   :  { %4794 = vmatpush2.bf16.msra.mxu0 %v10050_v4  ;;  %4835 = vmatpush2.bf16.msra.mxu1 %v10052_v36 }
 0xb78   :  { %4795 = vmatprep.subr.bf16.mxu0 %v10043_v49  ;;  %4836 = vmatprep.subr.bf16.mxu1 %v10045_v24 }
 0xb7b   :  { %4796 = vmatpush2.bf16.msra.mxu0 %v10042_v25  ;;  %4837 = vmatpush2.bf16.msra.mxu1 %v10044_v26 }
 0xb7c   :  { %4797 = vmatprep.subr.bf16.mxu0 %v10035_v27  ;;  %4838 = vmatprep.subr.bf16.mxu1 %v10037_v51 }
 0xb7f   :  { %4798 = vmatpush2.bf16.msra.mxu0 %v10034_v14  ;;  %4839 = vmatpush2.bf16.msra.mxu1 %v10036_v46  ;;  %v18200_v14 = vld [vmem:[#allocation71_spill] sm:$0xff] }
 0xb80   :  { %4799 = vmatprep.subr.bf16.mxu0 %v10027_v48  ;;  %4840 = vmatprep.subr.bf16.mxu1 %v10029_v31  ;;  %v3780_v46 = vrot.slane %v18200_v14, 6  ;;  %v3845_v14 = vld [vmem:[%s17137_s10 + $0x158] sm:$0xff] }
 0xb83   :  { %4800 = vmatpush2.bf16.msra.mxu0 %v10026_v9  ;;  %4841 = vmatpush2.bf16.msra.mxu1 %v10028_v16  ;;  %v18201_v9 = vld [vmem:[#allocation72_spill] sm:$0xff] }
 0xb84   :  { %4801 = vmatprep.subr.bf16.mxu0 %v10019_v44  ;;  %4842 = vmatprep.subr.bf16.mxu1 %v10021_v28 }
 0xb87   :  { %4802 = vmatpush2.bf16.msra.mxu0 %v10018_v62  ;;  %4843 = vmatpush2.bf16.msra.mxu1 %v10020_v7 }
 0xb88   :  { %4803 = vmatprep.subr.bf16.mxu0 %v10011_v11  ;;  %4844 = vmatprep.subr.bf16.mxu1 %v10013_v8 }
 0xb8b   :  { %4804 = vmatpush2.bf16.msra.mxu0 %v10010_v6  ;;  %4845 = vmatpush2.bf16.msra.mxu1 %v10012_v13 }
 0xb8c   :  { %4855 = vmatprep.subr.bf16.mxu0 %v10007_v56  ;;  %4896 = vmatprep.subr.bf16.mxu1 %v10009_v45 }
 0xbce   :  { %v3591_v58 = vpop.f32.mrf.mxu0  ;;  %v3632_v3 = vpop.f32.mrf.mxu1 }
 0xbcf   :  { %v3725_v52 = vrot.slane %v3591_v58, 2  ;;  %v3727_v26 = vrot.slane %v3632_v3, 2 }
 0xbd0   :  { %v3593_v4 = vpop.f32.mrf.mxu0  ;;  %v3634_v36 = vpop.f32.mrf.mxu1 }
 0xbd1   :  { %v3733_v12 = vadd.f32 %v3725_v52, %v13100_v42  ;;  %v3726_v54 = vrot.slane %v3593_v4, 2  ;;  %v3735_v24 = vadd.f32 %v3727_v26, %v13110_v22  ;;  %v3728_v27 = vrot.slane %v3634_v36, 2  ;;  %v18202_v26 = vld [vmem:[#allocation70_spill] sm:$0xff] }
 0xbd2   :  { %v3595_v50 = vpop.f32.mrf.mxu0  ;;  %v3636_v47 = vpop.f32.mrf.mxu1 }
 0xbd3   :  { %v9812_v25 = vmul.f32 -1.442695, %v3733_v12  ;;  %v3734_v49 = vadd.f32 %v3726_v54, %v13103_v20  ;;  %v9814_v61 = vmul.f32 -1.442695, %v3735_v24  ;;  %v3736_v63 = vadd.f32 %v3728_v27, %v18168_v1  ;;  %v18203_v27 = vld [vmem:[#allocation132_spill] sm:$0xff] }
 0xbd4   :  { %v3596_v17 = vpop.f32.mrf.mxu0  ;;  %v3637_v18 = vpop.f32.mrf.mxu1  ;;  %v3786_v54 = vrot.slane %v13471_v41, 2  ;;  %v3852_v41 = vld [vmem:[%s17137_s10 + $0x190] sm:$0xff] }
 0xbd5   :  { %11266 = vpow2.f32 %v9812_v25  ;;  %v9813_v39 = vmul.f32 -1.442695, %v3734_v49 }
 0xbd7   :  { %11268 = vpow2.f32 %v9813_v39 }
 0xbd8   :  { %11270 = vpow2.f32 %v9814_v61 }
 0xbd9   :  { %11272 = vtanh.f32 %v3736_v63  ;;  %v3856_v63 = vld [vmem:[%s17137_s10 + $0x1b0] sm:$0xff] }
 0xbe2   :  { %v11267_v51 = vpop.eup %11266 }
 0xbe3   :  { %v3750_v42 = vadd.f32 1.0, %v11267_v51  ;;  %v3853_v51 = vld [vmem:[%s17137_s10 + $0x198] sm:$0xff] }
 0xbe4   :  { %v11269_v2 = vpop.eup %11268 }
 0xbe5   :  { %11274 = vrcp.f32 %v3750_v42  ;;  %v3751_v21 = vadd.f32 1.0, %v11269_v2  ;;  %v11271_v20 = vpop.eup %11270 }
 0xbe6   :  { %v11273_v5 = vpop.eup %11272  ;;  %v3752_v22 = vadd.f32 1.0, %v11271_v20  ;;  %v9999_v20 = vcombine.high %v3852_v41, %v3856_v63 }
 0xbe7   :  { %11276 = vrcp.f32 %v3751_v21  ;;  %v3844_v21 = vld [vmem:[%s17137_s10 + $0x150] sm:$0xff] }
 0xbe8   :  { %11278 = vrcp.f32 %v3752_v22 }
 0xbf2   :  { %v11275_v30 = vpop.eup %11274 }
 0xbf3   :  { %v3783_v48 = vmul.f32 %v11275_v30, %v11273_v5  ;;  %v3848_v30 = vld [vmem:[%s17137_s10 + $0x170] sm:$0xff] }
 0xbf4   :  { %v11277_v31 = vpop.eup %11276  ;;  %v9991_v22 = vcombine.high %v3844_v21, %v3848_v30 }
 0xbf5   :  { %v3782_v23 = vmul.f32 %v11277_v31, %v3780_v46  ;;  %v11279_v1 = vpop.eup %11278  ;;  %v3849_v46 = vld [vmem:[%s17137_s10 + $0x178] sm:$0xff] }
 0xbf6   :  { %v9992_v35 = vcombine.low %v3845_v14, %v3849_v46 }
 0xbf7   :  { %v3784_v33 = vadd.f32 %v3783_v48, %v3782_v23  ;;  %v9998_v48 = vcombine.low %v3852_v41, %v3856_v63  ;;  %v9993_v23 = vcombine.high %v3845_v14, %v3849_v46  ;;  %v3920_v63 = vld [vmem:[%s17137_s10 + $0x3b0] sm:$0xff]  ;;  %v3909_v46 = vld [vmem:[%s17137_s10 + $0x358] sm:$0xff] }
 0xbf8   :  { %v3912_v14 = vld [vmem:[%s17137_s10 + $0x370] sm:$0xff] }
 0xbf9   :  { %11280 = vtanh.f32 %v3784_v33  ;;  %v3836_v33 = vld [vmem:[%s17137_s10 + $0x110] sm:$0xff] }
 0xc06   :  { %v11281_v40 = vpop.eup %11280 }
 0xc07   :  { %v3792_v15 = vmul.f32 %v11281_v40, %v11279_v1  ;;  %v9985_v1 = vcombine.high %v3837_v10, %v3841_v29  ;;  %v3828_v40 = vld [vmem:[%s17137_s10 + $0xd0] sm:$0xff] }
 0xc09   :  { %v3800_v16 = vsel %vm3799_vm8, %v18201_v9, %v3792_v15  ;;  %v3832_v15 = vld [vmem:[%s17137_s10 + $0xf0] sm:$0xff]  ;;  %v3829_v9 = vld [vmem:[%s17137_s10 + $0xd8] sm:$0xff] }
 0xc0a   :  { %v13795_v2 = vpack.c.bf16 %v3800_v16, %v3800_v16  ;;  %v3833_v16 = vld [vmem:[%s17137_s10 + $0xf8] sm:$0xff] }
 0xc0e   :  { %v3673_v44 = vpop.f32.mrf.mxu0  ;;  %v3714_v28 = vpop.f32.mrf.mxu1 }
 0xc0f   :  { %v3737_v59 = vadd.f32 %v3673_v44, %v13131_v38  ;;  %v3739_v56 = vadd.f32 %v3714_v28, %v13145_v19  ;;  %v9982_v44 = vcombine.low %v3836_v33, %v3840_v37  ;;  %v9984_v28 = vcombine.low %v3837_v10, %v3841_v29  ;;  %v3904_v10 = vld [vmem:[%s17137_s10 + $0x330] sm:$0xff]  ;;  %v3901_v29 = vld [vmem:[%s17137_s10 + $0x318] sm:$0xff] }
 0xc10   :  { %v3675_v43 = vpop.f32.mrf.mxu0  ;;  %v3716_v60 = vpop.f32.mrf.mxu1 }
 0xc11   :  { %v9815_v53 = vmul.f32 -1.442695, %v3737_v59  ;;  %v3738_v62 = vadd.f32 %v3675_v43, %v13137_v34  ;;  %v9817_v58 = vmul.f32 -1.442695, %v3739_v56  ;;  %v3740_v45 = vadd.f32 %v3716_v60, %v13150_v57  ;;  %v3820_v60 = vld [vmem:[%s17137_s10 + $0x90] sm:$0xff] }
 0xc12   :  { %v3677_v7 = vpop.f32.mrf.mxu0  ;;  %v3718_v11 = vpop.f32.mrf.mxu1  ;;  %v9975_v59 = vcombine.high %v3828_v40, %v3832_v15  ;;  %v9977_v43 = vcombine.high %v3829_v9, %v3833_v16  ;;  %v3812_v56 = vld [vmem:[%s17137_s10 + $0x50] sm:$0xff] }
 0xc13   :  { %11282 = vpow2.f32 %v9815_v53  ;;  %v9816_v8 = vmul.f32 -1.442695, %v3738_v62  ;;  %v3824_v53 = vld [vmem:[%s17137_s10 + $0xb0] sm:$0xff]  ;;  %v3821_v62 = vld [vmem:[%s17137_s10 + $0x98] sm:$0xff]  ;;  %v9974_v11 = vcombine.low %v3828_v40, %v3832_v15 }
 0xc14   :  { %v3678_v6 = vpop.f32.mrf.mxu0  ;;  %v3719_v13 = vpop.f32.mrf.mxu1  ;;  %v3825_v7 = vld [vmem:[%s17137_s10 + $0xb8] sm:$0xff]  ;;  %v3892_v15 = vld [vmem:[%s17137_s10 + $0x2d0] sm:$0xff] }
 0xc15   :  { %11284 = vpow2.f32 %v9816_v8  ;;  %v9976_v8 = vcombine.low %v3829_v9, %v3833_v16  ;;  %v9967_v6 = vcombine.high %v3820_v60, %v3824_v53  ;;  %v9969_v13 = vcombine.high %v3821_v62, %v3825_v7  ;;  %v3896_v9 = vld [vmem:[%s17137_s10 + $0x2f0] sm:$0xff]  ;;  %v3893_v16 = vld [vmem:[%s17137_s10 + $0x2d8] sm:$0xff] }
 0xc16   :  { %11286 = vpow2.f32 %v9817_v58  ;;  %v3816_v58 = vld [vmem:[%s17137_s10 + $0x70] sm:$0xff] }
 0xc20   :  { %v11283_v3 = vpop.eup %11282 }
 0xc21   :  { %v3769_v52 = vadd.f32 1.0, %v11283_v3  ;;  %v3813_v3 = vld [vmem:[%s17137_s10 + $0x58] sm:$0xff] }
 0xc22   :  { %v11285_v38 = vpop.eup %11284 }
 0xc23   :  { %11288 = vrcp.f32 %v3769_v52  ;;  %v3770_v4 = vadd.f32 1.0, %v11285_v38  ;;  %v11287_v34 = vpop.eup %11286  ;;  %v9966_v52 = vcombine.low %v3820_v60, %v3824_v53  ;;  %v9968_v38 = vcombine.low %v3821_v62, %v3825_v7  ;;  %v3884_v53 = vld [vmem:[%s17137_s10 + $0x290] sm:$0xff]  ;;  %v3885_v7 = vld [vmem:[%s17137_s10 + $0x298] sm:$0xff] }
 0xc24   :  { %11290 = vtanh.f32 %v3740_v45  ;;  %v3771_v47 = vadd.f32 1.0, %v11287_v34  ;;  %v3817_v45 = vld [vmem:[%s17137_s10 + $0x78] sm:$0xff]  ;;  %v3888_v62 = vld [vmem:[%s17137_s10 + $0x2b0] sm:$0xff] }
 0xc25   :  { %11292 = vrcp.f32 %v3770_v4  ;;  %v9959_v4 = vcombine.high %v3812_v56, %v3816_v58  ;;  %v9961_v34 = vcombine.high %v3813_v3, %v3817_v45 }
 0xc26   :  { %11294 = vrcp.f32 %v3771_v47  ;;  %v9958_v47 = vcombine.low %v3812_v56, %v3816_v58  ;;  %v3876_v58 = vld [vmem:[%s17137_s10 + $0x250] sm:$0xff] }
 0xc30   :  { %v11289_v36 = vpop.eup %11288 }
 0xc31   :  { %v11291_v12 = vpop.eup %11290 }
 0xc32   :  { %v11293_v50 = vpop.eup %11292  ;;  %v3789_v19 = vmul.f32 %v11291_v12, %v11289_v36  ;;  %v3804_v36 = vld [vmem:[%s17137_s10 + $0x10] sm:$0xff] }
 0xc33   :  { %v3788_v25 = vmul.f32 %v11293_v50, %v3786_v54  ;;  %v11295_v57 = vpop.eup %11294  ;;  %v3808_v12 = vld [vmem:[%s17137_s10 + $0x30] sm:$0xff]  ;;  %v3805_v54 = vld [vmem:[%s17137_s10 + $0x18] sm:$0xff] }
 0xc34   :  { %v3809_v50 = vld [vmem:[%s17137_s10 + $0x38] sm:$0xff] }
 0xc35   :  { %v3790_v49 = vadd.f32 %v3789_v19, %v3788_v25  ;;  %v9960_v25 = vcombine.low %v3813_v3, %v3817_v45  ;;  %v9951_v19 = vcombine.high %v3804_v36, %v3808_v12  ;;  %v3880_v3 = vld [vmem:[%s17137_s10 + $0x270] sm:$0xff]  ;;  %v3877_v45 = vld [vmem:[%s17137_s10 + $0x258] sm:$0xff] }
 0xc37   :  { %11296 = vtanh.f32 %v3790_v49  ;;  %v9953_v49 = vcombine.high %v3805_v54, %v3809_v50 }
 0xc44   :  { %v11297_v17 = vpop.eup %11296 }
 0xc45   :  { %v3794_v18 = vmul.f32 %v11297_v17, %v11295_v57  ;;  %v3924_v57 = vld [vmem:[%s17137_s10 + $0x3d0] sm:$0xff] }
 0xc46   :  { %v3928_v17 = vld [vmem:[%s17137_s10 + $0x3f0] sm:$0xff] }
 0xc47   :  { %v3796_v39 = vsel %vm981_vm4, %v3794_v18, %v13474_v32  ;;  %v3857_v32 = vld [vmem:[%s17137_s10 + $0x1b8] sm:$0xff]  ;;  %v10071_v41 = vcombine.high %v3924_v57, %v3928_v17 }
 0xc48   :  { %v3798_v24 = vsel %vm233_vm0, %v3796_v39, %v18202_v26  ;;  %v10001_v5 = vcombine.high %v3853_v51, %v3857_v32  ;;  %v10000_v31 = vcombine.low %v3853_v51, %v3857_v32  ;;  %v3925_v18 = vld [vmem:[%s17137_s10 + $0x3d8] sm:$0xff]  ;;  %v9950_v26 = vcombine.low %v3804_v36, %v3808_v12  ;;  %v3868_v12 = vld [vmem:[%s17137_s10 + $0x210] sm:$0xff] }
 0xc49   :  { %v3801_v61 = vsel %vm3799_vm8, %v3798_v24, %v18203_v27  ;;  %v3929_v39 = vld [vmem:[%s17137_s10 + $0x3f8] sm:$0xff]  ;;  %v9952_v24 = vcombine.low %v3805_v54, %v3809_v50  ;;  %v3872_v54 = vld [vmem:[%s17137_s10 + $0x230] sm:$0xff] }
 0xc4a   :  { %v4060_v42 = vpack.c.bf16 %v3801_v61, %v3801_v61  ;;  %v10073_v27 = vcombine.high %v3925_v18, %v3929_v39  ;;  %v3916_v61 = vld [vmem:[%s17137_s10 + $0x390] sm:$0xff]  ;;  %v3917_v51 = vld [vmem:[%s17137_s10 + $0x398] sm:$0xff] }
 0xc4b   :  { %v3921_v32 = vld [vmem:[%s17137_s10 + $0x3b8] sm:$0xff] }
 0xc4c   :  { %4805 = vmatprep.mubr.bf16.mxu0 %v4060_v42  ;;  %4846 = vmatprep.mubr.bf16.mxu1 %v4060_v42  ;;  %v3869_v50 = vld [vmem:[%s17137_s10 + $0x218] sm:$0xff] }
 0xc4d   :  { %4806 = vmatmul.mubr.bf16.vlgmr.msra.gmra.mxu0 %v13795_v2  ;;  %4847 = vmatmul.mubr.bf16.vlgmr.msra.gmra.mxu1 %v13795_v2 }
 0xc4e   :  { %4856 = vmatpush1.bf16.msra.mxu0 %v10006_v55  ;;  %4897 = vmatpush1.bf16.msra.mxu1 %v10008_v0  ;;  %v9990_v55 = vcombine.low %v3844_v21, %v3848_v30  ;;  %v9983_v0 = vcombine.high %v3836_v33, %v3840_v37  ;;  %v10072_v21 = vcombine.low %v3925_v18, %v3929_v39  ;;  %v3908_v30 = vld [vmem:[%s17137_s10 + $0x350] sm:$0xff]  ;;  %v9878_v18 = vld [vmem:[%s17138_s11 + $0x5e0] sm:$0xff]  ;;  %v9875_v39 = vld [vmem:[%s17138_s11 + $0x5c8] sm:$0xff] }
 0xc4f   :  { %4887 = vmatprep.mubr.bf16.mxu0 %v4060_v42  ;;  %4928 = vmatprep.mubr.bf16.mxu1 %v4060_v42  ;;  %v10070_v42 = vcombine.low %v3924_v57, %v3928_v17  ;;  %v3900_v37 = vld [vmem:[%s17137_s10 + $0x310] sm:$0xff]  ;;  %v9874_v17 = vld [vmem:[%s17138_s11 + $0x5c0] sm:$0xff] }
 0xc50   :  { %4857 = vmatprep.subr.bf16.mxu0 %v9999_v20  ;;  %4898 = vmatprep.subr.bf16.mxu1 %v10001_v5  ;;  %v10063_v20 = vcombine.high %v3916_v61, %v3920_v63  ;;  %v10065_v5 = vcombine.high %v3917_v51, %v3921_v32 }
 0xc52   :  { %4858 = vmatpush1.bf16.msra.mxu0 %v9998_v48  ;;  %4899 = vmatpush1.bf16.msra.mxu1 %v10000_v31  ;;  %v3913_v48 = vld [vmem:[%s17137_s10 + $0x378] sm:$0xff]  ;;  %v10062_v31 = vcombine.low %v3916_v61, %v3920_v63  ;;  %v9866_v63 = vld [vmem:[%s17138_s11 + $0x580] sm:$0xff] }
 0xc53   :  { %4859 = vmatprep.subr.bf16.mxu0 %v9991_v22  ;;  %4900 = vmatprep.subr.bf16.mxu1 %v9993_v23  ;;  %v10064_v22 = vcombine.low %v3917_v51, %v3921_v32  ;;  %v10055_v23 = vcombine.high %v3908_v30, %v3912_v14  ;;  %v10057_v33 = vcombine.high %v3909_v46, %v3913_v48  ;;  %v9870_v51 = vld [vmem:[%s17138_s11 + $0x5a0] sm:$0xff]  ;;  %v9867_v32 = vld [vmem:[%s17138_s11 + $0x588] sm:$0xff] }
 0xc56   :  { %4860 = vmatpush1.bf16.msra.mxu0 %v9990_v55  ;;  %4901 = vmatpush1.bf16.msra.mxu1 %v9992_v35  ;;  %v3905_v55 = vld [vmem:[%s17137_s10 + $0x338] sm:$0xff]  ;;  %v10054_v35 = vcombine.low %v3908_v30, %v3912_v14  ;;  %v9858_v14 = vld [vmem:[%s17138_s11 + $0x540] sm:$0xff] }
 0xc57   :  { %4861 = vmatprep.subr.bf16.mxu0 %v9983_v0  ;;  %4902 = vmatprep.subr.bf16.mxu1 %v9985_v1  ;;  %v10056_v0 = vcombine.low %v3909_v46, %v3913_v48  ;;  %v10047_v1 = vcombine.high %v3900_v37, %v3904_v10  ;;  %v10049_v40 = vcombine.high %v3901_v29, %v3905_v55  ;;  %v9862_v46 = vld [vmem:[%s17138_s11 + $0x560] sm:$0xff]  ;;  %v9859_v48 = vld [vmem:[%s17138_s11 + $0x548] sm:$0xff] }
 0xc5a   :  { %4862 = vmatpush1.bf16.msra.mxu0 %v9982_v44  ;;  %4903 = vmatpush1.bf16.msra.mxu1 %v9984_v28  ;;  %v3897_v44 = vld [vmem:[%s17137_s10 + $0x2f8] sm:$0xff]  ;;  %v10046_v28 = vcombine.low %v3900_v37, %v3904_v10  ;;  %v9854_v10 = vld [vmem:[%s17138_s11 + $0x520] sm:$0xff] }
 0xc5b   :  { %4863 = vmatprep.subr.bf16.mxu0 %v9975_v59  ;;  %4904 = vmatprep.subr.bf16.mxu1 %v9977_v43  ;;  %v10048_v59 = vcombine.low %v3901_v29, %v3905_v55  ;;  %v10039_v43 = vcombine.high %v3892_v15, %v3896_v9  ;;  %v10041_v60 = vcombine.high %v3893_v16, %v3897_v44  ;;  %v9851_v29 = vld [vmem:[%s17138_s11 + $0x508] sm:$0xff] }
 0xc5c   :  { %v9855_v55 = vld [vmem:[%s17138_s11 + $0x528] sm:$0xff] }
 0xc5e   :  { %4864 = vmatpush1.bf16.msra.mxu0 %v9974_v11  ;;  %4905 = vmatpush1.bf16.msra.mxu1 %v9976_v8  ;;  %v3889_v11 = vld [vmem:[%s17137_s10 + $0x2b8] sm:$0xff]  ;;  %v10038_v8 = vcombine.low %v3892_v15, %v3896_v9  ;;  %v14061_v15 = vcombine.high %v9851_v29, %v9855_v55  ;;  %v9842_v9 = vld [vmem:[%s17138_s11 + $0x4c0] sm:$0xff] }
 0xc5f   :  { %4865 = vmatprep.subr.bf16.mxu0 %v9967_v6  ;;  %4906 = vmatprep.subr.bf16.mxu1 %v9969_v13  ;;  %v10040_v6 = vcombine.low %v3893_v16, %v3897_v44  ;;  %v10031_v13 = vcombine.high %v3884_v53, %v3888_v62  ;;  %v10033_v56 = vcombine.high %v3885_v7, %v3889_v11  ;;  %v9846_v16 = vld [vmem:[%s17138_s11 + $0x4e0] sm:$0xff]  ;;  %v9843_v44 = vld [vmem:[%s17138_s11 + $0x4c8] sm:$0xff] }
 0xc60   :  { %18209 = vst [vmem:[#allocation111_spill] sm:$0xff] %v14061_v15 }
 0xc62   :  { %4866 = vmatpush1.bf16.msra.mxu0 %v9966_v52  ;;  %4907 = vmatpush1.bf16.msra.mxu1 %v9968_v38  ;;  %v3881_v52 = vld [vmem:[%s17137_s10 + $0x278] sm:$0xff]  ;;  %v10030_v38 = vcombine.low %v3884_v53, %v3888_v62  ;;  %v9834_v62 = vld [vmem:[%s17138_s11 + $0x480] sm:$0xff] }
 0xc63   :  { %4867 = vmatprep.subr.bf16.mxu0 %v9959_v4  ;;  %4908 = vmatprep.subr.bf16.mxu1 %v9961_v34  ;;  %v10032_v4 = vcombine.low %v3885_v7, %v3889_v11  ;;  %v10023_v34 = vcombine.high %v3876_v58, %v3880_v3  ;;  %v10025_v36 = vcombine.high %v3877_v45, %v3881_v52  ;;  %v9838_v7 = vld [vmem:[%s17138_s11 + $0x4a0] sm:$0xff]  ;;  %v9835_v11 = vld [vmem:[%s17138_s11 + $0x488] sm:$0xff] }
 0xc66   :  { %4868 = vmatpush1.bf16.msra.mxu0 %v9958_v47  ;;  %4909 = vmatpush1.bf16.msra.mxu1 %v9960_v25  ;;  %v3873_v47 = vld [vmem:[%s17137_s10 + $0x238] sm:$0xff]  ;;  %v10022_v25 = vcombine.low %v3876_v58, %v3880_v3  ;;  %v9826_v3 = vld [vmem:[%s17138_s11 + $0x440] sm:$0xff] }
 0xc67   :  { %4869 = vmatprep.subr.bf16.mxu0 %v9951_v19  ;;  %4910 = vmatprep.subr.bf16.mxu1 %v9953_v49  ;;  %v10024_v19 = vcombine.low %v3877_v45, %v3881_v52  ;;  %v10015_v49 = vcombine.high %v3868_v12, %v3872_v54  ;;  %v10017_v57 = vcombine.high %v3869_v50, %v3873_v47  ;;  %v9830_v45 = vld [vmem:[%s17138_s11 + $0x460] sm:$0xff]  ;;  %v9827_v52 = vld [vmem:[%s17138_s11 + $0x448] sm:$0xff] }
 0xc6a   :  { %4870 = vmatpush1.bf16.msra.mxu0 %v9950_v26  ;;  %4911 = vmatpush1.bf16.msra.mxu1 %v9952_v24  ;;  %v9879_v26 = vld [vmem:[%s17138_s11 + $0x5e8] sm:$0xff]  ;;  %v10014_v24 = vcombine.low %v3868_v12, %v3872_v54  ;;  %v9818_v54 = vld [vmem:[%s17138_s11 + $0x400] sm:$0xff] }
 0xc6b   :  { %4871 = vmatprep.subr.bf16.mxu0 %v10071_v41  ;;  %4912 = vmatprep.subr.bf16.mxu1 %v10073_v27  ;;  %v10016_v41 = vcombine.low %v3869_v50, %v3873_v47  ;;  %v13985_v27 = vcombine.high %v9874_v17, %v9878_v18  ;;  %v13987_v61 = vcombine.high %v9875_v39, %v9879_v26  ;;  %v9822_v50 = vld [vmem:[%s17138_s11 + $0x420] sm:$0xff]  ;;  %v9819_v47 = vld [vmem:[%s17138_s11 + $0x408] sm:$0xff] }
 0xc6e   :  { %4872 = vmatpush2.bf16.msra.mxu0 %v10070_v42  ;;  %4913 = vmatpush2.bf16.msra.mxu1 %v10072_v21  ;;  %v9871_v42 = vld [vmem:[%s17138_s11 + $0x5a8] sm:$0xff]  ;;  %v14001_v21 = vcombine.low %v9874_v17, %v9878_v18  ;;  %v9938_v18 = vld [vmem:[%s17138_s11 + $0x7c0] sm:$0xff] }
 0xc6f   :  { %4873 = vmatprep.subr.bf16.mxu0 %v10063_v20  ;;  %4914 = vmatprep.subr.bf16.mxu1 %v10065_v5  ;;  %v14003_v20 = vcombine.low %v9875_v39, %v9879_v26  ;;  %v14007_v5 = vcombine.high %v9866_v63, %v9870_v51  ;;  %v14009_v30 = vcombine.high %v9867_v32, %v9871_v42  ;;  %v9942_v39 = vld [vmem:[%s17138_s11 + $0x7e0] sm:$0xff]  ;;  %v9939_v26 = vld [vmem:[%s17138_s11 + $0x7c8] sm:$0xff] }
 0xc72   :  { %4874 = vmatpush2.bf16.msra.mxu0 %v10062_v31  ;;  %4915 = vmatpush2.bf16.msra.mxu1 %v10064_v22  ;;  %v9863_v31 = vld [vmem:[%s17138_s11 + $0x568] sm:$0xff]  ;;  %v14027_v22 = vcombine.low %v9866_v63, %v9870_v51  ;;  %v14179_v51 = vcombine.high %v9938_v18, %v9942_v39 }
 0xc73   :  { %4875 = vmatprep.subr.bf16.mxu0 %v10055_v23  ;;  %4916 = vmatprep.subr.bf16.mxu1 %v10057_v33  ;;  %v14029_v23 = vcombine.low %v9867_v32, %v9871_v42  ;;  %v14033_v33 = vcombine.high %v9858_v14, %v9862_v46  ;;  %v14035_v37 = vcombine.high %v9859_v48, %v9863_v31  ;;  %v9930_v42 = vld [vmem:[%s17138_s11 + $0x780] sm:$0xff] }
 0xc74   :  { %18228 = vst [vmem:[#allocation102_spill] sm:$0xff] %v14179_v51 }
 0xc75   :  { %18204 = vst [vmem:[#allocation73_spill] sm:$0xff] %v14035_v37 }
 0xc76   :  { %4876 = vmatpush2.bf16.msra.mxu0 %v10054_v35  ;;  %4917 = vmatpush2.bf16.msra.mxu1 %v10056_v0  ;;  %v18205_v35 = vmov 0   ;;  %v14053_v0 = vcombine.low %v9858_v14, %v9862_v46  ;;  %v9934_v14 = vld [vmem:[%s17138_s11 + $0x7a0] sm:$0xff]  ;;  %v9931_v46 = vld [vmem:[%s17138_s11 + $0x788] sm:$0xff] }
 0xc77   :  { %4877 = vmatprep.subr.bf16.mxu0 %v10047_v1  ;;  %4918 = vmatprep.subr.bf16.mxu1 %v10049_v40  ;;  %v14055_v1 = vcombine.low %v9859_v48, %v9863_v31  ;;  %v9935_v48 = vld [vmem:[%s17138_s11 + $0x7a8] sm:$0xff]  ;;  %v14197_v31 = vcombine.low %v9938_v18, %v9942_v39  ;;  %v9910_v18 = vld [vmem:[%s17138_s11 + $0x6e0] sm:$0xff] }
 0xc78   :  { %18206 = vst [vmem:[#allocation74_spill] sm:$0xff] %v14053_v0  ;;  %v9907_v39 = vld [vmem:[%s17138_s11 + $0x6c8] sm:$0xff] }
 0xc79   :  { %18207 = vst [vmem:[#allocation75_spill] sm:$0xff] %v14055_v1  ;;  %18230 = vst [vmem:[#allocation104_spill] sm:$0xff] %v14197_v31 }
 0xc7a   :  { %4878 = vmatpush2.bf16.msra.mxu0 %v10046_v28  ;;  %4919 = vmatpush2.bf16.msra.mxu1 %v10048_v59  ;;  %v9847_v28 = vld [vmem:[%s17138_s11 + $0x4e8] sm:$0xff] }
 0xc7b   :  { %4879 = vmatprep.subr.bf16.mxu0 %v10039_v43  ;;  %4920 = vmatprep.subr.bf16.mxu1 %v10041_v60  ;;  %v14079_v43 = vcombine.low %v9851_v29, %v9855_v55  ;;  %v14083_v60 = vcombine.high %v9842_v9, %v9846_v16  ;;  %v14085_v53 = vcombine.high %v9843_v44, %v9847_v28  ;;  %v9922_v55 = vld [vmem:[%s17138_s11 + $0x740] sm:$0xff] }
 0xc7c   :  { %v14205_v29 = vcombine.high %v9931_v46, %v9935_v48 }
 0xc7d   :  { %18211 = vst [vmem:[#allocation113_spill] sm:$0xff] %v14079_v43  ;;  %18212 = vst [vmem:[#allocation114_spill] sm:$0xff] %v14083_v60 }
 0xc7e   :  { %4880 = vmatpush2.bf16.msra.mxu0 %v10038_v8  ;;  %4921 = vmatpush2.bf16.msra.mxu1 %v10040_v6  ;;  %18213 = vst [vmem:[#allocation115_spill] sm:$0xff] %v14085_v53  ;;  %v9839_v8 = vld [vmem:[%s17138_s11 + $0x4a8] sm:$0xff]  ;;  %v14101_v6 = vcombine.low %v9842_v9, %v9846_v16  ;;  %18233 = vst [vmem:[#allocation107_spill] sm:$0xff] %v14205_v29  ;;  %v9926_v9 = vld [vmem:[%s17138_s11 + $0x760] sm:$0xff] }
 0xc7f   :  { %4881 = vmatprep.subr.bf16.mxu0 %v10031_v13  ;;  %4922 = vmatprep.subr.bf16.mxu1 %v10033_v56  ;;  %v14103_v13 = vcombine.low %v9843_v44, %v9847_v28  ;;  %v14107_v56 = vcombine.high %v9834_v62, %v9838_v7  ;;  %v14109_v58 = vcombine.high %v9835_v11, %v9839_v8  ;;  %v9923_v16 = vld [vmem:[%s17138_s11 + $0x748] sm:$0xff] }
 0xc80   :  { %18214 = vst [vmem:[#allocation116_spill] sm:$0xff] %v14101_v6  ;;  %v9927_v44 = vld [vmem:[%s17138_s11 + $0x768] sm:$0xff]  ;;  %v14221_v28 = vcombine.low %v9930_v42, %v9934_v14 }
 0xc81   :  { %18215 = vst [vmem:[#allocation117_spill] sm:$0xff] %v14103_v13  ;;  %18216 = vst [vmem:[#allocation118_spill] sm:$0xff] %v14107_v56 }
 0xc82   :  { %4882 = vmatpush2.bf16.msra.mxu0 %v10030_v38  ;;  %4923 = vmatpush2.bf16.msra.mxu1 %v10032_v4  ;;  %18217 = vst [vmem:[#allocation119_spill] sm:$0xff] %v14109_v58  ;;  %v9831_v38 = vld [vmem:[%s17138_s11 + $0x468] sm:$0xff]  ;;  %v14125_v4 = vcombine.low %v9834_v62, %v9838_v7  ;;  %18234 = vst [vmem:[#allocation108_spill] sm:$0xff] %v14221_v28  ;;  %v14223_v62 = vcombine.low %v9931_v46, %v9935_v48  ;;  %v9898_v48 = vld [vmem:[%s17138_s11 + $0x680] sm:$0xff] }
 0xc83   :  { %4883 = vmatprep.subr.bf16.mxu0 %v10023_v34  ;;  %4924 = vmatprep.subr.bf16.mxu1 %v10025_v36  ;;  %v14127_v34 = vcombine.low %v9835_v11, %v9839_v8  ;;  %v14131_v36 = vcombine.high %v9826_v3, %v9830_v45  ;;  %v14133_v12 = vcombine.high %v9827_v52, %v9831_v38  ;;  %v9914_v8 = vld [vmem:[%s17138_s11 + $0x700] sm:$0xff] }
 0xc84   :  { %18218 = vst [vmem:[#allocation9_spill] sm:$0xff] %v14125_v4  ;;  %18235 = vst [vmem:[#allocation109_spill] sm:$0xff] %v14223_v62  ;;  %v14227_v7 = vcombine.high %v9922_v55, %v9926_v9  ;;  %v14229_v11 = vcombine.high %v9923_v16, %v9927_v44 }
 0xc85   :  { %18219 = vst [vmem:[#allocation77_spill] sm:$0xff] %v14127_v34  ;;  %18220 = vst [vmem:[#allocation78_spill] sm:$0xff] %v14131_v36 }
 0xc86   :  { %4884 = vmatpush2.bf16.msra.mxu0 %v10022_v25  ;;  %4925 = vmatpush2.bf16.msra.mxu1 %v10024_v19  ;;  %18221 = vst [vmem:[#allocation79_spill] sm:$0xff] %v14133_v12  ;;  %v9823_v25 = vld [vmem:[%s17138_s11 + $0x428] sm:$0xff]  ;;  %v14149_v19 = vcombine.low %v9826_v3, %v9830_v45  ;;  %18236 = vst [vmem:[#allocation110_spill] sm:$0xff] %v14227_v7  ;;  %v9918_v3 = vld [vmem:[%s17138_s11 + $0x720] sm:$0xff] }
 0xc87   :  { %4885 = vmatprep.subr.bf16.mxu0 %v10015_v49  ;;  %4926 = vmatprep.subr.bf16.mxu1 %v10017_v57  ;;  %v14151_v49 = vcombine.low %v9827_v52, %v9831_v38  ;;  %v14155_v57 = vcombine.high %v9818_v54, %v9822_v50  ;;  %v14157_v17 = vcombine.high %v9819_v47, %v9823_v25  ;;  %v9915_v45 = vld [vmem:[%s17138_s11 + $0x708] sm:$0xff] }
 0xc88   :  { %18222 = vst [vmem:[#allocation80_spill] sm:$0xff] %v14149_v19  ;;  %v14175_v63 = vcombine.low %v9819_v47, %v9823_v25  ;;  %18237 = vst [vmem:[#allocation11_spill] sm:$0xff] %v14229_v11  ;;  %v9919_v52 = vld [vmem:[%s17138_s11 + $0x728] sm:$0xff]  ;;  %v14245_v38 = vcombine.low %v9922_v55, %v9926_v9  ;;  %v9906_v25 = vld [vmem:[%s17138_s11 + $0x6c0] sm:$0xff] }
 0xc89   :  { %18223 = vst [vmem:[#allocation81_spill] sm:$0xff] %v14151_v49  ;;  %18224 = vst [vmem:[#allocation82_spill] sm:$0xff] %v14155_v57  ;;  %v14253_v47 = vcombine.high %v9915_v45, %v9919_v52  ;;  %v9902_v55 = vld [vmem:[%s17138_s11 + $0x6a0] sm:$0xff]  ;;  %v9899_v9 = vld [vmem:[%s17138_s11 + $0x688] sm:$0xff] }
 0xc8a   :  { %4886 = vmatpush2.bf16.msra.mxu0 %v10014_v24  ;;  %4927 = vmatpush2.bf16.msra.mxu1 %v10016_v41  ;;  %18225 = vst [vmem:[#allocation83_spill] sm:$0xff] %v14157_v17  ;;  %v9943_v24 = vld [vmem:[%s17138_s11 + $0x7e8] sm:$0xff]  ;;  %v14173_v41 = vcombine.low %v9818_v54, %v9822_v50  ;;  %18227 = vst [vmem:[#allocation101_spill] sm:$0xff] %v14175_v63  ;;  %v14247_v54 = vcombine.low %v9923_v16, %v9927_v44 }
 0xc8b   :  { %5577 = vmatprep.subr.bf16.mxu0 %v13985_v27  ;;  %5618 = vmatprep.subr.bf16.mxu1 %v13987_v61  ;;  %v14181_v32 = vcombine.high %v9939_v26, %v9943_v24  ;;  %18238 = vst [vmem:[#allocation12_spill] sm:$0xff] %v14245_v38  ;;  %v14251_v50 = vcombine.high %v9914_v8, %v9918_v3  ;;  %18241 = vst [vmem:[#allocation15_spill] sm:$0xff] %v14253_v47  ;;  %v9903_v16 = vld [vmem:[%s17138_s11 + $0x6a8] sm:$0xff] }
 0xc8c   :  { %18226 = vst [vmem:[#allocation100_spill] sm:$0xff] %v14173_v41  ;;  %18239 = vst [vmem:[#allocation13_spill] sm:$0xff] %v14247_v54  ;;  %v14293_v44 = vcombine.low %v9906_v25, %v9910_v18 }
 0xc8d   :  { %4888 = vmatmul.mubr.bf16.vlgmr.msra.gmra.mxu0 %v13795_v2  ;;  %4929 = vmatmul.mubr.bf16.vlgmr.msra.gmra.mxu1 %v13795_v2  ;;  %v9850_v2 = vld [vmem:[%s17138_s11 + $0x500] sm:$0xff]  ;;  %18229 = vst [vmem:[#allocation103_spill] sm:$0xff] %v14181_v32  ;;  %18240 = vst [vmem:[#allocation14_spill] sm:$0xff] %v14251_v50 }
 0xc8e   :  { %5578 = vmatpush1.bf16.msra.mxu0 %v14001_v21  ;;  %5619 = vmatpush1.bf16.msra.mxu1 %v14003_v20  ;;  %v14059_v40 = vcombine.high %v9850_v2, %v9854_v10  ;;  %v14077_v59 = vcombine.low %v9850_v2, %v9854_v10  ;;  %v14199_v2 = vcombine.low %v9939_v26, %v9943_v24  ;;  %v9911_v26 = vld [vmem:[%s17138_s11 + $0x6e8] sm:$0xff] }
 0xc8f   :  { %5579 = vmatprep.subr.bf16.mxu0 %v14007_v5  ;;  %5620 = vmatprep.subr.bf16.mxu1 %v14009_v30  ;;  %v14203_v10 = vcombine.high %v9930_v42, %v9934_v14  ;;  %v14269_v24 = vcombine.low %v9914_v8, %v9918_v3  ;;  %v14271_v42 = vcombine.low %v9915_v45, %v9919_v52  ;;  %v9890_v52 = vld [vmem:[%s17138_s11 + $0x640] sm:$0xff] }
 0xc90   :  { %5609 = vmatprep.mubr.bf16.mxu0 %v18205_v35  ;;  %5650 = vmatprep.mubr.bf16.mxu1 %v18205_v35  ;;  %18208 = vst [vmem:[#allocation76_spill] sm:$0xff] %v14059_v40  ;;  %18210 = vst [vmem:[#allocation112_spill] sm:$0xff] %v14077_v59  ;;  %v14275_v14 = vcombine.high %v9906_v25, %v9910_v18  ;;  %v14277_v46 = vcombine.high %v9907_v39, %v9911_v26  ;;  %v9891_v25 = vld [vmem:[%s17138_s11 + $0x648] sm:$0xff] }
 0xc91   :  { %18231 = vst [vmem:[#allocation105_spill] sm:$0xff] %v14199_v2  ;;  %18232 = vst [vmem:[#allocation106_spill] sm:$0xff] %v14203_v10  ;;  %v14295_v8 = vcombine.low %v9907_v39, %v9911_v26  ;;  %v14299_v3 = vcombine.high %v9898_v48, %v9902_v55  ;;  %v14301_v45 = vcombine.high %v9899_v9, %v9903_v16  ;;  %v9895_v18 = vld [vmem:[%s17138_s11 + $0x668] sm:$0xff] }
 0xc92   :  { %5580 = vmatpush1.bf16.msra.mxu0 %v14027_v22  ;;  %5621 = vmatpush1.bf16.msra.mxu1 %v14029_v23  ;;  %18242 = vst [vmem:[#allocation16_spill] sm:$0xff] %v14269_v24  ;;  %18243 = vst [vmem:[#allocation17_spill] sm:$0xff] %v14271_v42  ;;  %v14317_v39 = vcombine.low %v9898_v48, %v9902_v55  ;;  %v14319_v26 = vcombine.low %v9899_v9, %v9903_v16  ;;  %v9883_v48 = vld [vmem:[%s17138_s11 + $0x608] sm:$0xff] }
 0xc93   :  { %5581 = vmatprep.subr.bf16.mxu0 %v14033_v33  ;;  %5622 = vmatprep.subr.bf16.mxu1 %v14035_v37  ;;  %18244 = vst [vmem:[#allocation18_spill] sm:$0xff] %v14275_v14  ;;  %18245 = vst [vmem:[#allocation19_spill] sm:$0xff] %v14277_v46  ;;  %v9887_v55 = vld [vmem:[%s17138_s11 + $0x628] sm:$0xff]  ;;  %v14343_v16 = vcombine.low %v9891_v25, %v9895_v18 }
 0xc94   :  { %18246 = vst [vmem:[#allocation20_spill] sm:$0xff] %v14293_v44  ;;  %18247 = vst [vmem:[#allocation21_spill] sm:$0xff] %v14295_v8 }
 0xc95   :  { %18248 = vst [vmem:[#allocation22_spill] sm:$0xff] %v14299_v3  ;;  %18249 = vst [vmem:[#allocation23_spill] sm:$0xff] %v14301_v45 }
 0xc96   :  { %5582 = vmatpush1.bf16.msra.mxu0 %v14053_v0  ;;  %5623 = vmatpush1.bf16.msra.mxu1 %v14055_v1  ;;  %18250 = vst [vmem:[#allocation24_spill] sm:$0xff] %v14317_v39  ;;  %18251 = vst [vmem:[#allocation25_spill] sm:$0xff] %v14319_v26 }
 0xc97   :  { %5583 = vmatprep.subr.bf16.mxu0 %v14059_v40  ;;  %5624 = vmatprep.subr.bf16.mxu1 %v14061_v15  ;;  %18255 = vst [vmem:[#allocation29_spill] sm:$0xff] %v14343_v16 }
 0xc9a   :  { %5584 = vmatpush1.bf16.msra.mxu0 %v14077_v59  ;;  %5625 = vmatpush1.bf16.msra.mxu1 %v14079_v43 }
 0xc9b   :  { %5585 = vmatprep.subr.bf16.mxu0 %v14083_v60  ;;  %5626 = vmatprep.subr.bf16.mxu1 %v14085_v53 }
 0xc9e   :  { %5586 = vmatpush1.bf16.msra.mxu0 %v14101_v6  ;;  %5627 = vmatpush1.bf16.msra.mxu1 %v14103_v13 }
 0xc9f   :  { %5587 = vmatprep.subr.bf16.mxu0 %v14107_v56  ;;  %5628 = vmatprep.subr.bf16.mxu1 %v14109_v58 }
 0xca2   :  { %5588 = vmatpush1.bf16.msra.mxu0 %v14125_v4  ;;  %5629 = vmatpush1.bf16.msra.mxu1 %v14127_v34 }
 0xca3   :  { %5589 = vmatprep.subr.bf16.mxu0 %v14131_v36  ;;  %5630 = vmatprep.subr.bf16.mxu1 %v14133_v12 }
 0xca6   :  { %5590 = vmatpush1.bf16.msra.mxu0 %v14149_v19  ;;  %5631 = vmatpush1.bf16.msra.mxu1 %v14151_v49 }
 0xca7   :  { %5591 = vmatprep.subr.bf16.mxu0 %v14155_v57  ;;  %5632 = vmatprep.subr.bf16.mxu1 %v14157_v17 }
 0xcaa   :  { %5592 = vmatpush1.bf16.msra.mxu0 %v14173_v41  ;;  %5633 = vmatpush1.bf16.msra.mxu1 %v14175_v63 }
 0xcab   :  { %5593 = vmatprep.subr.bf16.mxu0 %v14179_v51  ;;  %5634 = vmatprep.subr.bf16.mxu1 %v14181_v32 }
 0xcae   :  { %5594 = vmatpush2.bf16.msra.mxu0 %v14197_v31  ;;  %5635 = vmatpush2.bf16.msra.mxu1 %v14199_v2 }
 0xcaf   :  { %5595 = vmatprep.subr.bf16.mxu0 %v14203_v10  ;;  %5636 = vmatprep.subr.bf16.mxu1 %v14205_v29 }
 0xcb2   :  { %5596 = vmatpush2.bf16.msra.mxu0 %v14221_v28  ;;  %5637 = vmatpush2.bf16.msra.mxu1 %v14223_v62 }
 0xcb3   :  { %5597 = vmatprep.subr.bf16.mxu0 %v14227_v7  ;;  %5638 = vmatprep.subr.bf16.mxu1 %v14229_v11 }
 0xcb6   :  { %5598 = vmatpush2.bf16.msra.mxu0 %v14245_v38  ;;  %5639 = vmatpush2.bf16.msra.mxu1 %v14247_v54 }
 0xcb7   :  { %5599 = vmatprep.subr.bf16.mxu0 %v14251_v50  ;;  %5640 = vmatprep.subr.bf16.mxu1 %v14253_v47 }
 0xcba   :  { %5600 = vmatpush2.bf16.msra.mxu0 %v14269_v24  ;;  %5641 = vmatpush2.bf16.msra.mxu1 %v14271_v42  ;;  %v9894_v42 = vld [vmem:[%s17138_s11 + $0x660] sm:$0xff] }
 0xcbb   :  { %5601 = vmatprep.subr.bf16.mxu0 %v14275_v14  ;;  %5642 = vmatprep.subr.bf16.mxu1 %v14277_v46  ;;  %v14323_v46 = vcombine.high %v9890_v52, %v9894_v42  ;;  %v14325_v14 = vcombine.high %v9891_v25, %v9895_v18  ;;  %v9882_v24 = vld [vmem:[%s17138_s11 + $0x600] sm:$0xff]  ;;  %v14341_v9 = vcombine.low %v9890_v52, %v9894_v42  ;;  %v9877_v42 = vld [vmem:[%s17138_s11 + $0x5d8] sm:$0xff] }
 0xcbc   :  { %v9881_v52 = vld [vmem:[%s17138_s11 + $0x5f8] sm:$0xff]  ;;  %v14367_v18 = vcombine.low %v9883_v48, %v9887_v55 }
 0xcbd   :  { %18252 = vst [vmem:[#allocation26_spill] sm:$0xff] %v14323_v46  ;;  %18253 = vst [vmem:[#allocation27_spill] sm:$0xff] %v14325_v14 }
 0xcbe   :  { %5602 = vmatpush2.bf16.msra.mxu0 %v14293_v44  ;;  %5643 = vmatpush2.bf16.msra.mxu1 %v14295_v8  ;;  %v9886_v8 = vld [vmem:[%s17138_s11 + $0x620] sm:$0xff]  ;;  %18254 = vst [vmem:[#allocation28_spill] sm:$0xff] %v14341_v9  ;;  %v9876_v44 = vld [vmem:[%s17138_s11 + $0x5d0] sm:$0xff]  ;;  %18259 = vst [vmem:[#allocation33_spill] sm:$0xff] %v14367_v18 }
 0xcbf   :  { %5603 = vmatprep.subr.bf16.mxu0 %v14299_v3  ;;  %5644 = vmatprep.subr.bf16.mxu1 %v14301_v45  ;;  %v14347_v45 = vcombine.high %v9882_v24, %v9886_v8  ;;  %v14349_v3 = vcombine.high %v9883_v48, %v9887_v55  ;;  %v14365_v25 = vcombine.low %v9882_v24, %v9886_v8  ;;  %v9869_v24 = vld [vmem:[%s17138_s11 + $0x598] sm:$0xff] }
 0xcc0   :  { %v9873_v8 = vld [vmem:[%s17138_s11 + $0x5b8] sm:$0xff]  ;;  %v14391_v55 = vcombine.low %v9877_v42, %v9881_v52 }
 0xcc1   :  { %18256 = vst [vmem:[#allocation30_spill] sm:$0xff] %v14347_v45  ;;  %18257 = vst [vmem:[#allocation31_spill] sm:$0xff] %v14349_v3 }
 0xcc2   :  { %5604 = vmatpush2.bf16.msra.mxu0 %v14317_v39  ;;  %5645 = vmatpush2.bf16.msra.mxu1 %v14319_v26  ;;  %v9880_v26 = vld [vmem:[%s17138_s11 + $0x5f0] sm:$0xff]  ;;  %18258 = vst [vmem:[#allocation32_spill] sm:$0xff] %v14365_v25  ;;  %18263 = vst [vmem:[#allocation37_spill] sm:$0xff] %v14391_v55 }
 0xcc3   :  { %5605 = vmatprep.subr.bf16.mxu0 %v14323_v46  ;;  %5646 = vmatprep.subr.bf16.mxu1 %v14325_v14  ;;  %v14371_v14 = vcombine.high %v9876_v44, %v9880_v26  ;;  %v14373_v46 = vcombine.high %v9877_v42, %v9881_v52  ;;  %v9868_v39 = vld [vmem:[%s17138_s11 + $0x590] sm:$0xff]  ;;  %v14389_v48 = vcombine.low %v9876_v44, %v9880_v26  ;;  %v9861_v44 = vld [vmem:[%s17138_s11 + $0x558] sm:$0xff] }
 0xcc4   :  { %v9865_v26 = vld [vmem:[%s17138_s11 + $0x578] sm:$0xff]  ;;  %v14417_v52 = vcombine.low %v9869_v24, %v9873_v8 }
 0xcc5   :  { %18260 = vst [vmem:[#allocation34_spill] sm:$0xff] %v14371_v14  ;;  %18261 = vst [vmem:[#allocation35_spill] sm:$0xff] %v14373_v46 }
 0xcc6   :  { %5606 = vmatpush2.bf16.msra.mxu0 %v14341_v9  ;;  %5647 = vmatpush2.bf16.msra.mxu1 %v14343_v16  ;;  %v9872_v16 = vld [vmem:[%s17138_s11 + $0x5b0] sm:$0xff]  ;;  %18262 = vst [vmem:[#allocation36_spill] sm:$0xff] %v14389_v48  ;;  %18267 = vst [vmem:[#allocation41_spill] sm:$0xff] %v14417_v52 }
 0xcc7   :  { %5607 = vmatprep.subr.bf16.mxu0 %v14347_v45  ;;  %5648 = vmatprep.subr.bf16.mxu1 %v14349_v3  ;;  %v14395_v3 = vcombine.high %v9868_v39, %v9872_v16  ;;  %v14397_v45 = vcombine.high %v9869_v24, %v9873_v8  ;;  %v9860_v9 = vld [vmem:[%s17138_s11 + $0x550] sm:$0xff]  ;;  %v14415_v42 = vcombine.low %v9868_v39, %v9872_v16  ;;  %v9853_v39 = vld [vmem:[%s17138_s11 + $0x518] sm:$0xff] }
 0xcc8   :  { %v9857_v16 = vld [vmem:[%s17138_s11 + $0x538] sm:$0xff]  ;;  %v14443_v8 = vcombine.low %v9861_v44, %v9865_v26 }
 0xcc9   :  { %18264 = vst [vmem:[#allocation38_spill] sm:$0xff] %v14395_v3  ;;  %18265 = vst [vmem:[#allocation39_spill] sm:$0xff] %v14397_v45 }
 0xcca   :  { %5608 = vmatpush2.bf16.msra.mxu0 %v14365_v25  ;;  %5649 = vmatpush2.bf16.msra.mxu1 %v14367_v18  ;;  %v9864_v18 = vld [vmem:[%s17138_s11 + $0x570] sm:$0xff]  ;;  %18266 = vst [vmem:[#allocation40_spill] sm:$0xff] %v14415_v42  ;;  %18271 = vst [vmem:[#allocation45_spill] sm:$0xff] %v14443_v8 }
 0xccb   :  { %5659 = vmatprep.subr.bf16.mxu0 %v14371_v14  ;;  %5700 = vmatprep.subr.bf16.mxu1 %v14373_v46  ;;  %v14421_v46 = vcombine.high %v9860_v9, %v9864_v18  ;;  %v14423_v14 = vcombine.high %v9861_v44, %v9865_v26  ;;  %v9852_v25 = vld [vmem:[%s17138_s11 + $0x510] sm:$0xff]  ;;  %v14441_v24 = vcombine.low %v9860_v9, %v9864_v18  ;;  %v9845_v9 = vld [vmem:[%s17138_s11 + $0x4d8] sm:$0xff] }
 0xccc   :  { %v9849_v18 = vld [vmem:[%s17138_s11 + $0x4f8] sm:$0xff]  ;;  %v14467_v26 = vcombine.low %v9853_v39, %v9857_v16 }
 0xccd   :  { %5610 = vmatmul.mubr.bf16.vlgmr.msra.gmra.mxu0 %v18205_v35  ;;  %5651 = vmatmul.mubr.bf16.vlgmr.msra.gmra.mxu1 %v18205_v35  ;;  %18268 = vst [vmem:[#allocation42_spill] sm:$0xff] %v14421_v46  ;;  %18269 = vst [vmem:[#allocation43_spill] sm:$0xff] %v14423_v14 }
 0xcce   :  { %5660 = vmatpush1.bf16.msra.mxu0 %v14389_v48  ;;  %5701 = vmatpush1.bf16.msra.mxu1 %v14391_v55  ;;  %v9856_v55 = vld [vmem:[%s17138_s11 + $0x530] sm:$0xff]  ;;  %18270 = vst [vmem:[#allocation44_spill] sm:$0xff] %v14441_v24  ;;  %18275 = vst [vmem:[#allocation49_spill] sm:$0xff] %v14467_v26 }
 0xccf   :  { %5661 = vmatprep.subr.bf16.mxu0 %v14395_v3  ;;  %5702 = vmatprep.subr.bf16.mxu1 %v14397_v45  ;;  %v14447_v45 = vcombine.high %v9852_v25, %v9856_v55  ;;  %v14449_v3 = vcombine.high %v9853_v39, %v9857_v16  ;;  %v9844_v48 = vld [vmem:[%s17138_s11 + $0x4d0] sm:$0xff]  ;;  %v14465_v44 = vcombine.low %v9852_v25, %v9856_v55  ;;  %v9837_v25 = vld [vmem:[%s17138_s11 + $0x498] sm:$0xff] }
 0xcd0   :  { %5691 = vmatprep.mubr.bf16.mxu0 %v18205_v35  ;;  %5732 = vmatprep.mubr.bf16.mxu1 %v18205_v35  ;;  %v9841_v55 = vld [vmem:[%s17138_s11 + $0x4b8] sm:$0xff]  ;;  %v14491_v16 = vcombine.low %v9845_v9, %v9849_v18 }
 0xcd1   :  { %18272 = vst [vmem:[#allocation46_spill] sm:$0xff] %v14447_v45  ;;  %18273 = vst [vmem:[#allocation47_spill] sm:$0xff] %v14449_v3 }
 0xcd2   :  { %5662 = vmatpush1.bf16.msra.mxu0 %v14415_v42  ;;  %5703 = vmatpush1.bf16.msra.mxu1 %v14417_v52  ;;  %v9848_v52 = vld [vmem:[%s17138_s11 + $0x4f0] sm:$0xff]  ;;  %18274 = vst [vmem:[#allocation48_spill] sm:$0xff] %v14465_v44  ;;  %18279 = vst [vmem:[#allocation53_spill] sm:$0xff] %v14491_v16 }
 0xcd3   :  { %5663 = vmatprep.subr.bf16.mxu0 %v14421_v46  ;;  %5704 = vmatprep.subr.bf16.mxu1 %v14423_v14  ;;  %v14471_v14 = vcombine.high %v9844_v48, %v9848_v52  ;;  %v14473_v46 = vcombine.high %v9845_v9, %v9849_v18  ;;  %v9836_v42 = vld [vmem:[%s17138_s11 + $0x490] sm:$0xff]  ;;  %v14489_v39 = vcombine.low %v9844_v48, %v9848_v52  ;;  %v9829_v48 = vld [vmem:[%s17138_s11 + $0x458] sm:$0xff] }
 0xcd4   :  { %v9833_v52 = vld [vmem:[%s17138_s11 + $0x478] sm:$0xff]  ;;  %v14515_v18 = vcombine.low %v9837_v25, %v9841_v55 }
 0xcd5   :  { %18276 = vst [vmem:[#allocation50_spill] sm:$0xff] %v14471_v14  ;;  %18277 = vst [vmem:[#allocation51_spill] sm:$0xff] %v14473_v46 }
 0xcd6   :  { %5664 = vmatpush1.bf16.msra.mxu0 %v14441_v24  ;;  %5705 = vmatpush1.bf16.msra.mxu1 %v14443_v8  ;;  %v9840_v8 = vld [vmem:[%s17138_s11 + $0x4b0] sm:$0xff]  ;;  %18278 = vst [vmem:[#allocation52_spill] sm:$0xff] %v14489_v39  ;;  %18283 = vst [vmem:[#allocation57_spill] sm:$0xff] %v14515_v18 }
 0xcd7   :  { %5665 = vmatprep.subr.bf16.mxu0 %v14447_v45  ;;  %5706 = vmatprep.subr.bf16.mxu1 %v14449_v3  ;;  %v14495_v3 = vcombine.high %v9836_v42, %v9840_v8  ;;  %v14497_v45 = vcombine.high %v9837_v25, %v9841_v55  ;;  %v9828_v24 = vld [vmem:[%s17138_s11 + $0x450] sm:$0xff]  ;;  %v14513_v9 = vcombine.low %v9836_v42, %v9840_v8  ;;  %v9821_v42 = vld [vmem:[%s17138_s11 + $0x418] sm:$0xff] }
 0xcd8   :  { %v9825_v8 = vld [vmem:[%s17138_s11 + $0x438] sm:$0xff]  ;;  %v14539_v55 = vcombine.low %v9829_v48, %v9833_v52 }
 0xcd9   :  { %18280 = vst [vmem:[#allocation54_spill] sm:$0xff] %v14495_v3  ;;  %18281 = vst [vmem:[#allocation55_spill] sm:$0xff] %v14497_v45 }
 0xcda   :  { %5666 = vmatpush1.bf16.msra.mxu0 %v14465_v44  ;;  %5707 = vmatpush1.bf16.msra.mxu1 %v14467_v26  ;;  %v9832_v26 = vld [vmem:[%s17138_s11 + $0x470] sm:$0xff]  ;;  %18282 = vst [vmem:[#allocation56_spill] sm:$0xff] %v14513_v9  ;;  %18287 = vst [vmem:[#allocation61_spill] sm:$0xff] %v14539_v55 }
 0xcdb   :  { %5667 = vmatprep.subr.bf16.mxu0 %v14471_v14  ;;  %5708 = vmatprep.subr.bf16.mxu1 %v14473_v46  ;;  %v14519_v46 = vcombine.high %v9828_v24, %v9832_v26  ;;  %v14521_v14 = vcombine.high %v9829_v48, %v9833_v52  ;;  %v9820_v44 = vld [vmem:[%s17138_s11 + $0x410] sm:$0xff]  ;;  %v14537_v25 = vcombine.low %v9828_v24, %v9832_v26  ;;  %v9941_v24 = vld [vmem:[%s17138_s11 + $0x7d8] sm:$0xff] }
 0xcdc   :  { %v9945_v26 = vld [vmem:[%s17138_s11 + $0x7f8] sm:$0xff]  ;;  %v14563_v52 = vcombine.low %v9821_v42, %v9825_v8 }
 0xcdd   :  { %18284 = vst [vmem:[#allocation58_spill] sm:$0xff] %v14519_v46  ;;  %18285 = vst [vmem:[#allocation59_spill] sm:$0xff] %v14521_v14 }
 0xcde   :  { %5668 = vmatpush1.bf16.msra.mxu0 %v14489_v39  ;;  %5709 = vmatpush1.bf16.msra.mxu1 %v14491_v16  ;;  %v9824_v16 = vld [vmem:[%s17138_s11 + $0x430] sm:$0xff]  ;;  %18286 = vst [vmem:[#allocation60_spill] sm:$0xff] %v14537_v25  ;;  %18291 = vst [vmem:[#allocation65_spill] sm:$0xff] %v14563_v52 }
 0xcdf   :  { %5669 = vmatprep.subr.bf16.mxu0 %v14495_v3  ;;  %5710 = vmatprep.subr.bf16.mxu1 %v14497_v45  ;;  %v14543_v45 = vcombine.high %v9820_v44, %v9824_v16  ;;  %v14545_v3 = vcombine.high %v9821_v42, %v9825_v8  ;;  %v9940_v39 = vld [vmem:[%s17138_s11 + $0x7d0] sm:$0xff]  ;;  %v14561_v48 = vcombine.low %v9820_v44, %v9824_v16  ;;  %v9933_v44 = vld [vmem:[%s17138_s11 + $0x798] sm:$0xff] }
 0xce0   :  { %v9937_v16 = vld [vmem:[%s17138_s11 + $0x7b8] sm:$0xff]  ;;  %v14587_v8 = vcombine.low %v9941_v24, %v9945_v26 }
 0xce1   :  { %18288 = vst [vmem:[#allocation62_spill] sm:$0xff] %v14543_v45  ;;  %18289 = vst [vmem:[#allocation63_spill] sm:$0xff] %v14545_v3 }
 0xce2   :  { %5670 = vmatpush1.bf16.msra.mxu0 %v14513_v9  ;;  %5711 = vmatpush1.bf16.msra.mxu1 %v14515_v18  ;;  %v9944_v18 = vld [vmem:[%s17138_s11 + $0x7f0] sm:$0xff]  ;;  %18290 = vst [vmem:[#allocation64_spill] sm:$0xff] %v14561_v48  ;;  %18295 = vst [vmem:[#allocation6_spill] sm:$0xff] %v14587_v8 }
 0xce3   :  { %5671 = vmatprep.subr.bf16.mxu0 %v14519_v46  ;;  %5712 = vmatprep.subr.bf16.mxu1 %v14521_v14  ;;  %v14567_v14 = vcombine.high %v9940_v39, %v9944_v18  ;;  %v14569_v46 = vcombine.high %v9941_v24, %v9945_v26  ;;  %v9932_v9 = vld [vmem:[%s17138_s11 + $0x790] sm:$0xff]  ;;  %v14585_v42 = vcombine.low %v9940_v39, %v9944_v18  ;;  %v9925_v39 = vld [vmem:[%s17138_s11 + $0x758] sm:$0xff] }
 0xce4   :  { %v9929_v18 = vld [vmem:[%s17138_s11 + $0x778] sm:$0xff]  ;;  %v14611_v26 = vcombine.low %v9933_v44, %v9937_v16 }
 0xce5   :  { %18292 = vst [vmem:[#allocation66_spill] sm:$0xff] %v14567_v14  ;;  %18293 = vst [vmem:[#allocation67_spill] sm:$0xff] %v14569_v46 }
 0xce6   :  { %5672 = vmatpush1.bf16.msra.mxu0 %v14537_v25  ;;  %5713 = vmatpush1.bf16.msra.mxu1 %v14539_v55  ;;  %v9936_v55 = vld [vmem:[%s17138_s11 + $0x7b0] sm:$0xff]  ;;  %18294 = vst [vmem:[#allocation68_spill] sm:$0xff] %v14585_v42  ;;  %18299 = vst [vmem:[#allocation85_spill] sm:$0xff] %v14611_v26 }
 0xce7   :  { %5673 = vmatprep.subr.bf16.mxu0 %v14543_v45  ;;  %5714 = vmatprep.subr.bf16.mxu1 %v14545_v3  ;;  %v14591_v3 = vcombine.high %v9932_v9, %v9936_v55  ;;  %v14593_v45 = vcombine.high %v9933_v44, %v9937_v16  ;;  %v9924_v25 = vld [vmem:[%s17138_s11 + $0x750] sm:$0xff]  ;;  %v14609_v24 = vcombine.low %v9932_v9, %v9936_v55  ;;  %v9917_v9 = vld [vmem:[%s17138_s11 + $0x718] sm:$0xff] }
 0xce8   :  { %v9921_v55 = vld [vmem:[%s17138_s11 + $0x738] sm:$0xff]  ;;  %v14635_v16 = vcombine.low %v9925_v39, %v9929_v18 }
 0xce9   :  { %18296 = vst [vmem:[#allocation69_spill] sm:$0xff] %v14591_v3  ;;  %18297 = vst [vmem:[#allocation131_spill] sm:$0xff] %v14593_v45 }
 0xcea   :  { %5674 = vmatpush1.bf16.msra.mxu0 %v14561_v48  ;;  %5715 = vmatpush1.bf16.msra.mxu1 %v14563_v52  ;;  %v9928_v52 = vld [vmem:[%s17138_s11 + $0x770] sm:$0xff]  ;;  %18298 = vst [vmem:[#allocation84_spill] sm:$0xff] %v14609_v24  ;;  %18303 = vst [vmem:[#allocation89_spill] sm:$0xff] %v14635_v16 }
 0xceb   :  { %5675 = vmatprep.subr.bf16.mxu0 %v14567_v14  ;;  %5716 = vmatprep.subr.bf16.mxu1 %v14569_v46  ;;  %v14615_v46 = vcombine.high %v9924_v25, %v9928_v52  ;;  %v14617_v14 = vcombine.high %v9925_v39, %v9929_v18  ;;  %v9916_v48 = vld [vmem:[%s17138_s11 + $0x710] sm:$0xff]  ;;  %v14633_v44 = vcombine.low %v9924_v25, %v9928_v52  ;;  %v9909_v25 = vld [vmem:[%s17138_s11 + $0x6d8] sm:$0xff] }
 0xcec   :  { %v9913_v52 = vld [vmem:[%s17138_s11 + $0x6f8] sm:$0xff]  ;;  %v14659_v18 = vcombine.low %v9917_v9, %v9921_v55 }
 0xced   :  { %18300 = vst [vmem:[#allocation86_spill] sm:$0xff] %v14615_v46  ;;  %18301 = vst [vmem:[#allocation87_spill] sm:$0xff] %v14617_v14 }
 0xcee   :  { %5676 = vmatpush2.bf16.msra.mxu0 %v14585_v42  ;;  %5717 = vmatpush2.bf16.msra.mxu1 %v14587_v8  ;;  %v9920_v8 = vld [vmem:[%s17138_s11 + $0x730] sm:$0xff]  ;;  %18302 = vst [vmem:[#allocation88_spill] sm:$0xff] %v14633_v44  ;;  %18307 = vst [vmem:[#allocation93_spill] sm:$0xff] %v14659_v18 }
 0xcef   :  { %5677 = vmatprep.subr.bf16.mxu0 %v14591_v3  ;;  %5718 = vmatprep.subr.bf16.mxu1 %v14593_v45  ;;  %v14639_v45 = vcombine.high %v9916_v48, %v9920_v8  ;;  %v14641_v3 = vcombine.high %v9917_v9, %v9921_v55  ;;  %v9908_v42 = vld [vmem:[%s17138_s11 + $0x6d0] sm:$0xff]  ;;  %v14657_v39 = vcombine.low %v9916_v48, %v9920_v8  ;;  %v9901_v48 = vld [vmem:[%s17138_s11 + $0x698] sm:$0xff] }
 0xcf0   :  { %v9905_v8 = vld [vmem:[%s17138_s11 + $0x6b8] sm:$0xff]  ;;  %v14683_v55 = vcombine.low %v9909_v25, %v9913_v52 }
 0xcf1   :  { %18304 = vst [vmem:[#allocation90_spill] sm:$0xff] %v14639_v45  ;;  %18305 = vst [vmem:[#allocation91_spill] sm:$0xff] %v14641_v3 }
 0xcf2   :  { %5678 = vmatpush2.bf16.msra.mxu0 %v14609_v24  ;;  %5719 = vmatpush2.bf16.msra.mxu1 %v14611_v26  ;;  %v9912_v26 = vld [vmem:[%s17138_s11 + $0x6f0] sm:$0xff]  ;;  %18306 = vst [vmem:[#allocation92_spill] sm:$0xff] %v14657_v39  ;;  %18311 = vst [vmem:[#allocation97_spill] sm:$0xff] %v14683_v55 }
 0xcf3   :  { %5679 = vmatprep.subr.bf16.mxu0 %v14615_v46  ;;  %5720 = vmatprep.subr.bf16.mxu1 %v14617_v14  ;;  %v14663_v14 = vcombine.high %v9908_v42, %v9912_v26  ;;  %v14665_v46 = vcombine.high %v9909_v25, %v9913_v52  ;;  %v9900_v24 = vld [vmem:[%s17138_s11 + $0x690] sm:$0xff]  ;;  %v14681_v9 = vcombine.low %v9908_v42, %v9912_v26  ;;  %v9893_v42 = vld [vmem:[%s17138_s11 + $0x658] sm:$0xff] }
 0xcf4   :  { %v9897_v26 = vld [vmem:[%s17138_s11 + $0x678] sm:$0xff]  ;;  %v14707_v52 = vcombine.low %v9901_v48, %v9905_v8 }
 0xcf5   :  { %18308 = vst [vmem:[#allocation94_spill] sm:$0xff] %v14663_v14  ;;  %18309 = vst [vmem:[#allocation95_spill] sm:$0xff] %v14665_v46 }
 0xcf6   :  { %5680 = vmatpush2.bf16.msra.mxu0 %v14633_v44  ;;  %5721 = vmatpush2.bf16.msra.mxu1 %v14635_v16  ;;  %v9904_v16 = vld [vmem:[%s17138_s11 + $0x6b0] sm:$0xff]  ;;  %18310 = vst [vmem:[#allocation96_spill] sm:$0xff] %v14681_v9  ;;  %18315 = vst [vmem:[#allocation121_spill] sm:$0xff] %v14707_v52 }
 0xcf7   :  { %5681 = vmatprep.subr.bf16.mxu0 %v14639_v45  ;;  %5722 = vmatprep.subr.bf16.mxu1 %v14641_v3  ;;  %v14687_v3 = vcombine.high %v9900_v24, %v9904_v16  ;;  %v14689_v45 = vcombine.high %v9901_v48, %v9905_v8  ;;  %v9892_v44 = vld [vmem:[%s17138_s11 + $0x650] sm:$0xff]  ;;  %v14705_v25 = vcombine.low %v9900_v24, %v9904_v16  ;;  %v9885_v24 = vld [vmem:[%s17138_s11 + $0x618] sm:$0xff] }
 0xcf8   :  { %v9889_v16 = vld [vmem:[%s17138_s11 + $0x638] sm:$0xff]  ;;  %v14731_v8 = vcombine.low %v9893_v42, %v9897_v26 }
 0xcf9   :  { %18312 = vst [vmem:[#allocation98_spill] sm:$0xff] %v14687_v3  ;;  %18313 = vst [vmem:[#allocation99_spill] sm:$0xff] %v14689_v45 }
 0xcfa   :  { %5682 = vmatpush2.bf16.msra.mxu0 %v14657_v39  ;;  %5723 = vmatpush2.bf16.msra.mxu1 %v14659_v18  ;;  %v9896_v18 = vld [vmem:[%s17138_s11 + $0x670] sm:$0xff]  ;;  %18314 = vst [vmem:[#allocation120_spill] sm:$0xff] %v14705_v25  ;;  %18319 = vst [vmem:[#allocation125_spill] sm:$0xff] %v14731_v8 }
 0xcfb   :  { %5683 = vmatprep.subr.bf16.mxu0 %v14663_v14  ;;  %5724 = vmatprep.subr.bf16.mxu1 %v14665_v46  ;;  %v14711_v46 = vcombine.high %v9892_v44, %v9896_v18  ;;  %v14713_v14 = vcombine.high %v9893_v42, %v9897_v26  ;;  %v9884_v39 = vld [vmem:[%s17138_s11 + $0x610] sm:$0xff]  ;;  %v14729_v48 = vcombine.low %v9892_v44, %v9896_v18 }
 0xcfd   :  { %18316 = vst [vmem:[#allocation122_spill] sm:$0xff] %v14711_v46  ;;  %18317 = vst [vmem:[#allocation123_spill] sm:$0xff] %v14713_v14 }
 0xcfe   :  { %5684 = vmatpush2.bf16.msra.mxu0 %v14681_v9  ;;  %5725 = vmatpush2.bf16.msra.mxu1 %v14683_v55  ;;  %v9888_v55 = vld [vmem:[%s17138_s11 + $0x630] sm:$0xff]  ;;  %18318 = vst [vmem:[#allocation124_spill] sm:$0xff] %v14729_v48 }
 0xcff   :  { %5685 = vmatprep.subr.bf16.mxu0 %v14687_v3  ;;  %5726 = vmatprep.subr.bf16.mxu1 %v14689_v45  ;;  %v14735_v45 = vcombine.high %v9884_v39, %v9888_v55  ;;  %v14737_v3 = vcombine.high %v9885_v24, %v9889_v16  ;;  %v14741_v9 = vcombine.low %v9884_v39, %v9888_v55 }
 0xd01   :  { %18320 = vst [vmem:[#allocation126_spill] sm:$0xff] %v14735_v45  ;;  %18321 = vst [vmem:[#allocation127_spill] sm:$0xff] %v14737_v3 }
 0xd02   :  { %5686 = vmatpush2.bf16.msra.mxu0 %v14705_v25  ;;  %5727 = vmatpush2.bf16.msra.mxu1 %v14707_v52  ;;  %18322 = vst [vmem:[#allocation128_spill] sm:$0xff] %v14741_v9  ;;  %v14743_v25 = vcombine.low %v9885_v24, %v9889_v16 }
 0xd03   :  { %5687 = vmatprep.subr.bf16.mxu0 %v14711_v46  ;;  %5728 = vmatprep.subr.bf16.mxu1 %v14713_v14 }
 0xd04   :  { %18323 = vst [vmem:[#allocation129_spill] sm:$0xff] %v14743_v25 }
 0xd06   :  { %5688 = vmatpush2.bf16.msra.mxu0 %v14729_v48  ;;  %5729 = vmatpush2.bf16.msra.mxu1 %v14731_v8 }
 0xd07   :  { %5689 = vmatprep.subr.bf16.mxu0 %v14735_v45  ;;  %5730 = vmatprep.subr.bf16.mxu1 %v14737_v3 }
 0xd0a   :  { %5690 = vmatpush2.bf16.msra.mxu0 %v14741_v9  ;;  %5731 = vmatpush2.bf16.msra.mxu1 %v14743_v25 }
 0xd0b   :  { %5814 = vmatprep.subr.bf16.mxu0 %v13985_v27  ;;  %5855 = vmatprep.subr.bf16.mxu1 %v13987_v61 }
 0xd0d   :  { %5692 = vmatmul.mubr.bf16.vlgmr.msra.gmra.mxu0 %v18205_v35  ;;  %5733 = vmatmul.mubr.bf16.vlgmr.msra.gmra.mxu1 %v18205_v35  ;;  %v14753_v44 = vpop.f32.mrf.mxu0  ;;  %v14755_v39 = vpop.f32.mrf.mxu1  ;;  %v18328_v35 = vld [vmem:[#allocation20_spill] sm:$0xff] }
 0xd0e   :  { %5815 = vmatpush1.bf16.msra.mxu0 %v14001_v21  ;;  %5856 = vmatpush1.bf16.msra.mxu1 %v14003_v20 }
 0xd0f   :  { %v14759_v18 = vpop.f32.mrf.mxu0  ;;  %v14761_v55 = vpop.f32.mrf.mxu1  ;;  %5816 = vmatprep.subr.bf16.mxu0 %v14007_v5  ;;  %5857 = vmatprep.subr.bf16.mxu1 %v14009_v30 }
 0xd11   :  { %v4811_v42 = vpop.f32.mrf.mxu0  ;;  %v4852_v26 = vpop.f32.mrf.mxu1 }
 0xd12   :  { %5817 = vmatpush1.bf16.msra.mxu0 %v14027_v22  ;;  %5858 = vmatpush1.bf16.msra.mxu1 %v14029_v23  ;;  %v18324_v42 = vld [vmem:[#allocation16_spill] sm:$0xff]  ;;  %v18325_v26 = vld [vmem:[#allocation17_spill] sm:$0xff] }
 0xd13   :  { %v4812_v24 = vpop.f32.mrf.mxu0  ;;  %v4853_v16 = vpop.f32.mrf.mxu1  ;;  %5818 = vmatprep.subr.bf16.mxu0 %v14033_v33  ;;  %5859 = vmatprep.subr.bf16.mxu1 %v14035_v37 }
 0xd14   :  { %v18326_v24 = vld [vmem:[#allocation18_spill] sm:$0xff]  ;;  %v18327_v16 = vld [vmem:[#allocation19_spill] sm:$0xff] }
 0xd16   :  { %5819 = vmatpush1.bf16.msra.mxu0 %v14053_v0  ;;  %5860 = vmatpush1.bf16.msra.mxu1 %v14055_v1 }
 0xd17   :  { %5820 = vmatprep.subr.bf16.mxu0 %v14059_v40  ;;  %5861 = vmatprep.subr.bf16.mxu1 %v14061_v15 }
 0xd1a   :  { %5821 = vmatpush1.bf16.msra.mxu0 %v14077_v59  ;;  %5862 = vmatpush1.bf16.msra.mxu1 %v14079_v43 }
 0xd1b   :  { %5822 = vmatprep.subr.bf16.mxu0 %v14083_v60  ;;  %5863 = vmatprep.subr.bf16.mxu1 %v14085_v53 }
 0xd1e   :  { %5823 = vmatpush1.bf16.msra.mxu0 %v14101_v6  ;;  %5864 = vmatpush1.bf16.msra.mxu1 %v14103_v13 }
 0xd1f   :  { %5824 = vmatprep.subr.bf16.mxu0 %v14107_v56  ;;  %5865 = vmatprep.subr.bf16.mxu1 %v14109_v58 }
 0xd22   :  { %5825 = vmatpush1.bf16.msra.mxu0 %v14125_v4  ;;  %5866 = vmatpush1.bf16.msra.mxu1 %v14127_v34 }
 0xd23   :  { %5826 = vmatprep.subr.bf16.mxu0 %v14131_v36  ;;  %5867 = vmatprep.subr.bf16.mxu1 %v14133_v12 }
 0xd26   :  { %5827 = vmatpush1.bf16.msra.mxu0 %v14149_v19  ;;  %5868 = vmatpush1.bf16.msra.mxu1 %v14151_v49 }
 0xd27   :  { %5828 = vmatprep.subr.bf16.mxu0 %v14155_v57  ;;  %5869 = vmatprep.subr.bf16.mxu1 %v14157_v17 }
 0xd2a   :  { %5829 = vmatpush1.bf16.msra.mxu0 %v14173_v41  ;;  %5870 = vmatpush1.bf16.msra.mxu1 %v14175_v63 }
 0xd2b   :  { %5830 = vmatprep.subr.bf16.mxu0 %v14179_v51  ;;  %5871 = vmatprep.subr.bf16.mxu1 %v14181_v32 }
 0xd2e   :  { %5831 = vmatpush2.bf16.msra.mxu0 %v14197_v31  ;;  %5872 = vmatpush2.bf16.msra.mxu1 %v14199_v2 }
 0xd2f   :  { %5832 = vmatprep.subr.bf16.mxu0 %v14203_v10  ;;  %5873 = vmatprep.subr.bf16.mxu1 %v14205_v29 }
 0xd32   :  { %5833 = vmatpush2.bf16.msra.mxu0 %v14221_v28  ;;  %5874 = vmatpush2.bf16.msra.mxu1 %v14223_v62  ;;  %v18345_v28 = vld [vmem:[#allocation10_spill] sm:$0xff] }
 0xd33   :  { %5834 = vmatprep.subr.bf16.mxu0 %v14227_v7  ;;  %5875 = vmatprep.subr.bf16.mxu1 %v14229_v11  ;;  %v18329_v7 = vld [vmem:[#allocation21_spill] sm:$0xff]  ;;  %v18330_v11 = vld [vmem:[#allocation22_spill] sm:$0xff] }
 0xd36   :  { %5835 = vmatpush2.bf16.msra.mxu0 %v14245_v38  ;;  %5876 = vmatpush2.bf16.msra.mxu1 %v14247_v54  ;;  %v18331_v38 = vld [vmem:[#allocation23_spill] sm:$0xff]  ;;  %v18332_v54 = vld [vmem:[#allocation24_spill] sm:$0xff] }
 0xd37   :  { %5836 = vmatprep.subr.bf16.mxu0 %v14251_v50  ;;  %5877 = vmatprep.subr.bf16.mxu1 %v14253_v47  ;;  %v18333_v50 = vld [vmem:[#allocation25_spill] sm:$0xff]  ;;  %v18334_v47 = vld [vmem:[#allocation26_spill] sm:$0xff] }
 0xd3a   :  { %5837 = vmatpush2.bf16.msra.mxu0 %v18324_v42  ;;  %5878 = vmatpush2.bf16.msra.mxu1 %v18325_v26  ;;  %v18335_v42 = vld [vmem:[#allocation27_spill] sm:$0xff]  ;;  %v18336_v26 = vld [vmem:[#allocation28_spill] sm:$0xff] }
 0xd3b   :  { %5838 = vmatprep.subr.bf16.mxu0 %v18326_v24  ;;  %5879 = vmatprep.subr.bf16.mxu1 %v18327_v16  ;;  %v18337_v24 = vld [vmem:[#allocation29_spill] sm:$0xff]  ;;  %v18338_v16 = vld [vmem:[#allocation30_spill] sm:$0xff] }
 0xd3e   :  { %5839 = vmatpush2.bf16.msra.mxu0 %v18328_v35  ;;  %5880 = vmatpush2.bf16.msra.mxu1 %v18329_v7  ;;  %v18339_v35 = vld [vmem:[#allocation31_spill] sm:$0xff]  ;;  %v18340_v7 = vld [vmem:[#allocation32_spill] sm:$0xff] }
 0xd3f   :  { %5840 = vmatprep.subr.bf16.mxu0 %v18330_v11  ;;  %5881 = vmatprep.subr.bf16.mxu1 %v18331_v38  ;;  %v18341_v11 = vld [vmem:[#allocation33_spill] sm:$0xff]  ;;  %v18342_v38 = vld [vmem:[#allocation34_spill] sm:$0xff] }
 0xd42   :  { %5841 = vmatpush2.bf16.msra.mxu0 %v18332_v54  ;;  %5882 = vmatpush2.bf16.msra.mxu1 %v18333_v50  ;;  %v18343_v54 = vld [vmem:[#allocation35_spill] sm:$0xff] }
 0xd43   :  { %5842 = vmatprep.subr.bf16.mxu0 %v18334_v47  ;;  %5883 = vmatprep.subr.bf16.mxu1 %v18335_v42 }
 0xd46   :  { %5843 = vmatpush2.bf16.msra.mxu0 %v18336_v26  ;;  %5884 = vmatpush2.bf16.msra.mxu1 %v18337_v24 }
 0xd47   :  { %5844 = vmatprep.subr.bf16.mxu0 %v18338_v16  ;;  %5885 = vmatprep.subr.bf16.mxu1 %v18339_v35 }
 0xd4a   :  { %5845 = vmatpush2.bf16.msra.mxu0 %v18340_v7  ;;  %5886 = vmatpush2.bf16.msra.mxu1 %v18341_v11  ;;  %v11554_v11 = vld [vmem:[%s17139_s12] sm:$0x77]  ;;  %v18344_v7 = vld [vmem:[#allocation7_spill] sm:$0xff] }
 0xd4b   :  { %5896 = vmatprep.subr.bf16.mxu0 %v18342_v38  ;;  %5937 = vmatprep.subr.bf16.mxu1 %v18343_v54  ;;  %v4064_v38 = vrot.slane %v11554_v11, %v18344_v7  ;;  %v4068_v54 = vrot.slane %v11554_v11, %v18345_v28 }
 0xd4d   :  { %v14825_v50 = vpop.f32.mrf.mxu0  ;;  %v14827_v47 = vpop.f32.mrf.mxu1  ;;  %v4104_v29 = vrot.slane %v4064_v38, %v18344_v7  ;;  %v4108_v10 = vrot.slane %v4068_v54, %v18344_v7 }
 0xd4f   :  { %v14829_v42 = vpop.f32.mrf.mxu0  ;;  %v14831_v26 = vpop.f32.mrf.mxu1  ;;  %v14841_v2 = vadd.f32 %v14753_v44, %v4104_v29 }
 0xd51   :  { %v4893_v24 = vpop.f32.mrf.mxu0  ;;  %v4934_v16 = vpop.f32.mrf.mxu1 }
 0xd52   :  { %v14848_v16 = vadd.f32 %v14759_v18, %v4108_v10 }
 0xd53   :  { %v4894_v62 = vpop.f32.mrf.mxu0  ;;  %v4935_v35 = vpop.f32.mrf.mxu1 }
 0xd54   :  { %v11555_v35 = vld [vmem:[%s17139_s12 + $0x8] sm:$0x77] }
 0xd55   :  { %v4072_v62 = vrot.slane %v11555_v35, %v18344_v7  ;;  %v4076_v17 = vrot.slane %v11555_v35, %v18345_v28 }
 0xd57   :  { %v4112_v63 = vrot.slane %v4072_v62, %v18344_v7 }
 0xd59   :  { %v14855_v10 = vadd.f32 %v14755_v39, %v4112_v63 }
 0xd5b   :  { %18346 = vst [vmem:[#allocation130_spill] sm:$0xff] %v14855_v10 }
 0xd8d   :  { %v5611_v31 = vpop.f32.mrf.mxu0  ;;  %v5652_v24 = vpop.f32.mrf.mxu1 }
 0xd8e   :  { %v5741_v11 = vadd.f32 %v5611_v31, %v14841_v2  ;;  %v4116_v31 = vrot.slane %v4076_v17, %v18344_v7  ;;  %v5743_v18 = vadd.f32 %v5652_v24, %v14855_v10 }
 0xd8f   :  { %v5613_v32 = vpop.f32.mrf.mxu0  ;;  %v5654_v38 = vpop.f32.mrf.mxu1 }
 0xd90   :  { %v10202_v51 = vmul.f32 -1.442695, %v5741_v11  ;;  %v5742_v54 = vadd.f32 %v5613_v32, %v14848_v16  ;;  %v14860_v32 = vadd.f32 %v14761_v55, %v4116_v31  ;;  %v10204_v11 = vmul.f32 -1.442695, %v5743_v18  ;;  %v11556_v18 = vld [vmem:[%s17139_s12 + $0x10] sm:$0x77] }
 0xd91   :  { %v5615_v29 = vpop.f32.mrf.mxu0  ;;  %v5656_v44 = vpop.f32.mrf.mxu1 }
 0xd92   :  { %11298 = vpow2.f32 %v10202_v51  ;;  %v10203_v41 = vmul.f32 -1.442695, %v5742_v54  ;;  %18347 = vst [vmem:[#allocation71_spill] sm:$0xff] %v14860_v32  ;;  %v5744_v62 = vadd.f32 %v5654_v38, %v14860_v32 }
 0xd93   :  { %v5616_v57 = vpop.f32.mrf.mxu0  ;;  %v5657_v49 = vpop.f32.mrf.mxu1 }
 0xd94   :  { %11300 = vpow2.f32 %v10203_v41 }
 0xd95   :  { %11302 = vpow2.f32 %v10204_v11  ;;  %v4080_v11 = vrot.slane %v11556_v18, %v18344_v7 }
 0xd96   :  { %11304 = vtanh.f32 %v5744_v62  ;;  %v4084_v62 = vrot.slane %v11556_v18, %v18345_v28 }
 0xd9f   :  { %v11299_v51 = vpop.eup %11298 }
 0xda0   :  { %v5770_v54 = vadd.f32 1.0, %v11299_v51  ;;  %v4120_v51 = vrot.slane %v4080_v11, %v18344_v7 }
 0xda1   :  { %v11301_v35 = vpop.eup %11300 }
 0xda2   :  { %11306 = vrcp.f32 %v5770_v54  ;;  %v5771_v49 = vadd.f32 1.0, %v11301_v35  ;;  %v11303_v57 = vpop.eup %11302  ;;  %v4124_v54 = vrot.slane %v4084_v62, %v18344_v7 }
 0xda3   :  { %v11305_v41 = vpop.eup %11304  ;;  %v5772_v24 = vadd.f32 1.0, %v11303_v57  ;;  %v14876_v57 = vadd.f32 %v14825_v50, %v4120_v51 }
 0xda4   :  { %11308 = vrcp.f32 %v5771_v49 }
 0xda5   :  { %11310 = vrcp.f32 %v5772_v24  ;;  %18350 = vst [vmem:[#allocation132_spill] sm:$0xff] %v14876_v57 }
 0xdaf   :  { %v11307_v63 = vpop.eup %11306 }
 0xdb0   :  { %v5800_v17 = vmul.f32 %v11307_v63, %v11305_v41 }
 0xdb1   :  { %v11309_v39 = vpop.eup %11308 }
 0xdb2   :  { %v5799_v29 = vmul.f32 0.0, %v11309_v39  ;;  %v11311_v38 = vpop.eup %11310  ;;  %v14879_v39 = vadd.f32 %v14829_v42, %v4124_v54 }
 0xdb4   :  { %v14863_v55 = vadd.f32 %v5800_v17, %v5799_v29 }
 0xdb6   :  { %18348 = vst [vmem:[#allocation72_spill] sm:$0xff] %v14863_v55  ;;  %11312 = vtanh.f32 %v14863_v55 }
 0xdc3   :  { %v11313_v44 = vpop.eup %11312 }
 0xdc4   :  { %v14866_v31 = vmul.f32 %v11313_v44, %v11311_v38  ;;  %v11557_v38 = vld [vmem:[%s17139_s12 + $0x18] sm:$0x77] }
 0xdc5   :  { %v4088_v44 = vrot.slane %v11557_v38, %v18344_v7  ;;  %v4092_v54 = vrot.slane %v11557_v38, %v18345_v28 }
 0xdc6   :  { %18349 = vst [vmem:[#allocation70_spill] sm:$0xff] %v14866_v31 }
 0xdc7   :  { %v4128_v42 = vrot.slane %v4088_v44, %v18344_v7 }
 0xdcd   :  { %v5693_v35 = vpop.f32.mrf.mxu0  ;;  %v5734_v49 = vpop.f32.mrf.mxu1 }
 0xdce   :  { %v5749_v41 = vrot.slane %v5693_v35, 2 }
 0xdcf   :  { %v5695_v63 = vpop.f32.mrf.mxu0  ;;  %v5736_v17 = vpop.f32.mrf.mxu1 }
 0xdd0   :  { %v5757_v24 = vadd.f32 %v5749_v41, %v14876_v57  ;;  %v5750_v29 = vrot.slane %v5695_v63, 2  ;;  %v5751_v41 = vrot.slane %v5734_v49, 2  ;;  %v14890_v63 = vadd.f32 %v14827_v47, %v4128_v42 }
 0xdd1   :  { %v5697_v18 = vpop.f32.mrf.mxu0  ;;  %v5738_v11 = vpop.f32.mrf.mxu1  ;;  %v4132_v57 = vrot.slane %v4092_v54, %v18344_v7 }
 0xdd2   :  { %v10205_v62 = vmul.f32 -1.442695, %v5757_v24  ;;  %v5758_v50 = vadd.f32 %v5750_v29, %v14879_v39  ;;  %v5759_v18 = vadd.f32 %v5751_v41, %v14890_v63  ;;  %v5752_v24 = vrot.slane %v5736_v17, 2 }
 0xdd3   :  { %v5698_v51 = vpop.f32.mrf.mxu0  ;;  %v5739_v35 = vpop.f32.mrf.mxu1  ;;  %v14895_v29 = vadd.f32 %v14831_v26, %v4132_v57 }
 0xdd4   :  { %11314 = vpow2.f32 %v10205_v62  ;;  %v10206_v55 = vmul.f32 -1.442695, %v5758_v50  ;;  %v10207_v11 = vmul.f32 -1.442695, %v5759_v18 }
 0xdd5   :  { %v5760_v50 = vadd.f32 %v5752_v24, %v14895_v29  ;;  %v14906_v24 = vpack.c.bf16 %v14866_v31, %v14866_v31  ;;  %v18370_v31 = vld [vmem:[#allocation54_spill] sm:$0xff] }
 0xdd6   :  { %11316 = vpow2.f32 %v10206_v55 }
 0xdd7   :  { %11318 = vpow2.f32 %v10207_v11  ;;  %v18352_v11 = vld [vmem:[#allocation36_spill] sm:$0xff] }
 0xde1   :  { %v11315_v62 = vpop.eup %11314 }
 0xde2   :  { %v5789_v44 = vadd.f32 1.0, %v11315_v62  ;;  %v18353_v62 = vld [vmem:[#allocation37_spill] sm:$0xff] }
 0xde3   :  { %v11317_v55 = vpop.eup %11316 }
 0xde4   :  { %11320 = vrcp.f32 %v5789_v44  ;;  %v5790_v28 = vadd.f32 1.0, %v11317_v55  ;;  %v11319_v47 = vpop.eup %11318  ;;  %v18355_v44 = vld [vmem:[#allocation39_spill] sm:$0xff]  ;;  %v18356_v55 = vld [vmem:[#allocation40_spill] sm:$0xff] }
 0xde5   :  { %11322 = vtanh.f32 %v5760_v50  ;;  %v5791_v51 = vadd.f32 1.0, %v11319_v47  ;;  %v18354_v50 = vld [vmem:[#allocation38_spill] sm:$0xff] }
 0xde6   :  { %11324 = vrcp.f32 %v5790_v28  ;;  %v18357_v28 = vld [vmem:[#allocation41_spill] sm:$0xff]  ;;  %v18358_v47 = vld [vmem:[#allocation42_spill] sm:$0xff] }
 0xde7   :  { %11326 = vrcp.f32 %v5791_v51  ;;  %v18362_v51 = vld [vmem:[#allocation46_spill] sm:$0xff] }
 0xdf1   :  { %v11321_v49 = vpop.eup %11320 }
 0xdf2   :  { %v11323_v7 = vpop.eup %11322 }
 0xdf3   :  { %v11325_v38 = vpop.eup %11324  ;;  %v5803_v35 = vmul.f32 %v11323_v7, %v11321_v49  ;;  %v18359_v49 = vld [vmem:[#allocation43_spill] sm:$0xff]  ;;  %v18360_v7 = vld [vmem:[#allocation44_spill] sm:$0xff] }
 0xdf4   :  { %v5802_v17 = vmul.f32 0.0, %v11325_v38  ;;  %v11327_v57 = vpop.eup %11326  ;;  %v18361_v38 = vld [vmem:[#allocation45_spill] sm:$0xff] }
 0xdf6   :  { %v14898_v26 = vadd.f32 %v5803_v35, %v5802_v17  ;;  %v18363_v17 = vld [vmem:[#allocation47_spill] sm:$0xff]  ;;  %v18364_v35 = vld [vmem:[#allocation48_spill] sm:$0xff] }
 0xdf8   :  { %11328 = vtanh.f32 %v14898_v26 }
 0xe05   :  { %v11329_v42 = vpop.eup %11328 }
 0xe06   :  { %v14901_v54 = vmul.f32 %v11329_v42, %v11327_v57  ;;  %v18365_v57 = vld [vmem:[#allocation49_spill] sm:$0xff]  ;;  %v18366_v42 = vld [vmem:[#allocation50_spill] sm:$0xff] }
 0xe08   :  { %18351 = vst [vmem:[#allocation7_spill] sm:$0xff] %v14901_v54  ;;  %v5810_v41 = vrot.slane %v14901_v54, 6  ;;  %v18369_v54 = vld [vmem:[#allocation53_spill] sm:$0xff] }
 0xe0a   :  { %v5813_v18 = vpack.c.bf16 %v5810_v41, %v5810_v41  ;;  %v18367_v41 = vld [vmem:[#allocation51_spill] sm:$0xff] }
 0xe0c   :  { %5846 = vmatprep.mubr.bf16.mxu0 %v5813_v18  ;;  %5887 = vmatprep.mubr.bf16.mxu1 %v5813_v18 }
 0xe0d   :  { %5847 = vmatmul.mubr.bf16.vlgmr.msra.gmra.mxu0 %v14906_v24  ;;  %5888 = vmatmul.mubr.bf16.vlgmr.msra.gmra.mxu1 %v14906_v24 }
 0xe0e   :  { %5897 = vmatpush1.bf16.msra.mxu0 %v18352_v11  ;;  %5938 = vmatpush1.bf16.msra.mxu1 %v18353_v62 }
 0xe0f   :  { %5928 = vmatprep.mubr.bf16.mxu0 %v5813_v18  ;;  %5969 = vmatprep.mubr.bf16.mxu1 %v5813_v18  ;;  %v18368_v18 = vld [vmem:[#allocation52_spill] sm:$0xff] }
 0xe10   :  { %5898 = vmatprep.subr.bf16.mxu0 %v18354_v50  ;;  %5939 = vmatprep.subr.bf16.mxu1 %v18355_v44 }
 0xe12   :  { %5899 = vmatpush1.bf16.msra.mxu0 %v18356_v55  ;;  %5940 = vmatpush1.bf16.msra.mxu1 %v18357_v28 }
 0xe13   :  { %5900 = vmatprep.subr.bf16.mxu0 %v18358_v47  ;;  %5941 = vmatprep.subr.bf16.mxu1 %v18359_v49 }
 0xe16   :  { %5901 = vmatpush1.bf16.msra.mxu0 %v18360_v7  ;;  %5942 = vmatpush1.bf16.msra.mxu1 %v18361_v38  ;;  %v18371_v7 = vld [vmem:[#allocation55_spill] sm:$0xff]  ;;  %v18372_v38 = vld [vmem:[#allocation56_spill] sm:$0xff] }
 0xe17   :  { %5902 = vmatprep.subr.bf16.mxu0 %v18362_v51  ;;  %5943 = vmatprep.subr.bf16.mxu1 %v18363_v17  ;;  %v18373_v51 = vld [vmem:[#allocation57_spill] sm:$0xff]  ;;  %v18374_v17 = vld [vmem:[#allocation58_spill] sm:$0xff] }
 0xe1a   :  { %5903 = vmatpush1.bf16.msra.mxu0 %v18364_v35  ;;  %5944 = vmatpush1.bf16.msra.mxu1 %v18365_v57  ;;  %v18375_v35 = vld [vmem:[#allocation59_spill] sm:$0xff]  ;;  %v18376_v57 = vld [vmem:[#allocation60_spill] sm:$0xff] }
 0xe1b   :  { %5904 = vmatprep.subr.bf16.mxu0 %v18366_v42  ;;  %5945 = vmatprep.subr.bf16.mxu1 %v18367_v41  ;;  %v18377_v42 = vld [vmem:[#allocation61_spill] sm:$0xff]  ;;  %v18378_v41 = vld [vmem:[#allocation62_spill] sm:$0xff] }
 0xe1e   :  { %5905 = vmatpush1.bf16.msra.mxu0 %v18368_v18  ;;  %5946 = vmatpush1.bf16.msra.mxu1 %v18369_v54  ;;  %v18379_v18 = vld [vmem:[#allocation63_spill] sm:$0xff]  ;;  %v18380_v54 = vld [vmem:[#allocation64_spill] sm:$0xff] }
 0xe1f   :  { %5906 = vmatprep.subr.bf16.mxu0 %v18370_v31  ;;  %5947 = vmatprep.subr.bf16.mxu1 %v18371_v7  ;;  %v18381_v31 = vld [vmem:[#allocation65_spill] sm:$0xff]  ;;  %v18382_v7 = vld [vmem:[#allocation66_spill] sm:$0xff] }
 0xe22   :  { %5907 = vmatpush1.bf16.msra.mxu0 %v18372_v38  ;;  %5948 = vmatpush1.bf16.msra.mxu1 %v18373_v51  ;;  %v18383_v38 = vld [vmem:[#allocation67_spill] sm:$0xff]  ;;  %v18384_v51 = vld [vmem:[#allocation68_spill] sm:$0xff] }
 0xe23   :  { %5908 = vmatprep.subr.bf16.mxu0 %v18374_v17  ;;  %5949 = vmatprep.subr.bf16.mxu1 %v18375_v35  ;;  %v18385_v17 = vld [vmem:[#allocation6_spill] sm:$0xff]  ;;  %v18386_v35 = vld [vmem:[#allocation69_spill] sm:$0xff] }
 0xe26   :  { %5909 = vmatpush1.bf16.msra.mxu0 %v18376_v57  ;;  %5950 = vmatpush1.bf16.msra.mxu1 %v18377_v42  ;;  %v18387_v57 = vld [vmem:[#allocation131_spill] sm:$0xff]  ;;  %v18388_v42 = vld [vmem:[#allocation84_spill] sm:$0xff] }
 0xe27   :  { %5910 = vmatprep.subr.bf16.mxu0 %v18378_v41  ;;  %5951 = vmatprep.subr.bf16.mxu1 %v18379_v18  ;;  %v18389_v41 = vld [vmem:[#allocation85_spill] sm:$0xff]  ;;  %v18390_v18 = vld [vmem:[#allocation86_spill] sm:$0xff] }
 0xe2a   :  { %5911 = vmatpush1.bf16.msra.mxu0 %v18380_v54  ;;  %5952 = vmatpush1.bf16.msra.mxu1 %v18381_v31  ;;  %v18391_v54 = vld [vmem:[#allocation87_spill] sm:$0xff]  ;;  %v18392_v31 = vld [vmem:[#allocation88_spill] sm:$0xff] }
 0xe2b   :  { %5912 = vmatprep.subr.bf16.mxu0 %v18382_v7  ;;  %5953 = vmatprep.subr.bf16.mxu1 %v18383_v38  ;;  %v18393_v7 = vld [vmem:[#allocation89_spill] sm:$0xff]  ;;  %v18394_v38 = vld [vmem:[#allocation90_spill] sm:$0xff] }
 0xe2e   :  { %5913 = vmatpush2.bf16.msra.mxu0 %v18384_v51  ;;  %5954 = vmatpush2.bf16.msra.mxu1 %v18385_v17  ;;  %v18395_v51 = vld [vmem:[#allocation91_spill] sm:$0xff]  ;;  %v18396_v17 = vld [vmem:[#allocation92_spill] sm:$0xff] }
 0xe2f   :  { %5914 = vmatprep.subr.bf16.mxu0 %v18386_v35  ;;  %5955 = vmatprep.subr.bf16.mxu1 %v18387_v57  ;;  %v18397_v35 = vld [vmem:[#allocation93_spill] sm:$0xff]  ;;  %v18398_v57 = vld [vmem:[#allocation94_spill] sm:$0xff] }
 0xe32   :  { %5915 = vmatpush2.bf16.msra.mxu0 %v18388_v42  ;;  %5956 = vmatpush2.bf16.msra.mxu1 %v18389_v41  ;;  %v18399_v42 = vld [vmem:[#allocation95_spill] sm:$0xff]  ;;  %v18400_v41 = vld [vmem:[#allocation96_spill] sm:$0xff] }
 0xe33   :  { %5916 = vmatprep.subr.bf16.mxu0 %v18390_v18  ;;  %5957 = vmatprep.subr.bf16.mxu1 %v18391_v54  ;;  %v18401_v18 = vld [vmem:[#allocation97_spill] sm:$0xff]  ;;  %v18402_v54 = vld [vmem:[#allocation98_spill] sm:$0xff] }
 0xe36   :  { %5917 = vmatpush2.bf16.msra.mxu0 %v18392_v31  ;;  %5958 = vmatpush2.bf16.msra.mxu1 %v18393_v7  ;;  %v18403_v31 = vld [vmem:[#allocation99_spill] sm:$0xff]  ;;  %v18404_v7 = vld [vmem:[#allocation120_spill] sm:$0xff] }
 0xe37   :  { %5918 = vmatprep.subr.bf16.mxu0 %v18394_v38  ;;  %5959 = vmatprep.subr.bf16.mxu1 %v18395_v51 }
 0xe3a   :  { %5919 = vmatpush2.bf16.msra.mxu0 %v18396_v17  ;;  %5960 = vmatpush2.bf16.msra.mxu1 %v18397_v35 }
 0xe3b   :  { %5920 = vmatprep.subr.bf16.mxu0 %v18398_v57  ;;  %5961 = vmatprep.subr.bf16.mxu1 %v18399_v42 }
 0xe3e   :  { %5921 = vmatpush2.bf16.msra.mxu0 %v18400_v41  ;;  %5962 = vmatpush2.bf16.msra.mxu1 %v18401_v18 }
 0xe3f   :  { %5922 = vmatprep.subr.bf16.mxu0 %v18402_v54  ;;  %5963 = vmatprep.subr.bf16.mxu1 %v18403_v31 }
 0xe42   :  { %5923 = vmatpush2.bf16.msra.mxu0 %v18404_v7  ;;  %5964 = vmatpush2.bf16.msra.mxu1 %v14707_v52 }
 0xe43   :  { %5924 = vmatprep.subr.bf16.mxu0 %v14711_v46  ;;  %5965 = vmatprep.subr.bf16.mxu1 %v14713_v14 }
 0xe46   :  { %5925 = vmatpush2.bf16.msra.mxu0 %v14729_v48  ;;  %5966 = vmatpush2.bf16.msra.mxu1 %v14731_v8 }
 0xe47   :  { %5926 = vmatprep.subr.bf16.mxu0 %v14735_v45  ;;  %5967 = vmatprep.subr.bf16.mxu1 %v14737_v3 }
 0xe4a   :  { %5927 = vmatpush2.bf16.msra.mxu0 %v14741_v9  ;;  %5968 = vmatpush2.bf16.msra.mxu1 %v14743_v25 }
 0xe4b   :  { %6075 = vmatprep.subr.bf16.mxu0 %v13985_v27  ;;  %6116 = vmatprep.subr.bf16.mxu1 %v13987_v61 }
 0xe4d   :  { %5929 = vmatmul.mubr.bf16.vlgmr.msra.gmra.mxu0 %v14906_v24  ;;  %5970 = vmatmul.mubr.bf16.vlgmr.msra.gmra.mxu1 %v14906_v24  ;;  %v18405_v24 = vld [vmem:[#allocation81_spill] sm:$0xff] }
 0xe4e   :  { %6076 = vmatpush1.bf16.msra.mxu0 %v14001_v21  ;;  %6117 = vmatpush1.bf16.msra.mxu1 %v14003_v20 }
 0xe4f   :  { %6077 = vmatprep.subr.bf16.mxu0 %v14007_v5  ;;  %6118 = vmatprep.subr.bf16.mxu1 %v14009_v30 }
 0xe52   :  { %6078 = vmatpush1.bf16.msra.mxu0 %v14027_v22  ;;  %6119 = vmatpush1.bf16.msra.mxu1 %v14029_v23 }
 0xe53   :  { %6079 = vmatprep.subr.bf16.mxu0 %v14033_v33  ;;  %6120 = vmatprep.subr.bf16.mxu1 %v14035_v37 }
 0xe56   :  { %6080 = vmatpush1.bf16.msra.mxu0 %v14053_v0  ;;  %6121 = vmatpush1.bf16.msra.mxu1 %v14055_v1 }
 0xe57   :  { %6081 = vmatprep.subr.bf16.mxu0 %v14059_v40  ;;  %6122 = vmatprep.subr.bf16.mxu1 %v14061_v15 }
 0xe5a   :  { %6082 = vmatpush1.bf16.msra.mxu0 %v14077_v59  ;;  %6123 = vmatpush1.bf16.msra.mxu1 %v14079_v43 }
 0xe5b   :  { %6083 = vmatprep.subr.bf16.mxu0 %v14083_v60  ;;  %6124 = vmatprep.subr.bf16.mxu1 %v14085_v53  ;;  %v18406_v53 = vld [vmem:[#allocation82_spill] sm:$0xff] }
 0xe5e   :  { %6084 = vmatpush1.bf16.msra.mxu0 %v14101_v6  ;;  %6125 = vmatpush1.bf16.msra.mxu1 %v14103_v13  ;;  %v18407_v6 = vld [vmem:[#allocation83_spill] sm:$0xff]  ;;  %v18408_v13 = vld [vmem:[#allocation100_spill] sm:$0xff] }
 0xe5f   :  { %6085 = vmatprep.subr.bf16.mxu0 %v14107_v56  ;;  %6126 = vmatprep.subr.bf16.mxu1 %v14109_v58  ;;  %v18409_v56 = vld [vmem:[#allocation101_spill] sm:$0xff]  ;;  %v18410_v58 = vld [vmem:[#allocation102_spill] sm:$0xff] }
 0xe62   :  { %6086 = vmatpush1.bf16.msra.mxu0 %v14125_v4  ;;  %6127 = vmatpush1.bf16.msra.mxu1 %v14127_v34  ;;  %v18411_v4 = vld [vmem:[#allocation103_spill] sm:$0xff]  ;;  %v18412_v34 = vld [vmem:[#allocation104_spill] sm:$0xff] }
 0xe63   :  { %6087 = vmatprep.subr.bf16.mxu0 %v14131_v36  ;;  %6128 = vmatprep.subr.bf16.mxu1 %v14133_v12  ;;  %v18413_v36 = vld [vmem:[#allocation105_spill] sm:$0xff]  ;;  %v18414_v12 = vld [vmem:[#allocation106_spill] sm:$0xff] }
 0xe66   :  { %6088 = vmatpush1.bf16.msra.mxu0 %v14149_v19  ;;  %6129 = vmatpush1.bf16.msra.mxu1 %v18405_v24  ;;  %v18415_v19 = vld [vmem:[#allocation107_spill] sm:$0xff]  ;;  %v18416_v24 = vld [vmem:[#allocation108_spill] sm:$0xff] }
 0xe67   :  { %6089 = vmatprep.subr.bf16.mxu0 %v18406_v53  ;;  %6130 = vmatprep.subr.bf16.mxu1 %v18407_v6  ;;  %v18417_v53 = vld [vmem:[#allocation109_spill] sm:$0xff]  ;;  %v18418_v6 = vld [vmem:[#allocation110_spill] sm:$0xff] }
 0xe6a   :  { %6090 = vmatpush1.bf16.msra.mxu0 %v18408_v13  ;;  %6131 = vmatpush1.bf16.msra.mxu1 %v18409_v56  ;;  %v18419_v13 = vld [vmem:[#allocation11_spill] sm:$0xff]  ;;  %v18420_v56 = vld [vmem:[#allocation12_spill] sm:$0xff] }
 0xe6b   :  { %6091 = vmatprep.subr.bf16.mxu0 %v18410_v58  ;;  %6132 = vmatprep.subr.bf16.mxu1 %v18411_v4  ;;  %v18421_v58 = vld [vmem:[#allocation13_spill] sm:$0xff]  ;;  %v18422_v4 = vld [vmem:[#allocation14_spill] sm:$0xff] }
 0xe6e   :  { %6092 = vmatpush2.bf16.msra.mxu0 %v18412_v34  ;;  %6133 = vmatpush2.bf16.msra.mxu1 %v18413_v36  ;;  %v18423_v34 = vld [vmem:[#allocation15_spill] sm:$0xff]  ;;  %v18424_v36 = vld [vmem:[#allocation16_spill] sm:$0xff] }
 0xe6f   :  { %6093 = vmatprep.subr.bf16.mxu0 %v18414_v12  ;;  %6134 = vmatprep.subr.bf16.mxu1 %v18415_v19  ;;  %v18425_v12 = vld [vmem:[#allocation17_spill] sm:$0xff]  ;;  %v18426_v19 = vld [vmem:[#allocation18_spill] sm:$0xff] }
 0xe72   :  { %6094 = vmatpush2.bf16.msra.mxu0 %v18416_v24  ;;  %6135 = vmatpush2.bf16.msra.mxu1 %v18417_v53  ;;  %v18427_v24 = vld [vmem:[#allocation19_spill] sm:$0xff]  ;;  %v18428_v53 = vld [vmem:[#allocation20_spill] sm:$0xff] }
 0xe73   :  { %6095 = vmatprep.subr.bf16.mxu0 %v18418_v6  ;;  %6136 = vmatprep.subr.bf16.mxu1 %v18419_v13  ;;  %v18429_v6 = vld [vmem:[#allocation21_spill] sm:$0xff]  ;;  %v18430_v13 = vld [vmem:[#allocation22_spill] sm:$0xff] }
 0xe76   :  { %6096 = vmatpush2.bf16.msra.mxu0 %v18420_v56  ;;  %6137 = vmatpush2.bf16.msra.mxu1 %v18421_v58  ;;  %v18431_v56 = vld [vmem:[#allocation23_spill] sm:$0xff]  ;;  %v18432_v58 = vld [vmem:[#allocation24_spill] sm:$0xff] }
 0xe77   :  { %6097 = vmatprep.subr.bf16.mxu0 %v18422_v4  ;;  %6138 = vmatprep.subr.bf16.mxu1 %v18423_v34  ;;  %v18433_v4 = vld [vmem:[#allocation25_spill] sm:$0xff]  ;;  %v18434_v34 = vld [vmem:[#allocation26_spill] sm:$0xff] }
 0xe7a   :  { %6098 = vmatpush2.bf16.msra.mxu0 %v18424_v36  ;;  %6139 = vmatpush2.bf16.msra.mxu1 %v18425_v12  ;;  %v18435_v36 = vld [vmem:[#allocation27_spill] sm:$0xff]  ;;  %v18436_v12 = vld [vmem:[#allocation28_spill] sm:$0xff] }
 0xe7b   :  { %6099 = vmatprep.subr.bf16.mxu0 %v18426_v19  ;;  %6140 = vmatprep.subr.bf16.mxu1 %v18427_v24  ;;  %v18437_v19 = vld [vmem:[#allocation29_spill] sm:$0xff]  ;;  %v18438_v24 = vld [vmem:[#allocation30_spill] sm:$0xff] }
 0xe7e   :  { %6100 = vmatpush2.bf16.msra.mxu0 %v18428_v53  ;;  %6141 = vmatpush2.bf16.msra.mxu1 %v18429_v6  ;;  %v18439_v53 = vld [vmem:[#allocation31_spill] sm:$0xff]  ;;  %v18440_v6 = vld [vmem:[#allocation32_spill] sm:$0xff] }
 0xe7f   :  { %6101 = vmatprep.subr.bf16.mxu0 %v18430_v13  ;;  %6142 = vmatprep.subr.bf16.mxu1 %v18431_v56  ;;  %v18441_v13 = vld [vmem:[#allocation33_spill] sm:$0xff]  ;;  %v18442_v56 = vld [vmem:[#allocation34_spill] sm:$0xff] }
 0xe82   :  { %6102 = vmatpush2.bf16.msra.mxu0 %v18432_v58  ;;  %6143 = vmatpush2.bf16.msra.mxu1 %v18433_v4  ;;  %v18443_v58 = vld [vmem:[#allocation35_spill] sm:$0xff] }
 0xe83   :  { %6103 = vmatprep.subr.bf16.mxu0 %v18434_v34  ;;  %6144 = vmatprep.subr.bf16.mxu1 %v18435_v36 }
 0xe86   :  { %6104 = vmatpush2.bf16.msra.mxu0 %v18436_v12  ;;  %6145 = vmatpush2.bf16.msra.mxu1 %v18437_v19 }
 0xe87   :  { %6105 = vmatprep.subr.bf16.mxu0 %v18438_v24  ;;  %6146 = vmatprep.subr.bf16.mxu1 %v18439_v53 }
 0xe8a   :  { %6106 = vmatpush2.bf16.msra.mxu0 %v18440_v6  ;;  %6147 = vmatpush2.bf16.msra.mxu1 %v18441_v13 }
 0xe8b   :  { %6157 = vmatprep.subr.bf16.mxu0 %v18442_v56  ;;  %6198 = vmatprep.subr.bf16.mxu1 %v18443_v58 }
 0xecd   :  { %v5848_v4 = vpop.f32.mrf.mxu0  ;;  %v5889_v34 = vpop.f32.mrf.mxu1 }
 0xece   :  { %v5982_v60 = vrot.slane %v5848_v4, 6  ;;  %v5984_v56 = vrot.slane %v5889_v34, 6 }
 0xecf   :  { %v5850_v36 = vpop.f32.mrf.mxu0  ;;  %v5891_v43 = vpop.f32.mrf.mxu1 }
 0xed0   :  { %v5990_v12 = vadd.f32 %v5982_v60, %v14841_v2  ;;  %v5983_v19 = vrot.slane %v5850_v36, 6  ;;  %v5992_v58 = vadd.f32 %v5984_v56, %v14855_v10  ;;  %v5985_v1 = vrot.slane %v5891_v43, 6 }
 0xed1   :  { %v5852_v59 = vpop.f32.mrf.mxu0  ;;  %v5893_v24 = vpop.f32.mrf.mxu1 }
 0xed2   :  { %v10208_v15 = vmul.f32 -1.442695, %v5990_v12  ;;  %v5991_v53 = vadd.f32 %v5983_v19, %v14848_v16  ;;  %v10210_v4 = vmul.f32 -1.442695, %v5992_v58  ;;  %v5993_v0 = vadd.f32 %v5985_v1, %v14860_v32 }
 0xed3   :  { %v5853_v6 = vpop.f32.mrf.mxu0  ;;  %v5894_v40 = vpop.f32.mrf.mxu1 }
 0xed4   :  { %11330 = vpow2.f32 %v10208_v15  ;;  %v10209_v13 = vmul.f32 -1.442695, %v5991_v53  ;;  %v18444_v53 = vld [vmem:[#allocation72_spill] sm:$0xff] }
 0xed5   :  { %v6049_v34 = vrot.slane %v18444_v53, 6 }
 0xed6   :  { %11332 = vpow2.f32 %v10209_v13 }
 0xed7   :  { %11334 = vpow2.f32 %v10210_v4 }
 0xed8   :  { %11336 = vtanh.f32 %v5993_v0 }
 0xee1   :  { %v11331_v37 = vpop.eup %11330 }
 0xee2   :  { %v6019_v60 = vadd.f32 1.0, %v11331_v37 }
 0xee3   :  { %v11333_v59 = vpop.eup %11332 }
 0xee4   :  { %11338 = vrcp.f32 %v6019_v60  ;;  %v6020_v36 = vadd.f32 1.0, %v11333_v59  ;;  %v11335_v6 = vpop.eup %11334 }
 0xee5   :  { %v11337_v40 = vpop.eup %11336  ;;  %v6021_v56 = vadd.f32 1.0, %v11335_v6 }
 0xee6   :  { %11340 = vrcp.f32 %v6020_v36  ;;  %v18446_v36 = vld [vmem:[#allocation132_spill] sm:$0xff] }
 0xee7   :  { %11342 = vrcp.f32 %v6021_v56 }
 0xef1   :  { %v11339_v15 = vpop.eup %11338 }
 0xef2   :  { %v6052_v13 = vmul.f32 %v11339_v15, %v11337_v40 }
 0xef3   :  { %v11341_v12 = vpop.eup %11340 }
 0xef4   :  { %v6051_v43 = vmul.f32 %v11341_v12, %v6049_v34  ;;  %v11343_v37 = vpop.eup %11342 }
 0xef6   :  { %v15045_v58 = vadd.f32 %v6052_v13, %v6051_v43 }
 0xef8   :  { %18445 = vst [vmem:[#allocation10_spill] sm:$0xff] %v15045_v58  ;;  %11344 = vtanh.f32 %v15045_v58 }
 0xf05   :  { %v11345_v1 = vpop.eup %11344 }
 0xf06   :  { %v15048_v0 = vmul.f32 %v11345_v1, %v11343_v37 }
 0xf0d   :  { %v5930_v19 = vpop.f32.mrf.mxu0  ;;  %v5971_v24 = vpop.f32.mrf.mxu1 }
 0xf0e   :  { %v5998_v4 = vrot.slane %v5930_v19, 4  ;;  %v6000_v37 = vrot.slane %v5971_v24, 4 }
 0xf0f   :  { %v5932_v60 = vpop.f32.mrf.mxu0  ;;  %v5973_v59 = vpop.f32.mrf.mxu1 }
 0xf10   :  { %v6006_v53 = vadd.f32 %v5998_v4, %v18446_v36  ;;  %v5999_v40 = vrot.slane %v5932_v60, 4  ;;  %v6008_v1 = vadd.f32 %v6000_v37, %v14890_v63  ;;  %v6001_v58 = vrot.slane %v5973_v59, 4 }
 0xf11   :  { %v5934_v15 = vpop.f32.mrf.mxu0  ;;  %v5975_v6 = vpop.f32.mrf.mxu1  ;;  %v6067_v37 = vpack.c.bf16 %v15048_v0, %v15048_v0 }
 0xf12   :  { %v10211_v34 = vmul.f32 -1.442695, %v6006_v53  ;;  %v6007_v13 = vadd.f32 %v5999_v40, %v14879_v39  ;;  %v10213_v19 = vmul.f32 -1.442695, %v6008_v1  ;;  %v6009_v10 = vadd.f32 %v6001_v58, %v14895_v29 }
 0xf13   :  { %v5935_v12 = vpop.f32.mrf.mxu0  ;;  %v5976_v56 = vpop.f32.mrf.mxu1 }
 0xf14   :  { %11346 = vpow2.f32 %v10211_v34  ;;  %v10212_v43 = vmul.f32 -1.442695, %v6007_v13  ;;  %v6055_v34 = vrot.slane %v14898_v26, 2 }
 0xf16   :  { %11348 = vpow2.f32 %v10212_v43 }
 0xf17   :  { %11350 = vpow2.f32 %v10213_v19  ;;  %v15063_v19 = vrot.slane %v6067_v37, 1  ;;  %v18462_v37 = vld [vmem:[#allocation58_spill] sm:$0xff] }
 0xf21   :  { %v11347_v32 = vpop.eup %11346 }
 0xf22   :  { %v6038_v4 = vadd.f32 1.0, %v11347_v32 }
 0xf23   :  { %v11349_v60 = vpop.eup %11348 }
 0xf24   :  { %11352 = vrcp.f32 %v6038_v4  ;;  %v6039_v53 = vadd.f32 1.0, %v11349_v60  ;;  %v11351_v40 = vpop.eup %11350  ;;  %v18448_v4 = vld [vmem:[#allocation44_spill] sm:$0xff]  ;;  %v18449_v60 = vld [vmem:[#allocation45_spill] sm:$0xff] }
 0xf25   :  { %11354 = vtanh.f32 %v6009_v10  ;;  %v6040_v13 = vadd.f32 1.0, %v11351_v40  ;;  %v18451_v40 = vld [vmem:[#allocation47_spill] sm:$0xff] }
 0xf26   :  { %11356 = vrcp.f32 %v6039_v53  ;;  %v18450_v53 = vld [vmem:[#allocation46_spill] sm:$0xff] }
 0xf27   :  { %11358 = vrcp.f32 %v6040_v13  ;;  %v18456_v13 = vld [vmem:[#allocation52_spill] sm:$0xff] }
 0xf31   :  { %v11353_v15 = vpop.eup %11352 }
 0xf32   :  { %v11355_v6 = vpop.eup %11354 }
 0xf33   :  { %v11357_v24 = vpop.eup %11356  ;;  %v6058_v59 = vmul.f32 %v11355_v6, %v11353_v15  ;;  %v18452_v15 = vld [vmem:[#allocation48_spill] sm:$0xff]  ;;  %v18453_v6 = vld [vmem:[#allocation49_spill] sm:$0xff] }
 0xf34   :  { %v6057_v12 = vmul.f32 %v11357_v24, %v6055_v34  ;;  %v11359_v32 = vpop.eup %11358  ;;  %v18454_v34 = vld [vmem:[#allocation50_spill] sm:$0xff]  ;;  %v18455_v24 = vld [vmem:[#allocation51_spill] sm:$0xff] }
 0xf36   :  { %v15055_v56 = vadd.f32 %v6058_v59, %v6057_v12  ;;  %v18457_v12 = vld [vmem:[#allocation53_spill] sm:$0xff]  ;;  %v18458_v59 = vld [vmem:[#allocation54_spill] sm:$0xff] }
 0xf38   :  { %11360 = vtanh.f32 %v15055_v56 }
 0xf45   :  { %v11361_v58 = vpop.eup %11360 }
 0xf46   :  { %v15058_v43 = vmul.f32 %v11361_v58, %v11359_v32  ;;  %v18459_v32 = vld [vmem:[#allocation55_spill] sm:$0xff]  ;;  %v18460_v58 = vld [vmem:[#allocation56_spill] sm:$0xff] }
 0xf48   :  { %18447 = vst [vmem:[#allocation36_spill] sm:$0xff] %v15058_v43  ;;  %v6065_v10 = vrot.slane %v15058_v43, 2  ;;  %v18465_v43 = vld [vmem:[#allocation61_spill] sm:$0xff] }
 0xf4a   :  { %v6068_v1 = vpack.c.bf16 %v6065_v10, %v6065_v10  ;;  %v18461_v10 = vld [vmem:[#allocation57_spill] sm:$0xff] }
 0xf4c   :  { %v6072_v26 = vrot.slane %v6068_v1, 1  ;;  %v18463_v1 = vld [vmem:[#allocation59_spill] sm:$0xff] }
 0xf4e   :  { %6107 = vmatprep.mubr.bf16.mxu0 %v6072_v26  ;;  %6148 = vmatprep.mubr.bf16.mxu1 %v6072_v26 }
 0xf4f   :  { %6108 = vmatmul.mubr.bf16.vlgmr.msra.gmra.mxu0 %v15063_v19  ;;  %6149 = vmatmul.mubr.bf16.vlgmr.msra.gmra.mxu1 %v15063_v19 }
 0xf50   :  { %6158 = vmatpush1.bf16.msra.mxu0 %v18352_v11  ;;  %6199 = vmatpush1.bf16.msra.mxu1 %v18353_v62 }
 0xf51   :  { %6189 = vmatprep.mubr.bf16.mxu0 %v6072_v26  ;;  %6230 = vmatprep.mubr.bf16.mxu1 %v6072_v26  ;;  %v18464_v26 = vld [vmem:[#allocation60_spill] sm:$0xff] }
 0xf52   :  { %6159 = vmatprep.subr.bf16.mxu0 %v18354_v50  ;;  %6200 = vmatprep.subr.bf16.mxu1 %v18355_v44 }
 0xf54   :  { %6160 = vmatpush1.bf16.msra.mxu0 %v18356_v55  ;;  %6201 = vmatpush1.bf16.msra.mxu1 %v18357_v28 }
 0xf55   :  { %6161 = vmatprep.subr.bf16.mxu0 %v18358_v47  ;;  %6202 = vmatprep.subr.bf16.mxu1 %v18359_v49 }
 0xf58   :  { %6162 = vmatpush1.bf16.msra.mxu0 %v18448_v4  ;;  %6203 = vmatpush1.bf16.msra.mxu1 %v18449_v60 }
 0xf59   :  { %6163 = vmatprep.subr.bf16.mxu0 %v18450_v53  ;;  %6204 = vmatprep.subr.bf16.mxu1 %v18451_v40 }
 0xf5c   :  { %6164 = vmatpush1.bf16.msra.mxu0 %v18452_v15  ;;  %6205 = vmatpush1.bf16.msra.mxu1 %v18453_v6 }
 0xf5d   :  { %6165 = vmatprep.subr.bf16.mxu0 %v18454_v34  ;;  %6206 = vmatprep.subr.bf16.mxu1 %v18455_v24  ;;  %v18466_v24 = vld [vmem:[#allocation62_spill] sm:$0xff] }
 0xf60   :  { %6166 = vmatpush1.bf16.msra.mxu0 %v18456_v13  ;;  %6207 = vmatpush1.bf16.msra.mxu1 %v18457_v12  ;;  %v18467_v13 = vld [vmem:[#allocation63_spill] sm:$0xff]  ;;  %v18468_v12 = vld [vmem:[#allocation64_spill] sm:$0xff] }
 0xf61   :  { %6167 = vmatprep.subr.bf16.mxu0 %v18458_v59  ;;  %6208 = vmatprep.subr.bf16.mxu1 %v18459_v32  ;;  %v18469_v59 = vld [vmem:[#allocation65_spill] sm:$0xff]  ;;  %v18470_v32 = vld [vmem:[#allocation66_spill] sm:$0xff] }
 0xf64   :  { %6168 = vmatpush1.bf16.msra.mxu0 %v18460_v58  ;;  %6209 = vmatpush1.bf16.msra.mxu1 %v18461_v10  ;;  %v18471_v58 = vld [vmem:[#allocation67_spill] sm:$0xff]  ;;  %v18472_v10 = vld [vmem:[#allocation68_spill] sm:$0xff] }
 0xf65   :  { %6169 = vmatprep.subr.bf16.mxu0 %v18462_v37  ;;  %6210 = vmatprep.subr.bf16.mxu1 %v18463_v1  ;;  %v18473_v37 = vld [vmem:[#allocation6_spill] sm:$0xff]  ;;  %v18474_v1 = vld [vmem:[#allocation69_spill] sm:$0xff] }
 0xf68   :  { %6170 = vmatpush1.bf16.msra.mxu0 %v18464_v26  ;;  %6211 = vmatpush1.bf16.msra.mxu1 %v18465_v43  ;;  %v18475_v26 = vld [vmem:[#allocation131_spill] sm:$0xff]  ;;  %v18476_v43 = vld [vmem:[#allocation84_spill] sm:$0xff] }
 0xf69   :  { %6171 = vmatprep.subr.bf16.mxu0 %v18466_v24  ;;  %6212 = vmatprep.subr.bf16.mxu1 %v18467_v13  ;;  %v18477_v24 = vld [vmem:[#allocation85_spill] sm:$0xff]  ;;  %v18478_v13 = vld [vmem:[#allocation86_spill] sm:$0xff] }
 0xf6c   :  { %6172 = vmatpush1.bf16.msra.mxu0 %v18468_v12  ;;  %6213 = vmatpush1.bf16.msra.mxu1 %v18469_v59  ;;  %v18479_v12 = vld [vmem:[#allocation87_spill] sm:$0xff]  ;;  %v18480_v59 = vld [vmem:[#allocation88_spill] sm:$0xff] }
 0xf6d   :  { %6173 = vmatprep.subr.bf16.mxu0 %v18470_v32  ;;  %6214 = vmatprep.subr.bf16.mxu1 %v18471_v58  ;;  %v18481_v32 = vld [vmem:[#allocation89_spill] sm:$0xff] }
 0xf70   :  { %6174 = vmatpush2.bf16.msra.mxu0 %v18472_v10  ;;  %6215 = vmatpush2.bf16.msra.mxu1 %v18473_v37 }
 0xf71   :  { %6175 = vmatprep.subr.bf16.mxu0 %v18474_v1  ;;  %6216 = vmatprep.subr.bf16.mxu1 %v18475_v26 }
 0xf74   :  { %6176 = vmatpush2.bf16.msra.mxu0 %v18476_v43  ;;  %6217 = vmatpush2.bf16.msra.mxu1 %v18477_v24 }
 0xf75   :  { %6177 = vmatprep.subr.bf16.mxu0 %v18478_v13  ;;  %6218 = vmatprep.subr.bf16.mxu1 %v18479_v12 }
 0xf78   :  { %6178 = vmatpush2.bf16.msra.mxu0 %v18480_v59  ;;  %6219 = vmatpush2.bf16.msra.mxu1 %v18481_v32 }
 0xf79   :  { %6179 = vmatprep.subr.bf16.mxu0 %v18394_v38  ;;  %6220 = vmatprep.subr.bf16.mxu1 %v18395_v51 }
 0xf7c   :  { %6180 = vmatpush2.bf16.msra.mxu0 %v18396_v17  ;;  %6221 = vmatpush2.bf16.msra.mxu1 %v18397_v35 }
 0xf7d   :  { %6181 = vmatprep.subr.bf16.mxu0 %v18398_v57  ;;  %6222 = vmatprep.subr.bf16.mxu1 %v18399_v42 }
 0xf80   :  { %6182 = vmatpush2.bf16.msra.mxu0 %v18400_v41  ;;  %6223 = vmatpush2.bf16.msra.mxu1 %v18401_v18 }
 0xf81   :  { %6183 = vmatprep.subr.bf16.mxu0 %v18402_v54  ;;  %6224 = vmatprep.subr.bf16.mxu1 %v18403_v31 }
 0xf84   :  { %6184 = vmatpush2.bf16.msra.mxu0 %v18404_v7  ;;  %6225 = vmatpush2.bf16.msra.mxu1 %v14707_v52  ;;  %v18540_v52 = vld [vmem:[#allocation71_spill] sm:$0xff] }
 0xf85   :  { %6185 = vmatprep.subr.bf16.mxu0 %v14711_v46  ;;  %6226 = vmatprep.subr.bf16.mxu1 %v14713_v14 }
 0xf88   :  { %6186 = vmatpush2.bf16.msra.mxu0 %v14729_v48  ;;  %6227 = vmatpush2.bf16.msra.mxu1 %v14731_v8 }
 0xf89   :  { %6187 = vmatprep.subr.bf16.mxu0 %v14735_v45  ;;  %6228 = vmatprep.subr.bf16.mxu1 %v14737_v3 }
 0xf8c   :  { %6188 = vmatpush2.bf16.msra.mxu0 %v14741_v9  ;;  %6229 = vmatpush2.bf16.msra.mxu1 %v14743_v25  ;;  %v18484_v25 = vld [vmem:[#allocation75_spill] sm:$0xff] }
 0xf8d   :  { %6336 = vmatprep.subr.bf16.mxu0 %v13985_v27  ;;  %6377 = vmatprep.subr.bf16.mxu1 %v13987_v61  ;;  %v18482_v27 = vld [vmem:[#allocation73_spill] sm:$0xff]  ;;  %v18483_v61 = vld [vmem:[#allocation74_spill] sm:$0xff] }
 0xf8f   :  { %6190 = vmatmul.mubr.bf16.vlgmr.msra.gmra.mxu0 %v15063_v19  ;;  %6231 = vmatmul.mubr.bf16.vlgmr.msra.gmra.mxu1 %v15063_v19  ;;  %v18485_v19 = vld [vmem:[#allocation76_spill] sm:$0xff] }
 0xf90   :  { %6337 = vmatpush1.bf16.msra.mxu0 %v14001_v21  ;;  %6378 = vmatpush1.bf16.msra.mxu1 %v14003_v20  ;;  %v18486_v21 = vld [vmem:[#allocation111_spill] sm:$0xff]  ;;  %v18487_v20 = vld [vmem:[#allocation112_spill] sm:$0xff] }
 0xf91   :  { %6338 = vmatprep.subr.bf16.mxu0 %v14007_v5  ;;  %6379 = vmatprep.subr.bf16.mxu1 %v14009_v30  ;;  %v18488_v5 = vld [vmem:[#allocation113_spill] sm:$0xff]  ;;  %v18489_v30 = vld [vmem:[#allocation114_spill] sm:$0xff] }
 0xf94   :  { %6339 = vmatpush1.bf16.msra.mxu0 %v14027_v22  ;;  %6380 = vmatpush1.bf16.msra.mxu1 %v14029_v23  ;;  %v18490_v22 = vld [vmem:[#allocation115_spill] sm:$0xff]  ;;  %v18491_v23 = vld [vmem:[#allocation116_spill] sm:$0xff] }
 0xf95   :  { %6340 = vmatprep.subr.bf16.mxu0 %v14033_v33  ;;  %6381 = vmatprep.subr.bf16.mxu1 %v18482_v27  ;;  %v18492_v33 = vld [vmem:[#allocation117_spill] sm:$0xff]  ;;  %v18493_v27 = vld [vmem:[#allocation118_spill] sm:$0xff] }
 0xf98   :  { %6341 = vmatpush1.bf16.msra.mxu0 %v18483_v61  ;;  %6382 = vmatpush1.bf16.msra.mxu1 %v18484_v25  ;;  %v18494_v61 = vld [vmem:[#allocation119_spill] sm:$0xff]  ;;  %v18495_v25 = vld [vmem:[#allocation9_spill] sm:$0xff] }
 0xf99   :  { %6342 = vmatprep.subr.bf16.mxu0 %v18485_v19  ;;  %6383 = vmatprep.subr.bf16.mxu1 %v18486_v21  ;;  %v18496_v19 = vld [vmem:[#allocation77_spill] sm:$0xff]  ;;  %v18497_v21 = vld [vmem:[#allocation78_spill] sm:$0xff] }
 0xf9c   :  { %6343 = vmatpush1.bf16.msra.mxu0 %v18487_v20  ;;  %6384 = vmatpush1.bf16.msra.mxu1 %v18488_v5  ;;  %v18498_v20 = vld [vmem:[#allocation79_spill] sm:$0xff]  ;;  %v18499_v5 = vld [vmem:[#allocation80_spill] sm:$0xff] }
 0xf9d   :  { %6344 = vmatprep.subr.bf16.mxu0 %v18489_v30  ;;  %6385 = vmatprep.subr.bf16.mxu1 %v18490_v22  ;;  %v18500_v30 = vld [vmem:[#allocation81_spill] sm:$0xff]  ;;  %v18501_v22 = vld [vmem:[#allocation82_spill] sm:$0xff] }
 0xfa0   :  { %6345 = vmatpush1.bf16.msra.mxu0 %v18491_v23  ;;  %6386 = vmatpush1.bf16.msra.mxu1 %v18492_v33  ;;  %v18502_v23 = vld [vmem:[#allocation83_spill] sm:$0xff]  ;;  %v18503_v33 = vld [vmem:[#allocation100_spill] sm:$0xff] }
 0xfa1   :  { %6346 = vmatprep.subr.bf16.mxu0 %v18493_v27  ;;  %6387 = vmatprep.subr.bf16.mxu1 %v18494_v61  ;;  %v18504_v27 = vld [vmem:[#allocation101_spill] sm:$0xff]  ;;  %v18505_v61 = vld [vmem:[#allocation102_spill] sm:$0xff] }
 0xfa4   :  { %6347 = vmatpush1.bf16.msra.mxu0 %v18495_v25  ;;  %6388 = vmatpush1.bf16.msra.mxu1 %v18496_v19  ;;  %v18506_v25 = vld [vmem:[#allocation103_spill] sm:$0xff]  ;;  %v18507_v19 = vld [vmem:[#allocation104_spill] sm:$0xff] }
 0xfa5   :  { %6348 = vmatprep.subr.bf16.mxu0 %v18497_v21  ;;  %6389 = vmatprep.subr.bf16.mxu1 %v18498_v20  ;;  %v18508_v21 = vld [vmem:[#allocation105_spill] sm:$0xff]  ;;  %v18509_v20 = vld [vmem:[#allocation106_spill] sm:$0xff] }
 0xfa8   :  { %6349 = vmatpush1.bf16.msra.mxu0 %v18499_v5  ;;  %6390 = vmatpush1.bf16.msra.mxu1 %v18500_v30  ;;  %v18510_v5 = vld [vmem:[#allocation107_spill] sm:$0xff]  ;;  %v18511_v30 = vld [vmem:[#allocation108_spill] sm:$0xff] }
 0xfa9   :  { %6350 = vmatprep.subr.bf16.mxu0 %v18501_v22  ;;  %6391 = vmatprep.subr.bf16.mxu1 %v18502_v23  ;;  %v18512_v22 = vld [vmem:[#allocation109_spill] sm:$0xff]  ;;  %v18513_v23 = vld [vmem:[#allocation110_spill] sm:$0xff] }
 0xfac   :  { %6351 = vmatpush1.bf16.msra.mxu0 %v18503_v33  ;;  %6392 = vmatpush1.bf16.msra.mxu1 %v18504_v27  ;;  %v18514_v33 = vld [vmem:[#allocation11_spill] sm:$0xff]  ;;  %v18515_v27 = vld [vmem:[#allocation12_spill] sm:$0xff] }
 0xfad   :  { %6352 = vmatprep.subr.bf16.mxu0 %v18505_v61  ;;  %6393 = vmatprep.subr.bf16.mxu1 %v18506_v25  ;;  %v18516_v61 = vld [vmem:[#allocation13_spill] sm:$0xff]  ;;  %v18517_v25 = vld [vmem:[#allocation14_spill] sm:$0xff] }
 0xfb0   :  { %6353 = vmatpush2.bf16.msra.mxu0 %v18507_v19  ;;  %6394 = vmatpush2.bf16.msra.mxu1 %v18508_v21  ;;  %v18518_v19 = vld [vmem:[#allocation15_spill] sm:$0xff]  ;;  %v18519_v21 = vld [vmem:[#allocation16_spill] sm:$0xff] }
 0xfb1   :  { %6354 = vmatprep.subr.bf16.mxu0 %v18509_v20  ;;  %6395 = vmatprep.subr.bf16.mxu1 %v18510_v5  ;;  %v18520_v20 = vld [vmem:[#allocation17_spill] sm:$0xff]  ;;  %v18521_v5 = vld [vmem:[#allocation18_spill] sm:$0xff] }
 0xfb4   :  { %6355 = vmatpush2.bf16.msra.mxu0 %v18511_v30  ;;  %6396 = vmatpush2.bf16.msra.mxu1 %v18512_v22  ;;  %v18522_v30 = vld [vmem:[#allocation19_spill] sm:$0xff]  ;;  %v18523_v22 = vld [vmem:[#allocation20_spill] sm:$0xff] }
 0xfb5   :  { %6356 = vmatprep.subr.bf16.mxu0 %v18513_v23  ;;  %6397 = vmatprep.subr.bf16.mxu1 %v18514_v33  ;;  %v18524_v23 = vld [vmem:[#allocation21_spill] sm:$0xff]  ;;  %v18525_v33 = vld [vmem:[#allocation22_spill] sm:$0xff] }
 0xfb8   :  { %6357 = vmatpush2.bf16.msra.mxu0 %v18515_v27  ;;  %6398 = vmatpush2.bf16.msra.mxu1 %v18516_v61  ;;  %v18526_v27 = vld [vmem:[#allocation23_spill] sm:$0xff]  ;;  %v18527_v61 = vld [vmem:[#allocation24_spill] sm:$0xff] }
 0xfb9   :  { %6358 = vmatprep.subr.bf16.mxu0 %v18517_v25  ;;  %6399 = vmatprep.subr.bf16.mxu1 %v18518_v19  ;;  %v18528_v25 = vld [vmem:[#allocation25_spill] sm:$0xff]  ;;  %v18529_v19 = vld [vmem:[#allocation26_spill] sm:$0xff] }
 0xfbc   :  { %6359 = vmatpush2.bf16.msra.mxu0 %v18519_v21  ;;  %6400 = vmatpush2.bf16.msra.mxu1 %v18520_v20  ;;  %v18530_v21 = vld [vmem:[#allocation27_spill] sm:$0xff]  ;;  %v18531_v20 = vld [vmem:[#allocation28_spill] sm:$0xff] }
 0xfbd   :  { %6360 = vmatprep.subr.bf16.mxu0 %v18521_v5  ;;  %6401 = vmatprep.subr.bf16.mxu1 %v18522_v30  ;;  %v18532_v5 = vld [vmem:[#allocation29_spill] sm:$0xff]  ;;  %v18533_v30 = vld [vmem:[#allocation30_spill] sm:$0xff] }
 0xfc0   :  { %6361 = vmatpush2.bf16.msra.mxu0 %v18523_v22  ;;  %6402 = vmatpush2.bf16.msra.mxu1 %v18524_v23  ;;  %v18534_v22 = vld [vmem:[#allocation31_spill] sm:$0xff]  ;;  %v18535_v23 = vld [vmem:[#allocation32_spill] sm:$0xff] }
 0xfc1   :  { %6362 = vmatprep.subr.bf16.mxu0 %v18525_v33  ;;  %6403 = vmatprep.subr.bf16.mxu1 %v18526_v27  ;;  %v18536_v33 = vld [vmem:[#allocation33_spill] sm:$0xff]  ;;  %v18537_v27 = vld [vmem:[#allocation34_spill] sm:$0xff] }
 0xfc4   :  { %6363 = vmatpush2.bf16.msra.mxu0 %v18527_v61  ;;  %6404 = vmatpush2.bf16.msra.mxu1 %v18528_v25  ;;  %v18538_v61 = vld [vmem:[#allocation35_spill] sm:$0xff] }
 0xfc5   :  { %6364 = vmatprep.subr.bf16.mxu0 %v18529_v19  ;;  %6405 = vmatprep.subr.bf16.mxu1 %v18530_v21 }
 0xfc8   :  { %6365 = vmatpush2.bf16.msra.mxu0 %v18531_v20  ;;  %6406 = vmatpush2.bf16.msra.mxu1 %v18532_v5 }
 0xfc9   :  { %6366 = vmatprep.subr.bf16.mxu0 %v18533_v30  ;;  %6407 = vmatprep.subr.bf16.mxu1 %v18534_v22 }
 0xfcc   :  { %6367 = vmatpush2.bf16.msra.mxu0 %v18535_v23  ;;  %6408 = vmatpush2.bf16.msra.mxu1 %v18536_v33 }
 0xfcd   :  { %6418 = vmatprep.subr.bf16.mxu0 %v18537_v27  ;;  %6459 = vmatprep.subr.bf16.mxu1 %v18538_v61  ;;  %v18539_v61 = vld [vmem:[#allocation130_spill] sm:$0xff] }
0x100f   :  { %v6109_v25 = vpop.f32.mrf.mxu0  ;;  %v6150_v19 = vpop.f32.mrf.mxu1 }
0x1010   :  { %v6243_v9 = vrot.slane %v6109_v25, 4  ;;  %v6245_v27 = vrot.slane %v6150_v19, 4 }
0x1011   :  { %v6111_v21 = vpop.f32.mrf.mxu0  ;;  %v6152_v3 = vpop.f32.mrf.mxu1 }
0x1012   :  { %v6251_v20 = vadd.f32 %v6243_v9, %v14841_v2  ;;  %v6244_v5 = vrot.slane %v6111_v21, 4  ;;  %v6253_v14 = vadd.f32 %v6245_v27, %v18539_v61  ;;  %v6246_v46 = vrot.slane %v6152_v3, 4 }
0x1013   :  { %v6113_v45 = vpop.f32.mrf.mxu0  ;;  %v6154_v30 = vpop.f32.mrf.mxu1 }
0x1014   :  { %v10214_v8 = vmul.f32 -1.442695, %v6251_v20  ;;  %v6252_v22 = vadd.f32 %v6244_v5, %v14848_v16  ;;  %v10216_v25 = vmul.f32 -1.442695, %v6253_v14  ;;  %v6254_v7 = vadd.f32 %v6246_v46, %v18540_v52  ;;  %v18541_v5 = vld [vmem:[#allocation10_spill] sm:$0xff] }
0x1015   :  { %v6114_v23 = vpop.f32.mrf.mxu0  ;;  %v6155_v48 = vpop.f32.mrf.mxu1  ;;  %v6310_v19 = vrot.slane %v18541_v5, 6 }
0x1016   :  { %11362 = vpow2.f32 %v10214_v8  ;;  %v10215_v33 = vmul.f32 -1.442695, %v6252_v22 }
0x1018   :  { %11364 = vpow2.f32 %v10215_v33  ;;  %v18543_v33 = vld [vmem:[#allocation70_spill] sm:$0xff] }
0x1019   :  { %11366 = vpow2.f32 %v10216_v25  ;;  %v6574_v27 = vsel %vm981_vm4, %v18543_v33, %v15048_v0 }
0x101a   :  { %11368 = vtanh.f32 %v6254_v7 }
0x1023   :  { %v11363_v31 = vpop.eup %11362 }
0x1024   :  { %v6280_v9 = vadd.f32 1.0, %v11363_v31 }
0x1025   :  { %v11365_v45 = vpop.eup %11364 }
0x1026   :  { %11370 = vrcp.f32 %v6280_v9  ;;  %v6281_v21 = vadd.f32 1.0, %v11365_v45  ;;  %v11367_v20 = vpop.eup %11366 }
0x1027   :  { %v11369_v48 = vpop.eup %11368  ;;  %v6282_v23 = vadd.f32 1.0, %v11367_v20 }
0x1028   :  { %11372 = vrcp.f32 %v6281_v21 }
0x1029   :  { %11374 = vrcp.f32 %v6282_v23 }
0x1033   :  { %v11371_v8 = vpop.eup %11370 }
0x1034   :  { %v6313_v30 = vmul.f32 %v11371_v8, %v11369_v48 }
0x1035   :  { %v11373_v22 = vpop.eup %11372 }
0x1036   :  { %v6312_v3 = vmul.f32 %v11373_v22, %v6310_v19  ;;  %v11375_v46 = vpop.eup %11374 }
0x1038   :  { %v15202_v14 = vadd.f32 %v6313_v30, %v6312_v3 }
0x103a   :  { %18542 = vst [vmem:[#allocation37_spill] sm:$0xff] %v15202_v14  ;;  %11376 = vtanh.f32 %v15202_v14 }
0x1047   :  { %v11377_v31 = vpop.eup %11376 }
0x1048   :  { %v6322_v7 = vmul.f32 %v11377_v31, %v11375_v46 }
0x104a   :  { %v15209_v25 = vsel %vm233_vm0, %v6574_v27, %v6322_v7 }
0x104b   :  { %18544 = vst [vmem:[#allocation38_spill] sm:$0xff] %v15209_v25 }
0x104f   :  { %v6191_v9 = vpop.f32.mrf.mxu0  ;;  %v6232_v45 = vpop.f32.mrf.mxu1 }
0x1050   :  { %v6259_v21 = vrot.slane %v6191_v9, 6  ;;  %v6261_v31 = vrot.slane %v6232_v45, 6 }
0x1051   :  { %v6193_v20 = vpop.f32.mrf.mxu0  ;;  %v6234_v48 = vpop.f32.mrf.mxu1 }
0x1052   :  { %v6267_v8 = vadd.f32 %v6259_v21, %v18446_v36  ;;  %v6260_v5 = vrot.slane %v6193_v20, 6  ;;  %v6269_v33 = vadd.f32 %v6261_v31, %v14890_v63  ;;  %v6262_v27 = vrot.slane %v6234_v48, 6 }
0x1053   :  { %v6195_v19 = vpop.f32.mrf.mxu0  ;;  %v6236_v30 = vpop.f32.mrf.mxu1 }
0x1054   :  { %v10217_v22 = vmul.f32 -1.442695, %v6267_v8  ;;  %v6268_v23 = vadd.f32 %v6260_v5, %v14879_v39  ;;  %v10219_v9 = vmul.f32 -1.442695, %v6269_v33  ;;  %v6270_v14 = vadd.f32 %v6262_v27, %v14895_v29 }
0x1055   :  { %v6196_v3 = vpop.f32.mrf.mxu0  ;;  %v6237_v46 = vpop.f32.mrf.mxu1  ;;  %v6328_v33 = vpack.c.bf16 %v6322_v7, %v6322_v7  ;;  %v10278_v7 = vld [vmem:[%s17137_s10 + $0x5a0] sm:$0xff] }
0x1056   :  { %11378 = vpow2.f32 %v10217_v22  ;;  %v10218_v0 = vmul.f32 -1.442695, %v6268_v23  ;;  %v6316_v22 = vrot.slane %v15055_v56, 2  ;;  %v18553_v56 = vld [vmem:[#allocation59_spill] sm:$0xff] }
0x1058   :  { %11380 = vpow2.f32 %v10218_v0 }
0x1059   :  { %11382 = vpow2.f32 %v10219_v9 }
0x1063   :  { %v11379_v25 = vpop.eup %11378 }
0x1064   :  { %v6299_v21 = vadd.f32 1.0, %v11379_v25 }
0x1065   :  { %v11381_v20 = vpop.eup %11380 }
0x1066   :  { %11384 = vrcp.f32 %v6299_v21  ;;  %v6300_v8 = vadd.f32 1.0, %v11381_v20  ;;  %v11383_v5 = vpop.eup %11382  ;;  %v15222_v21 = vrot.slane %v6328_v33, 2  ;;  %v10275_v20 = vld [vmem:[%s17137_s10 + $0x588] sm:$0xff] }
0x1067   :  { %11386 = vtanh.f32 %v6270_v14  ;;  %v6301_v23 = vadd.f32 1.0, %v11383_v5  ;;  %v10279_v5 = vld [vmem:[%s17137_s10 + $0x5a8] sm:$0xff] }
0x1068   :  { %11388 = vrcp.f32 %v6300_v8 }
0x1069   :  { %11390 = vrcp.f32 %v6301_v23  ;;  %v10270_v23 = vld [vmem:[%s17137_s10 + $0x560] sm:$0xff] }
0x1073   :  { %v11385_v19 = vpop.eup %11384 }
0x1074   :  { %v11387_v30 = vpop.eup %11386 }
0x1075   :  { %v11389_v45 = vpop.eup %11388  ;;  %v6319_v48 = vmul.f32 %v11387_v30, %v11385_v19  ;;  %v10532_v30 = vcombine.low %v10275_v20, %v10279_v5 }
0x1076   :  { %v6318_v3 = vmul.f32 %v11389_v45, %v6316_v22  ;;  %v11391_v25 = vpop.eup %11390  ;;  %v10533_v22 = vcombine.high %v10275_v20, %v10279_v5  ;;  %v10266_v45 = vld [vmem:[%s17137_s10 + $0x540] sm:$0xff]  ;;  %v10347_v5 = vld [vmem:[%s17137_s10 + $0x7c8] sm:$0xff] }
0x1077   :  { %v10346_v20 = vld [vmem:[%s17137_s10 + $0x7c0] sm:$0xff] }
0x1078   :  { %v15216_v46 = vadd.f32 %v6319_v48, %v6318_v3  ;;  %v10267_v3 = vld [vmem:[%s17137_s10 + $0x548] sm:$0xff]  ;;  %v10523_v48 = vcombine.high %v10266_v45, %v10270_v23 }
0x107a   :  { %11392 = vtanh.f32 %v15216_v46 }
0x1087   :  { %v11393_v0 = vpop.eup %11392 }
0x1088   :  { %v15219_v31 = vmul.f32 %v11393_v0, %v11391_v25  ;;  %v10271_v25 = vld [vmem:[%s17137_s10 + $0x568] sm:$0xff]  ;;  %v10522_v0 = vcombine.low %v10266_v45, %v10270_v23 }
0x1089   :  { %v10525_v33 = vcombine.high %v10267_v3, %v10271_v25 }
0x108a   :  { %v6326_v14 = vrot.slane %v15219_v31, 6 }
0x108c   :  { %v6329_v27 = vpack.c.bf16 %v6326_v14, %v6326_v14  ;;  %v10524_v14 = vcombine.low %v10267_v3, %v10271_v25  ;;  %v10338_v3 = vld [vmem:[%s17137_s10 + $0x780] sm:$0xff]  ;;  %v10339_v25 = vld [vmem:[%s17137_s10 + $0x788] sm:$0xff] }
0x108e   :  { %v6333_v9 = vrot.slane %v6329_v27, 2  ;;  %v10258_v27 = vld [vmem:[%s17137_s10 + $0x500] sm:$0xff] }
0x1090   :  { %6368 = vmatprep.mubr.bf16.mxu0 %v6333_v9  ;;  %6409 = vmatprep.mubr.bf16.mxu1 %v6333_v9 }
0x1091   :  { %6369 = vmatmul.mubr.bf16.vlgmr.msra.gmra.mxu0 %v15222_v21  ;;  %6410 = vmatmul.mubr.bf16.vlgmr.msra.gmra.mxu1 %v15222_v21 }
0x1092   :  { %6419 = vmatpush1.bf16.msra.mxu0 %v18352_v11  ;;  %6460 = vmatpush1.bf16.msra.mxu1 %v18353_v62  ;;  %v18545_v11 = vld [vmem:[#allocation51_spill] sm:$0xff]  ;;  %v18546_v62 = vld [vmem:[#allocation52_spill] sm:$0xff] }
0x1093   :  { %6450 = vmatprep.mubr.bf16.mxu0 %v6333_v9  ;;  %6491 = vmatprep.mubr.bf16.mxu1 %v6333_v9  ;;  %v10262_v9 = vld [vmem:[%s17137_s10 + $0x520] sm:$0xff] }
0x1094   :  { %6420 = vmatprep.subr.bf16.mxu0 %v18354_v50  ;;  %6461 = vmatprep.subr.bf16.mxu1 %v18355_v44  ;;  %v18547_v50 = vld [vmem:[#allocation53_spill] sm:$0xff]  ;;  %v18548_v44 = vld [vmem:[#allocation54_spill] sm:$0xff] }
0x1096   :  { %6421 = vmatpush1.bf16.msra.mxu0 %v18356_v55  ;;  %6462 = vmatpush1.bf16.msra.mxu1 %v18357_v28  ;;  %v18549_v55 = vld [vmem:[#allocation55_spill] sm:$0xff]  ;;  %v18550_v28 = vld [vmem:[#allocation56_spill] sm:$0xff] }
0x1097   :  { %6422 = vmatprep.subr.bf16.mxu0 %v18358_v47  ;;  %6463 = vmatprep.subr.bf16.mxu1 %v18359_v49  ;;  %v18551_v47 = vld [vmem:[#allocation57_spill] sm:$0xff]  ;;  %v18552_v49 = vld [vmem:[#allocation58_spill] sm:$0xff] }
0x109a   :  { %6423 = vmatpush1.bf16.msra.mxu0 %v18448_v4  ;;  %6464 = vmatpush1.bf16.msra.mxu1 %v18449_v60  ;;  %v18554_v4 = vld [vmem:[#allocation60_spill] sm:$0xff]  ;;  %v18555_v60 = vld [vmem:[#allocation61_spill] sm:$0xff] }
0x109b   :  { %6424 = vmatprep.subr.bf16.mxu0 %v18450_v53  ;;  %6465 = vmatprep.subr.bf16.mxu1 %v18451_v40  ;;  %v18556_v53 = vld [vmem:[#allocation62_spill] sm:$0xff]  ;;  %v18557_v40 = vld [vmem:[#allocation63_spill] sm:$0xff] }
0x109e   :  { %6425 = vmatpush1.bf16.msra.mxu0 %v18452_v15  ;;  %6466 = vmatpush1.bf16.msra.mxu1 %v18453_v6  ;;  %v18558_v15 = vld [vmem:[#allocation64_spill] sm:$0xff]  ;;  %v18559_v6 = vld [vmem:[#allocation65_spill] sm:$0xff] }
0x109f   :  { %6426 = vmatprep.subr.bf16.mxu0 %v18454_v34  ;;  %6467 = vmatprep.subr.bf16.mxu1 %v18545_v11  ;;  %v18560_v34 = vld [vmem:[#allocation66_spill] sm:$0xff]  ;;  %v10515_v11 = vcombine.high %v10258_v27, %v10262_v9 }
0x10a2   :  { %6427 = vmatpush1.bf16.msra.mxu0 %v18546_v62  ;;  %6468 = vmatpush1.bf16.msra.mxu1 %v18547_v50  ;;  %v10263_v62 = vld [vmem:[%s17137_s10 + $0x528] sm:$0xff]  ;;  %v10514_v50 = vcombine.low %v10258_v27, %v10262_v9 }
0x10a3   :  { %6428 = vmatprep.subr.bf16.mxu0 %v18548_v44  ;;  %6469 = vmatprep.subr.bf16.mxu1 %v18549_v55 }
0x10a6   :  { %6429 = vmatpush1.bf16.msra.mxu0 %v18550_v28  ;;  %6470 = vmatpush1.bf16.msra.mxu1 %v18551_v47  ;;  %v10250_v28 = vld [vmem:[%s17137_s10 + $0x4c0] sm:$0xff] }
0x10a7   :  { %6430 = vmatprep.subr.bf16.mxu0 %v18552_v49  ;;  %6471 = vmatprep.subr.bf16.mxu1 %v18553_v56  ;;  %v10254_v47 = vld [vmem:[%s17137_s10 + $0x4e0] sm:$0xff]  ;;  %v10251_v49 = vld [vmem:[%s17137_s10 + $0x4c8] sm:$0xff] }
0x10a8   :  { %v10507_v56 = vcombine.high %v10250_v28, %v10254_v47 }
0x10aa   :  { %6431 = vmatpush1.bf16.msra.mxu0 %v18554_v4  ;;  %6472 = vmatpush1.bf16.msra.mxu1 %v18555_v60  ;;  %v10255_v4 = vld [vmem:[%s17137_s10 + $0x4e8] sm:$0xff]  ;;  %v10506_v60 = vcombine.low %v10250_v28, %v10254_v47 }
0x10ab   :  { %6432 = vmatprep.subr.bf16.mxu0 %v18556_v53  ;;  %6473 = vmatprep.subr.bf16.mxu1 %v18557_v40  ;;  %v10508_v53 = vcombine.low %v10251_v49, %v10255_v4  ;;  %v10509_v40 = vcombine.high %v10251_v49, %v10255_v4  ;;  %v10322_v49 = vld [vmem:[%s17137_s10 + $0x700] sm:$0xff]  ;;  %v10323_v4 = vld [vmem:[%s17137_s10 + $0x708] sm:$0xff] }
0x10ae   :  { %6433 = vmatpush1.bf16.msra.mxu0 %v18558_v15  ;;  %6474 = vmatpush1.bf16.msra.mxu1 %v18559_v6  ;;  %v10242_v15 = vld [vmem:[%s17137_s10 + $0x480] sm:$0xff] }
0x10af   :  { %6434 = vmatprep.subr.bf16.mxu0 %v18560_v34  ;;  %6475 = vmatprep.subr.bf16.mxu1 %v18471_v58  ;;  %v10246_v6 = vld [vmem:[%s17137_s10 + $0x4a0] sm:$0xff]  ;;  %v10243_v34 = vld [vmem:[%s17137_s10 + $0x488] sm:$0xff] }
0x10b2   :  { %6435 = vmatpush2.bf16.msra.mxu0 %v18472_v10  ;;  %6476 = vmatpush2.bf16.msra.mxu1 %v18473_v37  ;;  %v10287_v10 = vld [vmem:[%s17137_s10 + $0x5e8] sm:$0xff] }
0x10b3   :  { %6436 = vmatprep.subr.bf16.mxu0 %v18474_v1  ;;  %6477 = vmatprep.subr.bf16.mxu1 %v18475_v26  ;;  %v10274_v26 = vld [vmem:[%s17137_s10 + $0x580] sm:$0xff] }
0x10b4   :  { %v10531_v8 = vcombine.high %v10274_v26, %v10278_v7  ;;  %v10530_v19 = vcombine.low %v10274_v26, %v10278_v7 }
0x10b6   :  { %6437 = vmatpush2.bf16.msra.mxu0 %v18476_v43  ;;  %6478 = vmatpush2.bf16.msra.mxu1 %v18477_v24  ;;  %v18561_v43 = vld [vmem:[#allocation99_spill] sm:$0xff]  ;;  %v18562_v24 = vld [vmem:[#allocation120_spill] sm:$0xff] }
0x10b7   :  { %6438 = vmatprep.subr.bf16.mxu0 %v18478_v13  ;;  %6479 = vmatprep.subr.bf16.mxu1 %v18479_v12  ;;  %v10282_v13 = vld [vmem:[%s17137_s10 + $0x5c0] sm:$0xff] }
0x10b8   :  { %v10286_v12 = vld [vmem:[%s17137_s10 + $0x5e0] sm:$0xff] }
0x10b9   :  { %v10539_v58 = vcombine.high %v10282_v13, %v10286_v12 }
0x10ba   :  { %6439 = vmatpush2.bf16.msra.mxu0 %v18480_v59  ;;  %6480 = vmatpush2.bf16.msra.mxu1 %v18481_v32  ;;  %v10283_v59 = vld [vmem:[%s17137_s10 + $0x5c8] sm:$0xff]  ;;  %v10538_v32 = vcombine.low %v10282_v13, %v10286_v12 }
0x10bb   :  { %6440 = vmatprep.subr.bf16.mxu0 %v18394_v38  ;;  %6481 = vmatprep.subr.bf16.mxu1 %v18395_v51  ;;  %v18563_v38 = vld [vmem:[#allocation121_spill] sm:$0xff]  ;;  %v18564_v51 = vld [vmem:[#allocation122_spill] sm:$0xff]  ;;  %v10540_v37 = vcombine.low %v10283_v59, %v10287_v10  ;;  %v10541_v1 = vcombine.high %v10283_v59, %v10287_v10 }
0x10bc   :  { %v10226_v59 = vld [vmem:[%s17137_s10 + $0x400] sm:$0xff] }
0x10be   :  { %6441 = vmatpush2.bf16.msra.mxu0 %v18396_v17  ;;  %6482 = vmatpush2.bf16.msra.mxu1 %v18397_v35  ;;  %v18565_v17 = vld [vmem:[#allocation123_spill] sm:$0xff]  ;;  %v18566_v35 = vld [vmem:[#allocation124_spill] sm:$0xff] }
0x10bf   :  { %6442 = vmatprep.subr.bf16.mxu0 %v18398_v57  ;;  %6483 = vmatprep.subr.bf16.mxu1 %v18399_v42  ;;  %v18567_v57 = vld [vmem:[#allocation125_spill] sm:$0xff]  ;;  %v18568_v42 = vld [vmem:[#allocation126_spill] sm:$0xff] }
0x10c2   :  { %6443 = vmatpush2.bf16.msra.mxu0 %v18400_v41  ;;  %6484 = vmatpush2.bf16.msra.mxu1 %v18401_v18  ;;  %v18569_v41 = vld [vmem:[#allocation127_spill] sm:$0xff]  ;;  %v18570_v18 = vld [vmem:[#allocation128_spill] sm:$0xff] }
0x10c3   :  { %6444 = vmatprep.subr.bf16.mxu0 %v18402_v54  ;;  %6485 = vmatprep.subr.bf16.mxu1 %v18561_v43  ;;  %v18571_v54 = vld [vmem:[#allocation129_spill] sm:$0xff]  ;;  %v10499_v43 = vcombine.high %v10242_v15, %v10246_v6 }
0x10c6   :  { %6445 = vmatpush2.bf16.msra.mxu0 %v18562_v24  ;;  %6486 = vmatpush2.bf16.msra.mxu1 %v18563_v38  ;;  %v10247_v24 = vld [vmem:[%s17137_s10 + $0x4a8] sm:$0xff]  ;;  %v10498_v38 = vcombine.low %v10242_v15, %v10246_v6  ;;  %v10314_v15 = vld [vmem:[%s17137_s10 + $0x6c0] sm:$0xff] }
0x10c7   :  { %6446 = vmatprep.subr.bf16.mxu0 %v18564_v51  ;;  %6487 = vmatprep.subr.bf16.mxu1 %v18565_v17  ;;  %v10500_v51 = vcombine.low %v10243_v34, %v10247_v24  ;;  %v10501_v17 = vcombine.high %v10243_v34, %v10247_v24  ;;  %v10318_v6 = vld [vmem:[%s17137_s10 + $0x6e0] sm:$0xff] }
0x10c8   :  { %v10571_v24 = vcombine.high %v10314_v15, %v10318_v6 }
0x10ca   :  { %6447 = vmatpush2.bf16.msra.mxu0 %v18566_v35  ;;  %6488 = vmatpush2.bf16.msra.mxu1 %v18567_v57  ;;  %v10234_v35 = vld [vmem:[%s17137_s10 + $0x440] sm:$0xff] }
0x10cb   :  { %6448 = vmatprep.subr.bf16.mxu0 %v18568_v42  ;;  %6489 = vmatprep.subr.bf16.mxu1 %v18569_v41  ;;  %v10238_v57 = vld [vmem:[%s17137_s10 + $0x460] sm:$0xff]  ;;  %v10235_v42 = vld [vmem:[%s17137_s10 + $0x448] sm:$0xff] }
0x10cc   :  { %v10491_v41 = vcombine.high %v10234_v35, %v10238_v57 }
0x10ce   :  { %6449 = vmatpush2.bf16.msra.mxu0 %v18570_v18  ;;  %6490 = vmatpush2.bf16.msra.mxu1 %v18571_v54  ;;  %v10239_v18 = vld [vmem:[%s17137_s10 + $0x468] sm:$0xff]  ;;  %v10490_v54 = vcombine.low %v10234_v35, %v10238_v57  ;;  %v10306_v35 = vld [vmem:[%s17137_s10 + $0x680] sm:$0xff] }
0x10cf   :  { %7552 = vmatprep.subr.bf16.mxu0 %v10539_v58  ;;  %7593 = vmatprep.subr.bf16.mxu1 %v10541_v1  ;;  %v10492_v13 = vcombine.low %v10235_v42, %v10239_v18  ;;  %v10493_v12 = vcombine.high %v10235_v42, %v10239_v18  ;;  %v10227_v58 = vld [vmem:[%s17137_s10 + $0x408] sm:$0xff]  ;;  %v10310_v57 = vld [vmem:[%s17137_s10 + $0x6a0] sm:$0xff]  ;;  %v10570_v18 = vcombine.low %v10314_v15, %v10318_v6 }
0x10d0   :  { %v10307_v42 = vld [vmem:[%s17137_s10 + $0x688] sm:$0xff] }
0x10d1   :  { %6451 = vmatmul.mubr.bf16.vlgmr.msra.gmra.mxu0 %v15222_v21  ;;  %6492 = vmatmul.mubr.bf16.vlgmr.msra.gmra.mxu1 %v15222_v21  ;;  %v10259_v21 = vld [vmem:[%s17137_s10 + $0x508] sm:$0xff] }
0x10d2   :  { %7553 = vmatpush1.bf16.msra.mxu0 %v10538_v32  ;;  %7594 = vmatpush1.bf16.msra.mxu1 %v10540_v37  ;;  %v10516_v44 = vcombine.low %v10259_v21, %v10263_v62  ;;  %v10517_v55 = vcombine.high %v10259_v21, %v10263_v62  ;;  %v10230_v32 = vld [vmem:[%s17137_s10 + $0x420] sm:$0xff]  ;;  %v10231_v37 = vld [vmem:[%s17137_s10 + $0x428] sm:$0xff] }
0x10d3   :  { %7554 = vmatprep.subr.bf16.mxu0 %v10531_v8  ;;  %7595 = vmatprep.subr.bf16.mxu1 %v10533_v22  ;;  %v10483_v10 = vcombine.high %v10226_v59, %v10230_v32  ;;  %v10482_v1 = vcombine.low %v10226_v59, %v10230_v32  ;;  %v10484_v26 = vcombine.low %v10227_v58, %v10231_v37  ;;  %v10350_v8 = vld [vmem:[%s17137_s10 + $0x7e0] sm:$0xff]  ;;  %v10331_v62 = vld [vmem:[%s17137_s10 + $0x748] sm:$0xff] }
0x10d4   :  { %v10485_v7 = vcombine.high %v10227_v58, %v10231_v37  ;;  %v10602_v22 = vcombine.low %v10346_v20, %v10350_v8  ;;  %v10330_v21 = vld [vmem:[%s17137_s10 + $0x740] sm:$0xff]  ;;  %v10299_v58 = vld [vmem:[%s17137_s10 + $0x648] sm:$0xff]  ;;  %v10562_v37 = vcombine.low %v10306_v35, %v10310_v57 }
0x10d5   :  { %v10298_v59 = vld [vmem:[%s17137_s10 + $0x640] sm:$0xff] }
0x10d6   :  { %7555 = vmatpush1.bf16.msra.mxu0 %v10530_v19  ;;  %7596 = vmatpush1.bf16.msra.mxu1 %v10532_v30  ;;  %v10603_v19 = vcombine.high %v10346_v20, %v10350_v8  ;;  %v10351_v30 = vld [vmem:[%s17137_s10 + $0x7e8] sm:$0xff]  ;;  %v10302_v32 = vld [vmem:[%s17137_s10 + $0x660] sm:$0xff] }
0x10d7   :  { %7556 = vmatprep.subr.bf16.mxu0 %v10523_v48  ;;  %7597 = vmatprep.subr.bf16.mxu1 %v10525_v33  ;;  %v10604_v45 = vcombine.low %v10347_v5, %v10351_v30  ;;  %v10605_v23 = vcombine.high %v10347_v5, %v10351_v30  ;;  %v10342_v48 = vld [vmem:[%s17137_s10 + $0x7a0] sm:$0xff]  ;;  %v10291_v5 = vld [vmem:[%s17137_s10 + $0x608] sm:$0xff]  ;;  %v10554_v30 = vcombine.low %v10298_v59, %v10302_v32 }
0x10d8   :  { %v10594_v33 = vcombine.low %v10338_v3, %v10342_v48  ;;  %v10290_v20 = vld [vmem:[%s17137_s10 + $0x600] sm:$0xff] }
0x10d9   :  { %v10294_v8 = vld [vmem:[%s17137_s10 + $0x620] sm:$0xff] }
0x10da   :  { %7557 = vmatpush1.bf16.msra.mxu0 %v10522_v0  ;;  %7598 = vmatpush1.bf16.msra.mxu1 %v10524_v14  ;;  %v10595_v0 = vcombine.high %v10338_v3, %v10342_v48  ;;  %v10343_v14 = vld [vmem:[%s17137_s10 + $0x7a8] sm:$0xff]  ;;  %v10546_v3 = vcombine.low %v10290_v20, %v10294_v8 }
0x10db   :  { %7558 = vmatprep.subr.bf16.mxu0 %v10515_v11  ;;  %7599 = vmatprep.subr.bf16.mxu1 %v10517_v55  ;;  %v10596_v27 = vcombine.low %v10339_v25, %v10343_v14  ;;  %v10597_v9 = vcombine.high %v10339_v25, %v10343_v14  ;;  %v10334_v11 = vld [vmem:[%s17137_s10 + $0x760] sm:$0xff]  ;;  %v15485_v25 = vld [vmem:[%s17137_s10 + $0x5d0] sm:$0xff]  ;;  %v15495_v14 = vld [vmem:[%s17137_s10 + $0x5d8] sm:$0xff] }
0x10dc   :  { %v10586_v55 = vcombine.low %v10330_v21, %v10334_v11 }
0x10de   :  { %7559 = vmatpush1.bf16.msra.mxu0 %v10514_v50  ;;  %7600 = vmatpush1.bf16.msra.mxu1 %v10516_v44  ;;  %v10587_v50 = vcombine.high %v10330_v21, %v10334_v11  ;;  %v10335_v44 = vld [vmem:[%s17137_s10 + $0x768] sm:$0xff] }
0x10df   :  { %7560 = vmatprep.subr.bf16.mxu0 %v10507_v56  ;;  %7601 = vmatprep.subr.bf16.mxu1 %v10509_v40  ;;  %v10588_v28 = vcombine.low %v10331_v62, %v10335_v44  ;;  %v10589_v47 = vcombine.high %v10331_v62, %v10335_v44  ;;  %v10326_v56 = vld [vmem:[%s17137_s10 + $0x720] sm:$0xff]  ;;  %v10327_v40 = vld [vmem:[%s17137_s10 + $0x728] sm:$0xff] }
0x10e0   :  { %v10580_v34 = vcombine.low %v10323_v4, %v10327_v40 }
0x10e2   :  { %7561 = vmatpush1.bf16.msra.mxu0 %v10506_v60  ;;  %7602 = vmatpush1.bf16.msra.mxu1 %v10508_v53  ;;  %v10578_v60 = vcombine.low %v10322_v49, %v10326_v56  ;;  %v10579_v53 = vcombine.high %v10322_v49, %v10326_v56 }
0x10e3   :  { %7562 = vmatprep.subr.bf16.mxu0 %v10499_v43  ;;  %7603 = vmatprep.subr.bf16.mxu1 %v10501_v17  ;;  %v10581_v43 = vcombine.high %v10323_v4, %v10327_v40 }
0x10e6   :  { %7563 = vmatpush1.bf16.msra.mxu0 %v10498_v38  ;;  %7604 = vmatpush1.bf16.msra.mxu1 %v10500_v51  ;;  %v10315_v38 = vld [vmem:[%s17137_s10 + $0x6c8] sm:$0xff] }
0x10e7   :  { %7564 = vmatprep.subr.bf16.mxu0 %v10491_v41  ;;  %7605 = vmatprep.subr.bf16.mxu1 %v10493_v12  ;;  %v10319_v51 = vld [vmem:[%s17137_s10 + $0x6e8] sm:$0xff] }
0x10e8   :  { %v10573_v17 = vcombine.high %v10315_v38, %v10319_v51  ;;  %v10311_v41 = vld [vmem:[%s17137_s10 + $0x6a8] sm:$0xff] }
0x10e9   :  { %v10565_v12 = vcombine.high %v10307_v42, %v10311_v41 }
0x10ea   :  { %7565 = vmatpush1.bf16.msra.mxu0 %v10490_v54  ;;  %7606 = vmatpush1.bf16.msra.mxu1 %v10492_v13  ;;  %v10572_v54 = vcombine.low %v10315_v38, %v10319_v51  ;;  %v10563_v13 = vcombine.high %v10306_v35, %v10310_v57 }
0x10eb   :  { %7566 = vmatprep.subr.bf16.mxu0 %v10483_v10  ;;  %7607 = vmatprep.subr.bf16.mxu1 %v10485_v7  ;;  %v10303_v10 = vld [vmem:[%s17137_s10 + $0x668] sm:$0xff] }
0x10ec   :  { %v10557_v7 = vcombine.high %v10299_v58, %v10303_v10 }
0x10ee   :  { %7567 = vmatpush1.bf16.msra.mxu0 %v10482_v1  ;;  %7608 = vmatpush1.bf16.msra.mxu1 %v10484_v26  ;;  %v10564_v1 = vcombine.low %v10307_v42, %v10311_v41  ;;  %v10555_v26 = vcombine.high %v10298_v59, %v10302_v32 }
0x10ef   :  { %7568 = vmatprep.subr.bf16.mxu0 %v10603_v19  ;;  %7609 = vmatprep.subr.bf16.mxu1 %v10605_v23  ;;  %v10295_v19 = vld [vmem:[%s17137_s10 + $0x628] sm:$0xff] }
0x10f0   :  { %v10549_v23 = vcombine.high %v10291_v5, %v10295_v19  ;;  %v10548_v48 = vcombine.low %v10291_v5, %v10295_v19 }
0x10f2   :  { %7569 = vmatpush2.bf16.msra.mxu0 %v10602_v22  ;;  %7610 = vmatpush2.bf16.msra.mxu1 %v10604_v45  ;;  %v10556_v22 = vcombine.low %v10299_v58, %v10303_v10  ;;  %v10547_v45 = vcombine.high %v10290_v20, %v10294_v8 }
0x10f3   :  { %7570 = vmatprep.subr.bf16.mxu0 %v10595_v0  ;;  %7611 = vmatprep.subr.bf16.mxu1 %v10597_v9  ;;  %v15490_v0 = vld [vmem:[%s17137_s10 + $0x5f0] sm:$0xff]  ;;  %v15504_v9 = vld [vmem:[%s17137_s10 + $0x5f8] sm:$0xff] }
0x10f4   :  { %v10544_v62 = vcombine.low %v15495_v14, %v15504_v9 }
0x10f6   :  { %7571 = vmatpush2.bf16.msra.mxu0 %v10594_v33  ;;  %7612 = vmatpush2.bf16.msra.mxu1 %v10596_v27  ;;  %v10542_v33 = vcombine.low %v15485_v25, %v15490_v0  ;;  %v10543_v27 = vcombine.high %v15485_v25, %v15490_v0  ;;  %v10264_v25 = vld [vmem:[%s17137_s10 + $0x530] sm:$0xff]  ;;  %v10261_v0 = vld [vmem:[%s17137_s10 + $0x518] sm:$0xff] }
0x10f7   :  { %7572 = vmatprep.subr.bf16.mxu0 %v10587_v50  ;;  %7613 = vmatprep.subr.bf16.mxu1 %v10589_v47  ;;  %v10545_v50 = vcombine.high %v15495_v14, %v15504_v9  ;;  %v10265_v14 = vld [vmem:[%s17137_s10 + $0x538] sm:$0xff] }
0x10fa   :  { %7573 = vmatpush2.bf16.msra.mxu0 %v10586_v55  ;;  %7614 = vmatpush2.bf16.msra.mxu1 %v10588_v28 }
0x10fb   :  { %7574 = vmatprep.subr.bf16.mxu0 %v10579_v53  ;;  %7615 = vmatprep.subr.bf16.mxu1 %v10581_v43 }
0x10fe   :  { %7575 = vmatpush2.bf16.msra.mxu0 %v10578_v60  ;;  %7616 = vmatpush2.bf16.msra.mxu1 %v10580_v34 }
0x10ff   :  { %7576 = vmatprep.subr.bf16.mxu0 %v10571_v24  ;;  %7617 = vmatprep.subr.bf16.mxu1 %v10573_v17 }
0x1102   :  { %7577 = vmatpush2.bf16.msra.mxu0 %v10570_v18  ;;  %7618 = vmatpush2.bf16.msra.mxu1 %v10572_v54  ;;  %v18572_v18 = vld [vmem:[#allocation37_spill] sm:$0xff] }
0x1103   :  { %7578 = vmatprep.subr.bf16.mxu0 %v10563_v13  ;;  %7619 = vmatprep.subr.bf16.mxu1 %v10565_v12  ;;  %v6559_v54 = vrot.slane %v18572_v18, 6  ;;  %v10269_v18 = vld [vmem:[%s17137_s10 + $0x558] sm:$0xff] }
0x1106   :  { %7579 = vmatpush2.bf16.msra.mxu0 %v10562_v37  ;;  %7620 = vmatpush2.bf16.msra.mxu1 %v10564_v1  ;;  %v18573_v37 = vld [vmem:[#allocation38_spill] sm:$0xff] }
0x1107   :  { %7580 = vmatprep.subr.bf16.mxu0 %v10555_v26  ;;  %7621 = vmatprep.subr.bf16.mxu1 %v10557_v7 }
0x110a   :  { %7581 = vmatpush2.bf16.msra.mxu0 %v10554_v30  ;;  %7622 = vmatpush2.bf16.msra.mxu1 %v10556_v22 }
0x110b   :  { %7582 = vmatprep.subr.bf16.mxu0 %v10547_v45  ;;  %7623 = vmatprep.subr.bf16.mxu1 %v10549_v23 }
0x110e   :  { %7583 = vmatpush2.bf16.msra.mxu0 %v10546_v3  ;;  %7624 = vmatpush2.bf16.msra.mxu1 %v10548_v48 }
0x110f   :  { %7634 = vmatprep.subr.bf16.mxu0 %v10543_v27  ;;  %7675 = vmatprep.subr.bf16.mxu1 %v10545_v50 }
0x1151   :  { %v6370_v21 = vpop.f32.mrf.mxu0  ;;  %v6411_v11 = vpop.f32.mrf.mxu1 }
0x1152   :  { %v6504_v44 = vrot.slane %v6370_v21, 2  ;;  %v6506_v34 = vrot.slane %v6411_v11, 2 }
0x1153   :  { %v6372_v55 = vpop.f32.mrf.mxu0  ;;  %v6413_v28 = vpop.f32.mrf.mxu1 }
0x1154   :  { %v6512_v47 = vadd.f32 %v6504_v44, %v14841_v2  ;;  %v6505_v49 = vrot.slane %v6372_v55, 2  ;;  %v6514_v43 = vadd.f32 %v6506_v34, %v18539_v61  ;;  %v6507_v24 = vrot.slane %v6413_v28, 2  ;;  %v18574_v34 = vld [vmem:[#allocation36_spill] sm:$0xff] }
0x1155   :  { %v6374_v56 = vpop.f32.mrf.mxu0  ;;  %v6415_v4 = vpop.f32.mrf.mxu1 }
0x1156   :  { %v10220_v60 = vmul.f32 -1.442695, %v6512_v47  ;;  %v6513_v53 = vadd.f32 %v6505_v49, %v14848_v16  ;;  %v10222_v38 = vmul.f32 -1.442695, %v6514_v43  ;;  %v6515_v51 = vadd.f32 %v6507_v24, %v18540_v52  ;;  %v18575_v24 = vld [vmem:[#allocation7_spill] sm:$0xff] }
0x1157   :  { %v6375_v40 = vpop.f32.mrf.mxu0  ;;  %v6416_v15 = vpop.f32.mrf.mxu1  ;;  %v6565_v49 = vrot.slane %v15216_v46, 2  ;;  %v10276_v46 = vld [vmem:[%s17137_s10 + $0x590] sm:$0xff] }
0x1158   :  { %11394 = vpow2.f32 %v10220_v60  ;;  %v10221_v6 = vmul.f32 -1.442695, %v6513_v53 }
0x115a   :  { %11396 = vpow2.f32 %v10221_v6 }
0x115b   :  { %11398 = vpow2.f32 %v10222_v38 }
0x115c   :  { %11400 = vtanh.f32 %v6515_v51  ;;  %v10280_v51 = vld [vmem:[%s17137_s10 + $0x5b0] sm:$0xff] }
0x1165   :  { %v11395_v17 = vpop.eup %11394 }
0x1166   :  { %v6529_v2 = vadd.f32 1.0, %v11395_v17  ;;  %v10277_v17 = vld [vmem:[%s17137_s10 + $0x598] sm:$0xff] }
0x1167   :  { %v11397_v35 = vpop.eup %11396 }
0x1168   :  { %11402 = vrcp.f32 %v6529_v2  ;;  %v6530_v57 = vadd.f32 1.0, %v11397_v35  ;;  %v11399_v16 = vpop.eup %11398 }
0x1169   :  { %v11401_v42 = vpop.eup %11400  ;;  %v6531_v61 = vadd.f32 1.0, %v11399_v16  ;;  %v10535_v16 = vcombine.high %v10276_v46, %v10280_v51 }
0x116a   :  { %11404 = vrcp.f32 %v6530_v57  ;;  %v10268_v57 = vld [vmem:[%s17137_s10 + $0x550] sm:$0xff] }
0x116b   :  { %11406 = vrcp.f32 %v6531_v61 }
0x1175   :  { %v11403_v41 = vpop.eup %11402 }
0x1176   :  { %v6562_v13 = vmul.f32 %v11403_v41, %v11401_v42  ;;  %v10272_v41 = vld [vmem:[%s17137_s10 + $0x570] sm:$0xff] }
0x1177   :  { %v11405_v12 = vpop.eup %11404  ;;  %v10527_v61 = vcombine.high %v10268_v57, %v10272_v41 }
0x1178   :  { %v6561_v59 = vmul.f32 %v11405_v12, %v6559_v54  ;;  %v11407_v52 = vpop.eup %11406  ;;  %v10273_v54 = vld [vmem:[%s17137_s10 + $0x578] sm:$0xff] }
0x1179   :  { %v10528_v9 = vcombine.low %v10269_v18, %v10273_v54 }
0x117a   :  { %v6563_v32 = vadd.f32 %v6562_v13, %v6561_v59  ;;  %v10534_v13 = vcombine.low %v10276_v46, %v10280_v51  ;;  %v10529_v59 = vcombine.high %v10269_v18, %v10273_v54  ;;  %v10344_v51 = vld [vmem:[%s17137_s10 + $0x7b0] sm:$0xff]  ;;  %v10333_v54 = vld [vmem:[%s17137_s10 + $0x758] sm:$0xff] }
0x117b   :  { %v10336_v18 = vld [vmem:[%s17137_s10 + $0x770] sm:$0xff] }
0x117c   :  { %11408 = vtanh.f32 %v6563_v32  ;;  %v10260_v32 = vld [vmem:[%s17137_s10 + $0x510] sm:$0xff] }
0x1189   :  { %v11409_v58 = vpop.eup %11408 }
0x118a   :  { %v6571_v10 = vmul.f32 %v11409_v58, %v11407_v52  ;;  %v10521_v52 = vcombine.high %v10261_v0, %v10265_v14  ;;  %v10252_v58 = vld [vmem:[%s17137_s10 + $0x4d0] sm:$0xff] }
0x118c   :  { %v6578_v1 = vsel %vm3799_vm8, %v18573_v37, %v6571_v10  ;;  %v10256_v10 = vld [vmem:[%s17137_s10 + $0x4f0] sm:$0xff]  ;;  %v10253_v37 = vld [vmem:[%s17137_s10 + $0x4d8] sm:$0xff] }
0x118d   :  { %v15540_v35 = vpack.c.bf16 %v6578_v1, %v6578_v1  ;;  %v10257_v1 = vld [vmem:[%s17137_s10 + $0x4f8] sm:$0xff] }
0x1191   :  { %v6452_v26 = vpop.f32.mrf.mxu0  ;;  %v6493_v7 = vpop.f32.mrf.mxu1 }
0x1192   :  { %v6516_v20 = vadd.f32 %v6452_v26, %v18446_v36  ;;  %v6518_v27 = vadd.f32 %v6493_v7, %v14890_v63  ;;  %v10518_v26 = vcombine.low %v10260_v32, %v10264_v25  ;;  %v10520_v7 = vcombine.low %v10261_v0, %v10265_v14  ;;  %v10328_v0 = vld [vmem:[%s17137_s10 + $0x730] sm:$0xff]  ;;  %v10325_v14 = vld [vmem:[%s17137_s10 + $0x718] sm:$0xff] }
0x1193   :  { %v6454_v8 = vpop.f32.mrf.mxu0  ;;  %v6495_v5 = vpop.f32.mrf.mxu1 }
0x1194   :  { %v10223_v19 = vmul.f32 -1.442695, %v6516_v20  ;;  %v6517_v30 = vadd.f32 %v6454_v8, %v14879_v39  ;;  %v10225_v21 = vmul.f32 -1.442695, %v6518_v27  ;;  %v6519_v50 = vadd.f32 %v6495_v5, %v14895_v29  ;;  %v10244_v5 = vld [vmem:[%s17137_s10 + $0x490] sm:$0xff] }
0x1195   :  { %v6456_v22 = vpop.f32.mrf.mxu0  ;;  %v6497_v45 = vpop.f32.mrf.mxu1  ;;  %v10511_v20 = vcombine.high %v10252_v58, %v10256_v10  ;;  %v10513_v8 = vcombine.high %v10253_v37, %v10257_v1  ;;  %v10236_v27 = vld [vmem:[%s17137_s10 + $0x450] sm:$0xff] }
0x1196   :  { %11410 = vpow2.f32 %v10223_v19  ;;  %v10224_v23 = vmul.f32 -1.442695, %v6517_v30  ;;  %v10248_v19 = vld [vmem:[%s17137_s10 + $0x4b0] sm:$0xff]  ;;  %v10245_v30 = vld [vmem:[%s17137_s10 + $0x498] sm:$0xff]  ;;  %v10510_v45 = vcombine.low %v10252_v58, %v10256_v10 }
0x1197   :  { %v6457_v3 = vpop.f32.mrf.mxu0  ;;  %v6498_v48 = vpop.f32.mrf.mxu1  ;;  %v10249_v22 = vld [vmem:[%s17137_s10 + $0x4b8] sm:$0xff]  ;;  %v10316_v10 = vld [vmem:[%s17137_s10 + $0x6d0] sm:$0xff] }
0x1198   :  { %11412 = vpow2.f32 %v10224_v23  ;;  %v10512_v23 = vcombine.low %v10253_v37, %v10257_v1  ;;  %v10503_v3 = vcombine.high %v10244_v5, %v10248_v19  ;;  %v10505_v48 = vcombine.high %v10245_v30, %v10249_v22  ;;  %v10320_v37 = vld [vmem:[%s17137_s10 + $0x6f0] sm:$0xff]  ;;  %v10317_v1 = vld [vmem:[%s17137_s10 + $0x6d8] sm:$0xff] }
0x1199   :  { %11414 = vpow2.f32 %v10225_v21  ;;  %v10240_v21 = vld [vmem:[%s17137_s10 + $0x470] sm:$0xff] }
0x11a3   :  { %v11411_v11 = vpop.eup %11410 }
0x11a4   :  { %v6548_v44 = vadd.f32 1.0, %v11411_v11  ;;  %v10237_v11 = vld [vmem:[%s17137_s10 + $0x458] sm:$0xff] }
0x11a5   :  { %v11413_v36 = vpop.eup %11412 }
0x11a6   :  { %11416 = vrcp.f32 %v6548_v44  ;;  %v6549_v55 = vadd.f32 1.0, %v11413_v36  ;;  %v11415_v39 = vpop.eup %11414  ;;  %v10502_v44 = vcombine.low %v10244_v5, %v10248_v19  ;;  %v10504_v36 = vcombine.low %v10245_v30, %v10249_v22  ;;  %v10308_v19 = vld [vmem:[%s17137_s10 + $0x690] sm:$0xff]  ;;  %v10309_v22 = vld [vmem:[%s17137_s10 + $0x698] sm:$0xff] }
0x11a7   :  { %11418 = vtanh.f32 %v6519_v50  ;;  %v6550_v4 = vadd.f32 1.0, %v11415_v39  ;;  %v10241_v50 = vld [vmem:[%s17137_s10 + $0x478] sm:$0xff]  ;;  %v10312_v30 = vld [vmem:[%s17137_s10 + $0x6b0] sm:$0xff] }
0x11a8   :  { %11420 = vrcp.f32 %v6549_v55  ;;  %v10495_v55 = vcombine.high %v10236_v27, %v10240_v21  ;;  %v10497_v39 = vcombine.high %v10237_v11, %v10241_v50 }
0x11a9   :  { %11422 = vrcp.f32 %v6550_v4  ;;  %v10494_v4 = vcombine.low %v10236_v27, %v10240_v21  ;;  %v10300_v21 = vld [vmem:[%s17137_s10 + $0x650] sm:$0xff] }
0x11b3   :  { %v11417_v28 = vpop.eup %11416 }
0x11b4   :  { %v11419_v47 = vpop.eup %11418 }
0x11b5   :  { %v11421_v56 = vpop.eup %11420  ;;  %v6568_v63 = vmul.f32 %v11419_v47, %v11417_v28  ;;  %v10228_v28 = vld [vmem:[%s17137_s10 + $0x410] sm:$0xff] }
0x11b6   :  { %v6567_v60 = vmul.f32 %v11421_v56, %v6565_v49  ;;  %v11423_v29 = vpop.eup %11422  ;;  %v10232_v47 = vld [vmem:[%s17137_s10 + $0x430] sm:$0xff]  ;;  %v10229_v49 = vld [vmem:[%s17137_s10 + $0x418] sm:$0xff] }
0x11b7   :  { %v10233_v56 = vld [vmem:[%s17137_s10 + $0x438] sm:$0xff] }
0x11b8   :  { %v6569_v53 = vadd.f32 %v6568_v63, %v6567_v60  ;;  %v10496_v60 = vcombine.low %v10237_v11, %v10241_v50  ;;  %v10487_v63 = vcombine.high %v10228_v28, %v10232_v47  ;;  %v10304_v11 = vld [vmem:[%s17137_s10 + $0x670] sm:$0xff]  ;;  %v10301_v50 = vld [vmem:[%s17137_s10 + $0x658] sm:$0xff] }
0x11ba   :  { %11424 = vtanh.f32 %v6569_v53  ;;  %v10489_v53 = vcombine.high %v10229_v49, %v10233_v56 }
0x11c7   :  { %v11425_v40 = vpop.eup %11424 }
0x11c8   :  { %v6573_v15 = vmul.f32 %v11425_v40, %v11423_v29  ;;  %v10348_v29 = vld [vmem:[%s17137_s10 + $0x7d0] sm:$0xff] }
0x11c9   :  { %v10352_v40 = vld [vmem:[%s17137_s10 + $0x7f0] sm:$0xff] }
0x11ca   :  { %v6575_v6 = vsel %vm981_vm4, %v6573_v15, %v15219_v31  ;;  %v10281_v31 = vld [vmem:[%s17137_s10 + $0x5b8] sm:$0xff]  ;;  %v10607_v46 = vcombine.high %v10348_v29, %v10352_v40 }
0x11cb   :  { %v6577_v43 = vsel %vm233_vm0, %v6575_v6, %v18574_v34  ;;  %v10537_v42 = vcombine.high %v10277_v17, %v10281_v31  ;;  %v10536_v12 = vcombine.low %v10277_v17, %v10281_v31  ;;  %v10349_v15 = vld [vmem:[%s17137_s10 + $0x7d8] sm:$0xff]  ;;  %v10486_v34 = vcombine.low %v10228_v28, %v10232_v47  ;;  %v10292_v47 = vld [vmem:[%s17137_s10 + $0x610] sm:$0xff] }
0x11cc   :  { %v6579_v38 = vsel %vm3799_vm8, %v6577_v43, %v18575_v24  ;;  %v10353_v6 = vld [vmem:[%s17137_s10 + $0x7f8] sm:$0xff]  ;;  %v10488_v43 = vcombine.low %v10229_v49, %v10233_v56  ;;  %v10296_v49 = vld [vmem:[%s17137_s10 + $0x630] sm:$0xff] }
0x11cd   :  { %v6839_v2 = vpack.c.bf16 %v6579_v38, %v6579_v38  ;;  %v10609_v24 = vcombine.high %v10349_v15, %v10353_v6  ;;  %v10340_v38 = vld [vmem:[%s17137_s10 + $0x790] sm:$0xff]  ;;  %v10341_v17 = vld [vmem:[%s17137_s10 + $0x798] sm:$0xff] }
0x11ce   :  { %v10345_v31 = vld [vmem:[%s17137_s10 + $0x7b8] sm:$0xff] }
0x11cf   :  { %7584 = vmatprep.mubr.bf16.mxu0 %v6839_v2  ;;  %7625 = vmatprep.mubr.bf16.mxu1 %v6839_v2  ;;  %v10293_v56 = vld [vmem:[%s17137_s10 + $0x618] sm:$0xff] }
0x11d0   :  { %7585 = vmatmul.mubr.bf16.vlgmr.msra.gmra.mxu0 %v15540_v35  ;;  %7626 = vmatmul.mubr.bf16.vlgmr.msra.gmra.mxu1 %v15540_v35 }
0x11d1   :  { %7635 = vmatpush1.bf16.msra.mxu0 %v10542_v33  ;;  %7676 = vmatpush1.bf16.msra.mxu1 %v10544_v62  ;;  %v10526_v33 = vcombine.low %v10268_v57, %v10272_v41  ;;  %v10519_v62 = vcombine.high %v10260_v32, %v10264_v25  ;;  %v10608_v57 = vcombine.low %v10349_v15, %v10353_v6  ;;  %v10332_v41 = vld [vmem:[%s17137_s10 + $0x750] sm:$0xff]  ;;  %v10414_v15 = vld [vmem:[%s17138_s11 + $0x9e0] sm:$0xff]  ;;  %v10411_v6 = vld [vmem:[%s17138_s11 + $0x9c8] sm:$0xff] }
0x11d2   :  { %7666 = vmatprep.mubr.bf16.mxu0 %v6839_v2  ;;  %7707 = vmatprep.mubr.bf16.mxu1 %v6839_v2  ;;  %v10606_v2 = vcombine.low %v10348_v29, %v10352_v40  ;;  %v10324_v25 = vld [vmem:[%s17137_s10 + $0x710] sm:$0xff]  ;;  %v10410_v40 = vld [vmem:[%s17138_s11 + $0x9c0] sm:$0xff] }
0x11d3   :  { %7636 = vmatprep.subr.bf16.mxu0 %v10535_v16  ;;  %7677 = vmatprep.subr.bf16.mxu1 %v10537_v42  ;;  %v10599_v16 = vcombine.high %v10340_v38, %v10344_v51  ;;  %v10601_v42 = vcombine.high %v10341_v17, %v10345_v31 }
0x11d5   :  { %7637 = vmatpush1.bf16.msra.mxu0 %v10534_v13  ;;  %7678 = vmatpush1.bf16.msra.mxu1 %v10536_v12  ;;  %v10337_v13 = vld [vmem:[%s17137_s10 + $0x778] sm:$0xff]  ;;  %v10598_v12 = vcombine.low %v10340_v38, %v10344_v51  ;;  %v10402_v51 = vld [vmem:[%s17138_s11 + $0x980] sm:$0xff] }
0x11d6   :  { %7638 = vmatprep.subr.bf16.mxu0 %v10527_v61  ;;  %7679 = vmatprep.subr.bf16.mxu1 %v10529_v59  ;;  %v10600_v61 = vcombine.low %v10341_v17, %v10345_v31  ;;  %v10591_v59 = vcombine.high %v10332_v41, %v10336_v18  ;;  %v10593_v32 = vcombine.high %v10333_v54, %v10337_v13  ;;  %v10406_v17 = vld [vmem:[%s17138_s11 + $0x9a0] sm:$0xff]  ;;  %v10403_v31 = vld [vmem:[%s17138_s11 + $0x988] sm:$0xff] }
0x11d9   :  { %7639 = vmatpush1.bf16.msra.mxu0 %v10526_v33  ;;  %7680 = vmatpush1.bf16.msra.mxu1 %v10528_v9  ;;  %v10329_v33 = vld [vmem:[%s17137_s10 + $0x738] sm:$0xff]  ;;  %v10590_v9 = vcombine.low %v10332_v41, %v10336_v18  ;;  %v10394_v18 = vld [vmem:[%s17138_s11 + $0x940] sm:$0xff] }
0x11da   :  { %7640 = vmatprep.subr.bf16.mxu0 %v10519_v62  ;;  %7681 = vmatprep.subr.bf16.mxu1 %v10521_v52  ;;  %v10592_v62 = vcombine.low %v10333_v54, %v10337_v13  ;;  %v10583_v52 = vcombine.high %v10324_v25, %v10328_v0  ;;  %v10585_v58 = vcombine.high %v10325_v14, %v10329_v33  ;;  %v10398_v54 = vld [vmem:[%s17138_s11 + $0x960] sm:$0xff]  ;;  %v10395_v13 = vld [vmem:[%s17138_s11 + $0x948] sm:$0xff] }
0x11dd   :  { %7641 = vmatpush1.bf16.msra.mxu0 %v10518_v26  ;;  %7682 = vmatpush1.bf16.msra.mxu1 %v10520_v7  ;;  %v10321_v26 = vld [vmem:[%s17137_s10 + $0x6f8] sm:$0xff]  ;;  %v10582_v7 = vcombine.low %v10324_v25, %v10328_v0  ;;  %v10390_v0 = vld [vmem:[%s17138_s11 + $0x920] sm:$0xff] }
0x11de   :  { %7642 = vmatprep.subr.bf16.mxu0 %v10511_v20  ;;  %7683 = vmatprep.subr.bf16.mxu1 %v10513_v8  ;;  %v10584_v20 = vcombine.low %v10325_v14, %v10329_v33  ;;  %v10575_v8 = vcombine.high %v10316_v10, %v10320_v37  ;;  %v10577_v5 = vcombine.high %v10317_v1, %v10321_v26  ;;  %v10387_v14 = vld [vmem:[%s17138_s11 + $0x908] sm:$0xff] }
0x11df   :  { %v10391_v33 = vld [vmem:[%s17138_s11 + $0x928] sm:$0xff] }
0x11e1   :  { %7643 = vmatpush1.bf16.msra.mxu0 %v10510_v45  ;;  %7684 = vmatpush1.bf16.msra.mxu1 %v10512_v23  ;;  %v10313_v45 = vld [vmem:[%s17137_s10 + $0x6b8] sm:$0xff]  ;;  %v10574_v23 = vcombine.low %v10316_v10, %v10320_v37  ;;  %v15806_v10 = vcombine.high %v10387_v14, %v10391_v33  ;;  %v10378_v37 = vld [vmem:[%s17138_s11 + $0x8c0] sm:$0xff] }
0x11e2   :  { %7644 = vmatprep.subr.bf16.mxu0 %v10503_v3  ;;  %7685 = vmatprep.subr.bf16.mxu1 %v10505_v48  ;;  %v10576_v3 = vcombine.low %v10317_v1, %v10321_v26  ;;  %v10567_v48 = vcombine.high %v10308_v19, %v10312_v30  ;;  %v10569_v27 = vcombine.high %v10309_v22, %v10313_v45  ;;  %v10382_v1 = vld [vmem:[%s17138_s11 + $0x8e0] sm:$0xff]  ;;  %v10379_v26 = vld [vmem:[%s17138_s11 + $0x8c8] sm:$0xff] }
0x11e3   :  { %18581 = vst [vmem:[#allocation43_spill] sm:$0xff] %v15806_v10 }
0x11e5   :  { %7645 = vmatpush1.bf16.msra.mxu0 %v10502_v44  ;;  %7686 = vmatpush1.bf16.msra.mxu1 %v10504_v36  ;;  %v10305_v44 = vld [vmem:[%s17137_s10 + $0x678] sm:$0xff]  ;;  %v10566_v36 = vcombine.low %v10308_v19, %v10312_v30  ;;  %v10370_v30 = vld [vmem:[%s17138_s11 + $0x880] sm:$0xff] }
0x11e6   :  { %7646 = vmatprep.subr.bf16.mxu0 %v10495_v55  ;;  %7687 = vmatprep.subr.bf16.mxu1 %v10497_v39  ;;  %v10568_v55 = vcombine.low %v10309_v22, %v10313_v45  ;;  %v10559_v39 = vcombine.high %v10300_v21, %v10304_v11  ;;  %v10561_v28 = vcombine.high %v10301_v50, %v10305_v44  ;;  %v10374_v22 = vld [vmem:[%s17138_s11 + $0x8a0] sm:$0xff]  ;;  %v10371_v45 = vld [vmem:[%s17138_s11 + $0x888] sm:$0xff] }
0x11e9   :  { %7647 = vmatpush1.bf16.msra.mxu0 %v10494_v4  ;;  %7688 = vmatpush1.bf16.msra.mxu1 %v10496_v60  ;;  %v10297_v4 = vld [vmem:[%s17137_s10 + $0x638] sm:$0xff]  ;;  %v10558_v60 = vcombine.low %v10300_v21, %v10304_v11  ;;  %v10362_v11 = vld [vmem:[%s17138_s11 + $0x840] sm:$0xff] }
0x11ea   :  { %7648 = vmatprep.subr.bf16.mxu0 %v10487_v63  ;;  %7689 = vmatprep.subr.bf16.mxu1 %v10489_v53  ;;  %v10560_v63 = vcombine.low %v10301_v50, %v10305_v44  ;;  %v10551_v53 = vcombine.high %v10292_v47, %v10296_v49  ;;  %v10553_v29 = vcombine.high %v10293_v56, %v10297_v4  ;;  %v10366_v50 = vld [vmem:[%s17138_s11 + $0x860] sm:$0xff]  ;;  %v10363_v44 = vld [vmem:[%s17138_s11 + $0x848] sm:$0xff] }
0x11ed   :  { %7649 = vmatpush1.bf16.msra.mxu0 %v10486_v34  ;;  %7690 = vmatpush1.bf16.msra.mxu1 %v10488_v43  ;;  %v10415_v34 = vld [vmem:[%s17138_s11 + $0x9e8] sm:$0xff]  ;;  %v10550_v43 = vcombine.low %v10292_v47, %v10296_v49  ;;  %v10354_v49 = vld [vmem:[%s17138_s11 + $0x800] sm:$0xff] }
0x11ee   :  { %7650 = vmatprep.subr.bf16.mxu0 %v10607_v46  ;;  %7691 = vmatprep.subr.bf16.mxu1 %v10609_v24  ;;  %v10552_v46 = vcombine.low %v10293_v56, %v10297_v4  ;;  %v15730_v24 = vcombine.high %v10410_v40, %v10414_v15  ;;  %v15732_v38 = vcombine.high %v10411_v6, %v10415_v34  ;;  %v10358_v56 = vld [vmem:[%s17138_s11 + $0x820] sm:$0xff]  ;;  %v10355_v4 = vld [vmem:[%s17138_s11 + $0x808] sm:$0xff] }
0x11f1   :  { %7651 = vmatpush2.bf16.msra.mxu0 %v10606_v2  ;;  %7692 = vmatpush2.bf16.msra.mxu1 %v10608_v57  ;;  %v10407_v2 = vld [vmem:[%s17138_s11 + $0x9a8] sm:$0xff]  ;;  %v15746_v57 = vcombine.low %v10410_v40, %v10414_v15  ;;  %v10474_v15 = vld [vmem:[%s17138_s11 + $0xbc0] sm:$0xff] }
0x11f2   :  { %7652 = vmatprep.subr.bf16.mxu0 %v10599_v16  ;;  %7693 = vmatprep.subr.bf16.mxu1 %v10601_v42  ;;  %v15748_v16 = vcombine.low %v10411_v6, %v10415_v34  ;;  %v15752_v42 = vcombine.high %v10402_v51, %v10406_v17  ;;  %v15754_v41 = vcombine.high %v10403_v31, %v10407_v2  ;;  %v10478_v6 = vld [vmem:[%s17138_s11 + $0xbe0] sm:$0xff]  ;;  %v10475_v34 = vld [vmem:[%s17138_s11 + $0xbc8] sm:$0xff] }
0x11f5   :  { %7653 = vmatpush2.bf16.msra.mxu0 %v10598_v12  ;;  %7694 = vmatpush2.bf16.msra.mxu1 %v10600_v61  ;;  %v10399_v12 = vld [vmem:[%s17138_s11 + $0x968] sm:$0xff]  ;;  %v15772_v61 = vcombine.low %v10402_v51, %v10406_v17  ;;  %v15924_v17 = vcombine.high %v10474_v15, %v10478_v6 }
0x11f6   :  { %7654 = vmatprep.subr.bf16.mxu0 %v10591_v59  ;;  %7695 = vmatprep.subr.bf16.mxu1 %v10593_v32  ;;  %v15774_v59 = vcombine.low %v10403_v31, %v10407_v2  ;;  %v15778_v32 = vcombine.high %v10394_v18, %v10398_v54  ;;  %v15780_v25 = vcombine.high %v10395_v13, %v10399_v12  ;;  %v10466_v2 = vld [vmem:[%s17138_s11 + $0xb80] sm:$0xff] }
0x11f7   :  { %18600 = vst [vmem:[#allocation67_spill] sm:$0xff] %v15924_v17 }
0x11f8   :  { %18576 = vst [vmem:[#allocation39_spill] sm:$0xff] %v15780_v25 }
0x11f9   :  { %7655 = vmatpush2.bf16.msra.mxu0 %v10590_v9  ;;  %7696 = vmatpush2.bf16.msra.mxu1 %v10592_v62  ;;  %v18577_v9 = vmov 0   ;;  %v15798_v62 = vcombine.low %v10394_v18, %v10398_v54  ;;  %v10470_v18 = vld [vmem:[%s17138_s11 + $0xba0] sm:$0xff]  ;;  %v10467_v54 = vld [vmem:[%s17138_s11 + $0xb88] sm:$0xff] }
0x11fa   :  { %7656 = vmatprep.subr.bf16.mxu0 %v10583_v52  ;;  %7697 = vmatprep.subr.bf16.mxu1 %v10585_v58  ;;  %v15800_v52 = vcombine.low %v10395_v13, %v10399_v12  ;;  %v10471_v13 = vld [vmem:[%s17138_s11 + $0xba8] sm:$0xff]  ;;  %v15942_v12 = vcombine.low %v10474_v15, %v10478_v6  ;;  %v10446_v15 = vld [vmem:[%s17138_s11 + $0xae0] sm:$0xff] }
0x11fb   :  { %18578 = vst [vmem:[#allocation40_spill] sm:$0xff] %v15798_v62  ;;  %v10443_v6 = vld [vmem:[%s17138_s11 + $0xac8] sm:$0xff] }
0x11fc   :  { %18579 = vst [vmem:[#allocation41_spill] sm:$0xff] %v15800_v52  ;;  %18602 = vst [vmem:[#allocation6_spill] sm:$0xff] %v15942_v12 }
0x11fd   :  { %7657 = vmatpush2.bf16.msra.mxu0 %v10582_v7  ;;  %7698 = vmatpush2.bf16.msra.mxu1 %v10584_v20  ;;  %v10383_v7 = vld [vmem:[%s17138_s11 + $0x8e8] sm:$0xff] }
0x11fe   :  { %7658 = vmatprep.subr.bf16.mxu0 %v10575_v8  ;;  %7699 = vmatprep.subr.bf16.mxu1 %v10577_v5  ;;  %v15824_v8 = vcombine.low %v10387_v14, %v10391_v33  ;;  %v15828_v5 = vcombine.high %v10378_v37, %v10382_v1  ;;  %v15830_v19 = vcombine.high %v10379_v26, %v10383_v7  ;;  %v10458_v33 = vld [vmem:[%s17138_s11 + $0xb40] sm:$0xff] }
0x11ff   :  { %v15950_v14 = vcombine.high %v10467_v54, %v10471_v13 }
0x1200   :  { %18583 = vst [vmem:[#allocation91_spill] sm:$0xff] %v15824_v8  ;;  %18584 = vst [vmem:[#allocation92_spill] sm:$0xff] %v15828_v5 }
0x1201   :  { %7659 = vmatpush2.bf16.msra.mxu0 %v10574_v23  ;;  %7700 = vmatpush2.bf16.msra.mxu1 %v10576_v3  ;;  %18585 = vst [vmem:[#allocation93_spill] sm:$0xff] %v15830_v19  ;;  %v10375_v23 = vld [vmem:[%s17138_s11 + $0x8a8] sm:$0xff]  ;;  %v15846_v3 = vcombine.low %v10378_v37, %v10382_v1  ;;  %18605 = vst [vmem:[#allocation84_spill] sm:$0xff] %v15950_v14  ;;  %v10462_v37 = vld [vmem:[%s17138_s11 + $0xb60] sm:$0xff] }
0x1202   :  { %7660 = vmatprep.subr.bf16.mxu0 %v10567_v48  ;;  %7701 = vmatprep.subr.bf16.mxu1 %v10569_v27  ;;  %v15848_v48 = vcombine.low %v10379_v26, %v10383_v7  ;;  %v15852_v27 = vcombine.high %v10370_v30, %v10374_v22  ;;  %v15854_v21 = vcombine.high %v10371_v45, %v10375_v23  ;;  %v10459_v1 = vld [vmem:[%s17138_s11 + $0xb48] sm:$0xff] }
0x1203   :  { %18586 = vst [vmem:[#allocation94_spill] sm:$0xff] %v15846_v3  ;;  %v10463_v26 = vld [vmem:[%s17138_s11 + $0xb68] sm:$0xff]  ;;  %v15966_v7 = vcombine.low %v10466_v2, %v10470_v18 }
0x1204   :  { %18587 = vst [vmem:[#allocation95_spill] sm:$0xff] %v15848_v48  ;;  %18588 = vst [vmem:[#allocation96_spill] sm:$0xff] %v15852_v27 }
0x1205   :  { %7661 = vmatpush2.bf16.msra.mxu0 %v10566_v36  ;;  %7702 = vmatpush2.bf16.msra.mxu1 %v10568_v55  ;;  %18589 = vst [vmem:[#allocation97_spill] sm:$0xff] %v15854_v21  ;;  %v10367_v36 = vld [vmem:[%s17138_s11 + $0x868] sm:$0xff]  ;;  %v15870_v55 = vcombine.low %v10370_v30, %v10374_v22  ;;  %18606 = vst [vmem:[#allocation85_spill] sm:$0xff] %v15966_v7  ;;  %v15968_v30 = vcombine.low %v10467_v54, %v10471_v13  ;;  %v10434_v13 = vld [vmem:[%s17138_s11 + $0xa80] sm:$0xff] }
0x1206   :  { %7662 = vmatprep.subr.bf16.mxu0 %v10559_v39  ;;  %7703 = vmatprep.subr.bf16.mxu1 %v10561_v28  ;;  %v15872_v39 = vcombine.low %v10371_v45, %v10375_v23  ;;  %v15876_v28 = vcombine.high %v10362_v11, %v10366_v50  ;;  %v15878_v47 = vcombine.high %v10363_v44, %v10367_v36  ;;  %v10450_v23 = vld [vmem:[%s17138_s11 + $0xb00] sm:$0xff] }
0x1207   :  { %18590 = vst [vmem:[#allocation98_spill] sm:$0xff] %v15870_v55  ;;  %18607 = vst [vmem:[#allocation86_spill] sm:$0xff] %v15968_v30  ;;  %v15972_v22 = vcombine.high %v10458_v33, %v10462_v37  ;;  %v15974_v45 = vcombine.high %v10459_v1, %v10463_v26 }
0x1208   :  { %18591 = vst [vmem:[#allocation72_spill] sm:$0xff] %v15872_v39  ;;  %18592 = vst [vmem:[#allocation132_spill] sm:$0xff] %v15876_v28 }
0x1209   :  { %7663 = vmatpush2.bf16.msra.mxu0 %v10558_v60  ;;  %7704 = vmatpush2.bf16.msra.mxu1 %v10560_v63  ;;  %18593 = vst [vmem:[#allocation44_spill] sm:$0xff] %v15878_v47  ;;  %v10359_v60 = vld [vmem:[%s17138_s11 + $0x828] sm:$0xff]  ;;  %v15894_v63 = vcombine.low %v10362_v11, %v10366_v50  ;;  %18608 = vst [vmem:[#allocation87_spill] sm:$0xff] %v15972_v22  ;;  %v10454_v11 = vld [vmem:[%s17138_s11 + $0xb20] sm:$0xff] }
0x120a   :  { %7664 = vmatprep.subr.bf16.mxu0 %v10551_v53  ;;  %7705 = vmatprep.subr.bf16.mxu1 %v10553_v29  ;;  %v15896_v53 = vcombine.low %v10363_v44, %v10367_v36  ;;  %v15900_v29 = vcombine.high %v10354_v49, %v10358_v56  ;;  %v15902_v40 = vcombine.high %v10355_v4, %v10359_v60  ;;  %v10451_v50 = vld [vmem:[%s17138_s11 + $0xb08] sm:$0xff] }
0x120b   :  { %18594 = vst [vmem:[#allocation45_spill] sm:$0xff] %v15894_v63  ;;  %v15920_v51 = vcombine.low %v10355_v4, %v10359_v60  ;;  %18609 = vst [vmem:[#allocation88_spill] sm:$0xff] %v15974_v45  ;;  %v10455_v44 = vld [vmem:[%s17138_s11 + $0xb28] sm:$0xff]  ;;  %v15990_v36 = vcombine.low %v10458_v33, %v10462_v37  ;;  %v10442_v60 = vld [vmem:[%s17138_s11 + $0xac0] sm:$0xff] }
0x120c   :  { %18595 = vst [vmem:[#allocation46_spill] sm:$0xff] %v15896_v53  ;;  %18596 = vst [vmem:[#allocation47_spill] sm:$0xff] %v15900_v29  ;;  %v15998_v4 = vcombine.high %v10451_v50, %v10455_v44  ;;  %v10438_v33 = vld [vmem:[%s17138_s11 + $0xaa0] sm:$0xff]  ;;  %v10435_v37 = vld [vmem:[%s17138_s11 + $0xa88] sm:$0xff] }
0x120d   :  { %7665 = vmatpush2.bf16.msra.mxu0 %v10550_v43  ;;  %7706 = vmatpush2.bf16.msra.mxu1 %v10552_v46  ;;  %18597 = vst [vmem:[#allocation48_spill] sm:$0xff] %v15902_v40  ;;  %v10479_v43 = vld [vmem:[%s17138_s11 + $0xbe8] sm:$0xff]  ;;  %v15918_v46 = vcombine.low %v10354_v49, %v10358_v56  ;;  %18599 = vst [vmem:[#allocation50_spill] sm:$0xff] %v15920_v51  ;;  %v15992_v49 = vcombine.low %v10459_v1, %v10463_v26 }
0x120e   :  { %8356 = vmatprep.subr.bf16.mxu0 %v15730_v24  ;;  %8397 = vmatprep.subr.bf16.mxu1 %v15732_v38  ;;  %v15926_v31 = vcombine.high %v10475_v34, %v10479_v43  ;;  %18610 = vst [vmem:[#allocation89_spill] sm:$0xff] %v15990_v36  ;;  %v15996_v56 = vcombine.high %v10450_v23, %v10454_v11  ;;  %18613 = vst [vmem:[#allocation75_spill] sm:$0xff] %v15998_v4  ;;  %v10439_v1 = vld [vmem:[%s17138_s11 + $0xaa8] sm:$0xff] }
0x120f   :  { %18598 = vst [vmem:[#allocation49_spill] sm:$0xff] %v15918_v46  ;;  %18611 = vst [vmem:[#allocation73_spill] sm:$0xff] %v15992_v49  ;;  %v16038_v26 = vcombine.low %v10442_v60, %v10446_v15 }
0x1210   :  { %7667 = vmatmul.mubr.bf16.vlgmr.msra.gmra.mxu0 %v15540_v35  ;;  %7708 = vmatmul.mubr.bf16.vlgmr.msra.gmra.mxu1 %v15540_v35  ;;  %v10386_v35 = vld [vmem:[%s17138_s11 + $0x900] sm:$0xff]  ;;  %18601 = vst [vmem:[#allocation68_spill] sm:$0xff] %v15926_v31  ;;  %18612 = vst [vmem:[#allocation74_spill] sm:$0xff] %v15996_v56 }
0x1211   :  { %8357 = vmatpush1.bf16.msra.mxu0 %v15746_v57  ;;  %8398 = vmatpush1.bf16.msra.mxu1 %v15748_v16  ;;  %v15804_v58 = vcombine.high %v10386_v35, %v10390_v0  ;;  %v15822_v20 = vcombine.low %v10386_v35, %v10390_v0  ;;  %v15944_v35 = vcombine.low %v10475_v34, %v10479_v43  ;;  %v10447_v34 = vld [vmem:[%s17138_s11 + $0xae8] sm:$0xff] }
0x1212   :  { %8358 = vmatprep.subr.bf16.mxu0 %v15752_v42  ;;  %8399 = vmatprep.subr.bf16.mxu1 %v15754_v41  ;;  %v15948_v0 = vcombine.high %v10466_v2, %v10470_v18  ;;  %v16014_v43 = vcombine.low %v10450_v23, %v10454_v11  ;;  %v16016_v2 = vcombine.low %v10451_v50, %v10455_v44  ;;  %v10426_v44 = vld [vmem:[%s17138_s11 + $0xa40] sm:$0xff] }
0x1213   :  { %8388 = vmatprep.mubr.bf16.mxu0 %v18577_v9  ;;  %8429 = vmatprep.mubr.bf16.mxu1 %v18577_v9  ;;  %18580 = vst [vmem:[#allocation42_spill] sm:$0xff] %v15804_v58  ;;  %18582 = vst [vmem:[#allocation90_spill] sm:$0xff] %v15822_v20  ;;  %v16020_v18 = vcombine.high %v10442_v60, %v10446_v15  ;;  %v16022_v54 = vcombine.high %v10443_v6, %v10447_v34  ;;  %v10427_v60 = vld [vmem:[%s17138_s11 + $0xa48] sm:$0xff] }
0x1214   :  { %18603 = vst [vmem:[#allocation69_spill] sm:$0xff] %v15944_v35  ;;  %18604 = vst [vmem:[#allocation131_spill] sm:$0xff] %v15948_v0  ;;  %v16040_v23 = vcombine.low %v10443_v6, %v10447_v34  ;;  %v16044_v11 = vcombine.high %v10434_v13, %v10438_v33  ;;  %v16046_v50 = vcombine.high %v10435_v37, %v10439_v1  ;;  %v10431_v15 = vld [vmem:[%s17138_s11 + $0xa68] sm:$0xff] }
0x1215   :  { %8359 = vmatpush1.bf16.msra.mxu0 %v15772_v61  ;;  %8400 = vmatpush1.bf16.msra.mxu1 %v15774_v59  ;;  %18614 = vst [vmem:[#allocation76_spill] sm:$0xff] %v16014_v43  ;;  %18615 = vst [vmem:[#allocation111_spill] sm:$0xff] %v16016_v2  ;;  %v16062_v6 = vcombine.low %v10434_v13, %v10438_v33  ;;  %v16064_v34 = vcombine.low %v10435_v37, %v10439_v1  ;;  %v10419_v13 = vld [vmem:[%s17138_s11 + $0xa08] sm:$0xff] }
0x1216   :  { %8360 = vmatprep.subr.bf16.mxu0 %v15778_v32  ;;  %8401 = vmatprep.subr.bf16.mxu1 %v15780_v25  ;;  %18616 = vst [vmem:[#allocation112_spill] sm:$0xff] %v16020_v18  ;;  %18617 = vst [vmem:[#allocation113_spill] sm:$0xff] %v16022_v54  ;;  %v10423_v33 = vld [vmem:[%s17138_s11 + $0xa28] sm:$0xff]  ;;  %v16088_v1 = vcombine.low %v10427_v60, %v10431_v15 }
0x1217   :  { %18618 = vst [vmem:[#allocation114_spill] sm:$0xff] %v16038_v26  ;;  %18619 = vst [vmem:[#allocation115_spill] sm:$0xff] %v16040_v23 }
0x1218   :  { %18620 = vst [vmem:[#allocation116_spill] sm:$0xff] %v16044_v11  ;;  %18621 = vst [vmem:[#allocation117_spill] sm:$0xff] %v16046_v50 }
0x1219   :  { %8361 = vmatpush1.bf16.msra.mxu0 %v15798_v62  ;;  %8402 = vmatpush1.bf16.msra.mxu1 %v15800_v52  ;;  %18622 = vst [vmem:[#allocation118_spill] sm:$0xff] %v16062_v6  ;;  %18623 = vst [vmem:[#allocation119_spill] sm:$0xff] %v16064_v34 }
0x121a   :  { %8362 = vmatprep.subr.bf16.mxu0 %v15804_v58  ;;  %8403 = vmatprep.subr.bf16.mxu1 %v15806_v10  ;;  %18627 = vst [vmem:[#allocation79_spill] sm:$0xff] %v16088_v1 }
0x121d   :  { %8363 = vmatpush1.bf16.msra.mxu0 %v15822_v20  ;;  %8404 = vmatpush1.bf16.msra.mxu1 %v15824_v8 }
0x121e   :  { %8364 = vmatprep.subr.bf16.mxu0 %v15828_v5  ;;  %8405 = vmatprep.subr.bf16.mxu1 %v15830_v19 }
0x1221   :  { %8365 = vmatpush1.bf16.msra.mxu0 %v15846_v3  ;;  %8406 = vmatpush1.bf16.msra.mxu1 %v15848_v48 }
0x1222   :  { %8366 = vmatprep.subr.bf16.mxu0 %v15852_v27  ;;  %8407 = vmatprep.subr.bf16.mxu1 %v15854_v21 }
0x1225   :  { %8367 = vmatpush1.bf16.msra.mxu0 %v15870_v55  ;;  %8408 = vmatpush1.bf16.msra.mxu1 %v15872_v39 }
0x1226   :  { %8368 = vmatprep.subr.bf16.mxu0 %v15876_v28  ;;  %8409 = vmatprep.subr.bf16.mxu1 %v15878_v47 }
0x1229   :  { %8369 = vmatpush1.bf16.msra.mxu0 %v15894_v63  ;;  %8410 = vmatpush1.bf16.msra.mxu1 %v15896_v53 }
0x122a   :  { %8370 = vmatprep.subr.bf16.mxu0 %v15900_v29  ;;  %8411 = vmatprep.subr.bf16.mxu1 %v15902_v40 }
0x122d   :  { %8371 = vmatpush1.bf16.msra.mxu0 %v15918_v46  ;;  %8412 = vmatpush1.bf16.msra.mxu1 %v15920_v51 }
0x122e   :  { %8372 = vmatprep.subr.bf16.mxu0 %v15924_v17  ;;  %8413 = vmatprep.subr.bf16.mxu1 %v15926_v31 }
0x1231   :  { %8373 = vmatpush2.bf16.msra.mxu0 %v15942_v12  ;;  %8414 = vmatpush2.bf16.msra.mxu1 %v15944_v35 }
0x1232   :  { %8374 = vmatprep.subr.bf16.mxu0 %v15948_v0  ;;  %8415 = vmatprep.subr.bf16.mxu1 %v15950_v14 }
0x1235   :  { %8375 = vmatpush2.bf16.msra.mxu0 %v15966_v7  ;;  %8416 = vmatpush2.bf16.msra.mxu1 %v15968_v30 }
0x1236   :  { %8376 = vmatprep.subr.bf16.mxu0 %v15972_v22  ;;  %8417 = vmatprep.subr.bf16.mxu1 %v15974_v45 }
0x1239   :  { %8377 = vmatpush2.bf16.msra.mxu0 %v15990_v36  ;;  %8418 = vmatpush2.bf16.msra.mxu1 %v15992_v49 }
0x123a   :  { %8378 = vmatprep.subr.bf16.mxu0 %v15996_v56  ;;  %8419 = vmatprep.subr.bf16.mxu1 %v15998_v4 }
0x123d   :  { %8379 = vmatpush2.bf16.msra.mxu0 %v16014_v43  ;;  %8420 = vmatpush2.bf16.msra.mxu1 %v16016_v2  ;;  %v10430_v2 = vld [vmem:[%s17138_s11 + $0xa60] sm:$0xff] }
0x123e   :  { %8380 = vmatprep.subr.bf16.mxu0 %v16020_v18  ;;  %8421 = vmatprep.subr.bf16.mxu1 %v16022_v54  ;;  %v16068_v54 = vcombine.high %v10426_v44, %v10430_v2  ;;  %v16070_v18 = vcombine.high %v10427_v60, %v10431_v15  ;;  %v10418_v43 = vld [vmem:[%s17138_s11 + $0xa00] sm:$0xff]  ;;  %v16086_v37 = vcombine.low %v10426_v44, %v10430_v2  ;;  %v10413_v2 = vld [vmem:[%s17138_s11 + $0x9d8] sm:$0xff] }
0x123f   :  { %v10417_v44 = vld [vmem:[%s17138_s11 + $0x9f8] sm:$0xff]  ;;  %v16112_v15 = vcombine.low %v10419_v13, %v10423_v33 }
0x1240   :  { %18624 = vst [vmem:[#allocation9_spill] sm:$0xff] %v16068_v54  ;;  %18625 = vst [vmem:[#allocation77_spill] sm:$0xff] %v16070_v18 }
0x1241   :  { %8381 = vmatpush2.bf16.msra.mxu0 %v16038_v26  ;;  %8422 = vmatpush2.bf16.msra.mxu1 %v16040_v23  ;;  %v10422_v23 = vld [vmem:[%s17138_s11 + $0xa20] sm:$0xff]  ;;  %18626 = vst [vmem:[#allocation78_spill] sm:$0xff] %v16086_v37  ;;  %v10412_v26 = vld [vmem:[%s17138_s11 + $0x9d0] sm:$0xff]  ;;  %18631 = vst [vmem:[#allocation83_spill] sm:$0xff] %v16112_v15 }
0x1242   :  { %8382 = vmatprep.subr.bf16.mxu0 %v16044_v11  ;;  %8423 = vmatprep.subr.bf16.mxu1 %v16046_v50  ;;  %v16092_v50 = vcombine.high %v10418_v43, %v10422_v23  ;;  %v16094_v11 = vcombine.high %v10419_v13, %v10423_v33  ;;  %v16110_v60 = vcombine.low %v10418_v43, %v10422_v23  ;;  %v10405_v43 = vld [vmem:[%s17138_s11 + $0x998] sm:$0xff] }
0x1243   :  { %v10409_v23 = vld [vmem:[%s17138_s11 + $0x9b8] sm:$0xff]  ;;  %v16136_v33 = vcombine.low %v10413_v2, %v10417_v44 }
0x1244   :  { %18628 = vst [vmem:[#allocation80_spill] sm:$0xff] %v16092_v50  ;;  %18629 = vst [vmem:[#allocation81_spill] sm:$0xff] %v16094_v11 }
0x1245   :  { %8383 = vmatpush2.bf16.msra.mxu0 %v16062_v6  ;;  %8424 = vmatpush2.bf16.msra.mxu1 %v16064_v34  ;;  %v10416_v34 = vld [vmem:[%s17138_s11 + $0x9f0] sm:$0xff]  ;;  %18630 = vst [vmem:[#allocation82_spill] sm:$0xff] %v16110_v60  ;;  %18635 = vst [vmem:[#allocation103_spill] sm:$0xff] %v16136_v33 }
0x1246   :  { %8384 = vmatprep.subr.bf16.mxu0 %v16068_v54  ;;  %8425 = vmatprep.subr.bf16.mxu1 %v16070_v18  ;;  %v16116_v18 = vcombine.high %v10412_v26, %v10416_v34  ;;  %v16118_v54 = vcombine.high %v10413_v2, %v10417_v44  ;;  %v10404_v6 = vld [vmem:[%s17138_s11 + $0x990] sm:$0xff]  ;;  %v16134_v13 = vcombine.low %v10412_v26, %v10416_v34  ;;  %v10397_v26 = vld [vmem:[%s17138_s11 + $0x958] sm:$0xff] }
0x1247   :  { %v10401_v34 = vld [vmem:[%s17138_s11 + $0x978] sm:$0xff]  ;;  %v16162_v44 = vcombine.low %v10405_v43, %v10409_v23 }
0x1248   :  { %18632 = vst [vmem:[#allocation100_spill] sm:$0xff] %v16116_v18  ;;  %18633 = vst [vmem:[#allocation101_spill] sm:$0xff] %v16118_v54 }
0x1249   :  { %8385 = vmatpush2.bf16.msra.mxu0 %v16086_v37  ;;  %8426 = vmatpush2.bf16.msra.mxu1 %v16088_v1  ;;  %v10408_v1 = vld [vmem:[%s17138_s11 + $0x9b0] sm:$0xff]  ;;  %18634 = vst [vmem:[#allocation102_spill] sm:$0xff] %v16134_v13  ;;  %18639 = vst [vmem:[#allocation107_spill] sm:$0xff] %v16162_v44 }
0x124a   :  { %8386 = vmatprep.subr.bf16.mxu0 %v16092_v50  ;;  %8427 = vmatprep.subr.bf16.mxu1 %v16094_v11  ;;  %v16140_v11 = vcombine.high %v10404_v6, %v10408_v1  ;;  %v16142_v50 = vcombine.high %v10405_v43, %v10409_v23  ;;  %v10396_v37 = vld [vmem:[%s17138_s11 + $0x950] sm:$0xff]  ;;  %v16160_v2 = vcombine.low %v10404_v6, %v10408_v1  ;;  %v10389_v6 = vld [vmem:[%s17138_s11 + $0x918] sm:$0xff] }
0x124b   :  { %v10393_v1 = vld [vmem:[%s17138_s11 + $0x938] sm:$0xff]  ;;  %v16188_v23 = vcombine.low %v10397_v26, %v10401_v34 }
0x124c   :  { %18636 = vst [vmem:[#allocation104_spill] sm:$0xff] %v16140_v11  ;;  %18637 = vst [vmem:[#allocation105_spill] sm:$0xff] %v16142_v50 }
0x124d   :  { %8387 = vmatpush2.bf16.msra.mxu0 %v16110_v60  ;;  %8428 = vmatpush2.bf16.msra.mxu1 %v16112_v15  ;;  %v10400_v15 = vld [vmem:[%s17138_s11 + $0x970] sm:$0xff]  ;;  %18638 = vst [vmem:[#allocation106_spill] sm:$0xff] %v16160_v2  ;;  %18643 = vst [vmem:[#allocation11_spill] sm:$0xff] %v16188_v23 }
0x124e   :  { %8438 = vmatprep.subr.bf16.mxu0 %v16116_v18  ;;  %8479 = vmatprep.subr.bf16.mxu1 %v16118_v54  ;;  %v16166_v54 = vcombine.high %v10396_v37, %v10400_v15  ;;  %v16168_v18 = vcombine.high %v10397_v26, %v10401_v34  ;;  %v10388_v60 = vld [vmem:[%s17138_s11 + $0x910] sm:$0xff]  ;;  %v16186_v43 = vcombine.low %v10396_v37, %v10400_v15  ;;  %v10381_v37 = vld [vmem:[%s17138_s11 + $0x8d8] sm:$0xff] }
0x124f   :  { %v10385_v15 = vld [vmem:[%s17138_s11 + $0x8f8] sm:$0xff]  ;;  %v16212_v34 = vcombine.low %v10389_v6, %v10393_v1 }
0x1250   :  { %8389 = vmatmul.mubr.bf16.vlgmr.msra.gmra.mxu0 %v18577_v9  ;;  %8430 = vmatmul.mubr.bf16.vlgmr.msra.gmra.mxu1 %v18577_v9  ;;  %18640 = vst [vmem:[#allocation108_spill] sm:$0xff] %v16166_v54  ;;  %18641 = vst [vmem:[#allocation109_spill] sm:$0xff] %v16168_v18 }
0x1251   :  { %8439 = vmatpush1.bf16.msra.mxu0 %v16134_v13  ;;  %8480 = vmatpush1.bf16.msra.mxu1 %v16136_v33  ;;  %v10392_v33 = vld [vmem:[%s17138_s11 + $0x930] sm:$0xff]  ;;  %18642 = vst [vmem:[#allocation110_spill] sm:$0xff] %v16186_v43  ;;  %18647 = vst [vmem:[#allocation15_spill] sm:$0xff] %v16212_v34 }
0x1252   :  { %8440 = vmatprep.subr.bf16.mxu0 %v16140_v11  ;;  %8481 = vmatprep.subr.bf16.mxu1 %v16142_v50  ;;  %v16192_v50 = vcombine.high %v10388_v60, %v10392_v33  ;;  %v16194_v11 = vcombine.high %v10389_v6, %v10393_v1  ;;  %v10380_v13 = vld [vmem:[%s17138_s11 + $0x8d0] sm:$0xff]  ;;  %v16210_v26 = vcombine.low %v10388_v60, %v10392_v33  ;;  %v10373_v60 = vld [vmem:[%s17138_s11 + $0x898] sm:$0xff] }
0x1253   :  { %8470 = vmatprep.mubr.bf16.mxu0 %v18577_v9  ;;  %8511 = vmatprep.mubr.bf16.mxu1 %v18577_v9  ;;  %v10377_v33 = vld [vmem:[%s17138_s11 + $0x8b8] sm:$0xff]  ;;  %v16236_v1 = vcombine.low %v10381_v37, %v10385_v15 }
0x1254   :  { %18644 = vst [vmem:[#allocation12_spill] sm:$0xff] %v16192_v50  ;;  %18645 = vst [vmem:[#allocation13_spill] sm:$0xff] %v16194_v11 }
0x1255   :  { %8441 = vmatpush1.bf16.msra.mxu0 %v16160_v2  ;;  %8482 = vmatpush1.bf16.msra.mxu1 %v16162_v44  ;;  %v10384_v44 = vld [vmem:[%s17138_s11 + $0x8f0] sm:$0xff]  ;;  %18646 = vst [vmem:[#allocation14_spill] sm:$0xff] %v16210_v26  ;;  %18651 = vst [vmem:[#allocation19_spill] sm:$0xff] %v16236_v1 }
0x1256   :  { %8442 = vmatprep.subr.bf16.mxu0 %v16166_v54  ;;  %8483 = vmatprep.subr.bf16.mxu1 %v16168_v18  ;;  %v16216_v18 = vcombine.high %v10380_v13, %v10384_v44  ;;  %v16218_v54 = vcombine.high %v10381_v37, %v10385_v15  ;;  %v10372_v2 = vld [vmem:[%s17138_s11 + $0x890] sm:$0xff]  ;;  %v16234_v6 = vcombine.low %v10380_v13, %v10384_v44  ;;  %v10365_v13 = vld [vmem:[%s17138_s11 + $0x858] sm:$0xff] }
0x1257   :  { %v10369_v44 = vld [vmem:[%s17138_s11 + $0x878] sm:$0xff]  ;;  %v16260_v15 = vcombine.low %v10373_v60, %v10377_v33 }
0x1258   :  { %18648 = vst [vmem:[#allocation16_spill] sm:$0xff] %v16216_v18  ;;  %18649 = vst [vmem:[#allocation17_spill] sm:$0xff] %v16218_v54 }
0x1259   :  { %8443 = vmatpush1.bf16.msra.mxu0 %v16186_v43  ;;  %8484 = vmatpush1.bf16.msra.mxu1 %v16188_v23  ;;  %v10376_v23 = vld [vmem:[%s17138_s11 + $0x8b0] sm:$0xff]  ;;  %18650 = vst [vmem:[#allocation18_spill] sm:$0xff] %v16234_v6  ;;  %18655 = vst [vmem:[#allocation23_spill] sm:$0xff] %v16260_v15 }
0x125a   :  { %8444 = vmatprep.subr.bf16.mxu0 %v16192_v50  ;;  %8485 = vmatprep.subr.bf16.mxu1 %v16194_v11  ;;  %v16240_v11 = vcombine.high %v10372_v2, %v10376_v23  ;;  %v16242_v50 = vcombine.high %v10373_v60, %v10377_v33  ;;  %v10364_v43 = vld [vmem:[%s17138_s11 + $0x850] sm:$0xff]  ;;  %v16258_v37 = vcombine.low %v10372_v2, %v10376_v23  ;;  %v10357_v2 = vld [vmem:[%s17138_s11 + $0x818] sm:$0xff] }
0x125b   :  { %v10361_v23 = vld [vmem:[%s17138_s11 + $0x838] sm:$0xff]  ;;  %v16284_v33 = vcombine.low %v10365_v13, %v10369_v44 }
0x125c   :  { %18652 = vst [vmem:[#allocation20_spill] sm:$0xff] %v16240_v11  ;;  %18653 = vst [vmem:[#allocation21_spill] sm:$0xff] %v16242_v50 }
0x125d   :  { %8445 = vmatpush1.bf16.msra.mxu0 %v16210_v26  ;;  %8486 = vmatpush1.bf16.msra.mxu1 %v16212_v34  ;;  %v10368_v34 = vld [vmem:[%s17138_s11 + $0x870] sm:$0xff]  ;;  %18654 = vst [vmem:[#allocation22_spill] sm:$0xff] %v16258_v37  ;;  %18659 = vst [vmem:[#allocation27_spill] sm:$0xff] %v16284_v33 }
0x125e   :  { %8446 = vmatprep.subr.bf16.mxu0 %v16216_v18  ;;  %8487 = vmatprep.subr.bf16.mxu1 %v16218_v54  ;;  %v16264_v54 = vcombine.high %v10364_v43, %v10368_v34  ;;  %v16266_v18 = vcombine.high %v10365_v13, %v10369_v44  ;;  %v10356_v26 = vld [vmem:[%s17138_s11 + $0x810] sm:$0xff]  ;;  %v16282_v60 = vcombine.low %v10364_v43, %v10368_v34  ;;  %v10477_v43 = vld [vmem:[%s17138_s11 + $0xbd8] sm:$0xff] }
0x125f   :  { %v10481_v34 = vld [vmem:[%s17138_s11 + $0xbf8] sm:$0xff]  ;;  %v16308_v44 = vcombine.low %v10357_v2, %v10361_v23 }
0x1260   :  { %18656 = vst [vmem:[#allocation24_spill] sm:$0xff] %v16264_v54  ;;  %18657 = vst [vmem:[#allocation25_spill] sm:$0xff] %v16266_v18 }
0x1261   :  { %8447 = vmatpush1.bf16.msra.mxu0 %v16234_v6  ;;  %8488 = vmatpush1.bf16.msra.mxu1 %v16236_v1  ;;  %v10360_v1 = vld [vmem:[%s17138_s11 + $0x830] sm:$0xff]  ;;  %18658 = vst [vmem:[#allocation26_spill] sm:$0xff] %v16282_v60  ;;  %18663 = vst [vmem:[#allocation31_spill] sm:$0xff] %v16308_v44 }
0x1262   :  { %8448 = vmatprep.subr.bf16.mxu0 %v16240_v11  ;;  %8489 = vmatprep.subr.bf16.mxu1 %v16242_v50  ;;  %v16288_v50 = vcombine.high %v10356_v26, %v10360_v1  ;;  %v16290_v11 = vcombine.high %v10357_v2, %v10361_v23  ;;  %v10476_v6 = vld [vmem:[%s17138_s11 + $0xbd0] sm:$0xff]  ;;  %v16306_v13 = vcombine.low %v10356_v26, %v10360_v1  ;;  %v10469_v26 = vld [vmem:[%s17138_s11 + $0xb98] sm:$0xff] }
0x1263   :  { %v10473_v1 = vld [vmem:[%s17138_s11 + $0xbb8] sm:$0xff]  ;;  %v16332_v23 = vcombine.low %v10477_v43, %v10481_v34 }
0x1264   :  { %18660 = vst [vmem:[#allocation28_spill] sm:$0xff] %v16288_v50  ;;  %18661 = vst [vmem:[#allocation29_spill] sm:$0xff] %v16290_v11 }
0x1265   :  { %8449 = vmatpush1.bf16.msra.mxu0 %v16258_v37  ;;  %8490 = vmatpush1.bf16.msra.mxu1 %v16260_v15  ;;  %v10480_v15 = vld [vmem:[%s17138_s11 + $0xbf0] sm:$0xff]  ;;  %18662 = vst [vmem:[#allocation30_spill] sm:$0xff] %v16306_v13  ;;  %18667 = vst [vmem:[#allocation35_spill] sm:$0xff] %v16332_v23 }
0x1266   :  { %8450 = vmatprep.subr.bf16.mxu0 %v16264_v54  ;;  %8491 = vmatprep.subr.bf16.mxu1 %v16266_v18  ;;  %v16312_v18 = vcombine.high %v10476_v6, %v10480_v15  ;;  %v16314_v54 = vcombine.high %v10477_v43, %v10481_v34  ;;  %v10468_v37 = vld [vmem:[%s17138_s11 + $0xb90] sm:$0xff]  ;;  %v16330_v2 = vcombine.low %v10476_v6, %v10480_v15  ;;  %v10461_v6 = vld [vmem:[%s17138_s11 + $0xb58] sm:$0xff] }
0x1267   :  { %v10465_v15 = vld [vmem:[%s17138_s11 + $0xb78] sm:$0xff]  ;;  %v16356_v34 = vcombine.low %v10469_v26, %v10473_v1 }
0x1268   :  { %18664 = vst [vmem:[#allocation32_spill] sm:$0xff] %v16312_v18  ;;  %18665 = vst [vmem:[#allocation33_spill] sm:$0xff] %v16314_v54 }
0x1269   :  { %8451 = vmatpush1.bf16.msra.mxu0 %v16282_v60  ;;  %8492 = vmatpush1.bf16.msra.mxu1 %v16284_v33  ;;  %v10472_v33 = vld [vmem:[%s17138_s11 + $0xbb0] sm:$0xff]  ;;  %18666 = vst [vmem:[#allocation34_spill] sm:$0xff] %v16330_v2  ;;  %18671 = vst [vmem:[#allocation70_spill] sm:$0xff] %v16356_v34 }
0x126a   :  { %8452 = vmatprep.subr.bf16.mxu0 %v16288_v50  ;;  %8493 = vmatprep.subr.bf16.mxu1 %v16290_v11  ;;  %v16336_v11 = vcombine.high %v10468_v37, %v10472_v33  ;;  %v16338_v50 = vcombine.high %v10469_v26, %v10473_v1  ;;  %v10460_v60 = vld [vmem:[%s17138_s11 + $0xb50] sm:$0xff]  ;;  %v16354_v43 = vcombine.low %v10468_v37, %v10472_v33  ;;  %v10453_v37 = vld [vmem:[%s17138_s11 + $0xb18] sm:$0xff] }
0x126b   :  { %v10457_v33 = vld [vmem:[%s17138_s11 + $0xb38] sm:$0xff]  ;;  %v16380_v1 = vcombine.low %v10461_v6, %v10465_v15 }
0x126c   :  { %18668 = vst [vmem:[#allocation130_spill] sm:$0xff] %v16336_v11  ;;  %18669 = vst [vmem:[#allocation71_spill] sm:$0xff] %v16338_v50 }
0x126d   :  { %8453 = vmatpush1.bf16.msra.mxu0 %v16306_v13  ;;  %8494 = vmatpush1.bf16.msra.mxu1 %v16308_v44  ;;  %v10464_v44 = vld [vmem:[%s17138_s11 + $0xb70] sm:$0xff]  ;;  %18670 = vst [vmem:[#allocation10_spill] sm:$0xff] %v16354_v43  ;;  %18675 = vst [vmem:[#allocation54_spill] sm:$0xff] %v16380_v1 }
0x126e   :  { %8454 = vmatprep.subr.bf16.mxu0 %v16312_v18  ;;  %8495 = vmatprep.subr.bf16.mxu1 %v16314_v54  ;;  %v16360_v54 = vcombine.high %v10460_v60, %v10464_v44  ;;  %v16362_v18 = vcombine.high %v10461_v6, %v10465_v15  ;;  %v10452_v13 = vld [vmem:[%s17138_s11 + $0xb10] sm:$0xff]  ;;  %v16378_v26 = vcombine.low %v10460_v60, %v10464_v44  ;;  %v10445_v60 = vld [vmem:[%s17138_s11 + $0xad8] sm:$0xff] }
0x126f   :  { %v10449_v44 = vld [vmem:[%s17138_s11 + $0xaf8] sm:$0xff]  ;;  %v16404_v15 = vcombine.low %v10453_v37, %v10457_v33 }
0x1270   :  { %18672 = vst [vmem:[#allocation51_spill] sm:$0xff] %v16360_v54  ;;  %18673 = vst [vmem:[#allocation52_spill] sm:$0xff] %v16362_v18 }
0x1271   :  { %8455 = vmatpush2.bf16.msra.mxu0 %v16330_v2  ;;  %8496 = vmatpush2.bf16.msra.mxu1 %v16332_v23  ;;  %v10456_v23 = vld [vmem:[%s17138_s11 + $0xb30] sm:$0xff]  ;;  %18674 = vst [vmem:[#allocation53_spill] sm:$0xff] %v16378_v26  ;;  %18679 = vst [vmem:[#allocation58_spill] sm:$0xff] %v16404_v15 }
0x1272   :  { %8456 = vmatprep.subr.bf16.mxu0 %v16336_v11  ;;  %8497 = vmatprep.subr.bf16.mxu1 %v16338_v50  ;;  %v16384_v50 = vcombine.high %v10452_v13, %v10456_v23  ;;  %v16386_v11 = vcombine.high %v10453_v37, %v10457_v33  ;;  %v10444_v2 = vld [vmem:[%s17138_s11 + $0xad0] sm:$0xff]  ;;  %v16402_v6 = vcombine.low %v10452_v13, %v10456_v23  ;;  %v10437_v13 = vld [vmem:[%s17138_s11 + $0xa98] sm:$0xff] }
0x1273   :  { %v10441_v23 = vld [vmem:[%s17138_s11 + $0xab8] sm:$0xff]  ;;  %v16428_v33 = vcombine.low %v10445_v60, %v10449_v44 }
0x1274   :  { %18676 = vst [vmem:[#allocation55_spill] sm:$0xff] %v16384_v50  ;;  %18677 = vst [vmem:[#allocation56_spill] sm:$0xff] %v16386_v11 }
0x1275   :  { %8457 = vmatpush2.bf16.msra.mxu0 %v16354_v43  ;;  %8498 = vmatpush2.bf16.msra.mxu1 %v16356_v34  ;;  %v10448_v34 = vld [vmem:[%s17138_s11 + $0xaf0] sm:$0xff]  ;;  %18678 = vst [vmem:[#allocation57_spill] sm:$0xff] %v16402_v6  ;;  %18683 = vst [vmem:[#allocation62_spill] sm:$0xff] %v16428_v33 }
0x1276   :  { %8458 = vmatprep.subr.bf16.mxu0 %v16360_v54  ;;  %8499 = vmatprep.subr.bf16.mxu1 %v16362_v18  ;;  %v16408_v18 = vcombine.high %v10444_v2, %v10448_v34  ;;  %v16410_v54 = vcombine.high %v10445_v60, %v10449_v44  ;;  %v10436_v43 = vld [vmem:[%s17138_s11 + $0xa90] sm:$0xff]  ;;  %v16426_v37 = vcombine.low %v10444_v2, %v10448_v34  ;;  %v10429_v2 = vld [vmem:[%s17138_s11 + $0xa58] sm:$0xff] }
0x1277   :  { %v10433_v34 = vld [vmem:[%s17138_s11 + $0xa78] sm:$0xff]  ;;  %v16452_v44 = vcombine.low %v10437_v13, %v10441_v23 }
0x1278   :  { %18680 = vst [vmem:[#allocation59_spill] sm:$0xff] %v16408_v18  ;;  %18681 = vst [vmem:[#allocation60_spill] sm:$0xff] %v16410_v54 }
0x1279   :  { %8459 = vmatpush2.bf16.msra.mxu0 %v16378_v26  ;;  %8500 = vmatpush2.bf16.msra.mxu1 %v16380_v1  ;;  %v10440_v1 = vld [vmem:[%s17138_s11 + $0xab0] sm:$0xff]  ;;  %18682 = vst [vmem:[#allocation61_spill] sm:$0xff] %v16426_v37  ;;  %18687 = vst [vmem:[#allocation66_spill] sm:$0xff] %v16452_v44 }
0x127a   :  { %8460 = vmatprep.subr.bf16.mxu0 %v16384_v50  ;;  %8501 = vmatprep.subr.bf16.mxu1 %v16386_v11  ;;  %v16432_v11 = vcombine.high %v10436_v43, %v10440_v1  ;;  %v16434_v50 = vcombine.high %v10437_v13, %v10441_v23  ;;  %v10428_v26 = vld [vmem:[%s17138_s11 + $0xa50] sm:$0xff]  ;;  %v16450_v60 = vcombine.low %v10436_v43, %v10440_v1  ;;  %v10421_v43 = vld [vmem:[%s17138_s11 + $0xa18] sm:$0xff] }
0x127b   :  { %v10425_v1 = vld [vmem:[%s17138_s11 + $0xa38] sm:$0xff]  ;;  %v16476_v23 = vcombine.low %v10429_v2, %v10433_v34 }
0x127c   :  { %18684 = vst [vmem:[#allocation63_spill] sm:$0xff] %v16432_v11  ;;  %18685 = vst [vmem:[#allocation64_spill] sm:$0xff] %v16434_v50 }
0x127d   :  { %8461 = vmatpush2.bf16.msra.mxu0 %v16402_v6  ;;  %8502 = vmatpush2.bf16.msra.mxu1 %v16404_v15  ;;  %v10432_v15 = vld [vmem:[%s17138_s11 + $0xa70] sm:$0xff]  ;;  %18686 = vst [vmem:[#allocation65_spill] sm:$0xff] %v16450_v60  ;;  %18691 = vst [vmem:[#allocation122_spill] sm:$0xff] %v16476_v23 }
0x127e   :  { %8462 = vmatprep.subr.bf16.mxu0 %v16408_v18  ;;  %8503 = vmatprep.subr.bf16.mxu1 %v16410_v54  ;;  %v16456_v54 = vcombine.high %v10428_v26, %v10432_v15  ;;  %v16458_v18 = vcombine.high %v10429_v2, %v10433_v34  ;;  %v10420_v6 = vld [vmem:[%s17138_s11 + $0xa10] sm:$0xff]  ;;  %v16474_v13 = vcombine.low %v10428_v26, %v10432_v15 }
0x1280   :  { %18688 = vst [vmem:[#allocation99_spill] sm:$0xff] %v16456_v54  ;;  %18689 = vst [vmem:[#allocation120_spill] sm:$0xff] %v16458_v18 }
0x1281   :  { %8463 = vmatpush2.bf16.msra.mxu0 %v16426_v37  ;;  %8504 = vmatpush2.bf16.msra.mxu1 %v16428_v33  ;;  %v10424_v33 = vld [vmem:[%s17138_s11 + $0xa30] sm:$0xff]  ;;  %18690 = vst [vmem:[#allocation121_spill] sm:$0xff] %v16474_v13 }
0x1282   :  { %8464 = vmatprep.subr.bf16.mxu0 %v16432_v11  ;;  %8505 = vmatprep.subr.bf16.mxu1 %v16434_v50  ;;  %v16480_v50 = vcombine.high %v10420_v6, %v10424_v33  ;;  %v16482_v11 = vcombine.high %v10421_v43, %v10425_v1  ;;  %v16486_v37 = vcombine.low %v10420_v6, %v10424_v33 }
0x1284   :  { %18692 = vst [vmem:[#allocation123_spill] sm:$0xff] %v16480_v50  ;;  %18693 = vst [vmem:[#allocation124_spill] sm:$0xff] %v16482_v11 }
0x1285   :  { %8465 = vmatpush2.bf16.msra.mxu0 %v16450_v60  ;;  %8506 = vmatpush2.bf16.msra.mxu1 %v16452_v44  ;;  %18694 = vst [vmem:[#allocation125_spill] sm:$0xff] %v16486_v37  ;;  %v16488_v60 = vcombine.low %v10421_v43, %v10425_v1  ;;  %v18696_v1 = vld [vmem:[#allocation76_spill] sm:$0xff] }
0x1286   :  { %8466 = vmatprep.subr.bf16.mxu0 %v16456_v54  ;;  %8507 = vmatprep.subr.bf16.mxu1 %v16458_v18 }
0x1287   :  { %18695 = vst [vmem:[#allocation126_spill] sm:$0xff] %v16488_v60 }
0x1289   :  { %8467 = vmatpush2.bf16.msra.mxu0 %v16474_v13  ;;  %8508 = vmatpush2.bf16.msra.mxu1 %v16476_v23 }
0x128a   :  { %8468 = vmatprep.subr.bf16.mxu0 %v16480_v50  ;;  %8509 = vmatprep.subr.bf16.mxu1 %v16482_v11 }
0x128d   :  { %8469 = vmatpush2.bf16.msra.mxu0 %v16486_v37  ;;  %8510 = vmatpush2.bf16.msra.mxu1 %v16488_v60 }
0x128e   :  { %8593 = vmatprep.subr.bf16.mxu0 %v15730_v24  ;;  %8634 = vmatprep.subr.bf16.mxu1 %v15732_v38 }
0x1290   :  { %8471 = vmatmul.mubr.bf16.vlgmr.msra.gmra.mxu0 %v18577_v9  ;;  %8512 = vmatmul.mubr.bf16.vlgmr.msra.gmra.mxu1 %v18577_v9  ;;  %v16498_v26 = vpop.f32.mrf.mxu0  ;;  %v16500_v6 = vpop.f32.mrf.mxu1 }
0x1291   :  { %8594 = vmatpush1.bf16.msra.mxu0 %v15746_v57  ;;  %8635 = vmatpush1.bf16.msra.mxu1 %v15748_v16 }
0x1292   :  { %v16504_v15 = vpop.f32.mrf.mxu0  ;;  %v16506_v33 = vpop.f32.mrf.mxu1  ;;  %8595 = vmatprep.subr.bf16.mxu0 %v15752_v42  ;;  %8636 = vmatprep.subr.bf16.mxu1 %v15754_v41 }
0x1294   :  { %v7590_v2 = vpop.f32.mrf.mxu0  ;;  %v7631_v34 = vpop.f32.mrf.mxu1 }
0x1295   :  { %8596 = vmatpush1.bf16.msra.mxu0 %v15772_v61  ;;  %8637 = vmatpush1.bf16.msra.mxu1 %v15774_v59  ;;  %v18697_v2 = vld [vmem:[#allocation111_spill] sm:$0xff]  ;;  %v18698_v34 = vld [vmem:[#allocation112_spill] sm:$0xff] }
0x1296   :  { %v7591_v9 = vpop.f32.mrf.mxu0  ;;  %v7632_v43 = vpop.f32.mrf.mxu1  ;;  %8597 = vmatprep.subr.bf16.mxu0 %v15778_v32  ;;  %8638 = vmatprep.subr.bf16.mxu1 %v15780_v25 }
0x1297   :  { %v18699_v9 = vld [vmem:[#allocation113_spill] sm:$0xff]  ;;  %v18700_v43 = vld [vmem:[#allocation114_spill] sm:$0xff] }
0x1299   :  { %8598 = vmatpush1.bf16.msra.mxu0 %v15798_v62  ;;  %8639 = vmatpush1.bf16.msra.mxu1 %v15800_v52 }
0x129a   :  { %8599 = vmatprep.subr.bf16.mxu0 %v15804_v58  ;;  %8640 = vmatprep.subr.bf16.mxu1 %v15806_v10 }
0x129d   :  { %8600 = vmatpush1.bf16.msra.mxu0 %v15822_v20  ;;  %8641 = vmatpush1.bf16.msra.mxu1 %v15824_v8 }
0x129e   :  { %8601 = vmatprep.subr.bf16.mxu0 %v15828_v5  ;;  %8642 = vmatprep.subr.bf16.mxu1 %v15830_v19 }
0x12a1   :  { %8602 = vmatpush1.bf16.msra.mxu0 %v15846_v3  ;;  %8643 = vmatpush1.bf16.msra.mxu1 %v15848_v48 }
0x12a2   :  { %8603 = vmatprep.subr.bf16.mxu0 %v15852_v27  ;;  %8644 = vmatprep.subr.bf16.mxu1 %v15854_v21 }
0x12a5   :  { %8604 = vmatpush1.bf16.msra.mxu0 %v15870_v55  ;;  %8645 = vmatpush1.bf16.msra.mxu1 %v15872_v39 }
0x12a6   :  { %8605 = vmatprep.subr.bf16.mxu0 %v15876_v28  ;;  %8646 = vmatprep.subr.bf16.mxu1 %v15878_v47 }
0x12a9   :  { %8606 = vmatpush1.bf16.msra.mxu0 %v15894_v63  ;;  %8647 = vmatpush1.bf16.msra.mxu1 %v15896_v53 }
0x12aa   :  { %8607 = vmatprep.subr.bf16.mxu0 %v15900_v29  ;;  %8648 = vmatprep.subr.bf16.mxu1 %v15902_v40 }
0x12ad   :  { %8608 = vmatpush1.bf16.msra.mxu0 %v15918_v46  ;;  %8649 = vmatpush1.bf16.msra.mxu1 %v15920_v51 }
0x12ae   :  { %8609 = vmatprep.subr.bf16.mxu0 %v15924_v17  ;;  %8650 = vmatprep.subr.bf16.mxu1 %v15926_v31 }
0x12b1   :  { %8610 = vmatpush2.bf16.msra.mxu0 %v15942_v12  ;;  %8651 = vmatpush2.bf16.msra.mxu1 %v15944_v35 }
0x12b2   :  { %8611 = vmatprep.subr.bf16.mxu0 %v15948_v0  ;;  %8652 = vmatprep.subr.bf16.mxu1 %v15950_v14 }
0x12b5   :  { %8612 = vmatpush2.bf16.msra.mxu0 %v15966_v7  ;;  %8653 = vmatpush2.bf16.msra.mxu1 %v15968_v30  ;;  %v18716_v7 = vld [vmem:[#allocation5_spill] sm:$0xff] }
0x12b6   :  { %8613 = vmatprep.subr.bf16.mxu0 %v15972_v22  ;;  %8654 = vmatprep.subr.bf16.mxu1 %v15974_v45  ;;  %v18701_v22 = vld [vmem:[#allocation115_spill] sm:$0xff]  ;;  %v18702_v45 = vld [vmem:[#allocation116_spill] sm:$0xff] }
0x12b9   :  { %8614 = vmatpush2.bf16.msra.mxu0 %v15990_v36  ;;  %8655 = vmatpush2.bf16.msra.mxu1 %v15992_v49  ;;  %v18703_v36 = vld [vmem:[#allocation117_spill] sm:$0xff]  ;;  %v18704_v49 = vld [vmem:[#allocation118_spill] sm:$0xff] }
0x12ba   :  { %8615 = vmatprep.subr.bf16.mxu0 %v15996_v56  ;;  %8656 = vmatprep.subr.bf16.mxu1 %v15998_v4  ;;  %v18705_v56 = vld [vmem:[#allocation119_spill] sm:$0xff]  ;;  %v18706_v4 = vld [vmem:[#allocation9_spill] sm:$0xff] }
0x12bd   :  { %8616 = vmatpush2.bf16.msra.mxu0 %v18696_v1  ;;  %8657 = vmatpush2.bf16.msra.mxu1 %v18697_v2  ;;  %v18707_v1 = vld [vmem:[#allocation77_spill] sm:$0xff]  ;;  %v18708_v2 = vld [vmem:[#allocation78_spill] sm:$0xff] }
0x12be   :  { %8617 = vmatprep.subr.bf16.mxu0 %v18698_v34  ;;  %8658 = vmatprep.subr.bf16.mxu1 %v18699_v9  ;;  %v18709_v34 = vld [vmem:[#allocation79_spill] sm:$0xff]  ;;  %v18710_v9 = vld [vmem:[#allocation80_spill] sm:$0xff] }
0x12c1   :  { %8618 = vmatpush2.bf16.msra.mxu0 %v18700_v43  ;;  %8659 = vmatpush2.bf16.msra.mxu1 %v18701_v22  ;;  %v18711_v43 = vld [vmem:[#allocation81_spill] sm:$0xff]  ;;  %v18712_v22 = vld [vmem:[#allocation82_spill] sm:$0xff] }
0x12c2   :  { %8619 = vmatprep.subr.bf16.mxu0 %v18702_v45  ;;  %8660 = vmatprep.subr.bf16.mxu1 %v18703_v36  ;;  %v18713_v45 = vld [vmem:[#allocation83_spill] sm:$0xff]  ;;  %v18714_v36 = vld [vmem:[#allocation100_spill] sm:$0xff] }
0x12c5   :  { %8620 = vmatpush2.bf16.msra.mxu0 %v18704_v49  ;;  %8661 = vmatpush2.bf16.msra.mxu1 %v18705_v56  ;;  %v18715_v49 = vld [vmem:[#allocation101_spill] sm:$0xff] }
0x12c6   :  { %8621 = vmatprep.subr.bf16.mxu0 %v18706_v4  ;;  %8662 = vmatprep.subr.bf16.mxu1 %v18707_v1 }
0x12c9   :  { %8622 = vmatpush2.bf16.msra.mxu0 %v18708_v2  ;;  %8663 = vmatpush2.bf16.msra.mxu1 %v18709_v34 }
0x12ca   :  { %8623 = vmatprep.subr.bf16.mxu0 %v18710_v9  ;;  %8664 = vmatprep.subr.bf16.mxu1 %v18711_v43 }
0x12cd   :  { %8624 = vmatpush2.bf16.msra.mxu0 %v18712_v22  ;;  %8665 = vmatpush2.bf16.msra.mxu1 %v18713_v45  ;;  %v16579_v22 = vsub.s32 6, %v18716_v7  ;;  %v11559_v7 = vld [vmem:[%s17139_s12 + $0x8] sm:$0x77] }
0x12ce   :  { %8675 = vmatprep.subr.bf16.mxu0 %v18714_v36  ;;  %8716 = vmatprep.subr.bf16.mxu1 %v18715_v49  ;;  %v11558_v36 = vld [vmem:[%s17139_s12] sm:$0x77] }
0x12cf   :  { %v18717_v49 = vld [vmem:[#allocation8_spill] sm:$0xff]  ;;  %v6847_v14 = vrot.slane %v11558_v36, %v16579_v22  ;;  %v6855_v40 = vrot.slane %v11559_v7, %v16579_v22 }
0x12d0   :  { %v16570_v56 = vpop.f32.mrf.mxu0  ;;  %v16572_v4 = vpop.f32.mrf.mxu1  ;;  %v6843_v45 = vrot.slane %v11558_v36, %v18717_v49 }
0x12d1   :  { %v6887_v35 = vrot.slane %v6847_v14, %v18717_v49 }
0x12d2   :  { %v16574_v1 = vpop.f32.mrf.mxu0  ;;  %v16576_v2 = vpop.f32.mrf.mxu1  ;;  %v6883_v0 = vrot.slane %v6843_v45, %v18717_v49 }
0x12d3   :  { %v16596_v12 = vadd.f32 %v16504_v15, %v6887_v35  ;;  %v6895_v15 = vrot.slane %v6855_v40, %v18717_v49 }
0x12d4   :  { %v7672_v34 = vpop.f32.mrf.mxu0  ;;  %v7713_v9 = vpop.f32.mrf.mxu1 }
0x12d5   :  { %v16589_v34 = vadd.f32 %v16498_v26, %v6883_v0 }
0x12d6   :  { %v7673_v30 = vpop.f32.mrf.mxu0  ;;  %v7714_v43 = vpop.f32.mrf.mxu1 }
0x12d7   :  { %v6851_v43 = vrot.slane %v11559_v7, %v18717_v49 }
0x12d9   :  { %v6891_v51 = vrot.slane %v6851_v43, %v18717_v49 }
0x12db   :  { %v16603_v35 = vadd.f32 %v16500_v6, %v6891_v51 }
0x12dd   :  { %18718 = vst [vmem:[#allocation127_spill] sm:$0xff] %v16603_v35 }
0x1310   :  { %v8390_v30 = vpop.f32.mrf.mxu0  ;;  %v8431_v9 = vpop.f32.mrf.mxu1 }
0x1311   :  { %v8520_v36 = vadd.f32 %v8390_v30, %v16589_v34  ;;  %v8522_v30 = vadd.f32 %v8431_v9, %v16603_v35 }
0x1312   :  { %v8392_v31 = vpop.f32.mrf.mxu0  ;;  %v8433_v45 = vpop.f32.mrf.mxu1 }
0x1313   :  { %v10738_v17 = vmul.f32 -1.442695, %v8520_v36  ;;  %v8521_v14 = vadd.f32 %v8392_v31, %v16596_v12  ;;  %v16608_v31 = vadd.f32 %v16506_v33, %v6895_v15  ;;  %v10740_v36 = vmul.f32 -1.442695, %v8522_v30  ;;  %v11560_v30 = vld [vmem:[%s17139_s12 + $0x10] sm:$0x77] }
0x1314   :  { %v8394_v0 = vpop.f32.mrf.mxu0  ;;  %v8435_v26 = vpop.f32.mrf.mxu1 }
0x1315   :  { %11426 = vpow2.f32 %v10738_v17  ;;  %v10739_v46 = vmul.f32 -1.442695, %v8521_v14  ;;  %18719 = vst [vmem:[#allocation128_spill] sm:$0xff] %v16608_v31  ;;  %v8523_v43 = vadd.f32 %v8433_v45, %v16608_v31 }
0x1316   :  { %v8395_v29 = vpop.f32.mrf.mxu0  ;;  %v8436_v53 = vpop.f32.mrf.mxu1 }
0x1317   :  { %11428 = vpow2.f32 %v10739_v46 }
0x1318   :  { %11430 = vpow2.f32 %v10740_v36  ;;  %v6859_v36 = vrot.slane %v11560_v30, %v18717_v49 }
0x1319   :  { %11432 = vtanh.f32 %v8523_v43  ;;  %v6863_v43 = vrot.slane %v11560_v30, %v16579_v22 }
0x1322   :  { %v11427_v17 = vpop.eup %11426 }
0x1323   :  { %v8549_v14 = vadd.f32 1.0, %v11427_v17  ;;  %v6899_v17 = vrot.slane %v6859_v36, %v18717_v49 }
0x1324   :  { %v11429_v7 = vpop.eup %11428 }
0x1325   :  { %11434 = vrcp.f32 %v8549_v14  ;;  %v8550_v53 = vadd.f32 1.0, %v11429_v7  ;;  %v11431_v29 = vpop.eup %11430  ;;  %v6903_v14 = vrot.slane %v6863_v43, %v18717_v49 }
0x1326   :  { %v11433_v46 = vpop.eup %11432  ;;  %v8551_v9 = vadd.f32 1.0, %v11431_v29  ;;  %v16622_v29 = vadd.f32 %v16570_v56, %v6899_v17 }
0x1327   :  { %11436 = vrcp.f32 %v8550_v53 }
0x1328   :  { %11438 = vrcp.f32 %v8551_v9  ;;  %18721 = vst [vmem:[#allocation37_spill] sm:$0xff] %v16622_v29 }
0x1332   :  { %v11435_v51 = vpop.eup %11434 }
0x1333   :  { %v8579_v40 = vmul.f32 %v11435_v51, %v11433_v46 }
0x1334   :  { %v11437_v6 = vpop.eup %11436 }
0x1335   :  { %v8578_v0 = vmul.f32 0.0, %v11437_v6  ;;  %v11439_v45 = vpop.eup %11438  ;;  %v16625_v6 = vadd.f32 %v16574_v1, %v6903_v14 }
0x1337   :  { %v16611_v33 = vadd.f32 %v8579_v40, %v8578_v0 }
0x1339   :  { %18720 = vst [vmem:[#allocation129_spill] sm:$0xff] %v16611_v33  ;;  %11440 = vtanh.f32 %v16611_v33 }
0x1346   :  { %v11441_v26 = vpop.eup %11440 }
0x1347   :  { %v8585_v15 = vmul.f32 %v11441_v26, %v11439_v45  ;;  %v11561_v45 = vld [vmem:[%s17139_s12 + $0x18] sm:$0x77] }
0x1348   :  { %v6867_v26 = vrot.slane %v11561_v45, %v18717_v49  ;;  %v6871_v14 = vrot.slane %v11561_v45, %v16579_v22 }
0x134a   :  { %v6907_v1 = vrot.slane %v6867_v26, %v18717_v49 }
0x1350   :  { %v8472_v7 = vpop.f32.mrf.mxu0  ;;  %v8513_v53 = vpop.f32.mrf.mxu1 }
0x1351   :  { %v8528_v46 = vrot.slane %v8472_v7, 2 }
0x1352   :  { %v8474_v51 = vpop.f32.mrf.mxu0  ;;  %v8515_v40 = vpop.f32.mrf.mxu1 }
0x1353   :  { %v8536_v9 = vadd.f32 %v8528_v46, %v16622_v29  ;;  %v8529_v0 = vrot.slane %v8474_v51, 2  ;;  %v8530_v46 = vrot.slane %v8513_v53, 2  ;;  %v16636_v51 = vadd.f32 %v16572_v4, %v6907_v1 }
0x1354   :  { %v8476_v30 = vpop.f32.mrf.mxu0  ;;  %v8517_v36 = vpop.f32.mrf.mxu1  ;;  %v6911_v29 = vrot.slane %v6871_v14, %v18717_v49 }
0x1355   :  { %v10741_v43 = vmul.f32 -1.442695, %v8536_v9  ;;  %v8537_v56 = vadd.f32 %v8529_v0, %v16625_v6  ;;  %v8538_v30 = vadd.f32 %v8530_v46, %v16636_v51  ;;  %v8531_v9 = vrot.slane %v8515_v40, 2 }
0x1356   :  { %v8477_v17 = vpop.f32.mrf.mxu0  ;;  %v8518_v7 = vpop.f32.mrf.mxu1  ;;  %v16641_v0 = vadd.f32 %v16576_v2, %v6911_v29 }
0x1357   :  { %11442 = vpow2.f32 %v10741_v43  ;;  %v10742_v33 = vmul.f32 -1.442695, %v8537_v56  ;;  %v10743_v36 = vmul.f32 -1.442695, %v8538_v30 }
0x1358   :  { %v8539_v56 = vadd.f32 %v8531_v9, %v16641_v0  ;;  %v16647_v9 = vpack.c.bf16 %v8585_v15, %v8585_v15  ;;  %v18727_v15 = vld [vmem:[#allocation107_spill] sm:$0xff] }
0x1359   :  { %11444 = vpow2.f32 %v10742_v33 }
0x135a   :  { %11446 = vpow2.f32 %v10743_v36  ;;  %v18722_v36 = vld [vmem:[#allocation102_spill] sm:$0xff] }
0x1364   :  { %v11443_v43 = vpop.eup %11442 }
0x1365   :  { %v8568_v26 = vadd.f32 1.0, %v11443_v43  ;;  %v18723_v43 = vld [vmem:[#allocation103_spill] sm:$0xff] }
0x1366   :  { %v11445_v33 = vpop.eup %11444 }
0x1367   :  { %11448 = vrcp.f32 %v8568_v26  ;;  %v8569_v22 = vadd.f32 1.0, %v11445_v33  ;;  %v11447_v4 = vpop.eup %11446  ;;  %v18725_v26 = vld [vmem:[#allocation105_spill] sm:$0xff]  ;;  %v18726_v33 = vld [vmem:[#allocation106_spill] sm:$0xff] }
0x1368   :  { %11450 = vtanh.f32 %v8539_v56  ;;  %v8570_v17 = vadd.f32 1.0, %v11447_v4  ;;  %v18724_v56 = vld [vmem:[#allocation104_spill] sm:$0xff]  ;;  %v18729_v4 = vld [vmem:[#allocation109_spill] sm:$0xff] }
0x1369   :  { %11452 = vrcp.f32 %v8569_v22  ;;  %v18728_v22 = vld [vmem:[#allocation108_spill] sm:$0xff] }
0x136a   :  { %11454 = vrcp.f32 %v8570_v17  ;;  %v18733_v17 = vld [vmem:[#allocation13_spill] sm:$0xff] }
0x1374   :  { %v11449_v53 = vpop.eup %11448 }
0x1375   :  { %v11451_v49 = vpop.eup %11450 }
0x1376   :  { %v11453_v45 = vpop.eup %11452  ;;  %v8582_v7 = vmul.f32 %v11451_v49, %v11449_v53  ;;  %v18730_v53 = vld [vmem:[#allocation110_spill] sm:$0xff]  ;;  %v18731_v49 = vld [vmem:[#allocation11_spill] sm:$0xff] }
0x1377   :  { %v8581_v40 = vmul.f32 0.0, %v11453_v45  ;;  %v11455_v29 = vpop.eup %11454  ;;  %v18732_v45 = vld [vmem:[#allocation12_spill] sm:$0xff] }
0x1379   :  { %v16644_v2 = vadd.f32 %v8582_v7, %v8581_v40  ;;  %v18734_v40 = vld [vmem:[#allocation14_spill] sm:$0xff]  ;;  %v18735_v7 = vld [vmem:[#allocation15_spill] sm:$0xff] }
0x137b   :  { %11456 = vtanh.f32 %v16644_v2 }
0x1388   :  { %v11457_v1 = vpop.eup %11456 }
0x1389   :  { %v8587_v14 = vmul.f32 %v11457_v1, %v11455_v29  ;;  %v18736_v29 = vld [vmem:[#allocation16_spill] sm:$0xff]  ;;  %v18737_v1 = vld [vmem:[#allocation17_spill] sm:$0xff] }
0x138b   :  { %v8589_v46 = vrot.slane %v8587_v14, 6  ;;  %v18738_v14 = vld [vmem:[#allocation18_spill] sm:$0xff] }
0x138d   :  { %v8592_v30 = vpack.c.bf16 %v8589_v46, %v8589_v46  ;;  %v18739_v46 = vld [vmem:[#allocation19_spill] sm:$0xff] }
0x138f   :  { %8625 = vmatprep.mubr.bf16.mxu0 %v8592_v30  ;;  %8666 = vmatprep.mubr.bf16.mxu1 %v8592_v30 }
0x1390   :  { %8626 = vmatmul.mubr.bf16.vlgmr.msra.gmra.mxu0 %v16647_v9  ;;  %8667 = vmatmul.mubr.bf16.vlgmr.msra.gmra.mxu1 %v16647_v9 }
0x1391   :  { %8676 = vmatpush1.bf16.msra.mxu0 %v18722_v36  ;;  %8717 = vmatpush1.bf16.msra.mxu1 %v18723_v43 }
0x1392   :  { %8707 = vmatprep.mubr.bf16.mxu0 %v8592_v30  ;;  %8748 = vmatprep.mubr.bf16.mxu1 %v8592_v30  ;;  %v18740_v30 = vld [vmem:[#allocation20_spill] sm:$0xff] }
0x1393   :  { %8677 = vmatprep.subr.bf16.mxu0 %v18724_v56  ;;  %8718 = vmatprep.subr.bf16.mxu1 %v18725_v26 }
0x1395   :  { %8678 = vmatpush1.bf16.msra.mxu0 %v18726_v33  ;;  %8719 = vmatpush1.bf16.msra.mxu1 %v18727_v15 }
0x1396   :  { %8679 = vmatprep.subr.bf16.mxu0 %v18728_v22  ;;  %8720 = vmatprep.subr.bf16.mxu1 %v18729_v4 }
0x1399   :  { %8680 = vmatpush1.bf16.msra.mxu0 %v18730_v53  ;;  %8721 = vmatpush1.bf16.msra.mxu1 %v18731_v49  ;;  %v18741_v53 = vld [vmem:[#allocation21_spill] sm:$0xff]  ;;  %v18742_v49 = vld [vmem:[#allocation22_spill] sm:$0xff] }
0x139a   :  { %8681 = vmatprep.subr.bf16.mxu0 %v18732_v45  ;;  %8722 = vmatprep.subr.bf16.mxu1 %v18733_v17  ;;  %v18743_v45 = vld [vmem:[#allocation23_spill] sm:$0xff]  ;;  %v18744_v17 = vld [vmem:[#allocation24_spill] sm:$0xff] }
0x139d   :  { %8682 = vmatpush1.bf16.msra.mxu0 %v18734_v40  ;;  %8723 = vmatpush1.bf16.msra.mxu1 %v18735_v7  ;;  %v18745_v40 = vld [vmem:[#allocation25_spill] sm:$0xff]  ;;  %v18746_v7 = vld [vmem:[#allocation26_spill] sm:$0xff] }
0x139e   :  { %8683 = vmatprep.subr.bf16.mxu0 %v18736_v29  ;;  %8724 = vmatprep.subr.bf16.mxu1 %v18737_v1  ;;  %v18747_v29 = vld [vmem:[#allocation27_spill] sm:$0xff]  ;;  %v18748_v1 = vld [vmem:[#allocation28_spill] sm:$0xff] }
0x13a1   :  { %8684 = vmatpush1.bf16.msra.mxu0 %v18738_v14  ;;  %8725 = vmatpush1.bf16.msra.mxu1 %v18739_v46  ;;  %v18749_v14 = vld [vmem:[#allocation29_spill] sm:$0xff]  ;;  %v18750_v46 = vld [vmem:[#allocation30_spill] sm:$0xff] }
0x13a2   :  { %8685 = vmatprep.subr.bf16.mxu0 %v18740_v30  ;;  %8726 = vmatprep.subr.bf16.mxu1 %v18741_v53  ;;  %v18751_v30 = vld [vmem:[#allocation31_spill] sm:$0xff]  ;;  %v18752_v53 = vld [vmem:[#allocation32_spill] sm:$0xff] }
0x13a5   :  { %8686 = vmatpush1.bf16.msra.mxu0 %v18742_v49  ;;  %8727 = vmatpush1.bf16.msra.mxu1 %v18743_v45  ;;  %v18753_v49 = vld [vmem:[#allocation33_spill] sm:$0xff]  ;;  %v18754_v45 = vld [vmem:[#allocation34_spill] sm:$0xff] }
0x13a6   :  { %8687 = vmatprep.subr.bf16.mxu0 %v18744_v17  ;;  %8728 = vmatprep.subr.bf16.mxu1 %v18745_v40  ;;  %v18755_v17 = vld [vmem:[#allocation35_spill] sm:$0xff]  ;;  %v18756_v40 = vld [vmem:[#allocation130_spill] sm:$0xff] }
0x13a9   :  { %8688 = vmatpush1.bf16.msra.mxu0 %v18746_v7  ;;  %8729 = vmatpush1.bf16.msra.mxu1 %v18747_v29  ;;  %v18757_v7 = vld [vmem:[#allocation71_spill] sm:$0xff]  ;;  %v18758_v29 = vld [vmem:[#allocation10_spill] sm:$0xff] }
0x13aa   :  { %8689 = vmatprep.subr.bf16.mxu0 %v18748_v1  ;;  %8730 = vmatprep.subr.bf16.mxu1 %v18749_v14  ;;  %v18759_v1 = vld [vmem:[#allocation70_spill] sm:$0xff]  ;;  %v18760_v14 = vld [vmem:[#allocation51_spill] sm:$0xff] }
0x13ad   :  { %8690 = vmatpush1.bf16.msra.mxu0 %v18750_v46  ;;  %8731 = vmatpush1.bf16.msra.mxu1 %v18751_v30  ;;  %v18761_v46 = vld [vmem:[#allocation52_spill] sm:$0xff]  ;;  %v18762_v30 = vld [vmem:[#allocation53_spill] sm:$0xff] }
0x13ae   :  { %8691 = vmatprep.subr.bf16.mxu0 %v18752_v53  ;;  %8732 = vmatprep.subr.bf16.mxu1 %v18753_v49  ;;  %v18763_v53 = vld [vmem:[#allocation54_spill] sm:$0xff]  ;;  %v18764_v49 = vld [vmem:[#allocation55_spill] sm:$0xff] }
0x13b1   :  { %8692 = vmatpush2.bf16.msra.mxu0 %v18754_v45  ;;  %8733 = vmatpush2.bf16.msra.mxu1 %v18755_v17  ;;  %v18765_v45 = vld [vmem:[#allocation56_spill] sm:$0xff]  ;;  %v18766_v17 = vld [vmem:[#allocation57_spill] sm:$0xff] }
0x13b2   :  { %8693 = vmatprep.subr.bf16.mxu0 %v18756_v40  ;;  %8734 = vmatprep.subr.bf16.mxu1 %v18757_v7  ;;  %v18767_v40 = vld [vmem:[#allocation58_spill] sm:$0xff]  ;;  %v18768_v7 = vld [vmem:[#allocation59_spill] sm:$0xff] }
0x13b5   :  { %8694 = vmatpush2.bf16.msra.mxu0 %v18758_v29  ;;  %8735 = vmatpush2.bf16.msra.mxu1 %v18759_v1  ;;  %v18769_v29 = vld [vmem:[#allocation60_spill] sm:$0xff]  ;;  %v18770_v1 = vld [vmem:[#allocation61_spill] sm:$0xff] }
0x13b6   :  { %8695 = vmatprep.subr.bf16.mxu0 %v18760_v14  ;;  %8736 = vmatprep.subr.bf16.mxu1 %v18761_v46  ;;  %v18771_v14 = vld [vmem:[#allocation62_spill] sm:$0xff]  ;;  %v18772_v46 = vld [vmem:[#allocation63_spill] sm:$0xff] }
0x13b9   :  { %8696 = vmatpush2.bf16.msra.mxu0 %v18762_v30  ;;  %8737 = vmatpush2.bf16.msra.mxu1 %v18763_v53  ;;  %v18773_v30 = vld [vmem:[#allocation64_spill] sm:$0xff]  ;;  %v18774_v53 = vld [vmem:[#allocation65_spill] sm:$0xff] }
0x13ba   :  { %8697 = vmatprep.subr.bf16.mxu0 %v18764_v49  ;;  %8738 = vmatprep.subr.bf16.mxu1 %v18765_v45 }
0x13bd   :  { %8698 = vmatpush2.bf16.msra.mxu0 %v18766_v17  ;;  %8739 = vmatpush2.bf16.msra.mxu1 %v18767_v40 }
0x13be   :  { %8699 = vmatprep.subr.bf16.mxu0 %v18768_v7  ;;  %8740 = vmatprep.subr.bf16.mxu1 %v18769_v29 }
0x13c1   :  { %8700 = vmatpush2.bf16.msra.mxu0 %v18770_v1  ;;  %8741 = vmatpush2.bf16.msra.mxu1 %v18771_v14 }
0x13c2   :  { %8701 = vmatprep.subr.bf16.mxu0 %v18772_v46  ;;  %8742 = vmatprep.subr.bf16.mxu1 %v18773_v30 }
0x13c5   :  { %8702 = vmatpush2.bf16.msra.mxu0 %v18774_v53  ;;  %8743 = vmatpush2.bf16.msra.mxu1 %v16452_v44 }
0x13c6   :  { %8703 = vmatprep.subr.bf16.mxu0 %v16456_v54  ;;  %8744 = vmatprep.subr.bf16.mxu1 %v16458_v18 }
0x13c9   :  { %8704 = vmatpush2.bf16.msra.mxu0 %v16474_v13  ;;  %8745 = vmatpush2.bf16.msra.mxu1 %v16476_v23 }
0x13ca   :  { %8705 = vmatprep.subr.bf16.mxu0 %v16480_v50  ;;  %8746 = vmatprep.subr.bf16.mxu1 %v16482_v11 }
0x13cd   :  { %8706 = vmatpush2.bf16.msra.mxu0 %v16486_v37  ;;  %8747 = vmatpush2.bf16.msra.mxu1 %v16488_v60 }
0x13ce   :  { %8854 = vmatprep.subr.bf16.mxu0 %v15730_v24  ;;  %8895 = vmatprep.subr.bf16.mxu1 %v15732_v38 }
0x13d0   :  { %8708 = vmatmul.mubr.bf16.vlgmr.msra.gmra.mxu0 %v16647_v9  ;;  %8749 = vmatmul.mubr.bf16.vlgmr.msra.gmra.mxu1 %v16647_v9  ;;  %v18775_v9 = vld [vmem:[#allocation46_spill] sm:$0xff] }
0x13d1   :  { %8855 = vmatpush1.bf16.msra.mxu0 %v15746_v57  ;;  %8896 = vmatpush1.bf16.msra.mxu1 %v15748_v16 }
0x13d2   :  { %8856 = vmatprep.subr.bf16.mxu0 %v15752_v42  ;;  %8897 = vmatprep.subr.bf16.mxu1 %v15754_v41 }
0x13d5   :  { %8857 = vmatpush1.bf16.msra.mxu0 %v15772_v61  ;;  %8898 = vmatpush1.bf16.msra.mxu1 %v15774_v59 }
0x13d6   :  { %8858 = vmatprep.subr.bf16.mxu0 %v15778_v32  ;;  %8899 = vmatprep.subr.bf16.mxu1 %v15780_v25 }
0x13d9   :  { %8859 = vmatpush1.bf16.msra.mxu0 %v15798_v62  ;;  %8900 = vmatpush1.bf16.msra.mxu1 %v15800_v52 }
0x13da   :  { %8860 = vmatprep.subr.bf16.mxu0 %v15804_v58  ;;  %8901 = vmatprep.subr.bf16.mxu1 %v15806_v10 }
0x13dd   :  { %8861 = vmatpush1.bf16.msra.mxu0 %v15822_v20  ;;  %8902 = vmatpush1.bf16.msra.mxu1 %v15824_v8 }
0x13de   :  { %8862 = vmatprep.subr.bf16.mxu0 %v15828_v5  ;;  %8903 = vmatprep.subr.bf16.mxu1 %v15830_v19  ;;  %v18776_v19 = vld [vmem:[#allocation47_spill] sm:$0xff] }
0x13e1   :  { %8863 = vmatpush1.bf16.msra.mxu0 %v15846_v3  ;;  %8904 = vmatpush1.bf16.msra.mxu1 %v15848_v48  ;;  %v18777_v3 = vld [vmem:[#allocation48_spill] sm:$0xff]  ;;  %v18778_v48 = vld [vmem:[#allocation49_spill] sm:$0xff] }
0x13e2   :  { %8864 = vmatprep.subr.bf16.mxu0 %v15852_v27  ;;  %8905 = vmatprep.subr.bf16.mxu1 %v15854_v21  ;;  %v18779_v27 = vld [vmem:[#allocation50_spill] sm:$0xff]  ;;  %v18780_v21 = vld [vmem:[#allocation67_spill] sm:$0xff] }
0x13e5   :  { %8865 = vmatpush1.bf16.msra.mxu0 %v15870_v55  ;;  %8906 = vmatpush1.bf16.msra.mxu1 %v15872_v39  ;;  %v18781_v55 = vld [vmem:[#allocation68_spill] sm:$0xff]  ;;  %v18782_v39 = vld [vmem:[#allocation6_spill] sm:$0xff] }
0x13e6   :  { %8866 = vmatprep.subr.bf16.mxu0 %v15876_v28  ;;  %8907 = vmatprep.subr.bf16.mxu1 %v15878_v47  ;;  %v18783_v28 = vld [vmem:[#allocation69_spill] sm:$0xff]  ;;  %v18784_v47 = vld [vmem:[#allocation131_spill] sm:$0xff] }
0x13e9   :  { %8867 = vmatpush1.bf16.msra.mxu0 %v15894_v63  ;;  %8908 = vmatpush1.bf16.msra.mxu1 %v18775_v9  ;;  %v18785_v63 = vld [vmem:[#allocation84_spill] sm:$0xff]  ;;  %v18786_v9 = vld [vmem:[#allocation85_spill] sm:$0xff] }
0x13ea   :  { %8868 = vmatprep.subr.bf16.mxu0 %v18776_v19  ;;  %8909 = vmatprep.subr.bf16.mxu1 %v18777_v3  ;;  %v18787_v19 = vld [vmem:[#allocation86_spill] sm:$0xff]  ;;  %v18788_v3 = vld [vmem:[#allocation87_spill] sm:$0xff] }
0x13ed   :  { %8869 = vmatpush1.bf16.msra.mxu0 %v18778_v48  ;;  %8910 = vmatpush1.bf16.msra.mxu1 %v18779_v27  ;;  %v18789_v48 = vld [vmem:[#allocation88_spill] sm:$0xff]  ;;  %v18790_v27 = vld [vmem:[#allocation89_spill] sm:$0xff] }
0x13ee   :  { %8870 = vmatprep.subr.bf16.mxu0 %v18780_v21  ;;  %8911 = vmatprep.subr.bf16.mxu1 %v18781_v55  ;;  %v18791_v21 = vld [vmem:[#allocation73_spill] sm:$0xff]  ;;  %v18792_v55 = vld [vmem:[#allocation74_spill] sm:$0xff] }
0x13f1   :  { %8871 = vmatpush2.bf16.msra.mxu0 %v18782_v39  ;;  %8912 = vmatpush2.bf16.msra.mxu1 %v18783_v28  ;;  %v18793_v39 = vld [vmem:[#allocation75_spill] sm:$0xff]  ;;  %v18794_v28 = vld [vmem:[#allocation76_spill] sm:$0xff] }
0x13f2   :  { %8872 = vmatprep.subr.bf16.mxu0 %v18784_v47  ;;  %8913 = vmatprep.subr.bf16.mxu1 %v18785_v63  ;;  %v18795_v47 = vld [vmem:[#allocation111_spill] sm:$0xff]  ;;  %v18796_v63 = vld [vmem:[#allocation112_spill] sm:$0xff] }
0x13f5   :  { %8873 = vmatpush2.bf16.msra.mxu0 %v18786_v9  ;;  %8914 = vmatpush2.bf16.msra.mxu1 %v18787_v19  ;;  %v18797_v9 = vld [vmem:[#allocation113_spill] sm:$0xff]  ;;  %v18798_v19 = vld [vmem:[#allocation114_spill] sm:$0xff] }
0x13f6   :  { %8874 = vmatprep.subr.bf16.mxu0 %v18788_v3  ;;  %8915 = vmatprep.subr.bf16.mxu1 %v18789_v48  ;;  %v18799_v3 = vld [vmem:[#allocation115_spill] sm:$0xff]  ;;  %v18800_v48 = vld [vmem:[#allocation116_spill] sm:$0xff] }
0x13f9   :  { %8875 = vmatpush2.bf16.msra.mxu0 %v18790_v27  ;;  %8916 = vmatpush2.bf16.msra.mxu1 %v18791_v21  ;;  %v18801_v27 = vld [vmem:[#allocation117_spill] sm:$0xff]  ;;  %v18802_v21 = vld [vmem:[#allocation118_spill] sm:$0xff] }
0x13fa   :  { %8876 = vmatprep.subr.bf16.mxu0 %v18792_v55  ;;  %8917 = vmatprep.subr.bf16.mxu1 %v18793_v39  ;;  %v18803_v55 = vld [vmem:[#allocation119_spill] sm:$0xff]  ;;  %v18804_v39 = vld [vmem:[#allocation9_spill] sm:$0xff] }
0x13fd   :  { %8877 = vmatpush2.bf16.msra.mxu0 %v18794_v28  ;;  %8918 = vmatpush2.bf16.msra.mxu1 %v18795_v47  ;;  %v18805_v28 = vld [vmem:[#allocation77_spill] sm:$0xff]  ;;  %v18806_v47 = vld [vmem:[#allocation78_spill] sm:$0xff] }
0x13fe   :  { %8878 = vmatprep.subr.bf16.mxu0 %v18796_v63  ;;  %8919 = vmatprep.subr.bf16.mxu1 %v18797_v9  ;;  %v18807_v63 = vld [vmem:[#allocation79_spill] sm:$0xff]  ;;  %v18808_v9 = vld [vmem:[#allocation80_spill] sm:$0xff] }
0x1401   :  { %8879 = vmatpush2.bf16.msra.mxu0 %v18798_v19  ;;  %8920 = vmatpush2.bf16.msra.mxu1 %v18799_v3  ;;  %v18809_v19 = vld [vmem:[#allocation81_spill] sm:$0xff]  ;;  %v18810_v3 = vld [vmem:[#allocation82_spill] sm:$0xff] }
0x1402   :  { %8880 = vmatprep.subr.bf16.mxu0 %v18800_v48  ;;  %8921 = vmatprep.subr.bf16.mxu1 %v18801_v27  ;;  %v18811_v48 = vld [vmem:[#allocation83_spill] sm:$0xff]  ;;  %v18812_v27 = vld [vmem:[#allocation100_spill] sm:$0xff] }
0x1405   :  { %8881 = vmatpush2.bf16.msra.mxu0 %v18802_v21  ;;  %8922 = vmatpush2.bf16.msra.mxu1 %v18803_v55  ;;  %v18813_v21 = vld [vmem:[#allocation101_spill] sm:$0xff] }
0x1406   :  { %8882 = vmatprep.subr.bf16.mxu0 %v18804_v39  ;;  %8923 = vmatprep.subr.bf16.mxu1 %v18805_v28 }
0x1409   :  { %8883 = vmatpush2.bf16.msra.mxu0 %v18806_v47  ;;  %8924 = vmatpush2.bf16.msra.mxu1 %v18807_v63 }
0x140a   :  { %8884 = vmatprep.subr.bf16.mxu0 %v18808_v9  ;;  %8925 = vmatprep.subr.bf16.mxu1 %v18809_v19 }
0x140d   :  { %8885 = vmatpush2.bf16.msra.mxu0 %v18810_v3  ;;  %8926 = vmatpush2.bf16.msra.mxu1 %v18811_v48 }
0x140e   :  { %8936 = vmatprep.subr.bf16.mxu0 %v18812_v27  ;;  %8977 = vmatprep.subr.bf16.mxu1 %v18813_v21 }
0x1450   :  { %v8627_v55 = vpop.f32.mrf.mxu0  ;;  %v8668_v39 = vpop.f32.mrf.mxu1 }
0x1451   :  { %v8761_v5 = vrot.slane %v8627_v55, 6  ;;  %v8763_v27 = vrot.slane %v8668_v39, 6 }
0x1452   :  { %v8629_v28 = vpop.f32.mrf.mxu0  ;;  %v8670_v8 = vpop.f32.mrf.mxu1 }
0x1453   :  { %v8769_v47 = vadd.f32 %v8761_v5, %v16589_v34  ;;  %v8762_v63 = vrot.slane %v8629_v28, 6  ;;  %v8771_v21 = vadd.f32 %v8763_v27, %v16603_v35  ;;  %v8764_v52 = vrot.slane %v8670_v8, 6 }
0x1454   :  { %v8631_v20 = vpop.f32.mrf.mxu0  ;;  %v8672_v9 = vpop.f32.mrf.mxu1 }
0x1455   :  { %v10744_v10 = vmul.f32 -1.442695, %v8769_v47  ;;  %v8770_v19 = vadd.f32 %v8762_v63, %v16596_v12  ;;  %v10746_v55 = vmul.f32 -1.442695, %v8771_v21  ;;  %v8772_v62 = vadd.f32 %v8764_v52, %v16608_v31 }
0x1456   :  { %v8632_v3 = vpop.f32.mrf.mxu0  ;;  %v8673_v58 = vpop.f32.mrf.mxu1 }
0x1457   :  { %11458 = vpow2.f32 %v10744_v10  ;;  %v10745_v48 = vmul.f32 -1.442695, %v8770_v19  ;;  %v18814_v19 = vld [vmem:[#allocation129_spill] sm:$0xff] }
0x1458   :  { %v8828_v39 = vrot.slane %v18814_v19, 6 }
0x1459   :  { %11460 = vpow2.f32 %v10745_v48 }
0x145a   :  { %11462 = vpow2.f32 %v10746_v55 }
0x145b   :  { %11464 = vtanh.f32 %v8772_v62 }
0x1464   :  { %v11459_v25 = vpop.eup %11458 }
0x1465   :  { %v8798_v5 = vadd.f32 1.0, %v11459_v25 }
0x1466   :  { %v11461_v20 = vpop.eup %11460 }
0x1467   :  { %11466 = vrcp.f32 %v8798_v5  ;;  %v8799_v28 = vadd.f32 1.0, %v11461_v20  ;;  %v11463_v3 = vpop.eup %11462 }
0x1468   :  { %v11465_v58 = vpop.eup %11464  ;;  %v8800_v27 = vadd.f32 1.0, %v11463_v3 }
0x1469   :  { %11468 = vrcp.f32 %v8799_v28  ;;  %v18816_v28 = vld [vmem:[#allocation37_spill] sm:$0xff] }
0x146a   :  { %11470 = vrcp.f32 %v8800_v27 }
0x1474   :  { %v11467_v10 = vpop.eup %11466 }
0x1475   :  { %v8831_v48 = vmul.f32 %v11467_v10, %v11465_v58 }
0x1476   :  { %v11469_v47 = vpop.eup %11468 }
0x1477   :  { %v8830_v8 = vmul.f32 %v11469_v47, %v8828_v39  ;;  %v11471_v25 = vpop.eup %11470 }
0x1479   :  { %v16786_v21 = vadd.f32 %v8831_v48, %v8830_v8 }
0x147b   :  { %18815 = vst [vmem:[#allocation38_spill] sm:$0xff] %v16786_v21  ;;  %11472 = vtanh.f32 %v16786_v21 }
0x1488   :  { %v11473_v52 = vpop.eup %11472 }
0x1489   :  { %v8840_v62 = vmul.f32 %v11473_v52, %v11471_v25 }
0x1490   :  { %v8709_v63 = vpop.f32.mrf.mxu0  ;;  %v8750_v9 = vpop.f32.mrf.mxu1 }
0x1491   :  { %v8777_v55 = vrot.slane %v8709_v63, 4  ;;  %v8779_v8 = vrot.slane %v8750_v9, 4 }
0x1492   :  { %v8711_v5 = vpop.f32.mrf.mxu0  ;;  %v8752_v20 = vpop.f32.mrf.mxu1 }
0x1493   :  { %v8785_v31 = vadd.f32 %v8777_v55, %v18816_v28  ;;  %v8778_v19 = vrot.slane %v8711_v5, 4  ;;  %v8787_v25 = vadd.f32 %v8779_v8, %v16636_v51  ;;  %v8780_v52 = vrot.slane %v8752_v20, 4 }
0x1494   :  { %v8713_v58 = vpop.f32.mrf.mxu0  ;;  %v8754_v10 = vpop.f32.mrf.mxu1 }
0x1495   :  { %v10747_v3 = vmul.f32 -1.442695, %v8785_v31  ;;  %v8786_v39 = vadd.f32 %v8778_v19, %v16625_v6  ;;  %v10749_v63 = vmul.f32 -1.442695, %v8787_v25  ;;  %v8788_v35 = vadd.f32 %v8780_v52, %v16641_v0 }
0x1496   :  { %v8714_v48 = vpop.f32.mrf.mxu0  ;;  %v8755_v47 = vpop.f32.mrf.mxu1 }
0x1497   :  { %11474 = vpow2.f32 %v10747_v3  ;;  %v10748_v27 = vmul.f32 -1.442695, %v8786_v39  ;;  %v8834_v3 = vrot.slane %v16644_v2, 2  ;;  %v18817_v2 = vld [vmem:[#allocation110_spill] sm:$0xff] }
0x1499   :  { %11476 = vpow2.f32 %v10748_v27 }
0x149a   :  { %11478 = vpow2.f32 %v10749_v63 }
0x14a4   :  { %v11475_v21 = vpop.eup %11474 }
0x14a5   :  { %v8817_v55 = vadd.f32 1.0, %v11475_v21 }
0x14a6   :  { %v11477_v5 = vpop.eup %11476 }
0x14a7   :  { %11480 = vrcp.f32 %v8817_v55  ;;  %v8818_v31 = vadd.f32 1.0, %v11477_v5  ;;  %v11479_v19 = vpop.eup %11478  ;;  %v18819_v5 = vld [vmem:[#allocation12_spill] sm:$0xff] }
0x14a8   :  { %11482 = vtanh.f32 %v8788_v35  ;;  %v8819_v39 = vadd.f32 1.0, %v11479_v19  ;;  %v8846_v35 = vpack.c.bf16 %v8840_v62, %v8840_v62  ;;  %v18818_v62 = vld [vmem:[#allocation11_spill] sm:$0xff]  ;;  %v18821_v19 = vld [vmem:[#allocation14_spill] sm:$0xff] }
0x14a9   :  { %11484 = vrcp.f32 %v8818_v31  ;;  %v18820_v31 = vld [vmem:[#allocation13_spill] sm:$0xff] }
0x14aa   :  { %11486 = vrcp.f32 %v8819_v39  ;;  %v16797_v55 = vrot.slane %v8846_v35, 1  ;;  %v18826_v39 = vld [vmem:[#allocation19_spill] sm:$0xff]  ;;  %v18833_v35 = vld [vmem:[#allocation26_spill] sm:$0xff] }
0x14b4   :  { %v11481_v58 = vpop.eup %11480 }
0x14b5   :  { %v11483_v10 = vpop.eup %11482 }
0x14b6   :  { %v11485_v9 = vpop.eup %11484  ;;  %v8837_v20 = vmul.f32 %v11483_v10, %v11481_v58  ;;  %v18822_v58 = vld [vmem:[#allocation15_spill] sm:$0xff]  ;;  %v18823_v10 = vld [vmem:[#allocation16_spill] sm:$0xff] }
0x14b7   :  { %v8836_v48 = vmul.f32 %v11485_v9, %v8834_v3  ;;  %v11487_v21 = vpop.eup %11486  ;;  %v18824_v3 = vld [vmem:[#allocation17_spill] sm:$0xff]  ;;  %v18825_v9 = vld [vmem:[#allocation18_spill] sm:$0xff] }
0x14b9   :  { %v16794_v47 = vadd.f32 %v8837_v20, %v8836_v48  ;;  %v18827_v48 = vld [vmem:[#allocation20_spill] sm:$0xff]  ;;  %v18828_v20 = vld [vmem:[#allocation21_spill] sm:$0xff] }
0x14bb   :  { %11488 = vtanh.f32 %v16794_v47 }
0x14c8   :  { %v11489_v27 = vpop.eup %11488 }
0x14c9   :  { %v8842_v8 = vmul.f32 %v11489_v27, %v11487_v21  ;;  %v18829_v21 = vld [vmem:[#allocation22_spill] sm:$0xff]  ;;  %v18830_v27 = vld [vmem:[#allocation23_spill] sm:$0xff] }
0x14cb   :  { %v8844_v25 = vrot.slane %v8842_v8, 2  ;;  %v18831_v8 = vld [vmem:[#allocation24_spill] sm:$0xff] }
0x14cd   :  { %v8847_v52 = vpack.c.bf16 %v8844_v25, %v8844_v25  ;;  %v18832_v25 = vld [vmem:[#allocation25_spill] sm:$0xff] }
0x14cf   :  { %v8851_v63 = vrot.slane %v8847_v52, 1  ;;  %v18834_v52 = vld [vmem:[#allocation27_spill] sm:$0xff] }
0x14d1   :  { %8886 = vmatprep.mubr.bf16.mxu0 %v8851_v63  ;;  %8927 = vmatprep.mubr.bf16.mxu1 %v8851_v63 }
0x14d2   :  { %8887 = vmatmul.mubr.bf16.vlgmr.msra.gmra.mxu0 %v16797_v55  ;;  %8928 = vmatmul.mubr.bf16.vlgmr.msra.gmra.mxu1 %v16797_v55 }
0x14d3   :  { %8937 = vmatpush1.bf16.msra.mxu0 %v18722_v36  ;;  %8978 = vmatpush1.bf16.msra.mxu1 %v18723_v43 }
0x14d4   :  { %8968 = vmatprep.mubr.bf16.mxu0 %v8851_v63  ;;  %9009 = vmatprep.mubr.bf16.mxu1 %v8851_v63  ;;  %v18835_v63 = vld [vmem:[#allocation28_spill] sm:$0xff] }
0x14d5   :  { %8938 = vmatprep.subr.bf16.mxu0 %v18724_v56  ;;  %8979 = vmatprep.subr.bf16.mxu1 %v18725_v26 }
0x14d7   :  { %8939 = vmatpush1.bf16.msra.mxu0 %v18726_v33  ;;  %8980 = vmatpush1.bf16.msra.mxu1 %v18727_v15 }
0x14d8   :  { %8940 = vmatprep.subr.bf16.mxu0 %v18728_v22  ;;  %8981 = vmatprep.subr.bf16.mxu1 %v18729_v4 }
0x14db   :  { %8941 = vmatpush1.bf16.msra.mxu0 %v18817_v2  ;;  %8982 = vmatpush1.bf16.msra.mxu1 %v18818_v62 }
0x14dc   :  { %8942 = vmatprep.subr.bf16.mxu0 %v18819_v5  ;;  %8983 = vmatprep.subr.bf16.mxu1 %v18820_v31 }
0x14df   :  { %8943 = vmatpush1.bf16.msra.mxu0 %v18821_v19  ;;  %8984 = vmatpush1.bf16.msra.mxu1 %v18822_v58 }
0x14e0   :  { %8944 = vmatprep.subr.bf16.mxu0 %v18823_v10  ;;  %8985 = vmatprep.subr.bf16.mxu1 %v18824_v3 }
0x14e3   :  { %8945 = vmatpush1.bf16.msra.mxu0 %v18825_v9  ;;  %8986 = vmatpush1.bf16.msra.mxu1 %v18826_v39  ;;  %v18836_v9 = vld [vmem:[#allocation29_spill] sm:$0xff]  ;;  %v18837_v39 = vld [vmem:[#allocation30_spill] sm:$0xff] }
0x14e4   :  { %8946 = vmatprep.subr.bf16.mxu0 %v18827_v48  ;;  %8987 = vmatprep.subr.bf16.mxu1 %v18828_v20  ;;  %v18838_v48 = vld [vmem:[#allocation31_spill] sm:$0xff]  ;;  %v18839_v20 = vld [vmem:[#allocation32_spill] sm:$0xff] }
0x14e7   :  { %8947 = vmatpush1.bf16.msra.mxu0 %v18829_v21  ;;  %8988 = vmatpush1.bf16.msra.mxu1 %v18830_v27  ;;  %v18840_v21 = vld [vmem:[#allocation33_spill] sm:$0xff]  ;;  %v18841_v27 = vld [vmem:[#allocation34_spill] sm:$0xff] }
0x14e8   :  { %8948 = vmatprep.subr.bf16.mxu0 %v18831_v8  ;;  %8989 = vmatprep.subr.bf16.mxu1 %v18832_v25  ;;  %v18842_v8 = vld [vmem:[#allocation35_spill] sm:$0xff]  ;;  %v18843_v25 = vld [vmem:[#allocation130_spill] sm:$0xff] }
0x14eb   :  { %8949 = vmatpush1.bf16.msra.mxu0 %v18833_v35  ;;  %8990 = vmatpush1.bf16.msra.mxu1 %v18834_v52  ;;  %v18844_v35 = vld [vmem:[#allocation71_spill] sm:$0xff]  ;;  %v18845_v52 = vld [vmem:[#allocation10_spill] sm:$0xff] }
0x14ec   :  { %8950 = vmatprep.subr.bf16.mxu0 %v18835_v63  ;;  %8991 = vmatprep.subr.bf16.mxu1 %v18836_v9  ;;  %v18846_v63 = vld [vmem:[#allocation70_spill] sm:$0xff]  ;;  %v18847_v9 = vld [vmem:[#allocation51_spill] sm:$0xff] }
0x14ef   :  { %8951 = vmatpush1.bf16.msra.mxu0 %v18837_v39  ;;  %8992 = vmatpush1.bf16.msra.mxu1 %v18838_v48  ;;  %v18848_v39 = vld [vmem:[#allocation52_spill] sm:$0xff]  ;;  %v18849_v48 = vld [vmem:[#allocation53_spill] sm:$0xff] }
0x14f0   :  { %8952 = vmatprep.subr.bf16.mxu0 %v18839_v20  ;;  %8993 = vmatprep.subr.bf16.mxu1 %v18840_v21  ;;  %v18850_v20 = vld [vmem:[#allocation54_spill] sm:$0xff] }
0x14f3   :  { %8953 = vmatpush2.bf16.msra.mxu0 %v18841_v27  ;;  %8994 = vmatpush2.bf16.msra.mxu1 %v18842_v8 }
0x14f4   :  { %8954 = vmatprep.subr.bf16.mxu0 %v18843_v25  ;;  %8995 = vmatprep.subr.bf16.mxu1 %v18844_v35 }
0x14f7   :  { %8955 = vmatpush2.bf16.msra.mxu0 %v18845_v52  ;;  %8996 = vmatpush2.bf16.msra.mxu1 %v18846_v63 }
0x14f8   :  { %8956 = vmatprep.subr.bf16.mxu0 %v18847_v9  ;;  %8997 = vmatprep.subr.bf16.mxu1 %v18848_v39 }
0x14fb   :  { %8957 = vmatpush2.bf16.msra.mxu0 %v18849_v48  ;;  %8998 = vmatpush2.bf16.msra.mxu1 %v18850_v20 }
0x14fc   :  { %8958 = vmatprep.subr.bf16.mxu0 %v18764_v49  ;;  %8999 = vmatprep.subr.bf16.mxu1 %v18765_v45 }
0x14ff   :  { %8959 = vmatpush2.bf16.msra.mxu0 %v18766_v17  ;;  %9000 = vmatpush2.bf16.msra.mxu1 %v18767_v40 }
0x1500   :  { %8960 = vmatprep.subr.bf16.mxu0 %v18768_v7  ;;  %9001 = vmatprep.subr.bf16.mxu1 %v18769_v29 }
0x1503   :  { %8961 = vmatpush2.bf16.msra.mxu0 %v18770_v1  ;;  %9002 = vmatpush2.bf16.msra.mxu1 %v18771_v14 }
0x1504   :  { %8962 = vmatprep.subr.bf16.mxu0 %v18772_v46  ;;  %9003 = vmatprep.subr.bf16.mxu1 %v18773_v30 }
0x1507   :  { %8963 = vmatpush2.bf16.msra.mxu0 %v18774_v53  ;;  %9004 = vmatpush2.bf16.msra.mxu1 %v16452_v44  ;;  %v18909_v44 = vld [vmem:[#allocation128_spill] sm:$0xff] }
0x1508   :  { %8964 = vmatprep.subr.bf16.mxu0 %v16456_v54  ;;  %9005 = vmatprep.subr.bf16.mxu1 %v16458_v18 }
0x150b   :  { %8965 = vmatpush2.bf16.msra.mxu0 %v16474_v13  ;;  %9006 = vmatpush2.bf16.msra.mxu1 %v16476_v23 }
0x150c   :  { %8966 = vmatprep.subr.bf16.mxu0 %v16480_v50  ;;  %9007 = vmatprep.subr.bf16.mxu1 %v16482_v11 }
0x150f   :  { %8967 = vmatpush2.bf16.msra.mxu0 %v16486_v37  ;;  %9008 = vmatpush2.bf16.msra.mxu1 %v16488_v60  ;;  %v18853_v60 = vld [vmem:[#allocation41_spill] sm:$0xff] }
0x1510   :  { %9115 = vmatprep.subr.bf16.mxu0 %v15730_v24  ;;  %9156 = vmatprep.subr.bf16.mxu1 %v15732_v38  ;;  %v18851_v24 = vld [vmem:[#allocation39_spill] sm:$0xff]  ;;  %v18852_v38 = vld [vmem:[#allocation40_spill] sm:$0xff] }
0x1512   :  { %8969 = vmatmul.mubr.bf16.vlgmr.msra.gmra.mxu0 %v16797_v55  ;;  %9010 = vmatmul.mubr.bf16.vlgmr.msra.gmra.mxu1 %v16797_v55  ;;  %v18854_v55 = vld [vmem:[#allocation42_spill] sm:$0xff] }
0x1513   :  { %9116 = vmatpush1.bf16.msra.mxu0 %v15746_v57  ;;  %9157 = vmatpush1.bf16.msra.mxu1 %v15748_v16  ;;  %v18855_v57 = vld [vmem:[#allocation43_spill] sm:$0xff]  ;;  %v18856_v16 = vld [vmem:[#allocation90_spill] sm:$0xff] }
0x1514   :  { %9117 = vmatprep.subr.bf16.mxu0 %v15752_v42  ;;  %9158 = vmatprep.subr.bf16.mxu1 %v15754_v41  ;;  %v18857_v42 = vld [vmem:[#allocation91_spill] sm:$0xff]  ;;  %v18858_v41 = vld [vmem:[#allocation92_spill] sm:$0xff] }
0x1517   :  { %9118 = vmatpush1.bf16.msra.mxu0 %v15772_v61  ;;  %9159 = vmatpush1.bf16.msra.mxu1 %v15774_v59  ;;  %v18859_v61 = vld [vmem:[#allocation93_spill] sm:$0xff]  ;;  %v18860_v59 = vld [vmem:[#allocation94_spill] sm:$0xff] }
0x1518   :  { %9119 = vmatprep.subr.bf16.mxu0 %v15778_v32  ;;  %9160 = vmatprep.subr.bf16.mxu1 %v18851_v24  ;;  %v18861_v32 = vld [vmem:[#allocation95_spill] sm:$0xff]  ;;  %v18862_v24 = vld [vmem:[#allocation96_spill] sm:$0xff] }
0x151b   :  { %9120 = vmatpush1.bf16.msra.mxu0 %v18852_v38  ;;  %9161 = vmatpush1.bf16.msra.mxu1 %v18853_v60  ;;  %v18863_v38 = vld [vmem:[#allocation97_spill] sm:$0xff]  ;;  %v18864_v60 = vld [vmem:[#allocation98_spill] sm:$0xff] }
0x151c   :  { %9121 = vmatprep.subr.bf16.mxu0 %v18854_v55  ;;  %9162 = vmatprep.subr.bf16.mxu1 %v18855_v57  ;;  %v18865_v55 = vld [vmem:[#allocation72_spill] sm:$0xff] }
0x151d   :  { %v18866_v57 = vld [vmem:[#allocation132_spill] sm:$0xff] }
0x151f   :  { %9122 = vmatpush1.bf16.msra.mxu0 %v18856_v16  ;;  %9163 = vmatpush1.bf16.msra.mxu1 %v18857_v42  ;;  %v18867_v16 = vld [vmem:[#allocation44_spill] sm:$0xff]  ;;  %v18868_v42 = vld [vmem:[#allocation45_spill] sm:$0xff] }
0x1520   :  { %9123 = vmatprep.subr.bf16.mxu0 %v18858_v41  ;;  %9164 = vmatprep.subr.bf16.mxu1 %v18859_v61  ;;  %v18869_v41 = vld [vmem:[#allocation46_spill] sm:$0xff]  ;;  %v18870_v61 = vld [vmem:[#allocation47_spill] sm:$0xff] }
0x1523   :  { %9124 = vmatpush1.bf16.msra.mxu0 %v18860_v59  ;;  %9165 = vmatpush1.bf16.msra.mxu1 %v18861_v32  ;;  %v18871_v59 = vld [vmem:[#allocation48_spill] sm:$0xff]  ;;  %v18872_v32 = vld [vmem:[#allocation49_spill] sm:$0xff] }
0x1524   :  { %9125 = vmatprep.subr.bf16.mxu0 %v18862_v24  ;;  %9166 = vmatprep.subr.bf16.mxu1 %v18863_v38  ;;  %v18873_v24 = vld [vmem:[#allocation50_spill] sm:$0xff]  ;;  %v18874_v38 = vld [vmem:[#allocation67_spill] sm:$0xff] }
0x1527   :  { %9126 = vmatpush1.bf16.msra.mxu0 %v18864_v60  ;;  %9167 = vmatpush1.bf16.msra.mxu1 %v18865_v55  ;;  %v18875_v60 = vld [vmem:[#allocation68_spill] sm:$0xff]  ;;  %v18876_v55 = vld [vmem:[#allocation6_spill] sm:$0xff] }
0x1528   :  { %9127 = vmatprep.subr.bf16.mxu0 %v18866_v57  ;;  %9168 = vmatprep.subr.bf16.mxu1 %v18867_v16  ;;  %v18877_v57 = vld [vmem:[#allocation69_spill] sm:$0xff]  ;;  %v18878_v16 = vld [vmem:[#allocation131_spill] sm:$0xff] }
0x152b   :  { %9128 = vmatpush1.bf16.msra.mxu0 %v18868_v42  ;;  %9169 = vmatpush1.bf16.msra.mxu1 %v18869_v41  ;;  %v18879_v42 = vld [vmem:[#allocation84_spill] sm:$0xff]  ;;  %v18880_v41 = vld [vmem:[#allocation85_spill] sm:$0xff] }
0x152c   :  { %9129 = vmatprep.subr.bf16.mxu0 %v18870_v61  ;;  %9170 = vmatprep.subr.bf16.mxu1 %v18871_v59  ;;  %v18881_v61 = vld [vmem:[#allocation86_spill] sm:$0xff]  ;;  %v18882_v59 = vld [vmem:[#allocation87_spill] sm:$0xff] }
0x152f   :  { %9130 = vmatpush1.bf16.msra.mxu0 %v18872_v32  ;;  %9171 = vmatpush1.bf16.msra.mxu1 %v18873_v24  ;;  %v18883_v32 = vld [vmem:[#allocation88_spill] sm:$0xff]  ;;  %v18884_v24 = vld [vmem:[#allocation89_spill] sm:$0xff] }
0x1530   :  { %9131 = vmatprep.subr.bf16.mxu0 %v18874_v38  ;;  %9172 = vmatprep.subr.bf16.mxu1 %v18875_v60  ;;  %v18885_v38 = vld [vmem:[#allocation73_spill] sm:$0xff]  ;;  %v18886_v60 = vld [vmem:[#allocation74_spill] sm:$0xff] }
0x1533   :  { %9132 = vmatpush2.bf16.msra.mxu0 %v18876_v55  ;;  %9173 = vmatpush2.bf16.msra.mxu1 %v18877_v57  ;;  %v18887_v55 = vld [vmem:[#allocation75_spill] sm:$0xff]  ;;  %v18888_v57 = vld [vmem:[#allocation76_spill] sm:$0xff] }
0x1534   :  { %9133 = vmatprep.subr.bf16.mxu0 %v18878_v16  ;;  %9174 = vmatprep.subr.bf16.mxu1 %v18879_v42  ;;  %v18889_v16 = vld [vmem:[#allocation111_spill] sm:$0xff]  ;;  %v18890_v42 = vld [vmem:[#allocation112_spill] sm:$0xff] }
0x1537   :  { %9134 = vmatpush2.bf16.msra.mxu0 %v18880_v41  ;;  %9175 = vmatpush2.bf16.msra.mxu1 %v18881_v61  ;;  %v18891_v41 = vld [vmem:[#allocation113_spill] sm:$0xff]  ;;  %v18892_v61 = vld [vmem:[#allocation114_spill] sm:$0xff] }
0x1538   :  { %9135 = vmatprep.subr.bf16.mxu0 %v18882_v59  ;;  %9176 = vmatprep.subr.bf16.mxu1 %v18883_v32  ;;  %v18893_v59 = vld [vmem:[#allocation115_spill] sm:$0xff]  ;;  %v18894_v32 = vld [vmem:[#allocation116_spill] sm:$0xff] }
0x153b   :  { %9136 = vmatpush2.bf16.msra.mxu0 %v18884_v24  ;;  %9177 = vmatpush2.bf16.msra.mxu1 %v18885_v38  ;;  %v18895_v24 = vld [vmem:[#allocation117_spill] sm:$0xff]  ;;  %v18896_v38 = vld [vmem:[#allocation118_spill] sm:$0xff] }
0x153c   :  { %9137 = vmatprep.subr.bf16.mxu0 %v18886_v60  ;;  %9178 = vmatprep.subr.bf16.mxu1 %v18887_v55  ;;  %v18897_v60 = vld [vmem:[#allocation119_spill] sm:$0xff]  ;;  %v18898_v55 = vld [vmem:[#allocation9_spill] sm:$0xff] }
0x153f   :  { %9138 = vmatpush2.bf16.msra.mxu0 %v18888_v57  ;;  %9179 = vmatpush2.bf16.msra.mxu1 %v18889_v16  ;;  %v18899_v57 = vld [vmem:[#allocation77_spill] sm:$0xff]  ;;  %v18900_v16 = vld [vmem:[#allocation78_spill] sm:$0xff] }
0x1540   :  { %9139 = vmatprep.subr.bf16.mxu0 %v18890_v42  ;;  %9180 = vmatprep.subr.bf16.mxu1 %v18891_v41  ;;  %v18901_v42 = vld [vmem:[#allocation79_spill] sm:$0xff]  ;;  %v18902_v41 = vld [vmem:[#allocation80_spill] sm:$0xff] }
0x1543   :  { %9140 = vmatpush2.bf16.msra.mxu0 %v18892_v61  ;;  %9181 = vmatpush2.bf16.msra.mxu1 %v18893_v59  ;;  %v18903_v61 = vld [vmem:[#allocation81_spill] sm:$0xff]  ;;  %v18904_v59 = vld [vmem:[#allocation82_spill] sm:$0xff] }
0x1544   :  { %9141 = vmatprep.subr.bf16.mxu0 %v18894_v32  ;;  %9182 = vmatprep.subr.bf16.mxu1 %v18895_v24  ;;  %v18905_v32 = vld [vmem:[#allocation83_spill] sm:$0xff]  ;;  %v18906_v24 = vld [vmem:[#allocation100_spill] sm:$0xff] }
0x1547   :  { %9142 = vmatpush2.bf16.msra.mxu0 %v18896_v38  ;;  %9183 = vmatpush2.bf16.msra.mxu1 %v18897_v60  ;;  %v18907_v38 = vld [vmem:[#allocation101_spill] sm:$0xff] }
0x1548   :  { %9143 = vmatprep.subr.bf16.mxu0 %v18898_v55  ;;  %9184 = vmatprep.subr.bf16.mxu1 %v18899_v57 }
0x154b   :  { %9144 = vmatpush2.bf16.msra.mxu0 %v18900_v16  ;;  %9185 = vmatpush2.bf16.msra.mxu1 %v18901_v42 }
0x154c   :  { %9145 = vmatprep.subr.bf16.mxu0 %v18902_v41  ;;  %9186 = vmatprep.subr.bf16.mxu1 %v18903_v61 }
0x154f   :  { %9146 = vmatpush2.bf16.msra.mxu0 %v18904_v59  ;;  %9187 = vmatpush2.bf16.msra.mxu1 %v18905_v32 }
0x1550   :  { %9197 = vmatprep.subr.bf16.mxu0 %v18906_v24  ;;  %9238 = vmatprep.subr.bf16.mxu1 %v18907_v38  ;;  %v18908_v38 = vld [vmem:[#allocation127_spill] sm:$0xff] }
0x1592   :  { %v8888_v60 = vpop.f32.mrf.mxu0  ;;  %v8929_v55 = vpop.f32.mrf.mxu1 }
0x1593   :  { %v9022_v37 = vrot.slane %v8888_v60, 4  ;;  %v9024_v24 = vrot.slane %v8929_v55, 4 }
0x1594   :  { %v8890_v57 = vpop.f32.mrf.mxu0  ;;  %v8931_v11 = vpop.f32.mrf.mxu1 }
0x1595   :  { %v9030_v16 = vadd.f32 %v9022_v37, %v16589_v34  ;;  %v9023_v42 = vrot.slane %v8890_v57, 4  ;;  %v9032_v18 = vadd.f32 %v9024_v24, %v18908_v38  ;;  %v9025_v54 = vrot.slane %v8931_v11, 4 }
0x1596   :  { %v8892_v50 = vpop.f32.mrf.mxu0  ;;  %v8933_v41 = vpop.f32.mrf.mxu1 }
0x1597   :  { %v10750_v23 = vmul.f32 -1.442695, %v9030_v16  ;;  %v9031_v61 = vadd.f32 %v9023_v42, %v16596_v12  ;;  %v10752_v60 = vmul.f32 -1.442695, %v9032_v18  ;;  %v9033_v53 = vadd.f32 %v9025_v54, %v18909_v44  ;;  %v18910_v42 = vld [vmem:[#allocation38_spill] sm:$0xff] }
0x1598   :  { %v8893_v59 = vpop.f32.mrf.mxu0  ;;  %v8934_v13 = vpop.f32.mrf.mxu1  ;;  %v9089_v55 = vrot.slane %v18910_v42, 6 }
0x1599   :  { %11490 = vpow2.f32 %v10750_v23  ;;  %v10751_v32 = vmul.f32 -1.442695, %v9031_v61 }
0x159b   :  { %11492 = vpow2.f32 %v10751_v32 }
0x159c   :  { %11494 = vpow2.f32 %v10752_v60 }
0x159d   :  { %11496 = vtanh.f32 %v9033_v53 }
0x15a6   :  { %v11491_v30 = vpop.eup %11490 }
0x15a7   :  { %v9059_v37 = vadd.f32 1.0, %v11491_v30 }
0x15a8   :  { %v11493_v50 = vpop.eup %11492 }
0x15a9   :  { %11498 = vrcp.f32 %v9059_v37  ;;  %v9060_v57 = vadd.f32 1.0, %v11493_v50  ;;  %v11495_v16 = vpop.eup %11494 }
0x15aa   :  { %v11497_v13 = vpop.eup %11496  ;;  %v9061_v59 = vadd.f32 1.0, %v11495_v16 }
0x15ab   :  { %11500 = vrcp.f32 %v9060_v57 }
0x15ac   :  { %11502 = vrcp.f32 %v9061_v59 }
0x15b6   :  { %v11499_v23 = vpop.eup %11498 }
0x15b7   :  { %v9092_v41 = vmul.f32 %v11499_v23, %v11497_v13 }
0x15b8   :  { %v11501_v61 = vpop.eup %11500 }
0x15b9   :  { %v9091_v11 = vmul.f32 %v11501_v61, %v9089_v55  ;;  %v11503_v54 = vpop.eup %11502 }
0x15bb   :  { %v16936_v18 = vadd.f32 %v9092_v41, %v9091_v11 }
0x15bd   :  { %18911 = vst [vmem:[#allocation36_spill] sm:$0xff] %v16936_v18  ;;  %11504 = vtanh.f32 %v16936_v18 }
0x15ca   :  { %v11505_v30 = vpop.eup %11504 }
0x15cb   :  { %v9101_v53 = vmul.f32 %v11505_v30, %v11503_v54 }
0x15d2   :  { %v8970_v32 = vpop.f32.mrf.mxu0  ;;  %v9011_v24 = vpop.f32.mrf.mxu1 }
0x15d3   :  { %v9038_v60 = vrot.slane %v8970_v32, 6  ;;  %v9040_v11 = vrot.slane %v9011_v24, 6 }
0x15d4   :  { %v8972_v37 = vpop.f32.mrf.mxu0  ;;  %v9013_v50 = vpop.f32.mrf.mxu1 }
0x15d5   :  { %v9046_v57 = vadd.f32 %v9038_v60, %v18816_v28  ;;  %v9039_v42 = vrot.slane %v8972_v37, 6  ;;  %v9048_v54 = vadd.f32 %v9040_v11, %v16636_v51  ;;  %v9041_v30 = vrot.slane %v9013_v50, 6 }
0x15d6   :  { %v8974_v13 = vpop.f32.mrf.mxu0  ;;  %v9015_v23 = vpop.f32.mrf.mxu1 }
0x15d7   :  { %v10753_v16 = vmul.f32 -1.442695, %v9046_v57  ;;  %v9047_v55 = vadd.f32 %v9039_v42, %v16625_v6  ;;  %v10755_v32 = vmul.f32 -1.442695, %v9048_v54  ;;  %v9049_v44 = vadd.f32 %v9041_v30, %v16641_v0 }
0x15d8   :  { %v8975_v41 = vpop.f32.mrf.mxu0  ;;  %v9016_v61 = vpop.f32.mrf.mxu1 }
0x15d9   :  { %11506 = vpow2.f32 %v10753_v16  ;;  %v10754_v59 = vmul.f32 -1.442695, %v9047_v55  ;;  %v9095_v16 = vrot.slane %v16794_v47, 2  ;;  %v18920_v47 = vld [vmem:[#allocation26_spill] sm:$0xff] }
0x15db   :  { %11508 = vpow2.f32 %v10754_v59 }
0x15dc   :  { %11510 = vpow2.f32 %v10755_v32 }
0x15e6   :  { %v11507_v18 = vpop.eup %11506 }
0x15e7   :  { %v9078_v60 = vadd.f32 1.0, %v11507_v18 }
0x15e8   :  { %v11509_v37 = vpop.eup %11508 }
0x15e9   :  { %11512 = vrcp.f32 %v9078_v60  ;;  %v9079_v57 = vadd.f32 1.0, %v11509_v37  ;;  %v11511_v42 = vpop.eup %11510  ;;  %v9380_v37 = vld [vmem:[%s17140_s13 + $0xc8] sm:$0xff] }
0x15ea   :  { %11514 = vtanh.f32 %v9049_v44  ;;  %v9080_v55 = vadd.f32 1.0, %v11511_v42  ;;  %v9107_v44 = vpack.c.bf16 %v9101_v53, %v9101_v53  ;;  %v9365_v53 = vld [vmem:[%s17140_s13 + $0x50] sm:$0xff]  ;;  %v9379_v42 = vld [vmem:[%s17140_s13 + $0xc0] sm:$0xff] }
0x15eb   :  { %11516 = vrcp.f32 %v9079_v57  ;;  %v9364_v57 = vld [vmem:[%s17140_s13 + $0x48] sm:$0xff] }
0x15ec   :  { %11518 = vrcp.f32 %v9080_v55  ;;  %v16947_v60 = vrot.slane %v9107_v44, 2  ;;  %v9361_v55 = vld [vmem:[%s17140_s13 + $0x30] sm:$0xff] }
0x15ed   :  { %v9373_v44 = vld [vmem:[%s17140_s13 + $0x90] sm:$0xff] }
0x15f6   :  { %v11513_v13 = vpop.eup %11512 }
0x15f7   :  { %v11515_v23 = vpop.eup %11514 }
0x15f8   :  { %v11517_v24 = vpop.eup %11516  ;;  %v9098_v50 = vmul.f32 %v11515_v23, %v11513_v13  ;;  %v9363_v13 = vld [vmem:[%s17140_s13 + $0x40] sm:$0xff]  ;;  %v9378_v23 = vld [vmem:[%s17140_s13 + $0xb8] sm:$0xff] }
0x15f9   :  { %v9097_v41 = vmul.f32 %v11517_v24, %v9095_v16  ;;  %v11519_v18 = vpop.eup %11518  ;;  %v9362_v16 = vld [vmem:[%s17140_s13 + $0x38] sm:$0xff]  ;;  %v9377_v24 = vld [vmem:[%s17140_s13 + $0xb0] sm:$0xff] }
0x15fb   :  { %v16944_v61 = vadd.f32 %v9098_v50, %v9097_v41  ;;  %v9376_v41 = vld [vmem:[%s17140_s13 + $0xa8] sm:$0xff] }
0x15fc   :  { %v9360_v50 = vld [vmem:[%s17140_s13 + $0x28] sm:$0xff] }
0x15fd   :  { %11520 = vtanh.f32 %v16944_v61 }
0x160a   :  { %v11521_v59 = vpop.eup %11520 }
0x160b   :  { %v9103_v11 = vmul.f32 %v11521_v59, %v11519_v18  ;;  %v9375_v18 = vld [vmem:[%s17140_s13 + $0xa0] sm:$0xff] }
0x160c   :  { %v9359_v59 = vld [vmem:[%s17140_s13 + $0x20] sm:$0xff] }
0x160d   :  { %v9105_v54 = vrot.slane %v9103_v11, 6  ;;  %v9374_v11 = vld [vmem:[%s17140_s13 + $0x98] sm:$0xff] }
0x160f   :  { %v9108_v30 = vpack.c.bf16 %v9105_v54, %v9105_v54  ;;  %v9358_v54 = vld [vmem:[%s17140_s13 + $0x18] sm:$0xff] }
0x1611   :  { %v9112_v32 = vrot.slane %v9108_v30, 2  ;;  %v9357_v30 = vld [vmem:[%s17140_s13 + $0x10] sm:$0xff] }
0x1613   :  { %9147 = vmatprep.mubr.bf16.mxu0 %v9112_v32  ;;  %9188 = vmatprep.mubr.bf16.mxu1 %v9112_v32 }
0x1614   :  { %9148 = vmatmul.mubr.bf16.vlgmr.msra.gmra.mxu0 %v16947_v60  ;;  %9189 = vmatmul.mubr.bf16.vlgmr.msra.gmra.mxu1 %v16947_v60 }
0x1615   :  { %9198 = vmatpush1.bf16.msra.mxu0 %v18722_v36  ;;  %9239 = vmatpush1.bf16.msra.mxu1 %v18723_v43  ;;  %v18912_v36 = vld [vmem:[#allocation18_spill] sm:$0xff]  ;;  %v18913_v43 = vld [vmem:[#allocation19_spill] sm:$0xff] }
0x1616   :  { %9229 = vmatprep.mubr.bf16.mxu0 %v9112_v32  ;;  %9270 = vmatprep.mubr.bf16.mxu1 %v9112_v32  ;;  %v9372_v32 = vld [vmem:[%s17140_s13 + $0x88] sm:$0xff] }
0x1617   :  { %9199 = vmatprep.subr.bf16.mxu0 %v18724_v56  ;;  %9240 = vmatprep.subr.bf16.mxu1 %v18725_v26  ;;  %v18914_v56 = vld [vmem:[#allocation20_spill] sm:$0xff]  ;;  %v18915_v26 = vld [vmem:[#allocation21_spill] sm:$0xff] }
0x1619   :  { %9200 = vmatpush1.bf16.msra.mxu0 %v18726_v33  ;;  %9241 = vmatpush1.bf16.msra.mxu1 %v18727_v15  ;;  %v18916_v33 = vld [vmem:[#allocation22_spill] sm:$0xff]  ;;  %v18917_v15 = vld [vmem:[#allocation23_spill] sm:$0xff] }
0x161a   :  { %9201 = vmatprep.subr.bf16.mxu0 %v18728_v22  ;;  %9242 = vmatprep.subr.bf16.mxu1 %v18729_v4  ;;  %v18918_v22 = vld [vmem:[#allocation24_spill] sm:$0xff]  ;;  %v18919_v4 = vld [vmem:[#allocation25_spill] sm:$0xff] }
0x161d   :  { %9202 = vmatpush1.bf16.msra.mxu0 %v18817_v2  ;;  %9243 = vmatpush1.bf16.msra.mxu1 %v18818_v62  ;;  %v18921_v2 = vld [vmem:[#allocation27_spill] sm:$0xff]  ;;  %v18922_v62 = vld [vmem:[#allocation28_spill] sm:$0xff] }
0x161e   :  { %9203 = vmatprep.subr.bf16.mxu0 %v18819_v5  ;;  %9244 = vmatprep.subr.bf16.mxu1 %v18820_v31  ;;  %v18923_v5 = vld [vmem:[#allocation29_spill] sm:$0xff]  ;;  %v18924_v31 = vld [vmem:[#allocation30_spill] sm:$0xff] }
0x1621   :  { %9204 = vmatpush1.bf16.msra.mxu0 %v18821_v19  ;;  %9245 = vmatpush1.bf16.msra.mxu1 %v18822_v58  ;;  %v18925_v19 = vld [vmem:[#allocation31_spill] sm:$0xff]  ;;  %v18926_v58 = vld [vmem:[#allocation32_spill] sm:$0xff] }
0x1622   :  { %9205 = vmatprep.subr.bf16.mxu0 %v18823_v10  ;;  %9246 = vmatprep.subr.bf16.mxu1 %v18824_v3  ;;  %v18927_v10 = vld [vmem:[#allocation64_spill] sm:$0xff]  ;;  %v18928_v3 = vld [vmem:[#allocation65_spill] sm:$0xff] }
0x1625   :  { %9206 = vmatpush1.bf16.msra.mxu0 %v18912_v36  ;;  %9247 = vmatpush1.bf16.msra.mxu1 %v18913_v43  ;;  %v9371_v36 = vld [vmem:[%s17140_s13 + $0x80] sm:$0xff] }
0x1626   :  { %9207 = vmatprep.subr.bf16.mxu0 %v18914_v56  ;;  %9248 = vmatprep.subr.bf16.mxu1 %v18915_v26  ;;  %v9355_v43 = vld [vmem:[%s17140_s13] sm:$0xff] }
0x1629   :  { %9208 = vmatpush1.bf16.msra.mxu0 %v18916_v33  ;;  %9249 = vmatpush1.bf16.msra.mxu1 %v18917_v15 }
0x162a   :  { %9209 = vmatprep.subr.bf16.mxu0 %v18918_v22  ;;  %9250 = vmatprep.subr.bf16.mxu1 %v18919_v4 }
0x162d   :  { %9210 = vmatpush1.bf16.msra.mxu0 %v18920_v47  ;;  %9251 = vmatpush1.bf16.msra.mxu1 %v18921_v2 }
0x162e   :  { %9211 = vmatprep.subr.bf16.mxu0 %v18922_v62  ;;  %9252 = vmatprep.subr.bf16.mxu1 %v18923_v5 }
0x1631   :  { %9212 = vmatpush1.bf16.msra.mxu0 %v18924_v31  ;;  %9253 = vmatpush1.bf16.msra.mxu1 %v18925_v19 }
0x1632   :  { %9213 = vmatprep.subr.bf16.mxu0 %v18926_v58  ;;  %9254 = vmatprep.subr.bf16.mxu1 %v18840_v21  ;;  %v9384_v21 = vld [vmem:[%s17140_s13 + $0xe8] sm:$0xff] }
0x1635   :  { %9214 = vmatpush2.bf16.msra.mxu0 %v18841_v27  ;;  %9255 = vmatpush2.bf16.msra.mxu1 %v18842_v8  ;;  %v9368_v27 = vld [vmem:[%s17140_s13 + $0x68] sm:$0xff]  ;;  %v9383_v8 = vld [vmem:[%s17140_s13 + $0xe0] sm:$0xff] }
0x1636   :  { %9215 = vmatprep.subr.bf16.mxu0 %v18843_v25  ;;  %9256 = vmatprep.subr.bf16.mxu1 %v18844_v35  ;;  %v9367_v25 = vld [vmem:[%s17140_s13 + $0x60] sm:$0xff]  ;;  %v9382_v35 = vld [vmem:[%s17140_s13 + $0xd8] sm:$0xff] }
0x1639   :  { %9216 = vmatpush2.bf16.msra.mxu0 %v18845_v52  ;;  %9257 = vmatpush2.bf16.msra.mxu1 %v18846_v63  ;;  %v9366_v52 = vld [vmem:[%s17140_s13 + $0x58] sm:$0xff]  ;;  %v9381_v63 = vld [vmem:[%s17140_s13 + $0xd0] sm:$0xff] }
0x163a   :  { %9217 = vmatprep.subr.bf16.mxu0 %v18847_v9  ;;  %9258 = vmatprep.subr.bf16.mxu1 %v18848_v39  ;;  %v9386_v9 = vld [vmem:[%s17140_s13 + $0xf8] sm:$0xff] }
0x163b   :  { %v9370_v39 = vld [vmem:[%s17140_s13 + $0x78] sm:$0xff] }
0x163d   :  { %9218 = vmatpush2.bf16.msra.mxu0 %v18849_v48  ;;  %9259 = vmatpush2.bf16.msra.mxu1 %v18850_v20  ;;  %v9385_v48 = vld [vmem:[%s17140_s13 + $0xf0] sm:$0xff] }
0x163e   :  { %9219 = vmatprep.subr.bf16.mxu0 %v18764_v49  ;;  %9260 = vmatprep.subr.bf16.mxu1 %v18765_v45  ;;  %v18929_v49 = vld [vmem:[#allocation66_spill] sm:$0xff]  ;;  %v18930_v45 = vld [vmem:[#allocation99_spill] sm:$0xff] }
0x163f   :  { %v9369_v20 = vld [vmem:[%s17140_s13 + $0x70] sm:$0xff] }
0x1641   :  { %9220 = vmatpush2.bf16.msra.mxu0 %v18766_v17  ;;  %9261 = vmatpush2.bf16.msra.mxu1 %v18767_v40  ;;  %v18931_v17 = vld [vmem:[#allocation120_spill] sm:$0xff]  ;;  %v18932_v40 = vld [vmem:[#allocation121_spill] sm:$0xff] }
0x1642   :  { %9221 = vmatprep.subr.bf16.mxu0 %v18768_v7  ;;  %9262 = vmatprep.subr.bf16.mxu1 %v18769_v29  ;;  %v18933_v7 = vld [vmem:[#allocation122_spill] sm:$0xff]  ;;  %v18934_v29 = vld [vmem:[#allocation123_spill] sm:$0xff] }
0x1645   :  { %9222 = vmatpush2.bf16.msra.mxu0 %v18770_v1  ;;  %9263 = vmatpush2.bf16.msra.mxu1 %v18771_v14  ;;  %v18935_v1 = vld [vmem:[#allocation124_spill] sm:$0xff]  ;;  %v18936_v14 = vld [vmem:[#allocation125_spill] sm:$0xff] }
0x1646   :  { %9223 = vmatprep.subr.bf16.mxu0 %v18772_v46  ;;  %9264 = vmatprep.subr.bf16.mxu1 %v18927_v10  ;;  %v18937_v46 = vld [vmem:[#allocation126_spill] sm:$0xff] }
0x1649   :  { %9224 = vmatpush2.bf16.msra.mxu0 %v18928_v3  ;;  %9265 = vmatpush2.bf16.msra.mxu1 %v18929_v49 }
0x164a   :  { %9225 = vmatprep.subr.bf16.mxu0 %v18930_v45  ;;  %9266 = vmatprep.subr.bf16.mxu1 %v18931_v17 }
0x164d   :  { %9226 = vmatpush2.bf16.msra.mxu0 %v18932_v40  ;;  %9267 = vmatpush2.bf16.msra.mxu1 %v18933_v7  ;;  %v18938_v7 = vld [vmem:[#allocation128_spill] sm:$0xff] }
0x164e   :  { %9227 = vmatprep.subr.bf16.mxu0 %v18934_v29  ;;  %9268 = vmatprep.subr.bf16.mxu1 %v18935_v1 }
0x1651   :  { %9228 = vmatpush2.bf16.msra.mxu0 %v18936_v14  ;;  %9269 = vmatpush2.bf16.msra.mxu1 %v18937_v46 }
0x1652   :  { %10864 = vmatprep.subr.mxu0 %v9386_v9 }
0x1654   :  { %9230 = vmatmul.mubr.bf16.vlgmr.msra.gmra.mxu0 %v16947_v60  ;;  %9271 = vmatmul.mubr.bf16.vlgmr.msra.gmra.mxu1 %v16947_v60  ;;  %v9356_v60 = vld [vmem:[%s17140_s13 + $0x8] sm:$0xff] }
0x1655   :  { %10865 = vmatpush3.msra.mxu0 %v9370_v39  ;;  %v18939_v39 = vld [vmem:[#allocation36_spill] sm:$0xff] }
0x1656   :  { %10866 = vmatprep.subr.mxu0 %v9385_v48  ;;  %v9338_v48 = vrot.slane %v18939_v39, 6 }
0x1657   :  { %10867 = vmatpush3.msra.mxu0 %v9369_v20 }
0x1658   :  { %10868 = vmatprep.subr.mxu0 %v9384_v21 }
0x1659   :  { %10869 = vmatpush3.msra.mxu0 %v9368_v27 }
0x165a   :  { %10870 = vmatprep.subr.mxu0 %v9383_v8 }
0x165b   :  { %10871 = vmatpush3.msra.mxu0 %v9367_v25 }
0x165c   :  { %10872 = vmatprep.subr.mxu0 %v9382_v35 }
0x165d   :  { %10873 = vmatpush3.msra.mxu0 %v9366_v52 }
0x165e   :  { %10874 = vmatprep.subr.mxu0 %v9381_v63 }
0x165f   :  { %10875 = vmatpush3.msra.mxu0 %v9365_v53 }
0x1660   :  { %10876 = vmatprep.subr.mxu0 %v9380_v37 }
0x1661   :  { %10877 = vmatpush3.msra.mxu0 %v9364_v57 }
0x1662   :  { %10878 = vmatprep.subr.mxu0 %v9379_v42 }
0x1663   :  { %10879 = vmatpush3.msra.mxu0 %v9363_v13 }
0x1664   :  { %10880 = vmatprep.subr.mxu0 %v9378_v23 }
0x1665   :  { %10881 = vmatpush3.msra.mxu0 %v9362_v16 }
0x1666   :  { %10882 = vmatprep.subr.mxu0 %v9377_v24 }
0x1667   :  { %10883 = vmatpush3.msra.mxu0 %v9361_v55 }
0x1668   :  { %10884 = vmatprep.subr.mxu0 %v9376_v41 }
0x1669   :  { %10885 = vmatpush3.msra.mxu0 %v9360_v50 }
0x166a   :  { %10886 = vmatprep.subr.mxu0 %v9375_v18 }
0x166b   :  { %10887 = vmatpush3.msra.mxu0 %v9359_v59 }
0x166c   :  { %10888 = vmatprep.subr.mxu0 %v9374_v11 }
0x166d   :  { %10889 = vmatpush3.msra.mxu0 %v9358_v54 }
0x166e   :  { %10890 = vmatprep.subr.mxu0 %v9373_v44 }
0x166f   :  { %10891 = vmatpush3.msra.mxu0 %v9357_v30 }
0x1670   :  { %10892 = vmatprep.subr.mxu0 %v9372_v32 }
0x1671   :  { %10893 = vmatpush3.msra.mxu0 %v9356_v60 }
0x1672   :  { %10894 = vmatprep.subr.mxu0 %v9371_v36  ;;  %v9344_v36 = vrot.slane %v16944_v61, 2 }
0x1673   :  { %10895 = vmatpush3.msra.mxu0 %v9355_v43 }
0x16d4   :  { %v9149_v56 = vpop.f32.mrf.mxu0  ;;  %v9190_v26 = vpop.f32.mrf.mxu1 }
0x16d5   :  { %v9283_v33 = vrot.slane %v9149_v56, 2  ;;  %v9285_v3 = vrot.slane %v9190_v26, 2 }
0x16d6   :  { %v9151_v15 = vpop.f32.mrf.mxu0  ;;  %v9192_v22 = vpop.f32.mrf.mxu1 }
0x16d7   :  { %v9291_v4 = vadd.f32 %v9283_v33, %v16589_v34  ;;  %v9284_v47 = vrot.slane %v9151_v15, 2  ;;  %v9293_v49 = vadd.f32 %v9285_v3, %v18908_v38  ;;  %v9286_v45 = vrot.slane %v9192_v22, 2 }
0x16d8   :  { %v9153_v2 = vpop.f32.mrf.mxu0  ;;  %v9194_v62 = vpop.f32.mrf.mxu1 }
0x16d9   :  { %v10756_v5 = vmul.f32 -1.442695, %v9291_v4  ;;  %v9292_v31 = vadd.f32 %v9284_v47, %v16596_v12  ;;  %v10758_v17 = vmul.f32 -1.442695, %v9293_v49  ;;  %v9294_v29 = vadd.f32 %v9286_v45, %v18938_v7  ;;  %v10762_v2 = vld [vmem:[%s17141_s14] ss:$0 sm:$0xff] }
0x16da   :  { %v9154_v19 = vpop.f32.mrf.mxu0  ;;  %v9195_v58 = vpop.f32.mrf.mxu1 }
0x16db   :  { %11522 = vpow2.f32 %v10756_v5  ;;  %v10757_v10 = vmul.f32 -1.442695, %v9292_v31 }
0x16dd   :  { %11524 = vpow2.f32 %v10757_v10 }
0x16de   :  { %11526 = vpow2.f32 %v10758_v17 }
0x16e8   :  { %v11523_v40 = vpop.eup %11522 }
0x16e9   :  { %v9308_v34 = vadd.f32 1.0, %v11523_v40 }
0x16ea   :  { %v11525_v1 = vpop.eup %11524 }
0x16eb   :  { %11528 = vrcp.f32 %v9308_v34  ;;  %v9309_v14 = vadd.f32 1.0, %v11525_v1  ;;  %v11527_v12 = vpop.eup %11526 }
0x16ec   :  { %11530 = vtanh.f32 %v9294_v29  ;;  %v9310_v21 = vadd.f32 1.0, %v11527_v12 }
0x16ed   :  { %11532 = vrcp.f32 %v9309_v14 }
0x16ee   :  { %11534 = vrcp.f32 %v9310_v21 }
0x16f8   :  { %v11529_v46 = vpop.eup %11528 }
0x16f9   :  { %v11531_v9 = vpop.eup %11530 }
0x16fa   :  { %v11533_v20 = vpop.eup %11532  ;;  %v9341_v27 = vmul.f32 %v11531_v9, %v11529_v46 }
0x16fb   :  { %v9340_v38 = vmul.f32 %v11533_v20, %v9338_v48  ;;  %v11535_v25 = vpop.eup %11534 }
0x16fd   :  { %v9342_v8 = vadd.f32 %v9341_v27, %v9340_v38 }
0x16ff   :  { %11536 = vtanh.f32 %v9342_v8 }
0x170c   :  { %v11537_v35 = vpop.eup %11536 }
0x170d   :  { %v9350_v52 = vmul.f32 %v11537_v35, %v11535_v25 }
0x170f   :  { %v9395_v4 = vrot.slane %v9350_v52, 6 }
0x1714   :  { %v9231_v63 = vpop.f32.mrf.mxu0  ;;  %v9272_v53 = vpop.f32.mrf.mxu1 }
0x1715   :  { %v9295_v37 = vadd.f32 %v9231_v63, %v18816_v28  ;;  %v9297_v18 = vadd.f32 %v9272_v53, %v16636_v51 }
0x1716   :  { %v9233_v57 = vpop.f32.mrf.mxu0  ;;  %v9274_v42 = vpop.f32.mrf.mxu1 }
0x1717   :  { %v10759_v13 = vmul.f32 -1.442695, %v9295_v37  ;;  %v9296_v23 = vadd.f32 %v9233_v57, %v16625_v6  ;;  %v10761_v59 = vmul.f32 -1.442695, %v9297_v18  ;;  %v9298_v54 = vadd.f32 %v9274_v42, %v16641_v0 }
0x1718   :  { %v9235_v16 = vpop.f32.mrf.mxu0  ;;  %v9276_v24 = vpop.f32.mrf.mxu1 }
0x1719   :  { %11538 = vpow2.f32 %v10759_v13  ;;  %v10760_v55 = vmul.f32 -1.442695, %v9296_v23 }
0x171a   :  { %v9236_v41 = vpop.f32.mrf.mxu0  ;;  %v9277_v50 = vpop.f32.mrf.mxu1 }
0x171b   :  { %11540 = vpow2.f32 %v10760_v55 }
0x171c   :  { %11542 = vpow2.f32 %v10761_v59 }
0x1726   :  { %v11539_v11 = vpop.eup %11538 }
0x1727   :  { %v9327_v44 = vadd.f32 1.0, %v11539_v11 }
0x1728   :  { %v11541_v28 = vpop.eup %11540 }
0x1729   :  { %11544 = vrcp.f32 %v9327_v44  ;;  %v9328_v30 = vadd.f32 1.0, %v11541_v28  ;;  %v11543_v6 = vpop.eup %11542 }
0x172a   :  { %11546 = vtanh.f32 %v9298_v54  ;;  %v9329_v56 = vadd.f32 1.0, %v11543_v6 }
0x172b   :  { %11548 = vrcp.f32 %v9328_v30 }
0x172c   :  { %11550 = vrcp.f32 %v9329_v56 }
0x1736   :  { %v11545_v32 = vpop.eup %11544 }
0x1737   :  { %v11547_v60 = vpop.eup %11546 }
0x1738   :  { %v11549_v43 = vpop.eup %11548  ;;  %v9347_v51 = vmul.f32 %v11547_v60, %v11545_v32 }
0x1739   :  { %v9346_v26 = vmul.f32 %v11549_v43, %v9344_v36  ;;  %v11551_v0 = vpop.eup %11550 }
0x173b   :  { %v9348_v33 = vadd.f32 %v9347_v51, %v9346_v26 }
0x173d   :  { %11552 = vtanh.f32 %v9348_v33 }
0x174a   :  { %v11553_v15 = vpop.eup %11552 }
0x174b   :  { %v9352_v22 = vmul.f32 %v11553_v15, %v11551_v0 }
0x174d   :  { %9463 = vmatprep.mubr.f32.mxu0 %v9352_v22 }
0x174e   :  { %9464 = vmatmul.mubr.f32.vlgmr.msra.gmra.mxu0 %v9395_v4 }
0x180e   :  { %v10896_v47 = vpop.f32.mrf.mxu0 }
0x1810   :  { %v10897_v62 = vpop.f32.mrf.mxu0 }
0x1811   :  { %v10898_v61 = vadd.f32 %v10897_v62, %v10896_v47 }
0x1813   :  { %v9466_v5 = vadd.f32 %v10898_v61, %v10762_v2 }
0x1815   :  { %9470 = vst.msk [vmem:[#allocation2] sm:$0x3] %vm9469_vm9, %v9466_v5 }
0x1816   :  { %11573 = shalt.err (!%p11570_p4)
}
0x1817   :  { %9480 = dma.vmem_to_hbm [thread:$0]  %s9478_s6, 32, %s17142_s15, [#allocation3]  }
0x1818   :  { %11582 = dma.done.wait [#allocation3], 32  }
0x1819   :  { %11583 = vsyncadd [#allocation3], 4294967264 }
0x181a   :  { %9484 = vsyncpa [#allocation3], 1 }

</bundles_post_ra>
